<compile_context>
chip_gen: v6e
topology: v6e:2x2x1
jax: 0.10.0
libtpu: 0.0.40
codegen_flags: <defaults>
</compile_context>

<pallas_src>
import math

import jax
import jax.numpy as jnp
import numpy as np
from jax.experimental import pallas as pl
from jax.experimental.pallas import tpu as pltpu

LEAKY_SLOPE = 0.01                              # nn.LeakyReLU default slope

LATENT_C, LATENT_H, LATENT_W = 256, 7, 7        # nn.Unflatten(1, (256, 7, 7))
DECONV_CHANNELS = [(256, 64), (64, 32), (32, 16), (16, 3)]
N_PIX = LATENT_H * LATENT_W                     # 49 latent pixels
PATCH = 2 ** len(DECONV_CHANNELS)               # 16: each latent pixel -> 16x16 patch
OUT_C = DECONV_CHANNELS[-1][1]                  # 3
OUT_HW = LATENT_H * PATCH                       # 112
TILE_B = 8                                      # images folded into MXU M per grid step


# ---------------------------------------------------------------------------
# Pallas kernel: the whole 4-layer deconv stack for TILE_B batch elements.
# ---------------------------------------------------------------------------

def _decoder_kernel(z_ref, w1_ref, b1_ref, w2_ref, b2_ref, w3_ref, b3_ref,
                    w4_ref, b4_ref, o_ref):
    def layer(h, w_ref, b_ref):
        # bf16 x bf16 MXU matmul, f32 accumulation, fused bias + LeakyReLU
        # (max(y, a*y) instead of cmp/select).
        y = jnp.dot(h, w_ref[...], preferred_element_type=jnp.float32)
        y = y + b_ref[...]
        return jnp.maximum(y, LEAKY_SLOPE * y)

    h = z_ref[0]                                        # (M, 256)  bf16, M = TB*49
    h = layer(h, w1_ref, b1_ref).astype(jnp.bfloat16)   # (M, 256)
    h = layer(h, w2_ref, b2_ref).astype(jnp.bfloat16)   # (M, 512)
    h = layer(h, w3_ref, b3_ref).astype(jnp.bfloat16)   # (M, 1024)
    o_ref[0] = layer(h, w4_ref, b4_ref).astype(o_ref.dtype)   # (M, 768) f32


def _pallas_decoder(z3, packed):
    G, M, Cin = z3.shape
    n_cols = packed[-2].shape[1]                        # 768 = 16*16*3

    def const_spec(arr):                                # grid-invariant block
        nd = arr.ndim
        return pl.BlockSpec(arr.shape, lambda g: (0,) * nd)

    in_specs = [pl.BlockSpec((1, M, Cin), lambda g: (g, 0, 0))]
    in_specs += [const_spec(a) for a in packed]

    return pl.pallas_call(
        _decoder_kernel,
        out_shape=jax.ShapeDtypeStruct((G, M, n_cols), jnp.float32),
        grid_spec=pltpu.PrefetchScalarGridSpec(
            num_scalar_prefetch=0,
            grid=(G,),
            in_specs=in_specs,
            out_specs=pl.BlockSpec((1, M, n_cols), lambda g: (g, 0, 0)),
        ),
        compiler_params=pltpu.CompilerParams(
            dimension_semantics=("parallel",),          # megacore on v7x
            vmem_limit_bytes=32 * 1024 * 1024,
        ),
    )(z3, *packed)


# ---------------------------------------------------------------------------
# Weight pre-packing: ConvTranspose2d(k=2,s=2) -> block-diagonal matmul.
# ---------------------------------------------------------------------------

def _expand_deconv(w_bf16, b, n_rep):
    """(Cin, Cout, 2, 2) -> (n_rep^2*Cin, (2*n_rep)^2*Cout) block-diagonal
    operand; output columns ordered (row-bits, col-bits, channel)."""
    cin, cout = w_bf16.shape[0], w_bf16.shape[1]
    eye = jnp.eye(n_rep, dtype=w_bf16.dtype)
    # rows: (A_prev, B_prev, c_prev)   cols: (A_prev, kh, B_prev, kw, c_new)
    m = jnp.einsum("ax,by,iokl->abixkylo", eye, eye, w_bf16)
    m = m.reshape(n_rep * n_rep * cin, (2 * n_rep) * (2 * n_rep) * cout)
    bias = jnp.tile(b, (2 * n_rep) * (2 * n_rep)).reshape(1, -1)
    return m.astype(jnp.bfloat16), bias.astype(jnp.float32)


def prepare_decoder_params(params):
    packed = []
    for t, layer in enumerate(params["layers"]):
        w_bf16 = layer["w"].astype(jnp.bfloat16)
        m, bias = _expand_deconv(w_bf16, layer["b"], n_rep=2 ** t)
        packed += [m, bias]
    return tuple(packed)


# ---------------------------------------------------------------------------
# Forward pass (mirrors Decoder.forward) and pure-JAX reference.
# ---------------------------------------------------------------------------

@jax.jit
def decoder_forward(packed, x):
    """x: (B, 12544) latent -> (B, 3, 112, 112), like Decoder.forward."""
    B = x.shape[0]
    # Unflatten -> (B, 256, 7, 7), then per-pixel rows (B, 49, 256) for the MXU.
    z = x.reshape(B, LATENT_C, LATENT_H, LATENT_W)
    z = z.transpose(0, 2, 3, 1).reshape(B, N_PIX, LATENT_C).astype(jnp.bfloat16)

    # Fold TILE_B images into the matmul M dimension per grid step.
    tb = min(TILE_B, B)
    g = -(-B // tb)                       # cdiv
    bp = g * tb
    if bp != B:
        z = jnp.pad(z, ((0, bp - B), (0, 0), (0, 0)))
    z3 = z.reshape(g, tb * N_PIX, LATENT_C)

    y = _pallas_decoder(z3, packed)                       # (g, tb*49, 768)
    y = y.reshape(bp, N_PIX, -1)[:B]                      # drop batch padding
    # Columns are (row-bits R, col-bits C, channel); scatter each 16x16 patch
    # into NCHW:  out[b, c, 16h+R, 16w+C] = y[b, h*7+w, (R*16+C)*3+c].
    y = y.reshape(B, LATENT_H, LATENT_W, PATCH, PATCH, OUT_C)
    y = jnp.transpose(y, (0, 5, 1, 3, 2, 4))              # (B, 3, 7, 16, 7, 16)
    return y.reshape(B, OUT_C, OUT_HW, OUT_HW)


def decoder_reference(params, x):
    """Pure-JAX reference (same bf16 weight/activation rounding as kernel)."""
    B = x.shape[0]
    h = x.astype(jnp.bfloat16).astype(jnp.float32)
    h = h.reshape(B, LATENT_C, LATENT_H, LATENT_W)
    n_layers = len(params["layers"])
    for t, layer in enumerate(params["layers"]):
        w = layer["w"].astype(jnp.bfloat16).astype(jnp.float32)
        b = layer["b"]
        Bsz, _, H, W = h.shape
        cout = w.shape[1]
        y = jnp.einsum("bihw,iokl->bohkwl", h, w,
                       precision=jax.lax.Precision.HIGHEST)
        y = y.reshape(Bsz, cout, 2 * H, 2 * W) + b[None, :, None, None]
        h = jnp.maximum(y, LEAKY_SLOPE * y)
        if t != n_layers - 1:
            h = h.astype(jnp.bfloat16).astype(jnp.float32)
    return h


# ---------------------------------------------------------------------------
# Deterministic synthetic parameters (no checkpoint loading).
# ---------------------------------------------------------------------------

def init_params(key):
    keys = jax.random.split(key, 2 * len(DECONV_CHANNELS))
    layers = []
    for idx, (cin, cout) in enumerate(DECONV_CHANNELS):
        w = jax.random.normal(keys[2 * idx], (cin, cout, 2, 2),
                              jnp.float32) / math.sqrt(cin * 4)
        b = 0.01 * jax.random.normal(keys[2 * idx + 1], (cout,), jnp.float32)
        layers.append({"w": w, "b": b})
    return {"layers": layers}


# ---------------------------------------------------------------------------

if __name__ == "__main__":
    key = jax.random.PRNGKey(0)
    k_param, k_x = jax.random.split(key)

    LATENT_DIMS = LATENT_C * LATENT_H * LATENT_W        # 12544 (from Unflatten)

    params = init_params(k_param)
    packed = prepare_decoder_params(params)

    # Small-batch check (B=2 -> single grid step, M = 2*49 = 98 rows).
    B = 2
    x = jax.random.normal(k_x, (B, LATENT_DIMS), jnp.float32)
    out = decoder_forward(packed, x)
    jax.block_until_ready(out)
    assert out.shape == (B, OUT_C, OUT_HW, OUT_HW)       # (2, 3, 112, 112)
    ref = decoder_reference(params, x)
    np.testing.assert_allclose(np.asarray(out), np.asarray(ref),
                               rtol=2e-2, atol=2e-2)

    # Larger-batch check exercising batch folding, padding and the multi-step
    # grid (B=10 -> TILE_B=8, grid=2, padded to 16 images, M = 392).
    B2 = 10
    x2 = jax.random.normal(jax.random.PRNGKey(1), (B2, LATENT_DIMS), jnp.float32)
    out2 = decoder_forward(packed, x2)
    jax.block_until_ready(out2)
    assert out2.shape == (B2, OUT_C, OUT_HW, OUT_HW)
    ref2 = decoder_reference(params, x2)
    np.testing.assert_allclose(np.asarray(out2), np.asarray(ref2),
                               rtol=2e-2, atol=2e-2)

    print("KERNEL_OK")
</pallas_src>

<mosaic_0001>
module attributes {stable_mosaic.version = 11 : i64} {
  func.func @_decoder_kernel(%arg0: i32, %arg1: memref<1x98x256xbf16, #tpu.memory_space<vmem>>, %arg2: memref<256x256xbf16, #tpu.memory_space<vmem>>, %arg3: memref<1x256xf32, #tpu.memory_space<vmem>>, %arg4: memref<256x512xbf16, #tpu.memory_space<vmem>>, %arg5: memref<1x512xf32, #tpu.memory_space<vmem>>, %arg6: memref<512x1024xbf16, #tpu.memory_space<vmem>>, %arg7: memref<1x1024xf32, #tpu.memory_space<vmem>>, %arg8: memref<1024x768xbf16, #tpu.memory_space<vmem>>, %arg9: memref<1x768xf32, #tpu.memory_space<vmem>>, %arg10: memref<1x98x768xf32, #tpu.memory_space<vmem>>) attributes {dimension_semantics = [#tpu.dimension_semantics<parallel>], iteration_bounds = array<i64: 1>, scalar_prefetch = 0 : i64, scratch_operands = 0 : i64, tpu.core_type = #tpu.core_type<tc>, window_params = [{transform_indices = @transform_0, window_bounds = array<i64: 1, 98, 256>}, {pipeline_mode = #tpu.pipeline_mode<synchronous>, transform_indices = @transform_1, window_bounds = array<i64: 256, 256>}, {pipeline_mode = #tpu.pipeline_mode<synchronous>, transform_indices = @transform_2, window_bounds = array<i64: 1, 256>}, {pipeline_mode = #tpu.pipeline_mode<synchronous>, transform_indices = @transform_3, window_bounds = array<i64: 256, 512>}, {pipeline_mode = #tpu.pipeline_mode<synchronous>, transform_indices = @transform_4, window_bounds = array<i64: 1, 512>}, {pipeline_mode = #tpu.pipeline_mode<synchronous>, transform_indices = @transform_5, window_bounds = array<i64: 512, 1024>}, {pipeline_mode = #tpu.pipeline_mode<synchronous>, transform_indices = @transform_6, window_bounds = array<i64: 1, 1024>}, {pipeline_mode = #tpu.pipeline_mode<synchronous>, transform_indices = @transform_7, window_bounds = array<i64: 1024, 768>}, {pipeline_mode = #tpu.pipeline_mode<synchronous>, transform_indices = @transform_8, window_bounds = array<i64: 1, 768>}, {transform_indices = @transform_9, window_bounds = array<i64: 1, 98, 768>}]} {
    %c0 = arith.constant 0 : index
    %c0_0 = arith.constant 0 : index
    %c0_1 = arith.constant 0 : index
    %0 = vector.load %arg1[%c0, %c0_0, %c0_1] : memref<1x98x256xbf16, #tpu.memory_space<vmem>>, vector<1x98x256xbf16>
    %1 = vector.shape_cast %0 : vector<1x98x256xbf16> to vector<98x256xbf16>
    %c0_2 = arith.constant 0 : index
    %c0_3 = arith.constant 0 : index
    %2 = vector.load %arg2[%c0_2, %c0_3] : memref<256x256xbf16, #tpu.memory_space<vmem>>, vector<256x256xbf16>
    %cst = arith.constant dense<0.000000e+00> : vector<98x256xf32>
    %3 = tpu.matmul %1, %2, %cst {dimension_numbers = #tpu.dot_dimension_numbers<[1], [0], [0], [1], [0, 0, 1, 1], [], []>} : vector<98x256xbf16>, vector<256x256xbf16>, vector<98x256xf32> -> vector<98x256xf32>
    %c0_4 = arith.constant 0 : index
    %c0_5 = arith.constant 0 : index
    %4 = vector.load %arg3[%c0_4, %c0_5] : memref<1x256xf32, #tpu.memory_space<vmem>>, vector<1x256xf32>
    %5 = vector.broadcast %4 : vector<1x256xf32> to vector<98x256xf32>
    %6 = arith.addf %3, %5 : vector<98x256xf32>
    %cst_6 = arith.constant 0.00999999977 : f32
    %7 = vector.broadcast %cst_6 : f32 to vector<98x256xf32>
    %8 = arith.mulf %7, %6 : vector<98x256xf32>
    %9 = arith.maximumf %6, %8 : vector<98x256xf32>
    %10 = arith.truncf %9 : vector<98x256xf32> to vector<98x256xbf16>
    %c0_7 = arith.constant 0 : index
    %c0_8 = arith.constant 0 : index
    %11 = vector.load %arg4[%c0_7, %c0_8] : memref<256x512xbf16, #tpu.memory_space<vmem>>, vector<256x512xbf16>
    %cst_9 = arith.constant dense<0.000000e+00> : vector<98x512xf32>
    %12 = tpu.matmul %10, %11, %cst_9 {dimension_numbers = #tpu.dot_dimension_numbers<[1], [0], [0], [1], [0, 0, 1, 1], [], []>} : vector<98x256xbf16>, vector<256x512xbf16>, vector<98x512xf32> -> vector<98x512xf32>
    %c0_10 = arith.constant 0 : index
    %c0_11 = arith.constant 0 : index
    %13 = vector.load %arg5[%c0_10, %c0_11] : memref<1x512xf32, #tpu.memory_space<vmem>>, vector<1x512xf32>
    %14 = vector.broadcast %13 : vector<1x512xf32> to vector<98x512xf32>
    %15 = arith.addf %12, %14 : vector<98x512xf32>
    %cst_12 = arith.constant 0.00999999977 : f32
    %16 = vector.broadcast %cst_12 : f32 to vector<98x512xf32>
    %17 = arith.mulf %16, %15 : vector<98x512xf32>
    %18 = arith.maximumf %15, %17 : vector<98x512xf32>
    %19 = arith.truncf %18 : vector<98x512xf32> to vector<98x512xbf16>
    %c0_13 = arith.constant 0 : index
    %c0_14 = arith.constant 0 : index
    %20 = vector.load %arg6[%c0_13, %c0_14] : memref<512x1024xbf16, #tpu.memory_space<vmem>>, vector<512x1024xbf16>
    %cst_15 = arith.constant dense<0.000000e+00> : vector<98x1024xf32>
    %21 = tpu.matmul %19, %20, %cst_15 {dimension_numbers = #tpu.dot_dimension_numbers<[1], [0], [0], [1], [0, 0, 1, 1], [], []>} : vector<98x512xbf16>, vector<512x1024xbf16>, vector<98x1024xf32> -> vector<98x1024xf32>
    %c0_16 = arith.constant 0 : index
    %c0_17 = arith.constant 0 : index
    %22 = vector.load %arg7[%c0_16, %c0_17] : memref<1x1024xf32, #tpu.memory_space<vmem>>, vector<1x1024xf32>
    %23 = vector.broadcast %22 : vector<1x1024xf32> to vector<98x1024xf32>
    %24 = arith.addf %21, %23 : vector<98x1024xf32>
    %cst_18 = arith.constant 0.00999999977 : f32
    %25 = vector.broadcast %cst_18 : f32 to vector<98x1024xf32>
    %26 = arith.mulf %25, %24 : vector<98x1024xf32>
    %27 = arith.maximumf %24, %26 : vector<98x1024xf32>
    %28 = arith.truncf %27 : vector<98x1024xf32> to vector<98x1024xbf16>
    %c0_19 = arith.constant 0 : index
    %c0_20 = arith.constant 0 : index
    %29 = vector.load %arg8[%c0_19, %c0_20] : memref<1024x768xbf16, #tpu.memory_space<vmem>>, vector<1024x768xbf16>
    %cst_21 = arith.constant dense<0.000000e+00> : vector<98x768xf32>
    %30 = tpu.matmul %28, %29, %cst_21 {dimension_numbers = #tpu.dot_dimension_numbers<[1], [0], [0], [1], [0, 0, 1, 1], [], []>} : vector<98x1024xbf16>, vector<1024x768xbf16>, vector<98x768xf32> -> vector<98x768xf32>
    %c0_22 = arith.constant 0 : index
    %c0_23 = arith.constant 0 : index
    %31 = vector.load %arg9[%c0_22, %c0_23] : memref<1x768xf32, #tpu.memory_space<vmem>>, vector<1x768xf32>
    %32 = vector.broadcast %31 : vector<1x768xf32> to vector<98x768xf32>
    %33 = arith.addf %30, %32 : vector<98x768xf32>
    %cst_24 = arith.constant 0.00999999977 : f32
    %34 = vector.broadcast %cst_24 : f32 to vector<98x768xf32>
    %35 = arith.mulf %34, %33 : vector<98x768xf32>
    %36 = arith.maximumf %33, %35 : vector<98x768xf32>
    %c0_25 = arith.constant 0 : index
    %c0_26 = arith.constant 0 : index
    %c0_27 = arith.constant 0 : index
    %37 = vector.load %arg10[%c0_25, %c0_26, %c0_27] : memref<1x98x768xf32, #tpu.memory_space<vmem>>, vector<1x98x768xf32>
    %38 = vector.shape_cast %37 : vector<1x98x768xf32> to vector<98x768xf32>
    %39 = vector.shape_cast %36 : vector<98x768xf32> to vector<1x98x768xf32>
    tpu.vector_store %arg10[%c0_25, %c0_26, %c0_27], %39 {strides = array<i32>} : memref<1x98x768xf32, #tpu.memory_space<vmem>>, vector<1x98x768xf32>,
    return
  }
  func.func @transform_0(%arg0: i32) -> (i32, i32, i32) {
    %c0_i32 = arith.constant 0 : i32
    %c0_i32_0 = arith.constant 0 : i32
    %c0_i32_1 = arith.constant 0 : i32
    return %arg0, %c0_i32, %c0_i32_0 : i32, i32, i32
  }
  func.func @transform_1(%arg0: i32) -> (i32, i32) {
    %c0_i32 = arith.constant 0 : i32
    %c0_i32_0 = arith.constant 0 : i32
    %c0_i32_1 = arith.constant 0 : i32
    return %c0_i32, %c0_i32_0 : i32, i32
  }
  func.func @transform_2(%arg0: i32) -> (i32, i32) {
    %c0_i32 = arith.constant 0 : i32
    %c0_i32_0 = arith.constant 0 : i32
    %c0_i32_1 = arith.constant 0 : i32
    return %c0_i32, %c0_i32_0 : i32, i32
  }
  func.func @transform_3(%arg0: i32) -> (i32, i32) {
    %c0_i32 = arith.constant 0 : i32
    %c0_i32_0 = arith.constant 0 : i32
    %c0_i32_1 = arith.constant 0 : i32
    return %c0_i32, %c0_i32_0 : i32, i32
  }
  func.func @transform_4(%arg0: i32) -> (i32, i32) {
    %c0_i32 = arith.constant 0 : i32
    %c0_i32_0 = arith.constant 0 : i32
    %c0_i32_1 = arith.constant 0 : i32
    return %c0_i32, %c0_i32_0 : i32, i32
  }
  func.func @transform_5(%arg0: i32) -> (i32, i32) {
    %c0_i32 = arith.constant 0 : i32
    %c0_i32_0 = arith.constant 0 : i32
    %c0_i32_1 = arith.constant 0 : i32
    return %c0_i32, %c0_i32_0 : i32, i32
  }
  func.func @transform_6(%arg0: i32) -> (i32, i32) {
    %c0_i32 = arith.constant 0 : i32
    %c0_i32_0 = arith.constant 0 : i32
    %c0_i32_1 = arith.constant 0 : i32
    return %c0_i32, %c0_i32_0 : i32, i32
  }
  func.func @transform_7(%arg0: i32) -> (i32, i32) {
    %c0_i32 = arith.constant 0 : i32
    %c0_i32_0 = arith.constant 0 : i32
    %c0_i32_1 = arith.constant 0 : i32
    return %c0_i32, %c0_i32_0 : i32, i32
  }
  func.func @transform_8(%arg0: i32) -> (i32, i32) {
    %c0_i32 = arith.constant 0 : i32
    %c0_i32_0 = arith.constant 0 : i32
    %c0_i32_1 = arith.constant 0 : i32
    return %c0_i32, %c0_i32_0 : i32, i32
  }
  func.func @transform_9(%arg0: i32) -> (i32, i32, i32) {
    %c0_i32 = arith.constant 0 : i32
    %c0_i32_0 = arith.constant 0 : i32
    %c0_i32_1 = arith.constant 0 : i32
    return %arg0, %c0_i32, %c0_i32_0 : i32, i32, i32
  }
}

</mosaic_0001>

<bundles_post_ra>
// kernel: decoder_forward.1
= control target key start
LH: loop header
LB: loop body
LE: loop exit
PB: predicated region body
PF: predicated region fallthrough
CT: control target
= control target key end

     0   :  { %14 = vsyncpa [#allocation3], 0  ;;  %s13080_s0 = inlined_call_operand.vmem [shape: bf16[1,98,256], index: 0, kind: input, shape index: {}]   ;;  %s13081_s1 = inlined_call_operand.hbm [shape: bf16[256,256], index: 1, kind: input, shape index: {}]   ;;  %s13082_s2 = inlined_call_operand.hbm [shape: f32[1,256], index: 2, kind: input, shape index: {}]   ;;  %s13083_s3 = inlined_call_operand.hbm [shape: bf16[256,512], index: 3, kind: input, shape index: {}]   ;;  %s13084_s4 = inlined_call_operand.hbm [shape: f32[1,512], index: 4, kind: input, shape index: {}]   ;;  %s13085_s5 = inlined_call_operand.hbm [shape: bf16[512,1024], index: 5, kind: input, shape index: {}]   ;;  %s13086_s6 = inlined_call_operand.hbm [shape: f32[1,1024], index: 6, kind: input, shape index: {}]   ;;  %s13087_s7 = inlined_call_operand.vmem [shape: bf16[1024,768], index: 7, kind: input, shape index: {}]   ;;  %s13088_s8 = inlined_call_operand.hbm [shape: f32[1,768], index: 8, kind: input, shape index: {}]   ;;  %s13089_s9 = inlined_call_operand.vmem [shape: f32[1,98,768], index: 9, kind: output, shape index: {}]  }
   0x1   :  { %15 = vsyncpa [#allocation5], 0 }
   0x2   :  { %16 = vsyncpa [#allocation8], 0 }
   0x3   :  { %17 = vsyncpa [#allocation11], 0  ;;  %s9435_s30 = smov [#allocation4]   ;;  %s9436_s11 = smov [#allocation7]  }
   0x4   :  { %s38_s10 = sshll.u32 %s9435_s30, 4  ;;  %s60_s12 = sshll.u32 %s9436_s11, 4  ;;  %s39_s10 = int_to_ptr.vmem [resolvable:$true] %s38_s10  ;;  %s61_s12 = int_to_ptr.vmem [resolvable:$true] %s60_s12 }
   0x5   :  { %s9295_s13 = scalar_lea.vmem %s39_s10, 32  ;;  %p9300_p1 = scmp.lt.s32.totalorder %s39_s10, %s39_s10 }
   0x6   :  { %p9296_p0 = scmp.ne.s32.totalorder %s39_s10, %s9295_s13  ;;  %p9301_p2 = scmp.lt.s32.totalorder %s9295_s13, %s9295_s13 }
   0x8   :  { %p9302_p3 = por %p9301_p2, %p9300_p1 }
   0xa   :  { %p9303_p4 = pnand %p9302_p3, %p9296_p0 }
   0xc   :  { %9306 = shalt.err (!%p9303_p4)
}
   0xd   :  { %41 = dma.hbm_to_vmem [thread:$0]  %s13082_s2, 32, %s39_s10, [#allocation5]  }
   0xe   :  { %s9315_s16 = scalar_lea.vmem %s61_s12, 64  ;;  %p9320_p6 = scmp.lt.s32.totalorder %s61_s12, %s61_s12 }
   0xf   :  { %p9316_p5 = scmp.ne.s32.totalorder %s61_s12, %s9315_s16  ;;  %p9321_p7 = scmp.lt.s32.totalorder %s9315_s16, %s9315_s16 }
  0x11   :  { %p9322_p8 = por %p9321_p7, %p9320_p6 }
  0x13   :  { %p9323_p9 = pnand %p9322_p8, %p9316_p5 }
  0x15   :  { %9326 = shalt.err (!%p9323_p9)
}
  0x16   :  { %63 = dma.hbm_to_vmem [thread:$0]  %s13084_s4, 64, %s61_s12, [#allocation8]  }
  0x17   :  { %s9437_s19 = smov [#allocation10]   ;;  %s9438_s21 = smov [#allocation2]  }
  0x18   :  { %s82_s20 = sshll.u32 %s9437_s19, 4  ;;  %s25_s22 = sshll.u32 %s9438_s21, 4  ;;  %s83_s20 = int_to_ptr.vmem [resolvable:$true] %s82_s20  ;;  %s26_s22 = int_to_ptr.vmem [resolvable:$true] %s25_s22 }
  0x19   :  { %s9335_s23 = scalar_lea.vmem %s83_s20, 128  ;;  %p9340_p11 = scmp.lt.s32.totalorder %s83_s20, %s83_s20 }
  0x1a   :  { %p9336_p10 = scmp.ne.s32.totalorder %s83_s20, %s9335_s23  ;;  %p9341_p12 = scmp.lt.s32.totalorder %s9335_s23, %s9335_s23 }
  0x1c   :  { %p9342_p13 = por %p9341_p12, %p9340_p11 }
  0x1e   :  { %p9343_p0 = pnand %p9342_p13, %p9336_p10 }
  0x20   :  { %9346 = shalt.err (!%p9343_p0)
}
  0x21   :  { %85 = dma.hbm_to_vmem [thread:$0]  %s13086_s6, 128, %s83_s20, [#allocation11]  }
  0x22   :  { %s9355_s25 = scalar_lea.vmem %s26_s22, 4096  ;;  %p9360_p2 = scmp.lt.s32.totalorder %s26_s22, %s26_s22 }
  0x23   :  { %p9356_p1 = scmp.ne.s32.totalorder %s26_s22, %s9355_s25  ;;  %p9361_p3 = scmp.lt.s32.totalorder %s9355_s25, %s9355_s25 }
  0x25   :  { %p9362_p4 = por %p9361_p3, %p9360_p2 }
  0x27   :  { %p9363_p5 = pnand %p9362_p4, %p9356_p1 }
  0x29   :  { %9366 = shalt.err (!%p9363_p5)
}
  0x2a   :  { %s9439_s4 = smov 128   ;;  %s9440_s26 = smov 8  }
  0x2b   :  { %31 = dma.hbm_to_vmem [thread:$0]  %s13081_s1, 4096, %s26_s22, [#allocation3], %s9439_s4, %s9439_s4, %s9440_s26  }
  0x2c   :  { %s9441_s29 = smov [#allocation6]  }
  0x2d   :  { %s47_s30 = sshll.u32 %s9441_s29, 4  ;;  %s48_s30 = int_to_ptr.vmem [resolvable:$true] %s47_s30 }
  0x2e   :  { %s9375_s10 = scalar_lea.vmem %s48_s30, 8192  ;;  %p9380_p7 = scmp.lt.s32.totalorder %s48_s30, %s48_s30 }
  0x2f   :  { %p9376_p6 = scmp.ne.s32.totalorder %s48_s30, %s9375_s10  ;;  %p9381_p8 = scmp.lt.s32.totalorder %s9375_s10, %s9375_s10 }
  0x31   :  { %p9382_p9 = por %p9381_p8, %p9380_p7 }
  0x33   :  { %p9383_p10 = pnand %p9382_p9, %p9376_p6 }
  0x35   :  { %9386 = shalt.err (!%p9383_p10)
}
  0x36   :  { %s9442_s6 = smov 256   ;;  %s9443_s11 = smov 16  }
  0x37   :  { %53 = dma.hbm_to_vmem [thread:$0]  %s13083_s3, 8192, %s48_s30, [#allocation5], %s9442_s6, %s9442_s6, %s9443_s11  }
  0x38   :  { %s9444_s14 = smov [#allocation9]  }
  0x39   :  { %s69_s15 = sshll.u32 %s9444_s14, 4  ;;  %s70_s15 = int_to_ptr.vmem [resolvable:$true] %s69_s15 }
  0x3a   :  { %s9395_s1 = scalar_lea.vmem %s70_s15, 32768  ;;  %p9400_p12 = scmp.lt.s32.totalorder %s70_s15, %s70_s15 }
  0x3b   :  { %p9396_p11 = scmp.ne.s32.totalorder %s70_s15, %s9395_s1  ;;  %p9401_p13 = scmp.lt.s32.totalorder %s9395_s1, %s9395_s1 }
  0x3d   :  { %p9402_p0 = por %p9401_p13, %p9400_p12 }
  0x3f   :  { %p9403_p1 = pnand %p9402_p0, %p9396_p11 }
  0x41   :  { %9406 = shalt.err (!%p9403_p1)
}
  0x42   :  { %s9445_s16 = smov 512   ;;  %s9446_s17 = smov 32  }
  0x43   :  { %75 = dma.hbm_to_vmem [thread:$0]  %s13085_s5, 32768, %s70_s15, [#allocation8], %s9445_s16, %s9445_s16, %s9446_s17  }
  0x44   :  { %s9447_s20 = smov [#allocation12]  }
  0x45   :  { %s94_s21 = sshll.u32 %s9447_s20, 4  ;;  %s95_s21 = int_to_ptr.vmem [resolvable:$true] %s94_s21 }
  0x46   :  { %s9415_s3 = scalar_lea.vmem %s95_s21, 96  ;;  %p9420_p3 = scmp.lt.s32.totalorder %s95_s21, %s95_s21 }
  0x47   :  { %p9416_p2 = scmp.ne.s32.totalorder %s95_s21, %s9415_s3  ;;  %p9421_p4 = scmp.lt.s32.totalorder %s9415_s3, %s9415_s3 }
  0x49   :  { %p9422_p5 = por %p9421_p4, %p9420_p3 }
  0x4b   :  { %p9423_p6 = pnand %p9422_p5, %p9416_p2 }
  0x4d   :  { %9426 = shalt.err (!%p9423_p6)
}
  0x4e   :  { %97 = dma.hbm_to_vmem [thread:$0]  %s13088_s8, 96, %s95_s21, [#allocation11]  }
  0x4f   :  { %9427 = dma.done.wait [#allocation3], 4096  }
  0x50   :  { %9428 = vsyncadd [#allocation3], 4294963200 }
  0x51   :  { %9429 = dma.done.wait [#allocation5], 8224  }
  0x52   :  { %9430 = vsyncadd [#allocation5], 4294959072 }
  0x53   :  { %9431 = dma.done.wait [#allocation8], 32832  }
  0x54   :  { %9432 = vsyncadd [#allocation8], 4294934464 }
  0x55   :  { %9433 = dma.done.wait [#allocation11], 224  }
  0x56   :  { %9434 = vsyncadd [#allocation11], 4294967072  ;;  %v8545_v0 = vld [vmem:[#allocation2 + $0x74] ss:$8 sps:$4 sm:$0xff]   ;;  %v8547_v1 = vld [vmem:[#allocation2 + $0x70] ss:$8 sps:$4 sm:$0xff]  }
  0x57   :  { %403 = vmatprep.subr.bf16.mxu0 %v8545_v0  ;;  %v8548_v2 = vld [vmem:[#allocation2 + $0x64] ss:$8 sps:$4 sm:$0xff]   ;;  %v8550_v3 = vld [vmem:[#allocation2 + $0x60] ss:$8 sps:$4 sm:$0xff]   ;;  %v8551_v4 = vld [vmem:[#allocation2 + $0x54] ss:$8 sps:$4 sm:$0xff]  }
  0x58   :  { %404 = vmatpush1.bf16.msra.mxu0 %v8547_v1  ;;  %v8553_v5 = vld [vmem:[#allocation2 + $0x50] ss:$8 sps:$4 sm:$0xff]   ;;  %v8554_v6 = vld [vmem:[#allocation2 + $0x44] ss:$8 sps:$4 sm:$0xff]   ;;  %v8556_v7 = vld [vmem:[#allocation2 + $0x40] ss:$8 sps:$4 sm:$0xff]  }
  0x59   :  { %405 = vmatprep.subr.bf16.mxu0 %v8548_v2  ;;  %v8557_v8 = vld [vmem:[#allocation2 + $0x34] ss:$8 sps:$4 sm:$0xff]   ;;  %v8559_v9 = vld [vmem:[#allocation2 + $0x30] ss:$8 sps:$4 sm:$0xff]   ;;  %v8560_v10 = vld [vmem:[#allocation2 + $0x24] ss:$8 sps:$4 sm:$0xff]  }
  0x5a   :  { %v8562_v11 = vld [vmem:[#allocation2 + $0x20] ss:$8 sps:$4 sm:$0xff]   ;;  %v8563_v12 = vld [vmem:[#allocation2 + $0x14] ss:$8 sps:$4 sm:$0xff]   ;;  %v8595_v13 = vld [vmem:[%s13080_s0 + $0x4] ss:$8 sps:$4 sm:$0xff]  }
  0x5b   :  { %v8565_v14 = vld [vmem:[#allocation2 + $0x10] ss:$8 sps:$4 sm:$0xff]   ;;  %v8566_v15 = vld [vmem:[#allocation2 + $0x4] ss:$8 sps:$4 sm:$0xff]   ;;  %435 = vmatprep.mubr.bf16.mxu0 %v8595_v13  ;;  %v8568_v16 = vld [vmem:[#allocation2] ss:$8 sps:$4 sm:$0xff]  }
  0x5c   :  { %406 = vmatpush1.bf16.msra.mxu0 %v8550_v3  ;;  %v8569_v17 = vld [vmem:[#allocation2 + $0xf4] ss:$8 sps:$4 sm:$0xff]   ;;  %v8571_v19 = vld [vmem:[#allocation2 + $0xf0] ss:$8 sps:$4 sm:$0xff]   ;;  %v8572_v20 = vld [vmem:[#allocation2 + $0xe4] ss:$8 sps:$4 sm:$0xff]  }
  0x5d   :  { %407 = vmatprep.subr.bf16.mxu0 %v8551_v4  ;;  %v8613_v18 = vld [vmem:[#allocation6 + $0xe4] ss:$16 sps:$4 sm:$0xff]   ;;  %v8618_v21 = vld [vmem:[#allocation6 + $0xe0] ss:$16 sps:$4 sm:$0xff]   ;;  %v8617_v51 = vld [vmem:[#allocation6 + $0xec] ss:$16 sps:$4 sm:$0xff]  }
  0x5e   :  { %976 = vmatprep.subr.bf16.mxu1 %v8613_v18  ;;  %v8619_v22 = vld [vmem:[#allocation6 + $0xc4] ss:$16 sps:$4 sm:$0xff]   ;;  %v8624_v24 = vld [vmem:[#allocation6 + $0xc0] ss:$16 sps:$4 sm:$0xff]   ;;  %v8615_v53 = vld [vmem:[#allocation6 + $0xe8] ss:$16 sps:$4 sm:$0xff]  }
  0x5f   :  { %v8574_v23 = vld [vmem:[#allocation2 + $0xe0] ss:$8 sps:$4 sm:$0xff]   ;;  %977 = vmatpush1.bf16.msra.mxu1 %v8618_v21  ;;  %v8575_v26 = vld [vmem:[#allocation2 + $0xd4] ss:$8 sps:$4 sm:$0xff]   ;;  %v8577_v28 = vld [vmem:[#allocation2 + $0xd0] ss:$8 sps:$4 sm:$0xff]  }
  0x60   :  { %408 = vmatpush1.bf16.msra.mxu0 %v8553_v5  ;;  %978 = vmatprep.subr.bf16.mxu1 %v8619_v22  ;;  %v8625_v25 = vld [vmem:[#allocation6 + $0xa4] ss:$16 sps:$4 sm:$0xff]   ;;  %v8630_v27 = vld [vmem:[#allocation6 + $0xa0] ss:$16 sps:$4 sm:$0xff]   ;;  %v8623_v55 = vld [vmem:[#allocation6 + $0xcc] ss:$16 sps:$4 sm:$0xff]  }
  0x61   :  { %409 = vmatprep.subr.bf16.mxu0 %v8554_v6  ;;  %v8631_v29 = vld [vmem:[#allocation6 + $0x84] ss:$16 sps:$4 sm:$0xff]   ;;  %v8636_v32 = vld [vmem:[#allocation6 + $0x80] ss:$16 sps:$4 sm:$0xff]   ;;  %v8621_v58 = vld [vmem:[#allocation6 + $0xc8] ss:$16 sps:$4 sm:$0xff]  }
  0x62   :  { %v8578_v30 = vld [vmem:[#allocation2 + $0xc4] ss:$8 sps:$4 sm:$0xff]   ;;  %v8580_v31 = vld [vmem:[#allocation2 + $0xc0] ss:$8 sps:$4 sm:$0xff]   ;;  %v8581_v34 = vld [vmem:[#allocation2 + $0xb4] ss:$8 sps:$4 sm:$0xff]  }
  0x63   :  { %979 = vmatpush1.bf16.msra.mxu1 %v8624_v24  ;;  %v8637_v33 = vld [vmem:[#allocation6 + $0x64] ss:$16 sps:$4 sm:$0xff]   ;;  %v8642_v35 = vld [vmem:[#allocation6 + $0x60] ss:$16 sps:$4 sm:$0xff]   ;;  %v8629_v60 = vld [vmem:[#allocation6 + $0xac] ss:$16 sps:$4 sm:$0xff]  }
  0x64   :  { %410 = vmatpush1.bf16.msra.mxu0 %v8556_v7  ;;  %980 = vmatprep.subr.bf16.mxu1 %v8625_v25  ;;  %v8583_v36 = vld [vmem:[#allocation2 + $0xb0] ss:$8 sps:$4 sm:$0xff]   ;;  %v8584_v38 = vld [vmem:[#allocation2 + $0xa4] ss:$8 sps:$4 sm:$0xff]   ;;  %v8586_v39 = vld [vmem:[#allocation2 + $0xa0] ss:$8 sps:$4 sm:$0xff]  }
  0x65   :  { %411 = vmatprep.subr.bf16.mxu0 %v8557_v8  ;;  %v8643_v37 = vld [vmem:[#allocation6 + $0x44] ss:$16 sps:$4 sm:$0xff]   ;;  %v8648_v40 = vld [vmem:[#allocation6 + $0x40] ss:$16 sps:$4 sm:$0xff]   ;;  %v8627_v0 = vld [vmem:[#allocation6 + $0xa8] ss:$16 sps:$4 sm:$0xff]  }
  0x66   :  { %v8649_v41 = vld [vmem:[#allocation6 + $0x24] ss:$16 sps:$4 sm:$0xff]   ;;  %v8654_v43 = vld [vmem:[#allocation6 + $0x20] ss:$16 sps:$4 sm:$0xff]   ;;  %v8635_v1 = vld [vmem:[#allocation6 + $0x8c] ss:$16 sps:$4 sm:$0xff]  }
  0x67   :  { %981 = vmatpush1.bf16.msra.mxu1 %v8630_v27  ;;  %v8587_v42 = vld [vmem:[#allocation2 + $0x94] ss:$8 sps:$4 sm:$0xff]   ;;  %v8589_v44 = vld [vmem:[#allocation2 + $0x90] ss:$8 sps:$4 sm:$0xff]   ;;  %v8590_v46 = vld [vmem:[#allocation2 + $0x84] ss:$8 sps:$4 sm:$0xff]  }
  0x68   :  { %412 = vmatpush1.bf16.msra.mxu0 %v8559_v9  ;;  %982 = vmatprep.subr.bf16.mxu1 %v8631_v29  ;;  %v8655_v45 = vld [vmem:[#allocation6 + $0x4] ss:$16 sps:$4 sm:$0xff]   ;;  %v8660_v48 = vld [vmem:[#allocation6] ss:$16 sps:$4 sm:$0xff]   ;;  %v8633_v4 = vld [vmem:[#allocation6 + $0x88] ss:$16 sps:$4 sm:$0xff]  }
  0x69   :  { %413 = vmatprep.subr.bf16.mxu0 %v8560_v10  ;;  %v8592_v47 = vld [vmem:[#allocation2 + $0x80] ss:$8 sps:$4 sm:$0xff]   ;;  %v8596_v52 = vld [vmem:[%s13080_s0 + $0x14] ss:$8 sps:$4 sm:$0xff]   ;;  %v8598_v61 = vld [vmem:[%s13080_s0 + $0x10] ss:$8 sps:$4 sm:$0xff]  }
  0x6a   :  { %v8661_v49 = vld [vmem:[#allocation6 + $0x1e4] ss:$16 sps:$4 sm:$0xff]   ;;  %v8666_v54 = vld [vmem:[#allocation6 + $0x1e0] ss:$16 sps:$4 sm:$0xff]   ;;  %v8641_v5 = vld [vmem:[#allocation6 + $0x6c] ss:$16 sps:$4 sm:$0xff]  }
  0x6b   :  { %983 = vmatpush1.bf16.msra.mxu1 %v8636_v32  ;;  %v8593_v50 = vld [vmem:[%s13080_s0] ss:$8 sps:$4 sm:$0xff]   ;;  %v8599_v63 = vld [vmem:[%s13080_s0 + $0x24] ss:$8 sps:$4 sm:$0xff]   ;;  %v8602_v7 = vld [vmem:[%s13080_s0 + $0x34] ss:$8 sps:$4 sm:$0xff]  }
  0x6c   :  { %414 = vmatpush1.bf16.msra.mxu0 %v8562_v11  ;;  %984 = vmatprep.subr.bf16.mxu1 %v8637_v33  ;;  %v8667_v56 = vld [vmem:[#allocation6 + $0x1c4] ss:$16 sps:$4 sm:$0xff]   ;;  %v8672_v57 = vld [vmem:[#allocation6 + $0x1c0] ss:$16 sps:$4 sm:$0xff]   ;;  %v8639_v8 = vld [vmem:[#allocation6 + $0x68] ss:$16 sps:$4 sm:$0xff]  }
  0x6d   :  { %415 = vmatprep.subr.bf16.mxu0 %v8563_v12  ;;  %v8673_v59 = vld [vmem:[#allocation6 + $0x1a4] ss:$16 sps:$4 sm:$0xff]   ;;  %v8678_v62 = vld [vmem:[#allocation6 + $0x1a0] ss:$16 sps:$4 sm:$0xff]   ;;  %v8647_v9 = vld [vmem:[#allocation6 + $0x4c] ss:$16 sps:$4 sm:$0xff]  }
  0x6e   :  { %v8679_v2 = vld [vmem:[#allocation6 + $0x184] ss:$16 sps:$4 sm:$0xff]   ;;  %v8684_v3 = vld [vmem:[#allocation6 + $0x180] ss:$16 sps:$4 sm:$0xff]   ;;  %v8645_v10 = vld [vmem:[#allocation6 + $0x48] ss:$16 sps:$4 sm:$0xff]  }
  0x6f   :  { %985 = vmatpush1.bf16.msra.mxu1 %v8642_v35  ;;  %v8601_v6 = vld [vmem:[%s13080_s0 + $0x20] ss:$8 sps:$4 sm:$0xff]   ;;  %v8604_v12 = vld [vmem:[%s13080_s0 + $0x30] ss:$8 sps:$4 sm:$0xff]   ;;  %v8605_v13 = vld [vmem:[%s13080_s0 + $0x44] ss:$8 sps:$4 sm:$0xff]  }
  0x70   :  { %416 = vmatpush1.bf16.msra.mxu0 %v8565_v14  ;;  %986 = vmatprep.subr.bf16.mxu1 %v8643_v37  ;;  %v8653_v11 = vld [vmem:[#allocation6 + $0x2c] ss:$16 sps:$4 sm:$0xff]   ;;  %v8651_v14 = vld [vmem:[#allocation6 + $0x28] ss:$16 sps:$4 sm:$0xff]   ;;  %v8691_v35 = vld [vmem:[#allocation6 + $0x144] ss:$16 sps:$4 sm:$0xff]  }
  0x71   :  { %417 = vmatprep.subr.bf16.mxu0 %v8566_v15  ;;  %v8659_v15 = vld [vmem:[#allocation6 + $0xc] ss:$16 sps:$4 sm:$0xff]   ;;  %v8669_v22 = vld [vmem:[#allocation6 + $0x1c8] ss:$16 sps:$4 sm:$0xff]  }
  0x72   :  { %v8607_v18 = vld [vmem:[%s13080_s0 + $0x40] ss:$8 sps:$4 sm:$0xff]   ;;  %v8610_v25 = vld [vmem:[%s13080_s0 + $0x50] ss:$8 sps:$4 sm:$0xff]  }
  0x73   :  { %987 = vmatpush1.bf16.msra.mxu1 %v8648_v40  ;;  %v8671_v21 = vld [vmem:[#allocation6 + $0x1cc] ss:$16 sps:$4 sm:$0xff]   ;;  %v8681_v29 = vld [vmem:[#allocation6 + $0x188] ss:$16 sps:$4 sm:$0xff]  }
  0x74   :  { %418 = vmatpush1.bf16.msra.mxu0 %v8568_v16  ;;  %988 = vmatprep.subr.bf16.mxu1 %v8649_v41  ;;  %v8657_v16 = vld [vmem:[#allocation6 + $0x8] ss:$16 sps:$4 sm:$0xff]   ;;  %v8677_v24 = vld [vmem:[#allocation6 + $0x1ac] ss:$16 sps:$4 sm:$0xff]  }
  0x75   :  { %419 = vmatprep.subr.bf16.mxu0 %v8569_v17  ;;  %v8665_v17 = vld [vmem:[#allocation6 + $0x1ec] ss:$16 sps:$4 sm:$0xff]   ;;  %v8687_v33 = vld [vmem:[#allocation6 + $0x168] ss:$16 sps:$4 sm:$0xff]  }
  0x76   :  { %v8683_v27 = vld [vmem:[#allocation6 + $0x18c] ss:$16 sps:$4 sm:$0xff]   ;;  %v8693_v37 = vld [vmem:[#allocation6 + $0x148] ss:$16 sps:$4 sm:$0xff]  }
  0x77   :  { %989 = vmatpush1.bf16.msra.mxu1 %v8654_v43  ;;  %v8689_v32 = vld [vmem:[#allocation6 + $0x16c] ss:$16 sps:$4 sm:$0xff]   ;;  %v8699_v41 = vld [vmem:[#allocation6 + $0x128] ss:$16 sps:$4 sm:$0xff]   ;;  %v8703_v43 = vld [vmem:[#allocation6 + $0x104] ss:$16 sps:$4 sm:$0xff]  }
  0x78   :  { %420 = vmatpush2.bf16.msra.mxu0 %v8571_v19  ;;  %990 = vmatprep.subr.bf16.mxu1 %v8655_v45  ;;  %v8608_v19 = vld [vmem:[%s13080_s0 + $0x54] ss:$8 sps:$4 sm:$0xff]  }
  0x79   :  { %421 = vmatprep.subr.bf16.mxu0 %v8572_v20  ;;  %v8663_v20 = vld [vmem:[#allocation6 + $0x1e8] ss:$16 sps:$4 sm:$0xff]   ;;  %v8701_v40 = vld [vmem:[#allocation6 + $0x12c] ss:$16 sps:$4 sm:$0xff]  }
  0x7a   :  { %v8705_v45 = vld [vmem:[#allocation6 + $0x108] ss:$16 sps:$4 sm:$0xff]  }
  0x7b   :  { %991 = vmatpush1.bf16.msra.mxu1 %v8660_v48  ;;  %v9560_v48 = vld [vmem:[#allocation9 + $0x1e0] sm:$0xff] }
  0x7c   :  { %422 = vmatpush2.bf16.msra.mxu0 %v8574_v23  ;;  %992 = vmatprep.subr.bf16.mxu1 %v8661_v49  ;;  %v131_v23 = vld [vmem:[%s13080_s0 + $0x60] sm:$0x11]  ;;  %v9562_v49 = vld [vmem:[#allocation9 + $0x5c0] sm:$0xff] }
  0x7d   :  { %423 = vmatprep.subr.bf16.mxu0 %v8575_v26  ;;  %v8675_v26 = vld [vmem:[#allocation6 + $0x1a8] ss:$16 sps:$4 sm:$0xff]  }
  0x7f   :  { %993 = vmatpush2.bf16.msra.mxu1 %v8666_v54 }
  0x80   :  { %424 = vmatpush2.bf16.msra.mxu0 %v8577_v28  ;;  %994 = vmatprep.subr.bf16.mxu1 %v8667_v56  ;;  %v7763_v28 = vcombine.high %v131_v23, %v131_v23 }
  0x81   :  { %425 = vmatprep.subr.bf16.mxu0 %v8578_v30  ;;  %v7762_v30 = vcombine.low %v131_v23, %v131_v23 }
  0x83   :  { %995 = vmatpush2.bf16.msra.mxu1 %v8672_v57 }
  0x84   :  { %426 = vmatpush2.bf16.msra.mxu0 %v8580_v31  ;;  %996 = vmatprep.subr.bf16.mxu1 %v8673_v59  ;;  %v8685_v31 = vld [vmem:[#allocation6 + $0x164] ss:$16 sps:$4 sm:$0xff]   ;;  %v164_v59 = vld [vmem:[#allocation4] sm:$0x3] }
  0x85   :  { %427 = vmatprep.subr.bf16.mxu0 %v8581_v34  ;;  %v8690_v34 = vld [vmem:[#allocation6 + $0x160] ss:$16 sps:$4 sm:$0xff]  }
  0x87   :  { %997 = vmatpush2.bf16.msra.mxu1 %v8678_v62 }
  0x88   :  { %428 = vmatpush2.bf16.msra.mxu0 %v8583_v36  ;;  %998 = vmatprep.subr.bf16.mxu1 %v8679_v2  ;;  %v8695_v36 = vld [vmem:[#allocation6 + $0x14c] ss:$16 sps:$4 sm:$0xff]  }
  0x89   :  { %429 = vmatprep.subr.bf16.mxu0 %v8584_v38  ;;  %v8696_v38 = vld [vmem:[#allocation6 + $0x140] ss:$16 sps:$4 sm:$0xff]  }
  0x8b   :  { %999 = vmatpush2.bf16.msra.mxu1 %v8684_v3 }
  0x8c   :  { %430 = vmatpush2.bf16.msra.mxu0 %v8586_v39  ;;  %1000 = vmatprep.subr.bf16.mxu1 %v8685_v31  ;;  %v8697_v39 = vld [vmem:[#allocation6 + $0x124] ss:$16 sps:$4 sm:$0xff]  }
  0x8d   :  { %431 = vmatprep.subr.bf16.mxu0 %v8587_v42  ;;  %v8702_v42 = vld [vmem:[#allocation6 + $0x120] ss:$16 sps:$4 sm:$0xff]   ;;  %v9595_v31 = vld [vmem:[#allocation9 + $0x140] sm:$0xff] }
  0x8f   :  { %1001 = vmatpush2.bf16.msra.mxu1 %v8690_v34  ;;  %v1354_v34 = vld [vmem:[#allocation9 + $0x160] sm:$0xff] }
  0x90   :  { %432 = vmatpush2.bf16.msra.mxu0 %v8589_v44  ;;  %1002 = vmatprep.subr.bf16.mxu1 %v8691_v35  ;;  %v8707_v44 = vld [vmem:[#allocation6 + $0x10c] ss:$16 sps:$4 sm:$0xff]   ;;  %v1478_v35 = vld [vmem:[#allocation9 + $0x540] sm:$0xff] }
  0x91   :  { %433 = vmatprep.subr.bf16.mxu0 %v8590_v46  ;;  %v8708_v46 = vld [vmem:[#allocation6 + $0x100] ss:$16 sps:$4 sm:$0xff]  }
  0x93   :  { %1003 = vmatpush2.bf16.msra.mxu1 %v8696_v38 }
  0x94   :  { %434 = vmatpush2.bf16.msra.mxu0 %v8592_v47  ;;  %1004 = vmatprep.subr.bf16.mxu1 %v8697_v39  ;;  %v9558_v47 = vld [vmem:[#allocation9 + $0x1c0] sm:$0xff] }
  0x95   :  { %1077 = vmatprep.subr.bf16.mxu0 %v8617_v51  ;;  %v7917_v51 = vcombine.high %v9558_v47, %v9560_v48 }
  0x97   :  { %436 = vmatmul.mubr.bf16.vlgmr.msra.gmra.mxu0 %v8593_v50  ;;  %1005 = vmatpush2.bf16.msra.mxu1 %v8702_v42  ;;  %v7916_v50 = vcombine.low %v9558_v47, %v9560_v48  ;;  %v7900_v47 = vcombine.low %v9595_v31, %v1354_v34 }
  0x98   :  { %445 = vmatprep.mubr.bf16.mxu0 %v8596_v52  ;;  %1078 = vmatpush1.bf16.msra.mxu0 %v8615_v53  ;;  %v9568_v52 = vld [vmem:[#allocation9 + $0x5e0] sm:$0xff] }
  0x99   :  { %1079 = vmatprep.subr.bf16.mxu0 %v8623_v55  ;;  %1006 = vmatprep.subr.bf16.mxu1 %v8703_v43  ;;  %v8044_v53 = vcombine.low %v9562_v49, %v9568_v52  ;;  %v8045_v54 = vcombine.high %v9562_v49, %v9568_v52  ;;  %v166_v55 = vlaneseq }
  0x9b   :  { %1007 = vmatpush2.bf16.msra.mxu1 %v8708_v46  ;;  %v9574_v56 = vshrl.u32 %v166_v55, 7  ;;  %v7901_v46 = vcombine.high %v9595_v31, %v1354_v34  ;;  %v1346_v55 = vld [vmem:[#allocation9 + $0x120] sm:$0xff] }
  0x9c   :  { %1080 = vmatpush1.bf16.msra.mxu0 %v8621_v58  ;;  %2888 = vmatprep.subr.bf16.mxu1 %v7917_v51  ;;  %v1342_v51 = vld [vmem:[#allocation9 + $0x100] sm:$0xff] }
  0x9d   :  { %1081 = vmatprep.subr.bf16.mxu0 %v8629_v60  ;;  %13168 = vst [vmem:[#allocation17_spill] sm:$0xff] %v9574_v56  ;;  %v9577_v57 = vsub.s32 1, %v9574_v56  ;;  %v9580_v58 = vsub.s32 0, %v9574_v56 }
  0x9f   :  { %446 = vmatmul.mubr.bf16.gmra.mxu0 %v8598_v61  ;;  %13169 = vst [vmem:[#allocation18_spill] sm:$0xff] %v9577_v57  ;;  %13170 = vst [vmem:[#allocation19_spill] sm:$0xff] %v9580_v58  ;;  %v9583_v60 = vrot.slane %v164_v59, %v9577_v57  ;;  %v9586_v61 = vrot.slane %v164_v59, %v9580_v58  ;;  %v1470_v59 = vld [vmem:[#allocation9 + $0x500] sm:$0xff] }
  0xa0   :  { %455 = vmatprep.mubr.bf16.mxu0 %v8599_v63  ;;  %1082 = vmatpush1.bf16.msra.mxu0 %v8627_v0 }
  0xa1   :  { %1083 = vmatprep.subr.bf16.mxu0 %v8635_v1 }
  0xa4   :  { %1084 = vmatpush1.bf16.msra.mxu0 %v8633_v4 }
  0xa5   :  { %1085 = vmatprep.subr.bf16.mxu0 %v8641_v5 }
  0xa7   :  { %456 = vmatmul.mubr.bf16.gmra.mxu0 %v8601_v6 }
  0xa8   :  { %465 = vmatprep.mubr.bf16.mxu0 %v8602_v7  ;;  %1086 = vmatpush1.bf16.msra.mxu0 %v8639_v8 }
  0xa9   :  { %1087 = vmatprep.subr.bf16.mxu0 %v8647_v9 }
  0xac   :  { %1088 = vmatpush1.bf16.msra.mxu0 %v8645_v10 }
  0xad   :  { %1089 = vmatprep.subr.bf16.mxu0 %v8653_v11 }
  0xaf   :  { %466 = vmatmul.mubr.bf16.gmra.mxu0 %v8604_v12 }
  0xb0   :  { %475 = vmatprep.mubr.bf16.mxu0 %v8605_v13  ;;  %1090 = vmatpush1.bf16.msra.mxu0 %v8651_v14  ;;  %v1358_v14 = vld [vmem:[#allocation9 + $0x180] sm:$0xff] }
  0xb1   :  { %1091 = vmatprep.subr.bf16.mxu0 %v8659_v15 }
  0xb4   :  { %1092 = vmatpush1.bf16.msra.mxu0 %v8657_v16 }
  0xb5   :  { %1093 = vmatprep.subr.bf16.mxu0 %v8665_v17 }
  0xb7   :  { %476 = vmatmul.mubr.bf16.gmra.mxu0 %v8607_v18  ;;  %v1362_v18 = vld [vmem:[#allocation9 + $0x1a0] sm:$0xff] }
  0xb8   :  { %485 = vmatprep.mubr.bf16.mxu0 %v8608_v19  ;;  %1094 = vmatpush2.bf16.msra.mxu0 %v8663_v20  ;;  %v1486_v19 = vld [vmem:[#allocation9 + $0x580] sm:$0xff]  ;;  %v7908_v39 = vcombine.low %v1358_v14, %v1362_v18 }
  0xb9   :  { %1095 = vmatprep.subr.bf16.mxu0 %v8671_v21  ;;  %v1490_v20 = vld [vmem:[#allocation9 + $0x5a0] sm:$0xff] }
  0xbc   :  { %1096 = vmatpush2.bf16.msra.mxu0 %v8669_v22 }
  0xbd   :  { %1097 = vmatprep.subr.bf16.mxu0 %v8677_v24 }
  0xbf   :  { %486 = vmatmul.mubr.bf16.gmra.mxu0 %v8610_v25 }
  0xc0   :  { %495 = vmatprep.mubr.bf16.mxu0 %v7763_v28  ;;  %1098 = vmatpush2.bf16.msra.mxu0 %v8675_v26 }
  0xc1   :  { %1099 = vmatprep.subr.bf16.mxu0 %v8683_v27 }
  0xc4   :  { %1100 = vmatpush2.bf16.msra.mxu0 %v8681_v29  ;;  %v7909_v29 = vcombine.high %v1358_v14, %v1362_v18  ;;  %v7892_v14 = vcombine.low %v1342_v51, %v1346_v55 }
  0xc5   :  { %1101 = vmatprep.subr.bf16.mxu0 %v8689_v32 }
  0xc7   :  { %496 = vmatmul.mubr.bf16.gmra.mxu0 %v7762_v30  ;;  %v8037_v30 = vcombine.high %v1486_v19, %v1490_v20 }
  0xc8   :  { %1102 = vmatpush2.bf16.msra.mxu0 %v8687_v33 }
  0xc9   :  { %1103 = vmatprep.subr.bf16.mxu0 %v8695_v36  ;;  %v1482_v36 = vld [vmem:[#allocation9 + $0x560] sm:$0xff] }
  0xca   :  { %v8029_v49 = vcombine.high %v1478_v35, %v1482_v36 }
  0xcc   :  { %1104 = vmatpush2.bf16.msra.mxu0 %v8693_v37 }
  0xcd   :  { %1105 = vmatprep.subr.bf16.mxu0 %v8701_v40  ;;  %v8036_v40 = vcombine.low %v1486_v19, %v1490_v20 }
  0xd0   :  { %1106 = vmatpush2.bf16.msra.mxu0 %v8699_v41 }
  0xd1   :  { %1107 = vmatprep.subr.bf16.mxu0 %v8707_v44 }
  0xd4   :  { %1108 = vmatpush2.bf16.msra.mxu0 %v8705_v45 }
  0xd5   :  { %2989 = vmatprep.subr.bf16.mxu0 %v8045_v54 }
 0x157   :  { %v437_v62 = vpop.f32.mrf.mxu0 }
 0x158   :  { %v438_v1 = vadd.f32 %v437_v62, %v9586_v61  ;;  %v1474_v62 = vld [vmem:[#allocation9 + $0x520] sm:$0xff] }
 0x159   :  { %v439_v63 = vpop.f32.mrf.mxu0 }
 0x15a   :  { %v440_v0 = vadd.f32 %v439_v63, %v9583_v60  ;;  %v504_v8 = vmul.f32 0.01, %v438_v1 }
 0x15b   :  { %v441_v2 = vpop.f32.mrf.mxu0 }
 0x15c   :  { %v442_v3 = vadd.f32 %v441_v2, %v9586_v61  ;;  %v505_v5 = vmul.f32 0.01, %v440_v0  ;;  %v530_v21 = vmax.f32 %v438_v1, %v504_v8  ;;  %v8028_v2 = vcombine.low %v1478_v35, %v1482_v36 }
 0x15d   :  { %v443_v4 = vpop.f32.mrf.mxu0 }
 0x15e   :  { %v506_v6 = vmul.f32 0.01, %v442_v3  ;;  %v444_v7 = vadd.f32 %v443_v4, %v9583_v60  ;;  %v531_v15 = vmax.f32 %v440_v0, %v505_v5  ;;  %v7893_v4 = vcombine.high %v1342_v51, %v1346_v55 }
 0x15f   :  { %v447_v9 = vpop.f32.mrf.mxu0  ;;  %v8021_v5 = vcombine.high %v1470_v59, %v1474_v62 }
 0x160   :  { %v507_v10 = vmul.f32 0.01, %v444_v7  ;;  %v448_v11 = vadd.f32 %v447_v9, %v9586_v61  ;;  %v532_v12 = vmax.f32 %v442_v3, %v506_v6  ;;  %v9609_v6 = vld [vmem:[#allocation9 + $0xc0] sm:$0xff] }
 0x161   :  { %v449_v13 = vpop.f32.mrf.mxu0  ;;  %v1338_v9 = vld [vmem:[#allocation9 + $0xe0] sm:$0xff] }
 0x162   :  { %v450_v16 = vadd.f32 %v449_v13, %v9583_v60  ;;  %v533_v17 = vmax.f32 %v444_v7, %v507_v10  ;;  %v508_v22 = vmul.f32 0.01, %v448_v11  ;;  %v556_v28 = vpack.c.bf16 %v532_v12, %v530_v21  ;;  %v1462_v10 = vld [vmem:[#allocation9 + $0x4c0] sm:$0xff] }
 0x163   :  { %v451_v23 = vpop.f32.mrf.mxu0  ;;  %v7885_v21 = vcombine.high %v9609_v6, %v1338_v9 }
 0x164   :  { %v509_v24 = vmul.f32 0.01, %v450_v16  ;;  %v452_v25 = vadd.f32 %v451_v23, %v9586_v61  ;;  %v557_v26 = vpack.c.bf16 %v533_v17, %v531_v15  ;;  %v534_v37 = vmax.f32 %v448_v11, %v508_v22  ;;  %v1466_v11 = vld [vmem:[#allocation9 + $0x4e0] sm:$0xff] }
 0x165   :  { %v453_v27 = vpop.f32.mrf.mxu0  ;;  %v8020_v15 = vcombine.low %v1470_v59, %v1474_v62  ;;  %v8013_v22 = vcombine.high %v1462_v10, %v1466_v11  ;;  %v1326_v23 = vld [vmem:[#allocation9 + $0x80] sm:$0xff]  ;;  %v8012_v36 = vcombine.low %v1462_v10, %v1466_v11 }
 0x166   :  { %v510_v32 = vmul.f32 0.01, %v452_v25  ;;  %v454_v33 = vadd.f32 %v453_v27, %v9583_v60  ;;  %1008 = vmatprep.mubr.bf16.mxu1 %v557_v26  ;;  %1109 = vmatprep.mubr.bf16.mxu0 %v557_v26  ;;  %v535_v41 = vmax.f32 %v450_v16, %v509_v24  ;;  %v1330_v26 = vld [vmem:[#allocation9 + $0xa0] sm:$0xff] }
 0x167   :  { %v457_v38 = vpop.f32.mrf.mxu0  ;;  %1009 = vmatmul.mubr.bf16.vlgmr.msra.gmra.mxu1 %v556_v28  ;;  %1110 = vmatmul.mubr.bf16.vlgmr.msra.gmra.mxu0 %v556_v28  ;;  %v1454_v27 = vld [vmem:[#allocation9 + $0x480] sm:$0xff]  ;;  %v7876_v51 = vcombine.low %v1326_v23, %v1330_v26 }
 0x168   :  { %v536_v42 = vmax.f32 %v452_v25, %v510_v32  ;;  %v511_v43 = vmul.f32 0.01, %v454_v33  ;;  %v9599_v44 = vadd.f32 %v457_v38, %v9586_v61  ;;  %2889 = vmatpush1.bf16.msra.mxu1 %v7916_v50  ;;  %2990 = vmatpush1.bf16.msra.mxu0 %v8044_v53  ;;  %v1458_v28 = vld [vmem:[#allocation9 + $0x4a0] sm:$0xff]  ;;  %v7884_v32 = vcombine.low %v9609_v6, %v1338_v9 }
 0x169   :  { %v459_v45 = vpop.f32.mrf.mxu0  ;;  %2890 = vmatprep.subr.bf16.mxu1 %v7909_v29  ;;  %2991 = vmatprep.subr.bf16.mxu0 %v8037_v30  ;;  %v7877_v38 = vcombine.high %v1326_v23, %v1330_v26 }
 0x16a   :  { %v537_v52 = vmax.f32 %v454_v33, %v511_v43  ;;  %v460_v54 = vadd.f32 %v459_v45, %v9583_v60  ;;  %v512_v63 = vmul.f32 0.01, %v9599_v44  ;;  %v558_v1 = vpack.c.bf16 %v536_v42, %v534_v37  ;;  %v1322_v43 = vld [vmem:[#allocation9 + $0x60] sm:$0xff] }
 0x16b   :  { %v461_v0 = vpop.f32.mrf.mxu0  ;;  %v1450_v45 = vld [vmem:[#allocation9 + $0x460] sm:$0xff] }
 0x16c   :  { %v513_v48 = vmul.f32 0.01, %v460_v54  ;;  %v462_v50 = vadd.f32 %v461_v0, %v9586_v61  ;;  %v559_v53 = vpack.c.bf16 %v537_v52, %v535_v41  ;;  %2891 = vmatpush1.bf16.msra.mxu1 %v7908_v39  ;;  %2992 = vmatpush1.bf16.msra.mxu0 %v8036_v40  ;;  %v538_v12 = vmax.f32 %v9599_v44, %v512_v63  ;;  %v9621_v40 = vld [vmem:[#allocation9 + $0x40] sm:$0xff] }
 0x16d   :  { %v463_v3 = vpop.f32.mrf.mxu0  ;;  %2892 = vmatprep.subr.bf16.mxu1 %v7901_v46  ;;  %2993 = vmatprep.subr.bf16.mxu0 %v8029_v49  ;;  %v8005_v39 = vcombine.high %v1454_v27, %v1458_v28  ;;  %v1446_v44 = vld [vmem:[#allocation9 + $0x440] sm:$0xff]  ;;  %v8004_v52 = vcombine.low %v1454_v27, %v1458_v28  ;;  %v7869_v0 = vcombine.high %v9621_v40, %v1322_v43 }
 0x16e   :  { %v514_v7 = vmul.f32 0.01, %v462_v50  ;;  %v464_v8 = vadd.f32 %v463_v3, %v9583_v60  ;;  %1018 = vmatprep.mubr.bf16.mxu1 %v559_v53  ;;  %1119 = vmatprep.mubr.bf16.mxu0 %v559_v53  ;;  %v539_v16 = vmax.f32 %v460_v54, %v513_v48  ;;  %v1314_v53 = vld [vmem:[#allocation9 + $0x20] sm:$0xff]  ;;  %v7996_v11 = vcombine.low %v1446_v44, %v1450_v45 }
 0x16f   :  { %v467_v13 = vpop.f32.mrf.mxu0  ;;  %1019 = vmatmul.mubr.bf16.gmra.mxu1 %v558_v1  ;;  %1120 = vmatmul.mubr.bf16.gmra.mxu0 %v558_v1  ;;  %v7997_v1 = vcombine.high %v1446_v44, %v1450_v45  ;;  %v1442_v3 = vld [vmem:[#allocation9 + $0x420] sm:$0xff] }
 0x170   :  { %v540_v17 = vmax.f32 %v462_v50, %v514_v7  ;;  %v515_v18 = vmul.f32 0.01, %v464_v8  ;;  %v9614_v19 = vadd.f32 %v467_v13, %v9586_v61  ;;  %2893 = vmatpush1.bf16.msra.mxu1 %v7900_v47  ;;  %2994 = vmatpush1.bf16.msra.mxu0 %v8028_v2  ;;  %v1310_v47 = vld [vmem:[#allocation9] sm:$0xff]  ;;  %v7868_v7 = vcombine.low %v9621_v40, %v1322_v43 }
 0x171   :  { %v469_v20 = vpop.f32.mrf.mxu0  ;;  %2894 = vmatprep.subr.bf16.mxu1 %v7893_v4  ;;  %2995 = vmatprep.subr.bf16.mxu0 %v8021_v5  ;;  %v1438_v2 = vld [vmem:[#allocation9 + $0x400] sm:$0xff]  ;;  %v7861_v13 = vcombine.high %v1310_v47, %v1314_v53  ;;  %v7860_v23 = vcombine.low %v1310_v47, %v1314_v53 }
 0x172   :  { %v541_v24 = vmax.f32 %v464_v8, %v515_v18  ;;  %v470_v25 = vadd.f32 %v469_v20, %v9583_v60  ;;  %v516_v29 = vmul.f32 0.01, %v9614_v19  ;;  %v560_v31 = vpack.c.bf16 %v540_v17, %v538_v12  ;;  %v1434_v18 = vld [vmem:[#allocation9 + $0x3e0] sm:$0xff] }
 0x173   :  { %v471_v30 = vpop.f32.mrf.mxu0  ;;  %v1562_v20 = vld [vmem:[#allocation9 + $0x7e0] sm:$0xff] }
 0x174   :  { %v517_v33 = vmul.f32 0.01, %v470_v25  ;;  %v472_v34 = vadd.f32 %v471_v30, %v9586_v61  ;;  %v561_v35 = vpack.c.bf16 %v541_v24, %v539_v16  ;;  %2895 = vmatpush1.bf16.msra.mxu1 %v7892_v14  ;;  %2996 = vmatpush1.bf16.msra.mxu0 %v8020_v15  ;;  %v542_v46 = vmax.f32 %v9614_v19, %v516_v29  ;;  %v9633_v15 = vld [vmem:[#allocation9 + $0x3c0] sm:$0xff] }
 0x175   :  { %v473_v37 = vpop.f32.mrf.mxu0  ;;  %2896 = vmatprep.subr.bf16.mxu1 %v7885_v21  ;;  %2997 = vmatprep.subr.bf16.mxu0 %v8013_v22  ;;  %v7989_v14 = vcombine.high %v1438_v2, %v1442_v3  ;;  %v1558_v19 = vld [vmem:[#allocation9 + $0x7c0] sm:$0xff]  ;;  %v7988_v24 = vcombine.low %v1438_v2, %v1442_v3  ;;  %v7981_v30 = vcombine.high %v9633_v15, %v1434_v18 }
 0x176   :  { %v518_v41 = vmul.f32 0.01, %v472_v34  ;;  %v474_v42 = vadd.f32 %v473_v37, %v9583_v60  ;;  %1028 = vmatprep.mubr.bf16.mxu1 %v561_v35  ;;  %1129 = vmatprep.mubr.bf16.mxu0 %v561_v35  ;;  %v543_v54 = vmax.f32 %v470_v25, %v517_v33  ;;  %v1426_v35 = vld [vmem:[#allocation9 + $0x3a0] sm:$0xff]  ;;  %v8108_v45 = vcombine.low %v1558_v19, %v1562_v20 }
 0x177   :  { %v477_v49 = vpop.f32.mrf.mxu0  ;;  %1029 = vmatmul.mubr.bf16.gmra.mxu1 %v560_v31  ;;  %1130 = vmatmul.mubr.bf16.gmra.mxu0 %v560_v31  ;;  %v8109_v31 = vcombine.high %v1558_v19, %v1562_v20  ;;  %v1554_v37 = vld [vmem:[#allocation9 + $0x7a0] sm:$0xff] }
 0x178   :  { %v544_v55 = vmax.f32 %v472_v34, %v518_v41  ;;  %v519_v59 = vmul.f32 0.01, %v474_v42  ;;  %v9626_v62 = vadd.f32 %v477_v49, %v9586_v61  ;;  %2897 = vmatpush1.bf16.msra.mxu1 %v7884_v32  ;;  %2998 = vmatpush1.bf16.msra.mxu0 %v8012_v36  ;;  %v1422_v32 = vld [vmem:[#allocation9 + $0x380] sm:$0xff]  ;;  %v7980_v41 = vcombine.low %v9633_v15, %v1434_v18 }
 0x179   :  { %v479_v63 = vpop.f32.mrf.mxu0  ;;  %2898 = vmatprep.subr.bf16.mxu1 %v7877_v38  ;;  %2999 = vmatprep.subr.bf16.mxu0 %v8005_v39  ;;  %v1550_v36 = vld [vmem:[#allocation9 + $0x780] sm:$0xff]  ;;  %v7973_v49 = vcombine.high %v1422_v32, %v1426_v35  ;;  %v7972_v47 = vcombine.low %v1422_v32, %v1426_v35 }
 0x17a   :  { %v545_v48 = vmax.f32 %v474_v42, %v519_v59  ;;  %v480_v50 = vadd.f32 %v479_v63, %v9583_v60  ;;  %v520_v4 = vmul.f32 0.01, %v9626_v62  ;;  %v562_v6 = vpack.c.bf16 %v544_v55, %v542_v46  ;;  %v1418_v59 = vld [vmem:[#allocation9 + $0x360] sm:$0xff] }
 0x17b   :  { %v481_v5 = vpop.f32.mrf.mxu0  ;;  %v1546_v63 = vld [vmem:[#allocation9 + $0x760] sm:$0xff] }
 0x17c   :  { %v521_v8 = vmul.f32 0.01, %v480_v50  ;;  %v482_v9 = vadd.f32 %v481_v5, %v9586_v61  ;;  %v563_v10 = vpack.c.bf16 %v545_v48, %v543_v54  ;;  %2899 = vmatpush1.bf16.msra.mxu1 %v7876_v51  ;;  %3000 = vmatpush1.bf16.msra.mxu0 %v8004_v52  ;;  %v546_v21 = vmax.f32 %v9626_v62, %v520_v4  ;;  %v1414_v52 = vld [vmem:[#allocation9 + $0x340] sm:$0xff] }
 0x17d   :  { %v483_v12 = vpop.f32.mrf.mxu0  ;;  %2900 = vmatprep.subr.bf16.mxu1 %v7869_v0  ;;  %3001 = vmatprep.subr.bf16.mxu0 %v7997_v1  ;;  %v8101_v51 = vcombine.high %v1550_v36, %v1554_v37  ;;  %v1542_v62 = vld [vmem:[#allocation9 + $0x740] sm:$0xff]  ;;  %v8100_v48 = vcombine.low %v1550_v36, %v1554_v37  ;;  %v7965_v5 = vcombine.high %v1414_v52, %v1418_v59 }
 0x17e   :  { %v522_v16 = vmul.f32 0.01, %v482_v9  ;;  %v484_v17 = vadd.f32 %v483_v12, %v9583_v60  ;;  %1038 = vmatprep.mubr.bf16.mxu1 %v563_v10  ;;  %1139 = vmatprep.mubr.bf16.mxu0 %v563_v10  ;;  %v547_v25 = vmax.f32 %v480_v50, %v521_v8  ;;  %v1410_v10 = vld [vmem:[#allocation9 + $0x320] sm:$0xff]  ;;  %v8092_v18 = vcombine.low %v1542_v62, %v1546_v63 }
 0x17f   :  { %v487_v22 = vpop.f32.mrf.mxu0  ;;  %1039 = vmatmul.mubr.bf16.gmra.mxu1 %v562_v6  ;;  %1140 = vmatmul.mubr.bf16.gmra.mxu0 %v562_v6  ;;  %v8093_v6 = vcombine.high %v1542_v62, %v1546_v63  ;;  %v1538_v12 = vld [vmem:[#allocation9 + $0x720] sm:$0xff] }
 0x180   :  { %v548_v26 = vmax.f32 %v482_v9, %v522_v16  ;;  %v523_v27 = vmul.f32 0.01, %v484_v17  ;;  %v488_v28 = vadd.f32 %v487_v22, %v9586_v61  ;;  %2901 = vmatpush1.bf16.msra.mxu1 %v7868_v7  ;;  %3002 = vmatpush1.bf16.msra.mxu0 %v7996_v11  ;;  %v1406_v7 = vld [vmem:[#allocation9 + $0x300] sm:$0xff] }
 0x181   :  { %v489_v29 = vpop.f32.mrf.mxu0  ;;  %2902 = vmatprep.subr.bf16.mxu1 %v7861_v13  ;;  %3003 = vmatprep.subr.bf16.mxu0 %v7989_v14  ;;  %v1534_v11 = vld [vmem:[#allocation9 + $0x700] sm:$0xff]  ;;  %v7957_v20 = vcombine.high %v1406_v7, %v1410_v10 }
 0x182   :  { %v549_v33 = vmax.f32 %v484_v17, %v523_v27  ;;  %v490_v34 = vadd.f32 %v489_v29, %v9583_v60  ;;  %v524_v38 = vmul.f32 0.01, %v488_v28  ;;  %v564_v40 = vpack.c.bf16 %v548_v26, %v546_v21  ;;  %v1398_v22 = vld [vmem:[#allocation9 + $0x2c0] sm:$0xff] }
 0x183   :  { %v491_v39 = vpop.f32.mrf.mxu0  ;;  %v8085_v21 = vcombine.high %v1534_v11, %v1538_v12  ;;  %v8084_v29 = vcombine.low %v1534_v11, %v1538_v12  ;;  %v1390_v35 = vld [vmem:[#allocation9 + $0x280] sm:$0xff]  ;;  %v9667_v11 = vld [vmem:[#allocation9 + $0x188] sm:$0xff] }
 0x184   :  { %v525_v42 = vmul.f32 0.01, %v490_v34  ;;  %v492_v43 = vadd.f32 %v491_v39, %v9586_v61  ;;  %v565_v44 = vpack.c.bf16 %v549_v33, %v547_v25  ;;  %2903 = vmatpush1.bf16.msra.mxu1 %v7860_v23  ;;  %3004 = vmatpush1.bf16.msra.mxu0 %v7988_v24  ;;  %v550_v0 = vmax.f32 %v488_v28, %v524_v38  ;;  %v1526_v24 = vld [vmem:[#allocation9 + $0x6c0] sm:$0xff]  ;;  %v9669_v12 = vld [vmem:[#allocation9 + $0x1a8] sm:$0xff] }
 0x185   :  { %v493_v46 = vpop.f32.mrf.mxu0  ;;  %2904 = vmatprep.subr.bf16.mxu1 %v7981_v30  ;;  %3005 = vmatprep.subr.bf16.mxu0 %v8109_v31  ;;  %v1530_v25 = vld [vmem:[#allocation9 + $0x6e0] sm:$0xff]  ;;  %v7956_v28 = vcombine.low %v1406_v7, %v1410_v10  ;;  %v9665_v10 = vsub.s32 3, %v9574_v56 }
 0x186   :  { %v526_v54 = vmul.f32 0.01, %v492_v43  ;;  %v494_v55 = vadd.f32 %v493_v46, %v9583_v60  ;;  %1048 = vmatprep.mubr.bf16.mxu1 %v565_v44  ;;  %1149 = vmatprep.mubr.bf16.mxu0 %v565_v44  ;;  %v551_v50 = vmax.f32 %v490_v34, %v525_v42  ;;  %v8077_v31 = vcombine.high %v1526_v24, %v1530_v25  ;;  %v1394_v36 = vld [vmem:[#allocation9 + $0x2a0] sm:$0xff] }
 0x187   :  { %1049 = vmatmul.mubr.bf16.gmra.mxu1 %v564_v40  ;;  %1150 = vmatmul.mubr.bf16.gmra.mxu0 %v564_v40  ;;  %v497_v1 = vpop.f32.mrf.mxu0  ;;  %v8076_v34 = vcombine.low %v1526_v24, %v1530_v25  ;;  %v1518_v37 = vld [vmem:[#allocation9 + $0x680] sm:$0xff]  ;;  %v7941_v38 = vcombine.high %v1390_v35, %v1394_v36  ;;  %v7940_v40 = vcombine.low %v1390_v35, %v1394_v36  ;;  %v9701_v24 = vld [vmem:[#allocation9 + $0x508] sm:$0xff] }
 0x188   :  { %v552_v53 = vmax.f32 %v492_v43, %v526_v54  ;;  %v527_v2 = vmul.f32 0.01, %v494_v55  ;;  %v498_v3 = vadd.f32 %v497_v1, %v9586_v61  ;;  %2905 = vmatpush2.bf16.msra.mxu1 %v7980_v41  ;;  %3006 = vmatpush2.bf16.msra.mxu0 %v8108_v45  ;;  %v7964_v61 = vcombine.low %v1414_v52, %v1418_v59  ;;  %v1522_v39 = vld [vmem:[#allocation9 + $0x6a0] sm:$0xff]  ;;  %v9703_v25 = vld [vmem:[#allocation9 + $0x528] sm:$0xff] }
 0x189   :  { %v499_v4 = vpop.f32.mrf.mxu0  ;;  %2906 = vmatprep.subr.bf16.mxu1 %v7973_v49  ;;  %3007 = vmatprep.subr.bf16.mxu0 %v8101_v51  ;;  %v8068_v41 = vcombine.low %v1518_v37, %v1522_v39  ;;  %v8069_v42 = vcombine.high %v1518_v37, %v1522_v39  ;;  %v1382_v43 = vld [vmem:[#allocation9 + $0x240] sm:$0xff]  ;;  %13172 = vst [vmem:[#allocation21_spill] sm:$0xff] %v9665_v10  ;;  %v9719_v35 = vld [vmem:[#allocation9 + $0x4e8] sm:$0xff] }
 0x18a   :  { %v553_v8 = vmax.f32 %v494_v55, %v527_v2  ;;  %v500_v9 = vadd.f32 %v499_v4, %v9583_v60  ;;  %v528_v13 = vmul.f32 0.01, %v498_v3  ;;  %v566_v14 = vpack.c.bf16 %v552_v53, %v550_v0  ;;  %v1402_v60 = vld [vmem:[#allocation9 + $0x2e0] sm:$0xff]  ;;  %v9647_v53 = vld [vmem:[#allocation9 + $0x1e8] sm:$0xff] }
 0x18b   :  { %v501_v15 = vpop.f32.mrf.mxu0  ;;  %v7949_v30 = vcombine.high %v1398_v22, %v1402_v60  ;;  %v7948_v33 = vcombine.low %v1398_v22, %v1402_v60  ;;  %v1386_v44 = vld [vmem:[#allocation9 + $0x260] sm:$0xff]  ;;  %v9649_v2 = vld [vmem:[#allocation9 + $0x5c8] sm:$0xff] }
 0x18c   :  { %v529_v16 = vmul.f32 0.01, %v500_v9  ;;  %v567_v17 = vpack.c.bf16 %v553_v8, %v551_v50  ;;  %2907 = vmatpush2.bf16.msra.mxu1 %v7972_v47  ;;  %3008 = vmatpush2.bf16.msra.mxu0 %v8100_v48  ;;  %v554_v26 = vmax.f32 %v498_v3, %v528_v13  ;;  %v1510_v45 = vld [vmem:[#allocation9 + $0x640] sm:$0xff]  ;;  %v7933_v46 = vcombine.high %v1382_v43, %v1386_v44  ;;  %v9645_v50 = vld [vmem:[#allocation9 + $0x1c8] sm:$0xff]  ;;  %v634_v8 = vld [vmem:[#allocation7] sm:$0xf] }
 0x18d   :  { %v502_v19 = vpop.f32.mrf.mxu0  ;;  %2908 = vmatprep.subr.bf16.mxu1 %v7965_v5  ;;  %3009 = vmatprep.subr.bf16.mxu0 %v8093_v6  ;;  %v1514_v49 = vld [vmem:[#allocation9 + $0x660] sm:$0xff]  ;;  %v7932_v51 = vcombine.low %v1382_v43, %v1386_v44  ;;  %v7919_v3 = vcombine.high %v9645_v50, %v9647_v53  ;;  %v9653_v4 = vld [vmem:[#allocation9 + $0x5e8] sm:$0xff]  ;;  %v9694_v22 = vrot.slane %v634_v8, %v9577_v57 }
 0x18e   :  { %v555_v23 = vmax.f32 %v500_v9, %v529_v16  ;;  %1058 = vmatprep.mubr.bf16.mxu1 %v567_v17  ;;  %1159 = vmatprep.mubr.bf16.mxu0 %v567_v17  ;;  %v568_v32 = vpack.c.bf16 %v554_v26, %v554_v26  ;;  %v8060_v52 = vcombine.low %v1510_v45, %v1514_v49  ;;  %v1374_v55 = vld [vmem:[#allocation9 + $0x200] sm:$0xff]  ;;  %v9662_v9 = vsub.s32 2, %v9574_v56  ;;  %v9671_v13 = vld [vmem:[#allocation9 + $0x588] sm:$0xff] }
 0x18f   :  { %1059 = vmatmul.mubr.bf16.gmra.mxu1 %v566_v14  ;;  %1160 = vmatmul.mubr.bf16.gmra.mxu0 %v566_v14  ;;  %v8061_v54 = vcombine.high %v1510_v45, %v1514_v49  ;;  %v1378_v59 = vld [vmem:[#allocation9 + $0x220] sm:$0xff]  ;;  %v8047_v7 = vcombine.high %v9649_v2, %v9653_v4  ;;  %v9673_v14 = vld [vmem:[#allocation9 + $0x5a8] sm:$0xff] }
 0x190   :  { %v569_v27 = vpack.c.bf16 %v555_v23, %v555_v23  ;;  %2909 = vmatpush2.bf16.msra.mxu1 %v7964_v61  ;;  %3010 = vmatpush2.bf16.msra.mxu0 %v8092_v18  ;;  %v1502_v62 = vld [vmem:[#allocation9 + $0x600] sm:$0xff]  ;;  %v7925_v63 = vcombine.high %v1374_v55, %v1378_v59  ;;  %v7924_v1 = vcombine.low %v1374_v55, %v1378_v59  ;;  %v9675_v15 = vld [vmem:[#allocation9 + $0x148] sm:$0xff] }
 0x191   :  { %2910 = vmatprep.subr.bf16.mxu1 %v7957_v20  ;;  %3011 = vmatprep.subr.bf16.mxu0 %v8085_v21  ;;  %v1506_v0 = vld [vmem:[#allocation9 + $0x620] sm:$0xff]  ;;  %13171 = vst [vmem:[#allocation20_spill] sm:$0xff] %v9662_v9  ;;  %v9677_v16 = vld [vmem:[#allocation9 + $0x168] sm:$0xff]  ;;  %v9682_v61 = vrot.slane %v634_v8, %v9580_v58  ;;  %v9691_v21 = vrot.slane %v634_v8, %v9662_v9 }
 0x192   :  { %1068 = vmatprep.mubr.bf16.mxu1 %v569_v27  ;;  %1169 = vmatprep.mubr.bf16.mxu0 %v569_v27  ;;  %v8052_v47 = vcombine.low %v1502_v62, %v1506_v0  ;;  %v8053_v48 = vcombine.high %v1502_v62, %v1506_v0  ;;  %v9679_v17 = vld [vmem:[#allocation9 + $0x548] sm:$0xff]  ;;  %v9697_v23 = vrot.slane %v634_v8, %v9665_v10 }
 0x193   :  { %v9684_v18 = vld [vmem:[#allocation9 + $0x568] sm:$0xff] }
 0x194   :  { %2911 = vmatpush2.bf16.msra.mxu1 %v7956_v28  ;;  %3012 = vmatpush2.bf16.msra.mxu0 %v8084_v29  ;;  %v9686_v19 = vld [vmem:[#allocation9 + $0x108] sm:$0xff] }
 0x195   :  { %2912 = vmatprep.subr.bf16.mxu1 %v7949_v30  ;;  %3013 = vmatprep.subr.bf16.mxu0 %v8077_v31  ;;  %v9688_v20 = vld [vmem:[#allocation9 + $0x128] sm:$0xff] }
 0x196   :  { %v9705_v26 = vld [vmem:[#allocation9 + $0xc8] sm:$0xff] }
 0x197   :  { %1069 = vmatmul.mubr.bf16.gmra.mxu1 %v568_v32  ;;  %1170 = vmatmul.mubr.bf16.gmra.mxu0 %v568_v32  ;;  %v9748_v55 = vld [vmem:[#allocation9 + $0x68] sm:$0xff] }
 0x198   :  { %2913 = vmatpush2.bf16.msra.mxu1 %v7948_v33  ;;  %3014 = vmatpush2.bf16.msra.mxu0 %v8076_v34  ;;  %v9715_v33 = vld [vmem:[#allocation9 + $0xe8] sm:$0xff]  ;;  %13174 = vst [vmem:[#allocation23_spill] sm:$0xff] %v9748_v55 }
 0x199   :  { %2914 = vmatprep.subr.bf16.mxu1 %v7941_v38  ;;  %3015 = vmatprep.subr.bf16.mxu0 %v8069_v42  ;;  %v9717_v34 = vld [vmem:[#allocation9 + $0x4c8] sm:$0xff] }
 0x19a   :  { %v9733_v42 = vld [vmem:[#allocation9 + $0x488] sm:$0xff] }
 0x19c   :  { %2915 = vmatpush2.bf16.msra.mxu1 %v7940_v40  ;;  %3016 = vmatpush2.bf16.msra.mxu0 %v8068_v41  ;;  %v9729_v40 = vld [vmem:[#allocation9 + $0x88] sm:$0xff] }
 0x19d   :  { %2916 = vmatprep.subr.bf16.mxu1 %v7933_v46  ;;  %3017 = vmatprep.subr.bf16.mxu0 %v8061_v54  ;;  %v9731_v41 = vld [vmem:[#allocation9 + $0xa8] sm:$0xff] }
 0x19e   :  { %v9746_v54 = vld [vmem:[#allocation9 + $0x48] sm:$0xff] }
 0x19f   :  { %13173 = vst [vmem:[#allocation22_spill] sm:$0xff] %v9746_v54  ;;  %v9780_v46 = vld [vmem:[#allocation9 + $0x8] sm:$0xff] }
 0x1a0   :  { %2917 = vmatpush2.bf16.msra.mxu1 %v7932_v51  ;;  %3018 = vmatpush2.bf16.msra.mxu0 %v8060_v52  ;;  %v9744_v52 = vld [vmem:[#allocation9 + $0x4a8] sm:$0xff] }
 0x1a1   :  { %2918 = vmatprep.subr.bf16.mxu1 %v7925_v63  ;;  %3019 = vmatprep.subr.bf16.mxu0 %v8053_v48  ;;  %v9771_v63 = vld [vmem:[#allocation9 + $0x448] sm:$0xff] }
 0x1a4   :  { %2919 = vmatpush2.bf16.msra.mxu1 %v7924_v1  ;;  %3020 = vmatpush2.bf16.msra.mxu0 %v8052_v47 }
 0x1a5   :  { %3090 = vmatprep.subr.bf16.mxu1 %v7919_v3  ;;  %3191 = vmatprep.subr.bf16.mxu0 %v8047_v7  ;;  %v9773_v3 = vld [vmem:[#allocation9 + $0x468] sm:$0xff] }
 0x227   :  { %v1010_v27 = vpop.f32.mrf.mxu1  ;;  %v1111_v28 = vpop.f32.mrf.mxu0 }
 0x228   :  { %v9736_v43 = vadd.f32 %v1010_v27, %v9682_v61  ;;  %v1112_v1 = vadd.f32 %v1111_v28, %v9691_v21  ;;  %v9782_v28 = vld [vmem:[#allocation9 + $0x28] sm:$0xff] }
 0x229   :  { %v1012_v44 = vpop.f32.mrf.mxu1  ;;  %v1113_v45 = vpop.f32.mrf.mxu0 }
 0x22a   :  { %v1013_v59 = vadd.f32 %v1012_v44, %v9694_v22  ;;  %v1114_v62 = vadd.f32 %v1113_v45, %v9697_v23  ;;  %v1178_v7 = vmul.f32 0.01, %v9736_v43  ;;  %v1180_v36 = vmul.f32 0.01, %v1112_v1 }
 0x22b   :  { %v1014_v47 = vpop.f32.mrf.mxu1  ;;  %v1115_v48 = vpop.f32.mrf.mxu0 }
 0x22c   :  { %v1015_v8 = vadd.f32 %v1014_v47, %v9682_v61  ;;  %v1116_v0 = vadd.f32 %v1115_v48, %v9691_v21  ;;  %v1179_v45 = vmul.f32 0.01, %v1013_v59  ;;  %v1181_v51 = vmul.f32 0.01, %v1114_v62 }
 0x22d   :  { %v1016_v27 = vpop.f32.mrf.mxu1  ;;  %v1117_v49 = vpop.f32.mrf.mxu0  ;;  %v1232_v55 = vmax.f32 %v1112_v1, %v1180_v36  ;;  %v9817_v1 = vld [vmem:[#allocation9 + $0x3e8] sm:$0xff] }
 0x22e   :  { %v1017_v39 = vadd.f32 %v1016_v27, %v9694_v22  ;;  %v1118_v37 = vadd.f32 %v1117_v49, %v9697_v23  ;;  %v1182_v38 = vmul.f32 0.01, %v1015_v8  ;;  %v1184_v47 = vmul.f32 0.01, %v1116_v0 }
 0x22f   :  { %v1020_v32 = vpop.f32.mrf.mxu1  ;;  %v1121_v48 = vpop.f32.mrf.mxu0  ;;  %v1230_v27 = vmax.f32 %v9736_v43, %v1178_v7  ;;  %v1231_v9 = vmax.f32 %v1013_v59, %v1179_v45  ;;  %v1233_v58 = vmax.f32 %v1114_v62, %v1181_v51  ;;  %v9802_v7 = vld [vmem:[#allocation9 + $0x428] sm:$0xff] }
 0x230   :  { %v1183_v29 = vmul.f32 0.01, %v1017_v39  ;;  %v1185_v44 = vmul.f32 0.01, %v1118_v37  ;;  %v1234_v6 = vmax.f32 %v1015_v8, %v1182_v38  ;;  %v1236_v49 = vmax.f32 %v1116_v0, %v1184_v47  ;;  %v9800_v0 = vld [vmem:[#allocation9 + $0x408] sm:$0xff] }
 0x231   :  { %v1022_v5 = vpop.f32.mrf.mxu1  ;;  %v1123_v56 = vpop.f32.mrf.mxu0  ;;  %v9796_v54 = vadd.f32 %v1020_v32, %v9682_v61  ;;  %v1122_v36 = vadd.f32 %v1121_v48, %v9691_v21  ;;  %v9815_v62 = vld [vmem:[#allocation9 + $0x3c8] sm:$0xff]  ;;  %v13181_v48 = vcombine.high %v9667_v11, %v9669_v12 }
 0x232   :  { %v1235_v30 = vmax.f32 %v1017_v39, %v1183_v29  ;;  %v1237_v57 = vmax.f32 %v1118_v37, %v1185_v44  ;;  %v1023_v31 = vadd.f32 %v1022_v5, %v9694_v22  ;;  %v1124_v60 = vadd.f32 %v1123_v56, %v9697_v23 }
 0x233   :  { %v1024_v43 = vpop.f32.mrf.mxu1  ;;  %v1125_v38 = vpop.f32.mrf.mxu0  ;;  %v9804_v8 = vpack.c.bf16 %v1234_v6, %v1230_v27  ;;  %v9811_v32 = vpack.c.bf16 %v1236_v49, %v1232_v55  ;;  %v1188_v27 = vmul.f32 0.01, %v1122_v36 }
 0x234   :  { %v9806_v59 = vpack.c.bf16 %v1235_v30, %v1231_v9  ;;  %v9808_v29 = vpack.c.bf16 %v1237_v57, %v1233_v58  ;;  %v1187_v37 = vmul.f32 0.01, %v1023_v31  ;;  %v1025_v5 = vadd.f32 %v1024_v43, %v9682_v61 }
 0x235   :  { %13175 = vst [vmem:[#allocation24_spill] sm:$0xff] %v9804_v8  ;;  %13178 = vst [vmem:[#allocation27_spill] sm:$0xff] %v9811_v32  ;;  %v1126_v56 = vadd.f32 %v1125_v38, %v9691_v21  ;;  %v1026_v39 = vpop.f32.mrf.mxu1  ;;  %v1127_v51 = vpop.f32.mrf.mxu0  ;;  %v1189_v6 = vmul.f32 0.01, %v1124_v60  ;;  %v1186_v30 = vmul.f32 0.01, %v9796_v54  ;;  %v13179_v38 = vcombine.low %v9645_v50, %v9647_v53 }
 0x236   :  { %13176 = vst [vmem:[#allocation25_spill] sm:$0xff] %v9806_v59  ;;  %13177 = vst [vmem:[#allocation26_spill] sm:$0xff] %v9808_v29  ;;  %v1027_v9 = vadd.f32 %v1026_v39, %v9694_v22  ;;  %v1128_v57 = vadd.f32 %v1127_v51, %v9697_v23  ;;  %2920 = vmatprep.mubr.bf16.mxu1 %v9806_v59  ;;  %3021 = vmatprep.mubr.bf16.mxu0 %v9808_v29  ;;  %v1190_v55 = vmul.f32 0.01, %v1025_v5 }
 0x237   :  { %v1192_v44 = vmul.f32 0.01, %v1126_v56  ;;  %v1030_v45 = vpop.f32.mrf.mxu1  ;;  %v1131_v47 = vpop.f32.mrf.mxu0  ;;  %2921 = vmatmul.mubr.bf16.vlgmr.msra.gmra.mxu1 %v9804_v8  ;;  %3022 = vmatmul.mubr.bf16.vlgmr.msra.gmra.mxu0 %v9811_v32  ;;  %v13180_v39 = vcombine.low %v9649_v2, %v9653_v4  ;;  %v1239_v58 = vmax.f32 %v1023_v31, %v1187_v37  ;;  %v13182_v29 = vcombine.high %v9671_v13, %v9673_v14 }
 0x238   :  { %v1191_v49 = vmul.f32 0.01, %v1027_v9  ;;  %v1193_v43 = vmul.f32 0.01, %v1128_v57  ;;  %3091 = vmatpush1.bf16.msra.mxu1 %v13179_v38  ;;  %v1242_v10 = vmax.f32 %v1025_v5, %v1190_v55  ;;  %v1241_v53 = vmax.f32 %v1124_v60, %v1189_v6  ;;  %v9864_v6 = vld [vmem:[#allocation9 + $0x7e8] sm:$0xff] }
 0x239   :  { %3192 = vmatpush1.bf16.msra.mxu0 %v13180_v39  ;;  %v1032_v32 = vpop.f32.mrf.mxu1  ;;  %v1133_v8 = vpop.f32.mrf.mxu0  ;;  %3092 = vmatprep.subr.bf16.mxu1 %v13181_v48  ;;  %v1244_v2 = vmax.f32 %v1126_v56, %v1192_v44  ;;  %v1238_v31 = vmax.f32 %v9796_v54, %v1186_v30  ;;  %v9848_v37 = vadd.f32 %v1030_v45, %v9682_v61  ;;  %v9862_v56 = vld [vmem:[#allocation9 + $0x7c8] sm:$0xff] }
 0x23a   :  { %3193 = vmatprep.subr.bf16.mxu0 %v13182_v29  ;;  %v1243_v4 = vmax.f32 %v1027_v9, %v1191_v49  ;;  %v1245_v38 = vmax.f32 %v1128_v57, %v1193_v43  ;;  %v1033_v5 = vadd.f32 %v1032_v32, %v9694_v22  ;;  %v1134_v55 = vadd.f32 %v1133_v8, %v9697_v23 }
 0x23b   :  { %v1034_v48 = vpop.f32.mrf.mxu1  ;;  %v1135_v39 = vpop.f32.mrf.mxu0  ;;  %v1240_v51 = vmax.f32 %v1122_v36, %v1188_v27  ;;  %v9857_v60 = vadd.f32 %v1131_v47, %v9691_v21  ;;  %v13183_v54 = vcombine.low %v9667_v11, %v9669_v12  ;;  %v9866_v32 = vpack.c.bf16 %v1242_v10, %v1238_v31  ;;  %v9882_v47 = vld [vmem:[#allocation9 + $0x388] sm:$0xff] }
 0x23c   :  { %v9852_v29 = vpack.c.bf16 %v1243_v4, %v1239_v58  ;;  %v9854_v59 = vpack.c.bf16 %v1245_v38, %v1241_v53  ;;  %v1195_v8 = vmul.f32 0.01, %v1033_v5  ;;  %v1035_v36 = vadd.f32 %v1034_v48, %v9682_v61 }
 0x23d   :  { %3093 = vmatpush1.bf16.msra.mxu1 %v13183_v54  ;;  %v1136_v9 = vadd.f32 %v1135_v39, %v9691_v21  ;;  %v13184_v57 = vcombine.low %v9671_v13, %v9673_v14  ;;  %v1036_v58 = vpop.f32.mrf.mxu1  ;;  %v1137_v30 = vpop.f32.mrf.mxu0  ;;  %v13185_v11 = vcombine.high %v9675_v15, %v9677_v16  ;;  %v9876_v12 = vpack.c.bf16 %v1244_v2, %v1240_v51  ;;  %v9884_v13 = vld [vmem:[#allocation9 + $0x3a8] sm:$0xff] }
 0x23e   :  { %v1197_v44 = vmul.f32 0.01, %v1134_v55  ;;  %v1037_v10 = vadd.f32 %v1036_v58, %v9694_v22  ;;  %v1138_v45 = vadd.f32 %v1137_v30, %v9697_v23  ;;  %2930 = vmatprep.mubr.bf16.mxu1 %v9852_v29  ;;  %3031 = vmatprep.mubr.bf16.mxu0 %v9854_v59  ;;  %v1194_v14 = vmul.f32 0.01, %v9848_v37 }
 0x23f   :  { %3194 = vmatpush1.bf16.msra.mxu0 %v13184_v57  ;;  %3094 = vmatprep.subr.bf16.mxu1 %v13185_v11  ;;  %v1198_v27 = vmul.f32 0.01, %v1035_v36  ;;  %v1200_v49 = vmul.f32 0.01, %v1136_v9  ;;  %v13186_v43 = vcombine.high %v9679_v17, %v9684_v18  ;;  %v1040_v51 = vpop.f32.mrf.mxu1  ;;  %v1141_v53 = vpop.f32.mrf.mxu0  ;;  %v1196_v4 = vmul.f32 0.01, %v9857_v60 }
 0x240   :  { %2931 = vmatmul.mubr.bf16.gmra.mxu1 %v9866_v32  ;;  %v1199_v38 = vmul.f32 0.01, %v1037_v10  ;;  %v1201_v31 = vmul.f32 0.01, %v1138_v45  ;;  %3032 = vmatmul.mubr.bf16.gmra.mxu0 %v9876_v12  ;;  %v13187_v48 = vcombine.low %v9675_v15, %v9677_v16  ;;  %v8111_v39 = vcombine.high %v9862_v56, %v9864_v6 }
 0x241   :  { %3195 = vmatprep.subr.bf16.mxu0 %v13186_v43  ;;  %v1247_v54 = vmax.f32 %v1033_v5, %v1195_v8  ;;  %v1250_v57 = vmax.f32 %v1035_v36, %v1198_v27  ;;  %v13188_v58 = vcombine.low %v9679_v17, %v9684_v18  ;;  %v1042_v30 = vpop.f32.mrf.mxu1  ;;  %v1143_v11 = vpop.f32.mrf.mxu0  ;;  %v13189_v43 = vcombine.high %v9686_v19, %v9688_v20 }
 0x242   :  { %3095 = vmatpush1.bf16.msra.mxu1 %v13187_v48  ;;  %v1249_v15 = vmax.f32 %v1134_v55, %v1197_v44  ;;  %v1252_v16 = vmax.f32 %v1136_v9, %v1200_v49  ;;  %v1251_v48 = vmax.f32 %v1037_v10, %v1199_v38  ;;  %v1253_v50 = vmax.f32 %v1138_v45, %v1201_v31 }
 0x243   :  { %3196 = vmatpush1.bf16.msra.mxu0 %v13188_v58  ;;  %3096 = vmatprep.subr.bf16.mxu1 %v13189_v43  ;;  %v13190_v5 = vcombine.high %v9701_v24, %v9703_v25  ;;  %v1246_v17 = vmax.f32 %v9848_v37, %v1194_v14  ;;  %v9913_v18 = vadd.f32 %v1040_v51, %v9682_v61  ;;  %v1044_v27 = vpop.f32.mrf.mxu1  ;;  %v1145_v58 = vpop.f32.mrf.mxu0 }
 0x244   :  { %v1043_v8 = vadd.f32 %v1042_v30, %v9694_v22  ;;  %v1144_v36 = vadd.f32 %v1143_v11, %v9697_v23  ;;  %v1248_v55 = vmax.f32 %v9857_v60, %v1196_v4  ;;  %v9918_v9 = vpack.c.bf16 %v1251_v48, %v1247_v54  ;;  %v9944_v54 = vld [vmem:[#allocation9 + $0x788] sm:$0xff] }
 0x245   :  { %3197 = vmatprep.subr.bf16.mxu0 %v13190_v5  ;;  %v9920_v44 = vpack.c.bf16 %v1253_v50, %v1249_v15  ;;  %v9923_v10 = vadd.f32 %v1141_v53, %v9691_v21  ;;  %v13191_v37 = vcombine.low %v9686_v19, %v9688_v20  ;;  %v9928_v45 = vpack.c.bf16 %v1250_v57, %v1246_v17  ;;  %v1046_v50 = vpop.f32.mrf.mxu1  ;;  %v1147_v4 = vpop.f32.mrf.mxu0 }
 0x246   :  { %v1203_v14 = vmul.f32 0.01, %v1043_v8  ;;  %v1045_v49 = vadd.f32 %v1044_v27, %v9682_v61  ;;  %v1146_v51 = vadd.f32 %v1145_v58, %v9691_v21  ;;  %v13192_v60 = vcombine.low %v9701_v24, %v9703_v25  ;;  %2940 = vmatprep.mubr.bf16.mxu1 %v9918_v9  ;;  %v9946_v24 = vld [vmem:[#allocation9 + $0x7a8] sm:$0xff] }
 0x247   :  { %3097 = vmatpush1.bf16.msra.mxu1 %v13191_v37  ;;  %v13193_v53 = vcombine.high %v9705_v26, %v9715_v33  ;;  %v9938_v38 = vpack.c.bf16 %v1252_v16, %v1248_v55  ;;  %v1205_v19 = vmul.f32 0.01, %v1144_v36  ;;  %v1047_v20 = vadd.f32 %v1046_v50, %v9694_v22  ;;  %3041 = vmatprep.mubr.bf16.mxu0 %v9920_v44  ;;  %v1050_v43 = vpop.f32.mrf.mxu1  ;;  %v1151_v15 = vpop.f32.mrf.mxu0 }
 0x248   :  { %3198 = vmatpush1.bf16.msra.mxu0 %v13192_v60  ;;  %v1148_v31 = vadd.f32 %v1147_v4, %v9697_v23  ;;  %v1202_v25 = vmul.f32 0.01, %v9913_v18  ;;  %v1206_v57 = vmul.f32 0.01, %v1045_v49  ;;  %v1208_v30 = vmul.f32 0.01, %v1146_v51  ;;  %2941 = vmatmul.mubr.bf16.gmra.mxu1 %v9928_v45 }
 0x249   :  { %3098 = vmatprep.subr.bf16.mxu1 %v13193_v53  ;;  %v13194_v11 = vcombine.high %v9717_v34, %v9719_v35  ;;  %v1204_v48 = vmul.f32 0.01, %v9923_v10  ;;  %v1207_v5 = vmul.f32 0.01, %v1047_v20  ;;  %v9957_v27 = vadd.f32 %v1050_v43, %v9682_v61  ;;  %3042 = vmatmul.mubr.bf16.gmra.mxu0 %v9938_v38  ;;  %v1052_v50 = vpop.f32.mrf.mxu1  ;;  %v1153_v4 = vpop.f32.mrf.mxu0 }
 0x24a   :  { %v1209_v17 = vmul.f32 0.01, %v1148_v31  ;;  %v13195_v58 = vcombine.low %v9705_v26, %v9715_v33  ;;  %v1255_v55 = vmax.f32 %v1043_v8, %v1203_v14  ;;  %v1258_v37 = vmax.f32 %v1045_v49, %v1206_v57 }
 0x24b   :  { %3199 = vmatprep.subr.bf16.mxu0 %v13194_v11  ;;  %v13196_v60 = vcombine.low %v9717_v34, %v9719_v35  ;;  %v13197_v53 = vcombine.high %v9729_v40, %v9731_v41  ;;  %v1257_v43 = vmax.f32 %v1144_v36, %v1205_v19  ;;  %v1260_v16 = vmax.f32 %v1146_v51, %v1208_v30  ;;  %v1054_v49 = vpop.f32.mrf.mxu1  ;;  %v1155_v57 = vpop.f32.mrf.mxu0 }
 0x24c   :  { %3099 = vmatpush1.bf16.msra.mxu1 %v13195_v58  ;;  %v1259_v2 = vmax.f32 %v1047_v20, %v1207_v5  ;;  %v1261_v26 = vmax.f32 %v1148_v31, %v1209_v17  ;;  %v13198_v33 = vcombine.high %v9733_v42, %v9744_v52  ;;  %v1254_v34 = vmax.f32 %v9913_v18, %v1202_v25  ;;  %v13201_v5 = vld [vmem:[#allocation22_spill] sm:$0xff]  ;;  %v13202_v17 = vld [vmem:[#allocation23_spill] sm:$0xff] }
 0x24d   :  { %3200 = vmatpush1.bf16.msra.mxu0 %v13196_v60  ;;  %3100 = vmatprep.subr.bf16.mxu1 %v13197_v53  ;;  %v9976_v35 = vadd.f32 %v1151_v15, %v9691_v21  ;;  %v1053_v8 = vadd.f32 %v1052_v50, %v9694_v22  ;;  %v1154_v14 = vadd.f32 %v1153_v4, %v9697_v23  ;;  %v1210_v20 = vmul.f32 0.01, %v9957_v27 }
 0x24e   :  { %3201 = vmatprep.subr.bf16.mxu0 %v13198_v33  ;;  %v1256_v36 = vmax.f32 %v9923_v10, %v1204_v48  ;;  %v9981_v51 = vpack.c.bf16 %v1259_v2, %v1255_v55  ;;  %v9983_v19 = vpack.c.bf16 %v1261_v26, %v1257_v43  ;;  %v13199_v18 = vcombine.low %v9729_v40, %v9731_v41  ;;  %v1056_v2 = vpop.f32.mrf.mxu1  ;;  %v1157_v48 = vpop.f32.mrf.mxu0  ;;  %v9999_v55 = vld [vmem:[#allocation9 + $0x348] sm:$0xff] }
 0x24f   :  { %v9989_v31 = vpack.c.bf16 %v1258_v37, %v1254_v34  ;;  %v1211_v25 = vmul.f32 0.01, %v1053_v8  ;;  %v1055_v30 = vadd.f32 %v1054_v49, %v9682_v61  ;;  %v1156_v15 = vadd.f32 %v1155_v57, %v9691_v21  ;;  %v10001_v40 = vld [vmem:[#allocation9 + $0x368] sm:$0xff] }
 0x250   :  { %3101 = vmatpush1.bf16.msra.mxu1 %v13199_v18  ;;  %v13200_v10 = vcombine.low %v9733_v42, %v9744_v52  ;;  %v13203_v58 = vcombine.high %v13201_v5, %v13202_v17  ;;  %v10003_v41 = vpack.c.bf16 %v1260_v16, %v1256_v36  ;;  %v1213_v37 = vmul.f32 0.01, %v1154_v14  ;;  %2950 = vmatprep.mubr.bf16.mxu1 %v9981_v51  ;;  %v1060_v43 = vpop.f32.mrf.mxu1  ;;  %v1161_v16 = vpop.f32.mrf.mxu0 }
 0x251   :  { %v1057_v60 = vadd.f32 %v1056_v2, %v9694_v22  ;;  %v1158_v50 = vadd.f32 %v1157_v48, %v9697_v23  ;;  %3051 = vmatprep.mubr.bf16.mxu0 %v9983_v19  ;;  %v1212_v42 = vmul.f32 0.01, %v9976_v35  ;;  %v1214_v52 = vmul.f32 0.01, %v1055_v30  ;;  %2951 = vmatmul.mubr.bf16.gmra.mxu1 %v9989_v31 }
 0x252   :  { %3202 = vmatpush1.bf16.msra.mxu0 %v13200_v10  ;;  %3102 = vmatprep.subr.bf16.mxu1 %v13203_v58  ;;  %v1216_v4 = vmul.f32 0.01, %v1156_v15  ;;  %v13204_v53 = vcombine.high %v9771_v63, %v9773_v3  ;;  %v8103_v26 = vcombine.high %v9944_v54, %v9946_v24  ;;  %v13205_v49 = vcombine.low %v13201_v5, %v13202_v17  ;;  %v1062_v58 = vpop.f32.mrf.mxu1 }
 0x253   :  { %v1215_v33 = vmul.f32 0.01, %v1057_v60  ;;  %v1217_v34 = vmul.f32 0.01, %v1158_v50  ;;  %3052 = vmatmul.mubr.bf16.gmra.mxu0 %v10003_v41  ;;  %v1262_v18 = vmax.f32 %v9957_v27, %v1210_v20  ;;  %v1263_v10 = vmax.f32 %v1053_v8, %v1211_v25 }
 0x254   :  { %3203 = vmatprep.subr.bf16.mxu0 %v13204_v53  ;;  %3103 = vmatpush1.bf16.msra.mxu1 %v13205_v49  ;;  %v1266_v2 = vmax.f32 %v1055_v30, %v1214_v52  ;;  %v13206_v48 = vcombine.low %v9771_v63, %v9773_v3  ;;  %v1163_v53 = vpop.f32.mrf.mxu0  ;;  %v13207_v5 = vcombine.high %v9780_v46, %v9782_v28  ;;  %v1064_v20 = vpop.f32.mrf.mxu1 }
 0x255   :  { %v1265_v17 = vmax.f32 %v1154_v14, %v1213_v37  ;;  %v1268_v49 = vmax.f32 %v1156_v15, %v1216_v4  ;;  %v1267_v57 = vmax.f32 %v1057_v60, %v1215_v33  ;;  %v1269_v11 = vmax.f32 %v1158_v50, %v1217_v34  ;;  %v10052_v60 = vld [vmem:[#allocation9 + $0x748] sm:$0xff] }
 0x256   :  { %3204 = vmatpush1.bf16.msra.mxu0 %v13206_v48  ;;  %3104 = vmatprep.subr.bf16.mxu1 %v13207_v5  ;;  %v13208_v36 = vcombine.high %v9800_v0, %v9802_v7  ;;  %v1264_v27 = vmax.f32 %v9976_v35, %v1212_v42  ;;  %v10036_v8 = vadd.f32 %v1060_v43, %v9682_v61  ;;  %v1165_v25 = vpop.f32.mrf.mxu0  ;;  %v10054_v50 = vld [vmem:[#allocation9 + $0x768] sm:$0xff] }
 0x257   :  { %v1063_v63 = vadd.f32 %v1062_v58, %v9694_v22  ;;  %v1164_v3 = vadd.f32 %v1163_v53, %v9697_v23  ;;  %v10040_v30 = vpack.c.bf16 %v1266_v2, %v1262_v18  ;;  %v10042_v14 = vpack.c.bf16 %v1267_v57, %v1263_v10 }
 0x258   :  { %3205 = vmatprep.subr.bf16.mxu0 %v13208_v36  ;;  %v10044_v15 = vpack.c.bf16 %v1269_v11, %v1265_v17  ;;  %v10047_v37 = vadd.f32 %v1161_v16, %v9691_v21  ;;  %v13209_v35 = vcombine.low %v9780_v46, %v9782_v28  ;;  %v1065_v4 = vadd.f32 %v1064_v20, %v9682_v61  ;;  %v1066_v16 = vpop.f32.mrf.mxu1  ;;  %v1167_v33 = vpop.f32.mrf.mxu0 }
 0x259   :  { %v1219_v42 = vmul.f32 0.01, %v1063_v63  ;;  %v1221_v52 = vmul.f32 0.01, %v1164_v3  ;;  %v1166_v43 = vadd.f32 %v1165_v25, %v9691_v21  ;;  %v13210_v11 = vcombine.low %v9800_v0, %v9802_v7  ;;  %2960 = vmatprep.mubr.bf16.mxu1 %v10042_v14 }
 0x25a   :  { %3105 = vmatpush1.bf16.msra.mxu1 %v13209_v35  ;;  %v13211_v46 = vcombine.high %v9815_v62, %v9817_v1  ;;  %v10064_v28 = vpack.c.bf16 %v1268_v49, %v1264_v27  ;;  %v1067_v34 = vadd.f32 %v1066_v16, %v9694_v22  ;;  %v1168_v57 = vadd.f32 %v1167_v33, %v9697_v23  ;;  %v1070_v18 = vpop.f32.mrf.mxu1  ;;  %v1171_v10 = vpop.f32.mrf.mxu0 }
 0x25b   :  { %3206 = vmatpush1.bf16.msra.mxu0 %v13210_v11  ;;  %3061 = vmatprep.mubr.bf16.mxu0 %v10044_v15  ;;  %v1218_v36 = vmul.f32 0.01, %v10036_v8  ;;  %v1222_v0 = vmul.f32 0.01, %v1065_v4  ;;  %v1224_v7 = vmul.f32 0.01, %v1166_v43  ;;  %v8094_v2 = vcombine.low %v10052_v60, %v10054_v50 }
 0x25c   :  { %3106 = vmatprep.subr.bf16.mxu1 %v13211_v46  ;;  %3207 = vmatprep.subr.bf16.mxu0 %v8111_v39  ;;  %v1220_v48 = vmul.f32 0.01, %v10047_v37  ;;  %v1271_v58 = vmax.f32 %v1063_v63, %v1219_v42  ;;  %v1223_v53 = vmul.f32 0.01, %v1067_v34  ;;  %v1225_v5 = vmul.f32 0.01, %v1168_v57  ;;  %v1072_v25 = vpop.f32.mrf.mxu1  ;;  %v1173_v35 = vpop.f32.mrf.mxu0 }
 0x25d   :  { %2961 = vmatmul.mubr.bf16.gmra.mxu1 %v10040_v30  ;;  %3062 = vmatmul.mubr.bf16.gmra.mxu0 %v10064_v28  ;;  %v13212_v17 = vcombine.low %v9815_v62, %v9817_v1  ;;  %v1273_v49 = vmax.f32 %v1164_v3, %v1221_v52  ;;  %v1274_v39 = vmax.f32 %v1065_v4, %v1222_v0  ;;  %v1407_v42 = vld [vmem:[#allocation9 + $0x308] sm:$0xff] }
 0x25e   :  { %v13213_v27 = vcombine.low %v9862_v56, %v9864_v6  ;;  %v1071_v20 = vadd.f32 %v1070_v18, %v9682_v61  ;;  %v13214_v63 = vcombine.high %v9882_v47, %v9884_v13  ;;  %v1411_v11 = vld [vmem:[#allocation9 + $0x328] sm:$0xff]  ;;  %v1276_v16 = vmax.f32 %v1166_v43, %v1224_v7  ;;  %v1074_v3 = vpop.f32.mrf.mxu1  ;;  %v1175_v52 = vpop.f32.mrf.mxu0 }
 0x25f   :  { %3107 = vmatpush2.bf16.msra.mxu1 %v13212_v17  ;;  %v1275_v33 = vmax.f32 %v1067_v34, %v1223_v53  ;;  %v1277_v62 = vmax.f32 %v1168_v57, %v1225_v5  ;;  %v1172_v1 = vadd.f32 %v1171_v10, %v9691_v21  ;;  %v1270_v56 = vmax.f32 %v10036_v8, %v1218_v36  ;;  %v1535_v43 = vld [vmem:[#allocation9 + $0x708] sm:$0xff] }
 0x260   :  { %3208 = vmatpush2.bf16.msra.mxu0 %v13213_v27  ;;  %3108 = vmatprep.subr.bf16.mxu1 %v13214_v63  ;;  %v1073_v61 = vadd.f32 %v1072_v25, %v9694_v22  ;;  %v1174_v6 = vadd.f32 %v1173_v35, %v9697_v23  ;;  %v8095_v4 = vcombine.high %v10052_v60, %v10054_v50  ;;  %v1539_v46 = vld [vmem:[#allocation9 + $0x728] sm:$0xff]  ;;  %v1226_v0 = vmul.f32 0.01, %v1071_v20 }
 0x261   :  { %3209 = vmatprep.subr.bf16.mxu0 %v8103_v26  ;;  %v1272_v34 = vmax.f32 %v10047_v37, %v1220_v48  ;;  %v10099_v21 = vpack.c.bf16 %v1275_v33, %v1271_v58  ;;  %v10101_v57 = vpack.c.bf16 %v1277_v62, %v1273_v49  ;;  %v13215_v26 = vcombine.low %v9882_v47, %v9884_v13  ;;  %v1399_v8 = vld [vmem:[#allocation9 + $0x2c8] sm:$0xff]  ;;  %v1075_v37 = vpop.f32.mrf.mxu1  ;;  %v1176_v48 = vpop.f32.mrf.mxu0 }
 0x262   :  { %v7959_v22 = vcombine.high %v1407_v42, %v1411_v11  ;;  %v1403_v23 = vld [vmem:[#allocation9 + $0x2e8] sm:$0xff]  ;;  %v10106_v36 = vpack.c.bf16 %v1274_v39, %v1270_v56  ;;  %v1227_v7 = vmul.f32 0.01, %v1073_v61  ;;  %v1229_v18 = vmul.f32 0.01, %v1174_v6 }
 0x263   :  { %3109 = vmatpush2.bf16.msra.mxu1 %v13215_v26  ;;  %v13216_v10 = vcombine.low %v9944_v54, %v9946_v24  ;;  %v13217_v58 = vcombine.high %v9999_v55, %v10001_v40  ;;  %v10114_v47 = vpack.c.bf16 %v1276_v16, %v1272_v34  ;;  %v1228_v13 = vmul.f32 0.01, %v1172_v1  ;;  %2970 = vmatprep.mubr.bf16.mxu1 %v10099_v21  ;;  %v1527_v54 = vld [vmem:[#allocation9 + $0x6c8] sm:$0xff]  ;;  %v13220_v26 = vld [vmem:[#allocation26_spill] sm:$0xff] }
 0x264   :  { %3071 = vmatprep.mubr.bf16.mxu0 %v10101_v57  ;;  %v8087_v53 = vcombine.high %v1535_v43, %v1539_v46  ;;  %v1279_v5 = vmax.f32 %v1073_v61, %v1227_v7  ;;  %v1281_v17 = vmax.f32 %v1174_v6, %v1229_v18  ;;  %v1531_v24 = vld [vmem:[#allocation9 + $0x6e8] sm:$0xff]  ;;  %v13218_v49 = vcombine.low %v9999_v55, %v10001_v40 }
 0x265   :  { %3210 = vmatpush2.bf16.msra.mxu0 %v13216_v10  ;;  %3110 = vmatprep.subr.bf16.mxu1 %v13217_v58  ;;  %v7958_v39 = vcombine.low %v1407_v42, %v1411_v11  ;;  %v8086_v27 = vcombine.low %v1535_v43, %v1539_v46  ;;  %v7951_v25 = vcombine.high %v1399_v8, %v1403_v23  ;;  %v1391_v55 = vld [vmem:[#allocation9 + $0x288] sm:$0xff]  ;;  %v1368_v58 = vld [vmem:[#allocation9 + $0x1d0] sm:$0xff] }
 0x266   :  { %3211 = vmatprep.subr.bf16.mxu0 %v8095_v4  ;;  %2971 = vmatmul.mubr.bf16.gmra.mxu1 %v10106_v36  ;;  %v1278_v35 = vmax.f32 %v1071_v20, %v1226_v0  ;;  %v10123_v63 = vpack.c.bf16 %v1279_v5, %v1279_v5  ;;  %v10125_v16 = vpack.c.bf16 %v1281_v17, %v1281_v17  ;;  %v1395_v40 = vld [vmem:[#allocation9 + $0x2a8] sm:$0xff]  ;;  %v1500_v5 = vld [vmem:[#allocation9 + $0x5f0] sm:$0xff] }
 0x267   :  { %3072 = vmatmul.mubr.bf16.gmra.mxu0 %v10114_v47  ;;  %3111 = vmatpush2.bf16.msra.mxu1 %v13218_v49  ;;  %v1280_v33 = vmax.f32 %v1172_v1, %v1228_v13  ;;  %v8079_v62 = vcombine.high %v1527_v54, %v1531_v24  ;;  %v7950_v20 = vcombine.low %v1399_v8, %v1403_v23  ;;  %v1519_v42 = vld [vmem:[#allocation9 + $0x688] sm:$0xff]  ;;  %v1372_v13 = vld [vmem:[#allocation9 + $0x1f0] sm:$0xff] }
 0x268   :  { %3112 = vmatprep.subr.bf16.mxu1 %v7959_v22  ;;  %2980 = vmatprep.mubr.bf16.mxu1 %v10123_v63  ;;  %v1523_v11 = vld [vmem:[#allocation9 + $0x6a8] sm:$0xff]  ;;  %v10132_v56 = vpack.c.bf16 %v1278_v35, %v1278_v35  ;;  %v8078_v60 = vcombine.low %v1527_v54, %v1531_v24  ;;  %v7942_v4 = vcombine.low %v1391_v55, %v1395_v40  ;;  %v1492_v35 = vld [vmem:[#allocation9 + $0x5b0] sm:$0xff] }
 0x269   :  { %3212 = vmatpush2.bf16.msra.mxu0 %v8094_v2  ;;  %3081 = vmatprep.mubr.bf16.mxu0 %v10125_v16  ;;  %v10134_v50 = vpack.c.bf16 %v1280_v33, %v1280_v33  ;;  %v7943_v2 = vcombine.high %v1391_v55, %v1395_v40  ;;  %v1383_v1 = vld [vmem:[#allocation9 + $0x248] sm:$0xff]  ;;  %v8071_v6 = vcombine.high %v1519_v42, %v1523_v11 }
 0x26a   :  { %3213 = vmatprep.subr.bf16.mxu0 %v8087_v53  ;;  %v1387_v61 = vld [vmem:[#allocation9 + $0x268] sm:$0xff]  ;;  %v8070_v46 = vcombine.low %v1519_v42, %v1523_v11  ;;  %v1496_v53 = vld [vmem:[#allocation9 + $0x5d0] sm:$0xff]  ;;  %v7921_v24 = vcombine.high %v1368_v58, %v1372_v13  ;;  %v7920_v33 = vcombine.low %v1368_v58, %v1372_v13 }
 0x26b   :  { %3113 = vmatpush2.bf16.msra.mxu1 %v7958_v39  ;;  %v1511_v3 = vld [vmem:[#allocation9 + $0x648] sm:$0xff]  ;;  %v7935_v34 = vcombine.high %v1383_v1, %v1387_v61  ;;  %v7934_v18 = vcombine.low %v1383_v1, %v1387_v61  ;;  %v8049_v49 = vcombine.high %v1496_v53, %v1500_v5  ;;  %v1360_v39 = vld [vmem:[#allocation9 + $0x190] sm:$0xff] }
 0x26c   :  { %3114 = vmatprep.subr.bf16.mxu1 %v7951_v25  ;;  %v1515_v52 = vld [vmem:[#allocation9 + $0x668] sm:$0xff]  ;;  %v1488_v25 = vld [vmem:[#allocation9 + $0x590] sm:$0xff] }
 0x26d   :  { %3214 = vmatpush2.bf16.msra.mxu0 %v8086_v27  ;;  %v13219_v43 = vld [vmem:[#allocation25_spill] sm:$0xff]  ;;  %v8063_v22 = vcombine.high %v1511_v3, %v1515_v52  ;;  %v8062_v10 = vcombine.low %v1511_v3, %v1515_v52  ;;  %v13221_v40 = vld [vmem:[#allocation24_spill] sm:$0xff] }
 0x26e   :  { %3215 = vmatprep.subr.bf16.mxu0 %v8079_v62  ;;  %2981 = vmatmul.mubr.bf16.gmra.mxu1 %v10132_v56  ;;  %v1375_v8 = vld [vmem:[#allocation9 + $0x208] sm:$0xff]  ;;  %v1364_v27 = vld [vmem:[#allocation9 + $0x1b0] sm:$0xff]  ;;  %v8048_v62 = vcombine.low %v1496_v53, %v1500_v5 }
 0x26f   :  { %3082 = vmatmul.mubr.bf16.gmra.mxu0 %v10134_v50  ;;  %3115 = vmatpush2.bf16.msra.mxu1 %v7950_v20  ;;  %v1379_v23 = vld [vmem:[#allocation9 + $0x228] sm:$0xff]  ;;  %v7913_v55 = vcombine.high %v1360_v39, %v1364_v27  ;;  %v8041_v20 = vcombine.high %v1488_v25, %v1492_v35  ;;  %v1352_v42 = vld [vmem:[#allocation9 + $0x150] sm:$0xff]  ;;  %v7912_v61 = vcombine.low %v1360_v39, %v1364_v27 }
 0x270   :  { %3122 = vmatprep.mubr.bf16.mxu1 %v13219_v43  ;;  %3223 = vmatprep.mubr.bf16.mxu0 %v13220_v26  ;;  %v1503_v0 = vld [vmem:[#allocation9 + $0x608] sm:$0xff]  ;;  %v7927_v37 = vcombine.high %v1375_v8, %v1379_v23  ;;  %v7926_v17 = vcombine.low %v1375_v8, %v1379_v23  ;;  %v1356_v11 = vld [vmem:[#allocation9 + $0x170] sm:$0xff] }
 0x271   :  { %3216 = vmatpush2.bf16.msra.mxu0 %v8078_v60  ;;  %3116 = vmatprep.subr.bf16.mxu1 %v7943_v2  ;;  %v1507_v7 = vld [vmem:[#allocation9 + $0x628] sm:$0xff]  ;;  %v13222_v60 = vld [vmem:[#allocation27_spill] sm:$0xff]  ;;  %v1480_v2 = vld [vmem:[#allocation9 + $0x550] sm:$0xff]  ;;  %v7905_v3 = vcombine.high %v1352_v42, %v1356_v11  ;;  %v7904_v8 = vcombine.low %v1352_v42, %v1356_v11 }
 0x272   :  { %3217 = vmatprep.subr.bf16.mxu0 %v8071_v6  ;;  %v8055_v48 = vcombine.high %v1503_v0, %v1507_v7  ;;  %v8054_v54 = vcombine.low %v1503_v0, %v1507_v7  ;;  %v1484_v1 = vld [vmem:[#allocation9 + $0x570] sm:$0xff]  ;;  %v8040_v6 = vcombine.low %v1488_v25, %v1492_v35 }
 0x273   :  { %3117 = vmatpush2.bf16.msra.mxu1 %v7942_v4  ;;  %v8033_v52 = vcombine.high %v1480_v2, %v1484_v1  ;;  %v1344_v4 = vld [vmem:[#allocation9 + $0x110] sm:$0xff]  ;;  %v8032_v23 = vcombine.low %v1480_v2, %v1484_v1 }
 0x274   :  { %3118 = vmatprep.subr.bf16.mxu1 %v7935_v34  ;;  %v1472_v34 = vld [vmem:[#allocation9 + $0x510] sm:$0xff] }
 0x275   :  { %3218 = vmatpush2.bf16.msra.mxu0 %v8070_v46  ;;  %v1348_v46 = vld [vmem:[#allocation9 + $0x130] sm:$0xff] }
 0x276   :  { %3219 = vmatprep.subr.bf16.mxu0 %v8063_v22  ;;  %v1476_v22 = vld [vmem:[#allocation9 + $0x530] sm:$0xff]  ;;  %v7897_v0 = vcombine.high %v1344_v4, %v1348_v46  ;;  %v7896_v58 = vcombine.low %v1344_v4, %v1348_v46 }
 0x277   :  { %3119 = vmatpush2.bf16.msra.mxu1 %v7934_v18  ;;  %v8025_v7 = vcombine.high %v1472_v34, %v1476_v22  ;;  %v1336_v18 = vld [vmem:[#allocation9 + $0xd0] sm:$0xff]  ;;  %v8024_v13 = vcombine.low %v1472_v34, %v1476_v22 }
 0x278   :  { %3120 = vmatprep.subr.bf16.mxu1 %v7927_v37  ;;  %v1464_v37 = vld [vmem:[#allocation9 + $0x4d0] sm:$0xff] }
 0x279   :  { %3220 = vmatpush2.bf16.msra.mxu0 %v8062_v10  ;;  %v1340_v10 = vld [vmem:[#allocation9 + $0xf0] sm:$0xff] }
 0x27a   :  { %3221 = vmatprep.subr.bf16.mxu0 %v8055_v48  ;;  %v1468_v48 = vld [vmem:[#allocation9 + $0x4f0] sm:$0xff]  ;;  %v7889_v53 = vcombine.high %v1336_v18, %v1340_v10  ;;  %v7888_v39 = vcombine.low %v1336_v18, %v1340_v10 }
 0x27b   :  { %3121 = vmatpush2.bf16.msra.mxu1 %v7926_v17  ;;  %v8017_v5 = vcombine.high %v1464_v37, %v1468_v48  ;;  %v1328_v17 = vld [vmem:[#allocation9 + $0x90] sm:$0xff]  ;;  %v8016_v27 = vcombine.low %v1464_v37, %v1468_v48 }
 0x27c   :  { %3292 = vmatprep.subr.bf16.mxu1 %v7921_v24  ;;  %v1456_v24 = vld [vmem:[#allocation9 + $0x490] sm:$0xff] }
 0x27d   :  { %3222 = vmatpush2.bf16.msra.mxu0 %v8054_v54  ;;  %v1332_v54 = vld [vmem:[#allocation9 + $0xb0] sm:$0xff] }
 0x27e   :  { %3393 = vmatprep.subr.bf16.mxu0 %v8049_v49  ;;  %3123 = vmatmul.mubr.bf16.vlgmr.msra.gmra.mxu1 %v13221_v40  ;;  %v1460_v49 = vld [vmem:[#allocation9 + $0x4b0] sm:$0xff]  ;;  %v7881_v25 = vcombine.high %v1328_v17, %v1332_v54  ;;  %v7880_v42 = vcombine.low %v1328_v17, %v1332_v54 }
 0x27f   :  { %3132 = vmatprep.mubr.bf16.mxu1 %v9852_v29  ;;  %3293 = vmatpush1.bf16.msra.mxu1 %v7920_v33  ;;  %v8009_v35 = vcombine.high %v1456_v24, %v1460_v49  ;;  %v1320_v33 = vld [vmem:[#allocation9 + $0x50] sm:$0xff]  ;;  %v8008_v11 = vcombine.low %v1456_v24, %v1460_v49 }
 0x280   :  { %3224 = vmatmul.mubr.bf16.vlgmr.msra.gmra.mxu0 %v13222_v60  ;;  %3294 = vmatprep.subr.bf16.mxu1 %v7913_v55  ;;  %v1448_v55 = vld [vmem:[#allocation9 + $0x450] sm:$0xff] }
 0x281   :  { %3233 = vmatprep.mubr.bf16.mxu0 %v9854_v59  ;;  %3394 = vmatpush1.bf16.msra.mxu0 %v8048_v62  ;;  %v1324_v62 = vld [vmem:[#allocation9 + $0x70] sm:$0xff] }
 0x282   :  { %3395 = vmatprep.subr.bf16.mxu0 %v8041_v20  ;;  %v1452_v20 = vld [vmem:[#allocation9 + $0x470] sm:$0xff]  ;;  %v7873_v2 = vcombine.high %v1320_v33, %v1324_v62  ;;  %v7872_v4 = vcombine.low %v1320_v33, %v1324_v62 }
 0x283   :  { %3295 = vmatpush1.bf16.msra.mxu1 %v7912_v61  ;;  %v8001_v1 = vcombine.high %v1448_v55, %v1452_v20  ;;  %v1312_v61 = vld [vmem:[#allocation9 + $0x10] sm:$0xff]  ;;  %v8000_v46 = vcombine.low %v1448_v55, %v1452_v20 }
 0x284   :  { %3296 = vmatprep.subr.bf16.mxu1 %v7905_v3  ;;  %v1440_v3 = vld [vmem:[#allocation9 + $0x410] sm:$0xff] }
 0x285   :  { %3396 = vmatpush1.bf16.msra.mxu0 %v8040_v6  ;;  %v1316_v6 = vld [vmem:[#allocation9 + $0x30] sm:$0xff] }
 0x286   :  { %3133 = vmatmul.mubr.bf16.gmra.mxu1 %v9866_v32  ;;  %3397 = vmatprep.subr.bf16.mxu0 %v8033_v52  ;;  %v1444_v52 = vld [vmem:[#allocation9 + $0x430] sm:$0xff]  ;;  %v7865_v34 = vcombine.high %v1312_v61, %v1316_v6  ;;  %v7864_v18 = vcombine.low %v1312_v61, %v1316_v6 }
 0x287   :  { %3142 = vmatprep.mubr.bf16.mxu1 %v9918_v9  ;;  %3297 = vmatpush1.bf16.msra.mxu1 %v7904_v8  ;;  %v7993_v22 = vcombine.high %v1440_v3, %v1444_v52  ;;  %v1432_v8 = vld [vmem:[#allocation9 + $0x3d0] sm:$0xff]  ;;  %v7992_v10 = vcombine.low %v1440_v3, %v1444_v52 }
 0x288   :  { %3234 = vmatmul.mubr.bf16.gmra.mxu0 %v9876_v12  ;;  %3298 = vmatprep.subr.bf16.mxu1 %v7897_v0  ;;  %v1560_v0 = vld [vmem:[#allocation9 + $0x7d0] sm:$0xff] }
 0x289   :  { %3243 = vmatprep.mubr.bf16.mxu0 %v9920_v44  ;;  %3398 = vmatpush1.bf16.msra.mxu0 %v8032_v23  ;;  %v1436_v23 = vld [vmem:[#allocation9 + $0x3f0] sm:$0xff] }
 0x28a   :  { %3399 = vmatprep.subr.bf16.mxu0 %v8025_v7  ;;  %v1564_v7 = vld [vmem:[#allocation9 + $0x7f0] sm:$0xff]  ;;  %v7985_v37 = vcombine.high %v1432_v8, %v1436_v23  ;;  %v7984_v17 = vcombine.low %v1432_v8, %v1436_v23 }
 0x28b   :  { %3299 = vmatpush1.bf16.msra.mxu1 %v7896_v58  ;;  %v8113_v48 = vcombine.high %v1560_v0, %v1564_v7  ;;  %v1424_v58 = vld [vmem:[#allocation9 + $0x390] sm:$0xff]  ;;  %v8112_v54 = vcombine.low %v1560_v0, %v1564_v7 }
 0x28c   :  { %3300 = vmatprep.subr.bf16.mxu1 %v7889_v53  ;;  %v1552_v53 = vld [vmem:[#allocation9 + $0x790] sm:$0xff] }
 0x28d   :  { %3400 = vmatpush1.bf16.msra.mxu0 %v8024_v13  ;;  %v1428_v13 = vld [vmem:[#allocation9 + $0x3b0] sm:$0xff] }
 0x28e   :  { %3143 = vmatmul.mubr.bf16.gmra.mxu1 %v9928_v45  ;;  %3401 = vmatprep.subr.bf16.mxu0 %v8017_v5  ;;  %v1556_v5 = vld [vmem:[#allocation9 + $0x7b0] sm:$0xff]  ;;  %v7977_v24 = vcombine.high %v1424_v58, %v1428_v13  ;;  %v7976_v33 = vcombine.low %v1424_v58, %v1428_v13 }
 0x28f   :  { %3152 = vmatprep.mubr.bf16.mxu1 %v9981_v51  ;;  %3301 = vmatpush1.bf16.msra.mxu1 %v7888_v39  ;;  %v8105_v49 = vcombine.high %v1552_v53, %v1556_v5  ;;  %v1416_v39 = vld [vmem:[#allocation9 + $0x350] sm:$0xff]  ;;  %v8104_v62 = vcombine.low %v1552_v53, %v1556_v5 }
 0x290   :  { %3244 = vmatmul.mubr.bf16.gmra.mxu0 %v9938_v38  ;;  %3302 = vmatprep.subr.bf16.mxu1 %v7881_v25  ;;  %v1544_v25 = vld [vmem:[#allocation9 + $0x750] sm:$0xff] }
 0x291   :  { %3253 = vmatprep.mubr.bf16.mxu0 %v9983_v19  ;;  %3402 = vmatpush1.bf16.msra.mxu0 %v8016_v27  ;;  %v1420_v27 = vld [vmem:[#allocation9 + $0x370] sm:$0xff] }
 0x292   :  { %3403 = vmatprep.subr.bf16.mxu0 %v8009_v35  ;;  %v1548_v35 = vld [vmem:[#allocation9 + $0x770] sm:$0xff]  ;;  %v7969_v55 = vcombine.high %v1416_v39, %v1420_v27  ;;  %v7968_v61 = vcombine.low %v1416_v39, %v1420_v27 }
 0x293   :  { %3303 = vmatpush1.bf16.msra.mxu1 %v7880_v42  ;;  %v8097_v20 = vcombine.high %v1544_v25, %v1548_v35  ;;  %v1408_v42 = vld [vmem:[#allocation9 + $0x310] sm:$0xff]  ;;  %v8096_v6 = vcombine.low %v1544_v25, %v1548_v35 }
 0x294   :  { %3304 = vmatprep.subr.bf16.mxu1 %v7873_v2  ;;  %v1536_v2 = vld [vmem:[#allocation9 + $0x710] sm:$0xff] }
 0x295   :  { %3404 = vmatpush1.bf16.msra.mxu0 %v8008_v11  ;;  %v1412_v11 = vld [vmem:[#allocation9 + $0x330] sm:$0xff] }
 0x296   :  { %3153 = vmatmul.mubr.bf16.gmra.mxu1 %v9989_v31  ;;  %3405 = vmatprep.subr.bf16.mxu0 %v8001_v1  ;;  %v1540_v1 = vld [vmem:[#allocation9 + $0x730] sm:$0xff]  ;;  %v7961_v3 = vcombine.high %v1408_v42, %v1412_v11  ;;  %v7960_v8 = vcombine.low %v1408_v42, %v1412_v11 }
 0x297   :  { %3162 = vmatprep.mubr.bf16.mxu1 %v10042_v14  ;;  %3305 = vmatpush1.bf16.msra.mxu1 %v7872_v4  ;;  %v8089_v52 = vcombine.high %v1536_v2, %v1540_v1  ;;  %v1400_v4 = vld [vmem:[#allocation9 + $0x2d0] sm:$0xff]  ;;  %v8088_v23 = vcombine.low %v1536_v2, %v1540_v1 }
 0x298   :  { %3254 = vmatmul.mubr.bf16.gmra.mxu0 %v10003_v41  ;;  %3306 = vmatprep.subr.bf16.mxu1 %v7865_v34  ;;  %v1528_v34 = vld [vmem:[#allocation9 + $0x6d0] sm:$0xff] }
 0x299   :  { %3263 = vmatprep.mubr.bf16.mxu0 %v10044_v15  ;;  %3406 = vmatpush1.bf16.msra.mxu0 %v8000_v46  ;;  %v1404_v46 = vld [vmem:[#allocation9 + $0x2f0] sm:$0xff] }
 0x29a   :  { %3407 = vmatprep.subr.bf16.mxu0 %v7993_v22  ;;  %v1532_v22 = vld [vmem:[#allocation9 + $0x6f0] sm:$0xff]  ;;  %v7953_v0 = vcombine.high %v1400_v4, %v1404_v46  ;;  %v7952_v58 = vcombine.low %v1400_v4, %v1404_v46 }
 0x29b   :  { %3307 = vmatpush1.bf16.msra.mxu1 %v7864_v18  ;;  %v8081_v7 = vcombine.high %v1528_v34, %v1532_v22  ;;  %v1392_v18 = vld [vmem:[#allocation9 + $0x290] sm:$0xff]  ;;  %v8080_v13 = vcombine.low %v1528_v34, %v1532_v22 }
 0x29c   :  { %3308 = vmatprep.subr.bf16.mxu1 %v7985_v37  ;;  %v1520_v37 = vld [vmem:[#allocation9 + $0x690] sm:$0xff] }
 0x29d   :  { %3408 = vmatpush1.bf16.msra.mxu0 %v7992_v10  ;;  %v1396_v10 = vld [vmem:[#allocation9 + $0x2b0] sm:$0xff] }
 0x29e   :  { %3163 = vmatmul.mubr.bf16.gmra.mxu1 %v10040_v30  ;;  %3409 = vmatprep.subr.bf16.mxu0 %v8113_v48  ;;  %v1524_v48 = vld [vmem:[#allocation9 + $0x6b0] sm:$0xff]  ;;  %v7945_v53 = vcombine.high %v1392_v18, %v1396_v10  ;;  %v7944_v39 = vcombine.low %v1392_v18, %v1396_v10 }
 0x29f   :  { %3172 = vmatprep.mubr.bf16.mxu1 %v10099_v21  ;;  %3309 = vmatpush2.bf16.msra.mxu1 %v7984_v17  ;;  %v8073_v5 = vcombine.high %v1520_v37, %v1524_v48  ;;  %v1384_v17 = vld [vmem:[#allocation9 + $0x250] sm:$0xff]  ;;  %v8072_v27 = vcombine.low %v1520_v37, %v1524_v48 }
 0x2a0   :  { %3264 = vmatmul.mubr.bf16.gmra.mxu0 %v10064_v28  ;;  %3310 = vmatprep.subr.bf16.mxu1 %v7977_v24  ;;  %v1512_v24 = vld [vmem:[#allocation9 + $0x650] sm:$0xff] }
 0x2a1   :  { %3273 = vmatprep.mubr.bf16.mxu0 %v10101_v57  ;;  %3410 = vmatpush2.bf16.msra.mxu0 %v8112_v54  ;;  %v1388_v54 = vld [vmem:[#allocation9 + $0x270] sm:$0xff] }
 0x2a2   :  { %3411 = vmatprep.subr.bf16.mxu0 %v8105_v49  ;;  %v1516_v49 = vld [vmem:[#allocation9 + $0x670] sm:$0xff]  ;;  %v7937_v25 = vcombine.high %v1384_v17, %v1388_v54  ;;  %v7936_v42 = vcombine.low %v1384_v17, %v1388_v54 }
 0x2a3   :  { %3311 = vmatpush2.bf16.msra.mxu1 %v7976_v33  ;;  %v8065_v35 = vcombine.high %v1512_v24, %v1516_v49  ;;  %v1376_v33 = vld [vmem:[#allocation9 + $0x210] sm:$0xff]  ;;  %v8064_v11 = vcombine.low %v1512_v24, %v1516_v49 }
 0x2a4   :  { %3312 = vmatprep.subr.bf16.mxu1 %v7969_v55  ;;  %v1504_v55 = vld [vmem:[#allocation9 + $0x610] sm:$0xff] }
 0x2a5   :  { %3412 = vmatpush2.bf16.msra.mxu0 %v8104_v62  ;;  %v1380_v62 = vld [vmem:[#allocation9 + $0x230] sm:$0xff] }
 0x2a6   :  { %3173 = vmatmul.mubr.bf16.gmra.mxu1 %v10106_v36  ;;  %3413 = vmatprep.subr.bf16.mxu0 %v8097_v20  ;;  %v1508_v20 = vld [vmem:[#allocation9 + $0x630] sm:$0xff]  ;;  %v7929_v2 = vcombine.high %v1376_v33, %v1380_v62  ;;  %v7928_v4 = vcombine.low %v1376_v33, %v1380_v62 }
 0x2a7   :  { %3182 = vmatprep.mubr.bf16.mxu1 %v10123_v63  ;;  %3313 = vmatpush2.bf16.msra.mxu1 %v7968_v61  ;;  %v8057_v1 = vcombine.high %v1504_v55, %v1508_v20  ;;  %v1369_v61 = vld [vmem:[#allocation9 + $0x1d8] sm:$0xff]  ;;  %v8056_v46 = vcombine.low %v1504_v55, %v1508_v20 }
 0x2a8   :  { %3274 = vmatmul.mubr.bf16.gmra.mxu0 %v10114_v47  ;;  %3314 = vmatprep.subr.bf16.mxu1 %v7961_v3  ;;  %v1497_v3 = vld [vmem:[#allocation9 + $0x5d8] sm:$0xff] }
 0x2a9   :  { %3283 = vmatprep.mubr.bf16.mxu0 %v10125_v16  ;;  %3414 = vmatpush2.bf16.msra.mxu0 %v8096_v6  ;;  %v1373_v6 = vld [vmem:[#allocation9 + $0x1f8] sm:$0xff] }
 0x2aa   :  { %3415 = vmatprep.subr.bf16.mxu0 %v8089_v52  ;;  %v1501_v52 = vld [vmem:[#allocation9 + $0x5f8] sm:$0xff]  ;;  %v7923_v34 = vcombine.high %v1369_v61, %v1373_v6  ;;  %v7922_v18 = vcombine.low %v1369_v61, %v1373_v6 }
 0x2ab   :  { %3315 = vmatpush2.bf16.msra.mxu1 %v7960_v8  ;;  %v8051_v22 = vcombine.high %v1497_v3, %v1501_v52  ;;  %v1361_v8 = vld [vmem:[#allocation9 + $0x198] sm:$0xff]  ;;  %v8050_v10 = vcombine.low %v1497_v3, %v1501_v52 }
 0x2ac   :  { %3316 = vmatprep.subr.bf16.mxu1 %v7953_v0  ;;  %v1489_v0 = vld [vmem:[#allocation9 + $0x598] sm:$0xff] }
 0x2ad   :  { %3416 = vmatpush2.bf16.msra.mxu0 %v8088_v23  ;;  %v1365_v23 = vld [vmem:[#allocation9 + $0x1b8] sm:$0xff] }
 0x2ae   :  { %3183 = vmatmul.mubr.bf16.gmra.mxu1 %v10132_v56  ;;  %3417 = vmatprep.subr.bf16.mxu0 %v8081_v7  ;;  %v1493_v7 = vld [vmem:[#allocation9 + $0x5b8] sm:$0xff]  ;;  %v7915_v37 = vcombine.high %v1361_v8, %v1365_v23  ;;  %v7914_v17 = vcombine.low %v1361_v8, %v1365_v23 }
 0x2af   :  { %3324 = vmatprep.mubr.bf16.mxu1 %v13219_v43  ;;  %3317 = vmatpush2.bf16.msra.mxu1 %v7952_v58  ;;  %v8043_v48 = vcombine.high %v1489_v0, %v1493_v7  ;;  %v1353_v58 = vld [vmem:[#allocation9 + $0x158] sm:$0xff]  ;;  %v8042_v54 = vcombine.low %v1489_v0, %v1493_v7 }
 0x2b0   :  { %3284 = vmatmul.mubr.bf16.gmra.mxu0 %v10134_v50  ;;  %3318 = vmatprep.subr.bf16.mxu1 %v7945_v53  ;;  %v1481_v53 = vld [vmem:[#allocation9 + $0x558] sm:$0xff] }
 0x2b1   :  { %3425 = vmatprep.mubr.bf16.mxu0 %v13220_v26  ;;  %3418 = vmatpush2.bf16.msra.mxu0 %v8080_v13  ;;  %v1357_v13 = vld [vmem:[#allocation9 + $0x178] sm:$0xff] }
 0x2b2   :  { %3419 = vmatprep.subr.bf16.mxu0 %v8073_v5  ;;  %v1485_v5 = vld [vmem:[#allocation9 + $0x578] sm:$0xff]  ;;  %v7907_v24 = vcombine.high %v1353_v58, %v1357_v13  ;;  %v7906_v33 = vcombine.low %v1353_v58, %v1357_v13 }
 0x2b3   :  { %3319 = vmatpush2.bf16.msra.mxu1 %v7944_v39  ;;  %v8035_v49 = vcombine.high %v1481_v53, %v1485_v5  ;;  %v1345_v39 = vld [vmem:[#allocation9 + $0x118] sm:$0xff]  ;;  %v8034_v62 = vcombine.low %v1481_v53, %v1485_v5 }
 0x2b4   :  { %3320 = vmatprep.subr.bf16.mxu1 %v7937_v25  ;;  %v1473_v25 = vld [vmem:[#allocation9 + $0x518] sm:$0xff] }
 0x2b5   :  { %3420 = vmatpush2.bf16.msra.mxu0 %v8072_v27  ;;  %v1349_v27 = vld [vmem:[#allocation9 + $0x138] sm:$0xff] }
 0x2b6   :  { %3421 = vmatprep.subr.bf16.mxu0 %v8065_v35  ;;  %v1477_v35 = vld [vmem:[#allocation9 + $0x538] sm:$0xff]  ;;  %v7899_v55 = vcombine.high %v1345_v39, %v1349_v27  ;;  %v7898_v61 = vcombine.low %v1345_v39, %v1349_v27 }
 0x2b7   :  { %3321 = vmatpush2.bf16.msra.mxu1 %v7936_v42  ;;  %v8027_v20 = vcombine.high %v1473_v25, %v1477_v35  ;;  %v1337_v42 = vld [vmem:[#allocation9 + $0xd8] sm:$0xff]  ;;  %v8026_v6 = vcombine.low %v1473_v25, %v1477_v35 }
 0x2b8   :  { %3322 = vmatprep.subr.bf16.mxu1 %v7929_v2  ;;  %v1465_v2 = vld [vmem:[#allocation9 + $0x4d8] sm:$0xff] }
 0x2b9   :  { %3422 = vmatpush2.bf16.msra.mxu0 %v8064_v11  ;;  %v1341_v11 = vld [vmem:[#allocation9 + $0xf8] sm:$0xff] }
 0x2ba   :  { %3423 = vmatprep.subr.bf16.mxu0 %v8057_v1  ;;  %v1469_v1 = vld [vmem:[#allocation9 + $0x4f8] sm:$0xff]  ;;  %v7891_v3 = vcombine.high %v1337_v42, %v1341_v11  ;;  %v7890_v8 = vcombine.low %v1337_v42, %v1341_v11 }
 0x2bb   :  { %3323 = vmatpush2.bf16.msra.mxu1 %v7928_v4  ;;  %v8019_v52 = vcombine.high %v1465_v2, %v1469_v1  ;;  %v1329_v4 = vld [vmem:[#allocation9 + $0x98] sm:$0xff]  ;;  %v8018_v23 = vcombine.low %v1465_v2, %v1469_v1 }
 0x2bc   :  { %3494 = vmatprep.subr.bf16.mxu1 %v7923_v34  ;;  %v1457_v34 = vld [vmem:[#allocation9 + $0x498] sm:$0xff] }
 0x2bd   :  { %3424 = vmatpush2.bf16.msra.mxu0 %v8056_v46  ;;  %v1333_v46 = vld [vmem:[#allocation9 + $0xb8] sm:$0xff] }
 0x2be   :  { %3595 = vmatprep.subr.bf16.mxu0 %v8051_v22  ;;  %3325 = vmatmul.mubr.bf16.vlgmr.msra.gmra.mxu1 %v13221_v40  ;;  %v1461_v22 = vld [vmem:[#allocation9 + $0x4b8] sm:$0xff]  ;;  %v7883_v0 = vcombine.high %v1329_v4, %v1333_v46  ;;  %v7882_v58 = vcombine.low %v1329_v4, %v1333_v46 }
 0x2bf   :  { %3334 = vmatprep.mubr.bf16.mxu1 %v9852_v29  ;;  %3495 = vmatpush1.bf16.msra.mxu1 %v7922_v18  ;;  %v8011_v7 = vcombine.high %v1457_v34, %v1461_v22  ;;  %v1321_v18 = vld [vmem:[#allocation9 + $0x58] sm:$0xff]  ;;  %v8010_v13 = vcombine.low %v1457_v34, %v1461_v22 }
 0x2c0   :  { %3426 = vmatmul.mubr.bf16.vlgmr.msra.gmra.mxu0 %v13222_v60  ;;  %3496 = vmatprep.subr.bf16.mxu1 %v7915_v37  ;;  %v1449_v37 = vld [vmem:[#allocation9 + $0x458] sm:$0xff] }
 0x2c1   :  { %3435 = vmatprep.mubr.bf16.mxu0 %v9854_v59  ;;  %3596 = vmatpush1.bf16.msra.mxu0 %v8050_v10  ;;  %v1325_v10 = vld [vmem:[#allocation9 + $0x78] sm:$0xff] }
 0x2c2   :  { %3597 = vmatprep.subr.bf16.mxu0 %v8043_v48  ;;  %v1453_v48 = vld [vmem:[#allocation9 + $0x478] sm:$0xff]  ;;  %v7875_v53 = vcombine.high %v1321_v18, %v1325_v10  ;;  %v7874_v39 = vcombine.low %v1321_v18, %v1325_v10 }
 0x2c3   :  { %3497 = vmatpush1.bf16.msra.mxu1 %v7914_v17  ;;  %v8003_v5 = vcombine.high %v1449_v37, %v1453_v48  ;;  %v1313_v17 = vld [vmem:[#allocation9 + $0x18] sm:$0xff]  ;;  %v8002_v27 = vcombine.low %v1449_v37, %v1453_v48 }
 0x2c4   :  { %3498 = vmatprep.subr.bf16.mxu1 %v7907_v24  ;;  %v1441_v24 = vld [vmem:[#allocation9 + $0x418] sm:$0xff] }
 0x2c5   :  { %3598 = vmatpush1.bf16.msra.mxu0 %v8042_v54  ;;  %v1317_v54 = vld [vmem:[#allocation9 + $0x38] sm:$0xff] }
 0x2c6   :  { %3335 = vmatmul.mubr.bf16.gmra.mxu1 %v9866_v32  ;;  %3599 = vmatprep.subr.bf16.mxu0 %v8035_v49  ;;  %v1445_v49 = vld [vmem:[#allocation9 + $0x438] sm:$0xff]  ;;  %v7867_v25 = vcombine.high %v1313_v17, %v1317_v54  ;;  %v7866_v42 = vcombine.low %v1313_v17, %v1317_v54 }
 0x2c7   :  { %3344 = vmatprep.mubr.bf16.mxu1 %v9918_v9  ;;  %3499 = vmatpush1.bf16.msra.mxu1 %v7906_v33  ;;  %v7995_v35 = vcombine.high %v1441_v24, %v1445_v49  ;;  %v1433_v33 = vld [vmem:[#allocation9 + $0x3d8] sm:$0xff]  ;;  %v7994_v11 = vcombine.low %v1441_v24, %v1445_v49 }
 0x2c8   :  { %3436 = vmatmul.mubr.bf16.gmra.mxu0 %v9876_v12  ;;  %3500 = vmatprep.subr.bf16.mxu1 %v7899_v55  ;;  %v1561_v55 = vld [vmem:[#allocation9 + $0x7d8] sm:$0xff] }
 0x2c9   :  { %3445 = vmatprep.mubr.bf16.mxu0 %v9920_v44  ;;  %3600 = vmatpush1.bf16.msra.mxu0 %v8034_v62  ;;  %v1437_v62 = vld [vmem:[#allocation9 + $0x3f8] sm:$0xff] }
 0x2ca   :  { %3601 = vmatprep.subr.bf16.mxu0 %v8027_v20  ;;  %v1565_v20 = vld [vmem:[#allocation9 + $0x7f8] sm:$0xff]  ;;  %v7987_v2 = vcombine.high %v1433_v33, %v1437_v62  ;;  %v7986_v4 = vcombine.low %v1433_v33, %v1437_v62 }
 0x2cb   :  { %3501 = vmatpush1.bf16.msra.mxu1 %v7898_v61  ;;  %v8115_v1 = vcombine.high %v1561_v55, %v1565_v20  ;;  %v1425_v61 = vld [vmem:[#allocation9 + $0x398] sm:$0xff]  ;;  %v8114_v46 = vcombine.low %v1561_v55, %v1565_v20 }
 0x2cc   :  { %3502 = vmatprep.subr.bf16.mxu1 %v7891_v3  ;;  %v1553_v3 = vld [vmem:[#allocation9 + $0x798] sm:$0xff] }
 0x2cd   :  { %3602 = vmatpush1.bf16.msra.mxu0 %v8026_v6  ;;  %v1429_v6 = vld [vmem:[#allocation9 + $0x3b8] sm:$0xff] }
 0x2ce   :  { %3345 = vmatmul.mubr.bf16.gmra.mxu1 %v9928_v45  ;;  %3603 = vmatprep.subr.bf16.mxu0 %v8019_v52  ;;  %v1557_v52 = vld [vmem:[#allocation9 + $0x7b8] sm:$0xff]  ;;  %v7979_v34 = vcombine.high %v1425_v61, %v1429_v6  ;;  %v7978_v18 = vcombine.low %v1425_v61, %v1429_v6 }
 0x2cf   :  { %3354 = vmatprep.mubr.bf16.mxu1 %v9981_v51  ;;  %3503 = vmatpush1.bf16.msra.mxu1 %v7890_v8  ;;  %v8107_v22 = vcombine.high %v1553_v3, %v1557_v52  ;;  %v1417_v8 = vld [vmem:[#allocation9 + $0x358] sm:$0xff]  ;;  %v8106_v10 = vcombine.low %v1553_v3, %v1557_v52 }
 0x2d0   :  { %3446 = vmatmul.mubr.bf16.gmra.mxu0 %v9938_v38  ;;  %3504 = vmatprep.subr.bf16.mxu1 %v7883_v0  ;;  %v1545_v0 = vld [vmem:[#allocation9 + $0x758] sm:$0xff] }
 0x2d1   :  { %3455 = vmatprep.mubr.bf16.mxu0 %v9983_v19  ;;  %3604 = vmatpush1.bf16.msra.mxu0 %v8018_v23  ;;  %v1421_v23 = vld [vmem:[#allocation9 + $0x378] sm:$0xff] }
 0x2d2   :  { %3605 = vmatprep.subr.bf16.mxu0 %v8011_v7  ;;  %v1549_v7 = vld [vmem:[#allocation9 + $0x778] sm:$0xff]  ;;  %v7971_v37 = vcombine.high %v1417_v8, %v1421_v23  ;;  %v7970_v17 = vcombine.low %v1417_v8, %v1421_v23 }
 0x2d3   :  { %3505 = vmatpush1.bf16.msra.mxu1 %v7882_v58  ;;  %v8099_v48 = vcombine.high %v1545_v0, %v1549_v7  ;;  %v1409_v58 = vld [vmem:[#allocation9 + $0x318] sm:$0xff]  ;;  %v8098_v54 = vcombine.low %v1545_v0, %v1549_v7 }
 0x2d4   :  { %3506 = vmatprep.subr.bf16.mxu1 %v7875_v53  ;;  %v1537_v53 = vld [vmem:[#allocation9 + $0x718] sm:$0xff] }
 0x2d5   :  { %3606 = vmatpush1.bf16.msra.mxu0 %v8010_v13  ;;  %v1413_v13 = vld [vmem:[#allocation9 + $0x338] sm:$0xff] }
 0x2d6   :  { %3355 = vmatmul.mubr.bf16.gmra.mxu1 %v9989_v31  ;;  %3607 = vmatprep.subr.bf16.mxu0 %v8003_v5  ;;  %v1541_v5 = vld [vmem:[#allocation9 + $0x738] sm:$0xff]  ;;  %v7963_v24 = vcombine.high %v1409_v58, %v1413_v13  ;;  %v7962_v33 = vcombine.low %v1409_v58, %v1413_v13 }
 0x2d7   :  { %3364 = vmatprep.mubr.bf16.mxu1 %v10042_v14  ;;  %3507 = vmatpush1.bf16.msra.mxu1 %v7874_v39  ;;  %v8091_v49 = vcombine.high %v1537_v53, %v1541_v5  ;;  %v1401_v39 = vld [vmem:[#allocation9 + $0x2d8] sm:$0xff]  ;;  %v8090_v62 = vcombine.low %v1537_v53, %v1541_v5 }
 0x2d8   :  { %3456 = vmatmul.mubr.bf16.gmra.mxu0 %v10003_v41  ;;  %3508 = vmatprep.subr.bf16.mxu1 %v7867_v25  ;;  %v1529_v25 = vld [vmem:[#allocation9 + $0x6d8] sm:$0xff] }
 0x2d9   :  { %3465 = vmatprep.mubr.bf16.mxu0 %v10044_v15  ;;  %3608 = vmatpush1.bf16.msra.mxu0 %v8002_v27  ;;  %v1405_v27 = vld [vmem:[#allocation9 + $0x2f8] sm:$0xff] }
 0x2da   :  { %3609 = vmatprep.subr.bf16.mxu0 %v7995_v35  ;;  %v1533_v35 = vld [vmem:[#allocation9 + $0x6f8] sm:$0xff]  ;;  %v7955_v55 = vcombine.high %v1401_v39, %v1405_v27  ;;  %v7954_v61 = vcombine.low %v1401_v39, %v1405_v27 }
 0x2db   :  { %3509 = vmatpush1.bf16.msra.mxu1 %v7866_v42  ;;  %v8083_v20 = vcombine.high %v1529_v25, %v1533_v35  ;;  %v1393_v42 = vld [vmem:[#allocation9 + $0x298] sm:$0xff]  ;;  %v8082_v6 = vcombine.low %v1529_v25, %v1533_v35  ;;  %v8724_v25 = vld [vmem:[%s13087_s7 + $0x450] ss:$24 sps:$4 sm:$0xff]  }
 0x2dc   :  { %3510 = vmatprep.subr.bf16.mxu1 %v7987_v2  ;;  %v1521_v2 = vld [vmem:[#allocation9 + $0x698] sm:$0xff] }
 0x2dd   :  { %3610 = vmatpush1.bf16.msra.mxu0 %v7994_v11  ;;  %v1397_v11 = vld [vmem:[#allocation9 + $0x2b8] sm:$0xff] }
 0x2de   :  { %3365 = vmatmul.mubr.bf16.gmra.mxu1 %v10040_v30  ;;  %3611 = vmatprep.subr.bf16.mxu0 %v8115_v1  ;;  %v1525_v1 = vld [vmem:[#allocation9 + $0x6b8] sm:$0xff]  ;;  %v7947_v3 = vcombine.high %v1393_v42, %v1397_v11  ;;  %v7946_v8 = vcombine.low %v1393_v42, %v1397_v11  ;;  %v8717_v42 = vld [vmem:[%s13087_s7 + $0xf4] ss:$24 sps:$4 sm:$0xff]  }
 0x2df   :  { %3374 = vmatprep.mubr.bf16.mxu1 %v10099_v21  ;;  %3511 = vmatpush2.bf16.msra.mxu1 %v7986_v4  ;;  %v8075_v52 = vcombine.high %v1521_v2, %v1525_v1  ;;  %v1385_v4 = vld [vmem:[#allocation9 + $0x258] sm:$0xff]  ;;  %v8074_v23 = vcombine.low %v1521_v2, %v1525_v1  ;;  %v8738_v11 = vld [vmem:[%s13087_s7 + $0x3f4] ss:$24 sps:$4 sm:$0xff]   ;;  %v8715_v2 = vld [vmem:[%s13087_s7 + $0xf0] ss:$24 sps:$4 sm:$0xff]  }
 0x2e0   :  { %3466 = vmatmul.mubr.bf16.gmra.mxu0 %v10064_v28  ;;  %3512 = vmatprep.subr.bf16.mxu1 %v7979_v34  ;;  %v1513_v34 = vld [vmem:[#allocation9 + $0x658] sm:$0xff] }
 0x2e1   :  { %3475 = vmatprep.mubr.bf16.mxu0 %v10101_v57  ;;  %3612 = vmatpush2.bf16.msra.mxu0 %v8114_v46  ;;  %v1389_v46 = vld [vmem:[#allocation9 + $0x278] sm:$0xff] }
 0x2e2   :  { %3613 = vmatprep.subr.bf16.mxu0 %v8107_v22  ;;  %v1517_v22 = vld [vmem:[#allocation9 + $0x678] sm:$0xff]  ;;  %v7939_v0 = vcombine.high %v1385_v4, %v1389_v46  ;;  %v7938_v58 = vcombine.low %v1385_v4, %v1389_v46 }
 0x2e3   :  { %3513 = vmatpush2.bf16.msra.mxu1 %v7978_v18  ;;  %v8067_v7 = vcombine.high %v1513_v34, %v1517_v22  ;;  %v1377_v18 = vld [vmem:[#allocation9 + $0x218] sm:$0xff] }
 0x2e4   :  { %3514 = vmatprep.subr.bf16.mxu1 %v7971_v37  ;;  %v1505_v37 = vld [vmem:[#allocation9 + $0x618] sm:$0xff] }
 0x2e5   :  { %3614 = vmatpush2.bf16.msra.mxu0 %v8106_v10  ;;  %v1381_v10 = vld [vmem:[#allocation9 + $0x238] sm:$0xff] }
 0x2e6   :  { %3375 = vmatmul.mubr.bf16.gmra.mxu1 %v10106_v36  ;;  %3615 = vmatprep.subr.bf16.mxu0 %v8099_v48  ;;  %v1509_v48 = vld [vmem:[#allocation9 + $0x638] sm:$0xff]  ;;  %v7931_v13 = vcombine.high %v1377_v18, %v1381_v10 }
 0x2e7   :  { %3384 = vmatprep.mubr.bf16.mxu1 %v10123_v63  ;;  %3515 = vmatpush2.bf16.msra.mxu1 %v7970_v17  ;;  %v8059_v53 = vcombine.high %v1505_v37, %v1509_v48  ;;  %v8058_v5 = vcombine.low %v1505_v37, %v1509_v48  ;;  %v8711_v17 = vld [vmem:[%s13087_s7 + $0x154] ss:$24 sps:$4 sm:$0xff]   ;;  %v8714_v27 = vld [vmem:[%s13087_s7 + $0x124] ss:$24 sps:$4 sm:$0xff]   ;;  %v8748_v37 = vld [vmem:[%s13087_s7 + $0x390] ss:$24 sps:$4 sm:$0xff]  }
 0x2e8   :  { %3476 = vmatmul.mubr.bf16.gmra.mxu0 %v10114_v47  ;;  %3516 = vmatprep.subr.bf16.mxu1 %v7963_v24  ;;  %v8709_v24 = vld [vmem:[%s13087_s7 + $0x150] ss:$24 sps:$4 sm:$0xff]   ;;  %v8744_v4 = vld [vmem:[%s13087_s7 + $0x3c4] ss:$24 sps:$4 sm:$0xff]  }
 0x2e9   :  { %3485 = vmatprep.mubr.bf16.mxu0 %v10125_v16  ;;  %3616 = vmatpush2.bf16.msra.mxu0 %v8098_v54  ;;  %v8726_v54 = vld [vmem:[%s13087_s7 + $0x454] ss:$24 sps:$4 sm:$0xff]  }
 0x2ea   :  { %3617 = vmatprep.subr.bf16.mxu0 %v8091_v49 }
 0x2eb   :  { %3517 = vmatpush2.bf16.msra.mxu1 %v7962_v33 }
 0x2ec   :  { %3518 = vmatprep.subr.bf16.mxu1 %v7955_v55  ;;  %v8712_v55 = vld [vmem:[%s13087_s7 + $0x120] ss:$24 sps:$4 sm:$0xff]  }
 0x2ed   :  { %3618 = vmatpush2.bf16.msra.mxu0 %v8090_v62  ;;  %v8732_v62 = vld [vmem:[%s13087_s7 + $0x424] ss:$24 sps:$4 sm:$0xff]  }
 0x2ee   :  { %3385 = vmatmul.mubr.bf16.gmra.mxu1 %v10132_v56  ;;  %3619 = vmatprep.subr.bf16.mxu0 %v8083_v20 }
 0x2ef   :  { %3526 = vmatprep.mubr.bf16.mxu1 %v13219_v43  ;;  %3519 = vmatpush2.bf16.msra.mxu1 %v7954_v61  ;;  %v8066_v43 = vcombine.low %v1513_v34, %v1517_v22 }
 0x2f0   :  { %3486 = vmatmul.mubr.bf16.gmra.mxu0 %v10134_v50  ;;  %3520 = vmatprep.subr.bf16.mxu1 %v7947_v3  ;;  %v8736_v3 = vld [vmem:[%s13087_s7 + $0x3f0] ss:$24 sps:$4 sm:$0xff]  }
 0x2f1   :  { %3627 = vmatprep.mubr.bf16.mxu0 %v13220_v26  ;;  %3620 = vmatpush2.bf16.msra.mxu0 %v8082_v6  ;;  %v7930_v26 = vcombine.low %v1377_v18, %v1381_v10  ;;  %v8720_v6 = vld [vmem:[%s13087_s7 + $0xc4] ss:$24 sps:$4 sm:$0xff]  }
 0x2f2   :  { %3621 = vmatprep.subr.bf16.mxu0 %v8075_v52  ;;  %v8729_v10 = vld [vmem:[%s13087_s7 + $0x64] ss:$24 sps:$4 sm:$0xff]  }
 0x2f3   :  { %3521 = vmatpush2.bf16.msra.mxu1 %v7946_v8  ;;  %v8750_v8 = vld [vmem:[%s13087_s7 + $0x394] ss:$24 sps:$4 sm:$0xff]  }
 0x2f4   :  { %3522 = vmatprep.subr.bf16.mxu1 %v7939_v0  ;;  %v8721_v0 = vld [vmem:[%s13087_s7 + $0x90] ss:$24 sps:$4 sm:$0xff]  }
 0x2f5   :  { %3622 = vmatpush2.bf16.msra.mxu0 %v8074_v23 }
 0x2f6   :  { %3623 = vmatprep.subr.bf16.mxu0 %v8067_v7 }
 0x2f7   :  { %3523 = vmatpush2.bf16.msra.mxu1 %v7938_v58  ;;  %v10205_v49 = vpop.f32.mrf.mxu1  ;;  %v10207_v39 = vpop.f32.mrf.mxu0  ;;  %v8756_v58 = vld [vmem:[%s13087_s7 + $0x364] ss:$24 sps:$4 sm:$0xff]  }
 0x2f8   :  { %3524 = vmatprep.subr.bf16.mxu1 %v7931_v13 }
 0x2f9   :  { %3624 = vmatpush2.bf16.msra.mxu0 %v8066_v43  ;;  %v10216_v35 = vpop.f32.mrf.mxu1  ;;  %v10218_v33 = vpop.f32.mrf.mxu0 }
 0x2fa   :  { %3625 = vmatprep.subr.bf16.mxu0 %v8059_v53 }
 0x2fb   :  { %3525 = vmatpush2.bf16.msra.mxu1 %v7930_v26  ;;  %v10231_v20 = vpop.f32.mrf.mxu0  ;;  %v8762_v26 = vld [vmem:[%s13087_s7 + $0x334] ss:$24 sps:$4 sm:$0xff]  }
 0x2fc   :  { %6296 = vmatprep.subr.bf16.mxu1 %v8711_v17  ;;  %v8733_v17 = vld [vmem:[%s13087_s7 + $0x30] ss:$24 sps:$4 sm:$0xff]  }
 0x2fd   :  { %3626 = vmatpush2.bf16.msra.mxu0 %v8058_v5 }
 0x2fe   :  { %6397 = vmatprep.subr.bf16.mxu0 %v8726_v54  ;;  %3527 = vmatmul.mubr.bf16.vlgmr.msra.gmra.mxu1 %v13221_v40  ;;  %v10229_v40 = vpop.f32.mrf.mxu1 }
 0x2ff   :  { %3536 = vmatprep.mubr.bf16.mxu1 %v9852_v29  ;;  %6297 = vmatpush1.bf16.msra.mxu1 %v8709_v24  ;;  %v8730_v29 = vld [vmem:[%s13087_s7 + $0x420] ss:$24 sps:$4 sm:$0xff]  }
 0x300   :  { %3628 = vmatmul.mubr.bf16.vlgmr.msra.gmra.mxu0 %v13222_v60  ;;  %6298 = vmatprep.subr.bf16.mxu1 %v8714_v27  ;;  %v10241_v60 = vpop.f32.mrf.mxu0  ;;  %v8741_v27 = vld [vmem:[%s13087_s7 + $0x4] ss:$24 sps:$4 sm:$0xff]  }
 0x301   :  { %3637 = vmatprep.mubr.bf16.mxu0 %v9854_v59  ;;  %6398 = vmatpush1.bf16.msra.mxu0 %v8724_v25  ;;  %v10239_v59 = vpop.f32.mrf.mxu1  ;;  %v8760_v25 = vld [vmem:[%s13087_s7 + $0x330] ss:$24 sps:$4 sm:$0xff]  }
 0x302   :  { %6399 = vmatprep.subr.bf16.mxu0 %v8732_v62  ;;  %v10251_v61 = vpop.f32.mrf.mxu0 }
 0x303   :  { %6299 = vmatpush1.bf16.msra.mxu1 %v8712_v55  ;;  %v10249_v1 = vpop.f32.mrf.mxu1  ;;  %v8768_v55 = vld [vmem:[%s13087_s7 + $0x304] ss:$24 sps:$4 sm:$0xff]  }
 0x304   :  { %6300 = vmatprep.subr.bf16.mxu1 %v8717_v42  ;;  %v10267_v46 = vpop.f32.mrf.mxu0 }
 0x305   :  { %6400 = vmatpush1.bf16.msra.mxu0 %v8730_v29  ;;  %v10260_v52 = vpop.f32.mrf.mxu1 }
 0x306   :  { %3537 = vmatmul.mubr.bf16.gmra.mxu1 %v9866_v32  ;;  %6401 = vmatprep.subr.bf16.mxu0 %v8738_v11  ;;  %v8718_v32 = vld [vmem:[%s13087_s7 + $0xc0] ss:$24 sps:$4 sm:$0xff]   ;;  %v10275_v22 = vpop.f32.mrf.mxu0 }
 0x307   :  { %3546 = vmatprep.mubr.bf16.mxu1 %v9918_v9  ;;  %6301 = vmatpush1.bf16.msra.mxu1 %v8715_v2  ;;  %v10273_v34 = vpop.f32.mrf.mxu1  ;;  %v8742_v9 = vld [vmem:[%s13087_s7 + $0x3c0] ss:$24 sps:$4 sm:$0xff]  }
 0x308   :  { %3638 = vmatmul.mubr.bf16.gmra.mxu0 %v9876_v12  ;;  %6302 = vmatprep.subr.bf16.mxu1 %v8720_v6  ;;  %v8723_v12 = vld [vmem:[%s13087_s7 + $0x94] ss:$24 sps:$4 sm:$0xff]   ;;  %v10288_v23 = vpop.f32.mrf.mxu0 }
 0x309   :  { %3647 = vmatprep.mubr.bf16.mxu0 %v9920_v44  ;;  %6402 = vmatpush1.bf16.msra.mxu0 %v8736_v3  ;;  %v10283_v44 = vpop.f32.mrf.mxu1  ;;  %v8774_v6 = vld [vmem:[%s13087_s7 + $0x5d4] ss:$24 sps:$4 sm:$0xff]   ;;  %v13223_v3 = vld [vmem:[#allocation18_spill] sm:$0xff] }
 0x30a   :  { %6403 = vmatprep.subr.bf16.mxu0 %v8744_v4  ;;  %v10295_v18 = vpop.f32.mrf.mxu0 }
 0x30b   :  { %6303 = vmatpush1.bf16.msra.mxu1 %v8718_v32  ;;  %v10293_v7 = vpop.f32.mrf.mxu1 }
 0x30c   :  { %6304 = vmatprep.subr.bf16.mxu1 %v8723_v12  ;;  %v10311_v43 = vpop.f32.mrf.mxu0  ;;  %v8745_v12 = vld [vmem:[%s13087_s7 + $0x2d0] ss:$24 sps:$4 sm:$0xff]  }
 0x30d   :  { %6404 = vmatpush1.bf16.msra.mxu0 %v8742_v9  ;;  %v10304_v48 = vpop.f32.mrf.mxu1 }
 0x30e   :  { %3547 = vmatmul.mubr.bf16.gmra.mxu1 %v9928_v45  ;;  %6405 = vmatprep.subr.bf16.mxu0 %v8750_v8  ;;  %v8727_v45 = vld [vmem:[%s13087_s7 + $0x60] ss:$24 sps:$4 sm:$0xff]   ;;  %v10319_v53 = vpop.f32.mrf.mxu0 }
 0x30f   :  { %3556 = vmatprep.mubr.bf16.mxu1 %v9981_v51  ;;  %6305 = vmatpush1.bf16.msra.mxu1 %v8721_v0  ;;  %v10317_v13 = vpop.f32.mrf.mxu1  ;;  %v8754_v51 = vld [vmem:[%s13087_s7 + $0x360] ss:$24 sps:$4 sm:$0xff]  }
 0x310   :  { %3648 = vmatmul.mubr.bf16.gmra.mxu0 %v9938_v38  ;;  %6306 = vmatprep.subr.bf16.mxu1 %v8729_v10  ;;  %v8735_v38 = vld [vmem:[%s13087_s7 + $0x34] ss:$24 sps:$4 sm:$0xff]   ;;  %v10332_v5 = vpop.f32.mrf.mxu0  ;;  %v8753_v10 = vld [vmem:[%s13087_s7 + $0x2a4] ss:$24 sps:$4 sm:$0xff]  }
 0x311   :  { %3657 = vmatprep.mubr.bf16.mxu0 %v9983_v19  ;;  %6406 = vmatpush1.bf16.msra.mxu0 %v8748_v37  ;;  %v10327_v19 = vpop.f32.mrf.mxu1  ;;  %v8772_v37 = vld [vmem:[%s13087_s7 + $0x5d0] ss:$24 sps:$4 sm:$0xff]  }
 0x312   :  { %6407 = vmatprep.subr.bf16.mxu0 %v8756_v58 }
 0x313   :  { %6307 = vmatpush1.bf16.msra.mxu1 %v8727_v45  ;;  %v10337_v54 = vpop.f32.mrf.mxu1  ;;  %v10339_v24 = vpop.f32.mrf.mxu0 }
 0x314   :  { %6308 = vmatprep.subr.bf16.mxu1 %v8735_v38 }
 0x315   :  { %6408 = vmatpush1.bf16.msra.mxu0 %v8754_v51  ;;  %v10348_v62 = vpop.f32.mrf.mxu1  ;;  %v10355_v42 = vpop.f32.mrf.mxu0 }
 0x316   :  { %3557 = vmatmul.mubr.bf16.gmra.mxu1 %v9989_v31  ;;  %6409 = vmatprep.subr.bf16.mxu0 %v8762_v26  ;;  %v8739_v31 = vld [vmem:[%s13087_s7] ss:$24 sps:$4 sm:$0xff]  }
 0x317   :  { %3566 = vmatprep.mubr.bf16.mxu1 %v10042_v14  ;;  %6309 = vmatpush1.bf16.msra.mxu1 %v8733_v17  ;;  %v10361_v29 = vpop.f32.mrf.mxu1  ;;  %v10363_v11 = vpop.f32.mrf.mxu0  ;;  %v8766_v14 = vld [vmem:[%s13087_s7 + $0x300] ss:$24 sps:$4 sm:$0xff]  }
 0x318   :  { %3658 = vmatmul.mubr.bf16.gmra.mxu0 %v10003_v41  ;;  %6310 = vmatprep.subr.bf16.mxu1 %v8741_v27  ;;  %v8747_v41 = vld [vmem:[%s13087_s7 + $0x2d4] ss:$24 sps:$4 sm:$0xff]  }
 0x319   :  { %3667 = vmatprep.mubr.bf16.mxu0 %v10044_v15  ;;  %6410 = vmatpush1.bf16.msra.mxu0 %v8760_v25  ;;  %v10371_v15 = vld [vmem:[#allocation10] sm:$0xff]  ;;  %v10373_v2 = vpop.f32.mrf.mxu1  ;;  %v10382_v32 = vpop.f32.mrf.mxu0 }
 0x31a   :  { %6411 = vmatprep.subr.bf16.mxu0 %v8768_v55  ;;  %v10380_v4 = vrot.slane %v10371_v15, %v13223_v3  ;;  %v8757_v25 = vld [vmem:[%s13087_s7 + $0x270] ss:$24 sps:$4 sm:$0xff]  }
 0x31b   :  { %6311 = vmatpush1.bf16.msra.mxu1 %v8739_v31 }
 0x31c   :  { %v2929_v8 = vadd.f32 %v10239_v59, %v10380_v4  ;;  %6312 = vmatprep.subr.bf16.mxu1 %v8747_v41  ;;  %v8780_v59 = vld [vmem:[%s13087_s7 + $0x5a4] ss:$24 sps:$4 sm:$0xff]   ;;  %v2925_v45 = vadd.f32 %v10216_v35, %v10380_v4  ;;  %v8786_v35 = vld [vmem:[%s13087_s7 + $0x574] ss:$24 sps:$4 sm:$0xff]  }
 0x31d   :  { %v10387_v9 = vpop.f32.mrf.mxu1  ;;  %v10391_v0 = vpop.f32.mrf.mxu0  ;;  %6412 = vmatpush1.bf16.msra.mxu0 %v8766_v14  ;;  %v8765_v14 = vld [vmem:[%s13087_s7 + $0x244] ss:$24 sps:$4 sm:$0xff]  }
 0x31e   :  { %3567 = vmatmul.mubr.bf16.gmra.mxu1 %v10040_v30  ;;  %6413 = vmatprep.subr.bf16.mxu0 %v8774_v6  ;;  %v8751_v30 = vld [vmem:[%s13087_s7 + $0x2a0] ss:$24 sps:$4 sm:$0xff]   ;;  %v3030_v26 = vadd.f32 %v10241_v60, %v2929_v8  ;;  %v3026_v60 = vadd.f32 %v10218_v33, %v2925_v45  ;;  %v8784_v33 = vld [vmem:[%s13087_s7 + $0x570] ss:$24 sps:$4 sm:$0xff]  }
 0x31f   :  { %v10400_v58 = vpop.f32.mrf.mxu1  ;;  %3576 = vmatprep.mubr.bf16.mxu1 %v10099_v21  ;;  %v10409_v38 = vpop.f32.mrf.mxu0  ;;  %6313 = vmatpush2.bf16.msra.mxu1 %v8745_v12  ;;  %v8778_v21 = vld [vmem:[%s13087_s7 + $0x5a0] ss:$24 sps:$4 sm:$0xff]   ;;  %v8792_v12 = vld [vmem:[%s13087_s7 + $0x544] ss:$24 sps:$4 sm:$0xff]  }
 0x320   :  { %3668 = vmatmul.mubr.bf16.gmra.mxu0 %v10064_v28  ;;  %6314 = vmatprep.subr.bf16.mxu1 %v8753_v10  ;;  %v8759_v28 = vld [vmem:[%s13087_s7 + $0x274] ss:$24 sps:$4 sm:$0xff]   ;;  %v3705_v31 = vmul.f32 0.01, %v3030_v26  ;;  %v3697_v8 = vmul.f32 0.01, %v3026_v60 }
 0x321   :  { %3677 = vmatprep.mubr.bf16.mxu0 %v10101_v57  ;;  %v10415_v51 = vpop.f32.mrf.mxu1  ;;  %v10418_v17 = vpop.f32.mrf.mxu0  ;;  %6414 = vmatpush2.bf16.msra.mxu0 %v8772_v37 }
 0x322   :  { %6415 = vmatprep.subr.bf16.mxu0 %v8780_v59  ;;  %v3809_v59 = vmax.f32 %v3030_v26, %v3705_v31  ;;  %v13224_v26 = vld [vmem:[#allocation19_spill] sm:$0xff] }
 0x323   :  { %v10426_v57 = vpop.f32.mrf.mxu1  ;;  %v10432_v27 = vpop.f32.mrf.mxu0  ;;  %6315 = vmatpush2.bf16.msra.mxu1 %v8751_v30  ;;  %v8795_v30 = vld [vmem:[%s13087_s7 + $0x514] ss:$24 sps:$4 sm:$0xff]  }
 0x324   :  { %6316 = vmatprep.subr.bf16.mxu1 %v8759_v28  ;;  %v10478_v28 = vrot.slane %v10371_v15, %v13224_v26 }
 0x325   :  { %6416 = vmatpush2.bf16.msra.mxu0 %v8778_v21  ;;  %v3801_v21 = vmax.f32 %v3026_v60, %v3697_v8  ;;  %v8777_v60 = vld [vmem:[%s13087_s7 + $0x1e4] ss:$24 sps:$4 sm:$0xff]   ;;  %v8793_v8 = vld [vmem:[%s13087_s7 + $0x510] ss:$24 sps:$4 sm:$0xff]  }
 0x326   :  { %v10437_v55 = vpop.f32.mrf.mxu1  ;;  %3577 = vmatmul.mubr.bf16.gmra.mxu1 %v10106_v36  ;;  %6417 = vmatprep.subr.bf16.mxu0 %v8786_v35  ;;  %v8763_v36 = vld [vmem:[%s13087_s7 + $0x240] ss:$24 sps:$4 sm:$0xff]  }
 0x327   :  { %v10439_v41 = vpop.f32.mrf.mxu0  ;;  %3586 = vmatprep.mubr.bf16.mxu1 %v10123_v63  ;;  %6317 = vmatpush2.bf16.msra.mxu1 %v8757_v25  ;;  %v8790_v63 = vld [vmem:[%s13087_s7 + $0x540] ss:$24 sps:$4 sm:$0xff]   ;;  %v8769_v25 = vld [vmem:[%s13087_s7 + $0x210] ss:$24 sps:$4 sm:$0xff]  }
 0x328   :  { %v10448_v6 = vpop.f32.mrf.mxu1  ;;  %3678 = vmatmul.mubr.bf16.gmra.mxu0 %v10114_v47  ;;  %6318 = vmatprep.subr.bf16.mxu1 %v8765_v14  ;;  %v8771_v47 = vld [vmem:[%s13087_s7 + $0x214] ss:$24 sps:$4 sm:$0xff]   ;;  %v2927_v14 = vadd.f32 %v10229_v40, %v10478_v28 }
 0x329   :  { %v10455_v10 = vpop.f32.mrf.mxu0  ;;  %3687 = vmatprep.mubr.bf16.mxu0 %v10125_v16  ;;  %6418 = vmatpush2.bf16.msra.mxu0 %v8784_v33 }
 0x32a   :  { %v10461_v37 = vpop.f32.mrf.mxu1  ;;  %6419 = vmatprep.subr.bf16.mxu0 %v8792_v12  ;;  %v10491_v12 = vpack.c.bf16 %v3809_v59, %v3801_v21  ;;  %v8798_v59 = vld [vmem:[%s13087_s7 + $0x4e4] ss:$24 sps:$4 sm:$0xff]   ;;  %v3028_v21 = vadd.f32 %v10231_v20, %v2927_v14  ;;  %v8801_v20 = vld [vmem:[%s13087_s7 + $0x4b4] ss:$24 sps:$4 sm:$0xff]   ;;  %v2937_v14 = vadd.f32 %v10273_v34, %v10478_v28  ;;  %v8799_v34 = vld [vmem:[%s13087_s7 + $0x4b0] ss:$24 sps:$4 sm:$0xff]  }
 0x32b   :  { %v10463_v45 = vpop.f32.mrf.mxu0  ;;  %6319 = vmatpush2.bf16.msra.mxu1 %v8763_v36  ;;  %v2939_v36 = vadd.f32 %v10283_v44, %v10380_v4  ;;  %v2935_v44 = vadd.f32 %v10260_v52, %v10380_v4 }
 0x32c   :  { %v10471_v16 = vpop.f32.mrf.mxu1  ;;  %6320 = vmatprep.subr.bf16.mxu1 %v8771_v47  ;;  %13225 = vst [vmem:[#allocation22_spill] sm:$0xff] %v10491_v12  ;;  %v2923_v47 = vadd.f32 %v10205_v49, %v10478_v28  ;;  %v8796_v49 = vld [vmem:[%s13087_s7 + $0x4e0] ss:$24 sps:$4 sm:$0xff]  }
 0x32d   :  { %v10480_v35 = vpop.f32.mrf.mxu0  ;;  %6420 = vmatpush2.bf16.msra.mxu0 %v8790_v63  ;;  %v10526_v52 = vadd.f32 %v10288_v23, %v2939_v36  ;;  %v8781_v23 = vld [vmem:[%s13087_s7 + $0x1b0] ss:$24 sps:$4 sm:$0xff]   ;;  %v3704_v36 = vmul.f32 0.01, %v3028_v21 }
 0x32e   :  { %v10485_v31 = vpop.f32.mrf.mxu1  ;;  %3587 = vmatmul.mubr.bf16.gmra.mxu1 %v10132_v56  ;;  %6421 = vmatprep.subr.bf16.mxu0 %v8795_v30  ;;  %v8775_v56 = vld [vmem:[%s13087_s7 + $0x1e0] ss:$24 sps:$4 sm:$0xff]  }
 0x32f   :  { %v10489_v33 = vpop.f32.mrf.mxu0  ;;  %6328 = vmatprep.mubr.bf16.mxu1 %v10491_v12  ;;  %6321 = vmatpush2.bf16.msra.mxu1 %v8769_v25 }
 0x330   :  { %v10502_v40 = vpop.f32.mrf.mxu1  ;;  %3688 = vmatmul.mubr.bf16.gmra.mxu0 %v10134_v50  ;;  %6322 = vmatprep.subr.bf16.mxu1 %v8777_v60  ;;  %v8783_v50 = vld [vmem:[%s13087_s7 + $0x1b4] ss:$24 sps:$4 sm:$0xff]  }
 0x331   :  { %v10511_v63 = vpop.f32.mrf.mxu0  ;;  %6422 = vmatpush2.bf16.msra.mxu0 %v8793_v8  ;;  %v3036_v8 = vadd.f32 %v10267_v46, %v2935_v44  ;;  %v8789_v46 = vld [vmem:[%s13087_s7 + $0x184] ss:$24 sps:$4 sm:$0xff]   ;;  %v10557_v44 = vadd.f32 %v10275_v22, %v2937_v14 }
 0x332   :  { %v2986_v30 = vpop.f32.mrf.mxu1  ;;  %6423 = vmatprep.subr.bf16.mxu0 %v8798_v59  ;;  %v2933_v59 = vadd.f32 %v10249_v1, %v10478_v28  ;;  %v8804_v1 = vld [vmem:[%s13087_s7 + $0x484] ss:$24 sps:$4 sm:$0xff]  }
 0x333   :  { %v3087_v3 = vpop.f32.mrf.mxu0  ;;  %v2947_v30 = vadd.f32 %v10317_v13, %v10478_v28  ;;  %6323 = vmatpush2.bf16.msra.mxu1 %v8775_v56  ;;  %v3721_v13 = vmul.f32 0.01, %v10526_v52  ;;  %v2945_v56 = vadd.f32 %v10304_v48, %v10380_v4  ;;  %v8802_v48 = vld [vmem:[%s13087_s7 + $0x480] ss:$24 sps:$4 sm:$0xff]  }
 0x334   :  { %v2987_v25 = vpop.f32.mrf.mxu1  ;;  %v3024_v3 = vadd.f32 %v10207_v39, %v2923_v47  ;;  %v2943_v39 = vadd.f32 %v10293_v7, %v10478_v28  ;;  %6324 = vmatprep.subr.bf16.mxu1 %v8783_v50  ;;  %v2949_v47 = vadd.f32 %v10327_v19, %v10380_v4  ;;  %v3713_v50 = vmul.f32 0.01, %v3036_v8  ;;  %v8787_v19 = vld [vmem:[%s13087_s7 + $0x180] ss:$24 sps:$4 sm:$0xff]  }
 0x335   :  { %v3088_v60 = vpop.f32.mrf.mxu0  ;;  %6424 = vmatpush2.bf16.msra.mxu0 %v8796_v49  ;;  %v10562_v49 = vadd.f32 %v10319_v53, %v2947_v30  ;;  %v2953_v25 = vadd.f32 %v10337_v54, %v10478_v28  ;;  %v8807_v53 = vld [vmem:[%s13087_s7 + $0x754] ss:$24 sps:$4 sm:$0xff]   ;;  %v3825_v54 = vmax.f32 %v10526_v52, %v3721_v13  ;;  %v10594_v52 = vadd.f32 %v10311_v43, %v2945_v56  ;;  %v8805_v43 = vld [vmem:[%s13087_s7 + $0x750] ss:$24 sps:$4 sm:$0xff]  }
 0x336   :  { %6425 = vmatprep.subr.bf16.mxu0 %v8801_v20  ;;  %v3696_v7 = vmul.f32 0.01, %v3024_v3  ;;  %v3808_v20 = vmax.f32 %v3028_v21, %v3704_v36  ;;  %v3034_v60 = vadd.f32 %v10251_v61, %v2933_v59  ;;  %v10571_v22 = vadd.f32 %v10295_v18, %v2943_v39  ;;  %v13226_v18 = vld [vmem:[#allocation20_spill] sm:$0xff] }
 0x337   :  { %6325 = vmatpush2.bf16.msra.mxu1 %v8781_v23  ;;  %v10581_v14 = vadd.f32 %v10332_v5, %v2949_v47  ;;  %v2955_v61 = vadd.f32 %v10348_v62, %v10380_v4  ;;  %v10587_v21 = vrot.slane %v10371_v15, %v13226_v18  ;;  %v8855_v30 = vld [vmem:[%s13087_s7 + $0xa54] ss:$24 sps:$4 sm:$0xff]   ;;  %v3720_v36 = vmul.f32 0.01, %v10557_v44 }
 0x338   :  { %6326 = vmatprep.subr.bf16.mxu1 %v8789_v46  ;;  %v3800_v23 = vmax.f32 %v3024_v3, %v3696_v7  ;;  %v13227_v5 = vld [vmem:[#allocation21_spill] sm:$0xff]  ;;  %v3817_v62 = vmax.f32 %v3036_v8, %v3713_v50  ;;  %v3736_v39 = vmul.f32 0.01, %v10562_v49  ;;  %v10602_v46 = vadd.f32 %v10339_v24, %v2953_v25  ;;  %v8810_v24 = vld [vmem:[%s13087_s7 + $0x724] ss:$24 sps:$4 sm:$0xff]  }
 0x339   :  { %6426 = vmatpush2.bf16.msra.mxu0 %v8799_v34  ;;  %v10598_v59 = vrot.slane %v10371_v15, %v13227_v5  ;;  %v2957_v34 = vadd.f32 %v10361_v29, %v10478_v28  ;;  %v3712_v47 = vmul.f32 0.01, %v3034_v60  ;;  %v3728_v15 = vmul.f32 0.01, %v10571_v22 }
 0x33a   :  { %6427 = vmatprep.subr.bf16.mxu0 %v8804_v1  ;;  %v10609_v13 = vpack.c.bf16 %v3808_v20, %v3800_v23  ;;  %v2959_v8 = vadd.f32 %v10373_v2, %v10380_v4  ;;  %v3737_v29 = vmul.f32 0.01, %v10581_v14  ;;  %v10619_v7 = vadd.f32 %v10355_v42, %v2955_v61 }
 0x33b   :  { %6327 = vmatpush2.bf16.msra.mxu1 %v8787_v19  ;;  %v10622_v50 = vpack.c.bf16 %v3825_v54, %v3817_v62  ;;  %v3824_v2 = vmax.f32 %v10557_v44, %v3720_v36  ;;  %v3729_v19 = vmul.f32 0.01, %v10594_v52  ;;  %v10630_v42 = vmul.f32 0.01, %v10602_v46  ;;  %v8808_v44 = vld [vmem:[%s13087_s7 + $0x720] ss:$24 sps:$4 sm:$0xff]  }
 0x33c   :  { %13228 = vst [vmem:[#allocation23_spill] sm:$0xff] %v10609_v13  ;;  %6498 = vmatprep.subr.bf16.mxu1 %v8807_v53  ;;  %v3840_v53 = vmax.f32 %v10562_v49, %v3736_v39  ;;  %v10633_v61 = vadd.f32 %v10363_v11, %v2957_v34  ;;  %v10640_v23 = vadd.f32 %v10382_v32, %v2959_v8  ;;  %v8813_v11 = vld [vmem:[%s13087_s7 + $0x6f4] ss:$24 sps:$4 sm:$0xff]  }
 0x33d   :  { %6428 = vmatpush2.bf16.msra.mxu0 %v8802_v48  ;;  %13229 = vst [vmem:[#allocation25_spill] sm:$0xff] %v10622_v50  ;;  %v3832_v39 = vmax.f32 %v10571_v22, %v3728_v15  ;;  %v3841_v34 = vmax.f32 %v10581_v14, %v3737_v29  ;;  %v3848_v22 = vmax.f32 %v10602_v46, %v10630_v42  ;;  %v8816_v29 = vld [vmem:[%s13087_s7 + $0x6c4] ss:$24 sps:$4 sm:$0xff]  }
 0x33e   :  { %v3124_v3 = vpop.f32.mrf.mxu1  ;;  %6599 = vmatprep.subr.bf16.mxu0 %v8855_v30  ;;  %6329 = vmatmul.mubr.bf16.vlgmr.msra.gmra.mxu1 %v10609_v13  ;;  %v3816_v30 = vmax.f32 %v3034_v60, %v3712_v47  ;;  %v3833_v47 = vmax.f32 %v10594_v52, %v3729_v19  ;;  %v3752_v14 = vmul.f32 0.01, %v10633_v61  ;;  %v2965_v15 = vadd.f32 %v10400_v58, %v10380_v4  ;;  %v8811_v52 = vld [vmem:[%s13087_s7 + $0x6f0] ss:$24 sps:$4 sm:$0xff]  }
 0x33f   :  { %v3125_v56 = vadd.f32 %v3124_v3, %v10587_v21  ;;  %6338 = vmatprep.mubr.bf16.mxu1 %v10622_v50  ;;  %6499 = vmatpush1.bf16.msra.mxu1 %v8805_v43  ;;  %v10651_v3 = vmul.f32 0.01, %v10619_v7 }
 0x340   :  { %v3225_v1 = vpop.f32.mrf.mxu0  ;;  %v3126_v25 = vpop.f32.mrf.mxu1  ;;  %6500 = vmatprep.subr.bf16.mxu1 %v8810_v24  ;;  %v10653_v43 = vpack.c.bf16 %v3824_v2, %v3816_v30  ;;  %v2963_v30 = vadd.f32 %v10387_v9, %v10478_v28  ;;  %v8814_v9 = vld [vmem:[%s13087_s7 + $0x6c0] ss:$24 sps:$4 sm:$0xff]  }
 0x341   :  { %v3127_v20 = vadd.f32 %v3126_v25, %v10598_v59  ;;  %v3226_v60 = vadd.f32 %v3225_v1, %v3125_v56  ;;  %v3753_v56 = vmul.f32 0.01, %v10640_v23  ;;  %v3849_v58 = vmax.f32 %v10619_v7, %v10651_v3 }
 0x342   :  { %v3227_v48 = vpop.f32.mrf.mxu0  ;;  %v3128_v54 = vpop.f32.mrf.mxu1  ;;  %v3856_v7 = vmax.f32 %v10633_v61, %v3752_v14  ;;  %v10685_v3 = vadd.f32 %v10409_v38, %v2965_v15  ;;  %v8819_v38 = vld [vmem:[%s13087_s7 + $0x694] ss:$24 sps:$4 sm:$0xff]  }
 0x343   :  { %v10642_v36 = vadd.f32 %v3227_v48, %v3127_v20  ;;  %v3129_v49 = vadd.f32 %v3128_v54, %v10587_v21  ;;  %v10657_v20 = vpack.c.bf16 %v3840_v53, %v3832_v39  ;;  %6501 = vmatpush1.bf16.msra.mxu1 %v8808_v44  ;;  %v2969_v53 = vadd.f32 %v10426_v57, %v10380_v4 }
 0x344   :  { %v3229_v62 = vpop.f32.mrf.mxu0  ;;  %v3130_v32 = vpop.f32.mrf.mxu1  ;;  %6502 = vmatprep.subr.bf16.mxu1 %v8813_v11  ;;  %v3698_v42 = vmul.f32 0.01, %v3226_v60  ;;  %v10676_v54 = vpack.c.bf16 %v3841_v34, %v3833_v47  ;;  %v2967_v47 = vadd.f32 %v10415_v51, %v10478_v28  ;;  %v10705_v51 = vadd.f32 %v10391_v0, %v2963_v30  ;;  %v8822_v30 = vld [vmem:[%s13087_s7 + $0x664] ss:$24 sps:$4 sm:$0xff]  }
 0x345   :  { %v3230_v8 = vadd.f32 %v3229_v62, %v3129_v49  ;;  %v3131_v24 = vadd.f32 %v3130_v32, %v10598_v59  ;;  %v3699_v2 = vmul.f32 0.01, %v10642_v36  ;;  %v3857_v32 = vmax.f32 %v10640_v23, %v3753_v56 }
 0x346   :  { %v3231_v25 = vpop.f32.mrf.mxu0  ;;  %v3134_v1 = vpop.f32.mrf.mxu1  ;;  %6339 = vmatmul.mubr.bf16.gmra.mxu1 %v10653_v43  ;;  %v3802_v14 = vmax.f32 %v3226_v60, %v3698_v42  ;;  %v10715_v60 = vpack.c.bf16 %v3856_v7, %v3848_v22 }
 0x347   :  { %v3706_v46 = vmul.f32 0.01, %v3230_v8  ;;  %v3232_v19 = vadd.f32 %v3231_v25, %v3131_v24  ;;  %v3135_v62 = vadd.f32 %v3134_v1, %v10587_v21  ;;  %6348 = vmatprep.mubr.bf16.mxu1 %v10676_v54  ;;  %6503 = vmatpush1.bf16.msra.mxu1 %v8811_v52  ;;  %v3803_v24 = vmax.f32 %v10642_v36, %v3699_v2 }
 0x348   :  { %v3235_v48 = vpop.f32.mrf.mxu0  ;;  %v3136_v44 = vpop.f32.mrf.mxu1  ;;  %6504 = vmatprep.subr.bf16.mxu1 %v8816_v29  ;;  %v10718_v2 = vmul.f32 0.01, %v10685_v3  ;;  %v10730_v22 = vpack.c.bf16 %v3857_v32, %v3849_v58 }
 0x349   :  { %v3707_v49 = vmul.f32 0.01, %v3232_v19  ;;  %v3137_v11 = vadd.f32 %v3136_v44, %v10598_v59  ;;  %v3810_v57 = vmax.f32 %v3230_v8, %v3706_v46  ;;  %v10699_v8 = vadd.f32 %v10432_v27, %v2969_v53  ;;  %v8853_v27 = vld [vmem:[%s13087_s7 + $0xa50] ss:$24 sps:$4 sm:$0xff]  }
 0x34a   :  { %v3237_v39 = vpop.f32.mrf.mxu0  ;;  %v3138_v34 = vpop.f32.mrf.mxu1  ;;  %v10707_v36 = vadd.f32 %v3235_v48, %v3135_v62  ;;  %v8817_v48 = vld [vmem:[%s13087_s7 + $0x690] ss:$24 sps:$4 sm:$0xff]   ;;  %v10728_v53 = vadd.f32 %v10418_v17, %v2967_v47  ;;  %13230 = vst [vmem:[#allocation26_spill] sm:$0xff] %v10730_v22  ;;  %v2979_v17 = vadd.f32 %v10471_v16, %v10380_v4  ;;  %v8859_v16 = vld [vmem:[%s13087_s7 + $0xa20] ss:$24 sps:$4 sm:$0xff]   ;;  %v3865_v47 = vmax.f32 %v10685_v3, %v10718_v2 }
 0x34b   :  { %v3811_v61 = vmax.f32 %v3232_v19, %v3707_v49  ;;  %v10701_v15 = vadd.f32 %v3237_v39, %v3137_v11  ;;  %v3139_v23 = vadd.f32 %v3138_v34, %v10587_v21  ;;  %v10720_v46 = vpack.c.bf16 %v3810_v57, %v3802_v14  ;;  %6505 = vmatpush1.bf16.msra.mxu1 %v8814_v9  ;;  %v8861_v49 = vld [vmem:[%s13087_s7 + $0xa24] ss:$24 sps:$4 sm:$0xff]   ;;  %v8867_v14 = vld [vmem:[%s13087_s7 + $0x9f4] ss:$24 sps:$4 sm:$0xff]  }
 0x34c   :  { %v3239_v25 = vpop.f32.mrf.mxu0  ;;  %v3140_v1 = vpop.f32.mrf.mxu1  ;;  %6506 = vmatprep.subr.bf16.mxu1 %v8819_v38  ;;  %v3769_v62 = vmul.f32 0.01, %v10699_v8  ;;  %v3714_v7 = vmul.f32 0.01, %v10707_v36  ;;  %v8820_v38 = vld [vmem:[%s13087_s7 + $0x660] ss:$24 sps:$4 sm:$0xff]   ;;  %v2973_v2 = vadd.f32 %v10437_v55, %v10478_v28 }
 0x34d   :  { %v3141_v52 = vadd.f32 %v3140_v1, %v10598_v59  ;;  %v10710_v56 = vpack.c.bf16 %v3811_v61, %v3803_v24  ;;  %v10722_v0 = vadd.f32 %v3239_v25, %v3139_v23  ;;  %v3715_v11 = vmul.f32 0.01, %v10701_v15 }
 0x34e   :  { %v3241_v29 = vpop.f32.mrf.mxu0  ;;  %v3144_v19 = vpop.f32.mrf.mxu1  ;;  %6349 = vmatmul.mubr.bf16.gmra.mxu1 %v10657_v20  ;;  %v2975_v24 = vadd.f32 %v10448_v6, %v10380_v4  ;;  %v10765_v23 = vmul.f32 0.01, %v10705_v51 }
 0x34f   :  { %v3242_v42 = vadd.f32 %v3241_v29, %v3141_v52  ;;  %6429 = vmatprep.mubr.bf16.mxu0 %v10710_v56  ;;  %v3722_v58 = vmul.f32 0.01, %v10722_v0  ;;  %v3145_v34 = vadd.f32 %v3144_v19, %v10587_v21  ;;  %6358 = vmatprep.mubr.bf16.mxu1 %v10730_v22  ;;  %v8825_v29 = vld [vmem:[%s13087_s7 + $0x634] ss:$24 sps:$4 sm:$0xff]   ;;  %v3819_v19 = vmax.f32 %v10701_v15, %v3715_v11 }
 0x350   :  { %v3245_v44 = vpop.f32.mrf.mxu0  ;;  %v3146_v39 = vpop.f32.mrf.mxu1  ;;  %6430 = vmatmul.mubr.bf16.vlgmr.msra.gmra.mxu0 %v10720_v46  ;;  %6507 = vmatpush1.bf16.msra.mxu1 %v8817_v48  ;;  %v10790_v55 = vadd.f32 %v10455_v10, %v2975_v24 }
 0x351   :  { %v3723_v57 = vmul.f32 0.01, %v3242_v42  ;;  %v3147_v9 = vadd.f32 %v3146_v39, %v10598_v59  ;;  %6600 = vmatpush1.bf16.msra.mxu0 %v8853_v27  ;;  %v3826_v61 = vmax.f32 %v10722_v0, %v3722_v58  ;;  %6508 = vmatprep.subr.bf16.mxu1 %v8822_v30  ;;  %v3873_v27 = vmax.f32 %v10699_v8, %v3769_v62 }
 0x352   :  { %v3247_v32 = vpop.f32.mrf.mxu0  ;;  %v3148_v25 = vpop.f32.mrf.mxu1  ;;  %6601 = vmatprep.subr.bf16.mxu0 %v8861_v49  ;;  %v10777_v0 = vadd.f32 %v10480_v35, %v2979_v17  ;;  %v10781_v58 = vadd.f32 %v3245_v44, %v3145_v34  ;;  %v10787_v8 = vmul.f32 0.01, %v10728_v53  ;;  %v2977_v35 = vadd.f32 %v10461_v37, %v10478_v28  ;;  %v8828_v44 = vld [vmem:[%s13087_s7 + $0x604] ss:$24 sps:$4 sm:$0xff]  }
 0x353   :  { %v3827_v3 = vmax.f32 %v3242_v42, %v3723_v57  ;;  %v10767_v1 = vadd.f32 %v3247_v32, %v3147_v9  ;;  %v3149_v6 = vadd.f32 %v3148_v25, %v10587_v21  ;;  %v3818_v42 = vmax.f32 %v10707_v36, %v3714_v7  ;;  %v8823_v36 = vld [vmem:[%s13087_s7 + $0x630] ss:$24 sps:$4 sm:$0xff]  }
 0x354   :  { %v3249_v52 = vpop.f32.mrf.mxu0  ;;  %v3150_v48 = vpop.f32.mrf.mxu1  ;;  %6509 = vmatpush1.bf16.msra.mxu1 %v8820_v38  ;;  %v8865_v57 = vld [vmem:[%s13087_s7 + $0x9f0] ss:$24 sps:$4 sm:$0xff]   ;;  %v3864_v34 = vmax.f32 %v10705_v51, %v10765_v23  ;;  %v3785_v9 = vmul.f32 0.01, %v10777_v0  ;;  %v2985_v32 = vadd.f32 %v10502_v40, %v10380_v4  ;;  %v3730_v25 = vmul.f32 0.01, %v10781_v58 }
 0x355   :  { %v10783_v30 = vadd.f32 %v3249_v52, %v3149_v6  ;;  %v3151_v39 = vadd.f32 %v3150_v48, %v10598_v59  ;;  %6602 = vmatpush1.bf16.msra.mxu0 %v8859_v16  ;;  %v10794_v62 = vpack.c.bf16 %v3827_v3, %v3819_v19  ;;  %v10802_v17 = vpack.c.bf16 %v3826_v61, %v3818_v42  ;;  %v8873_v61 = vld [vmem:[%s13087_s7 + $0x9c4] ss:$24 sps:$4 sm:$0xff]   ;;  %v8826_v52 = vld [vmem:[%s13087_s7 + $0x600] ss:$24 sps:$4 sm:$0xff]  }
 0x356   :  { %v3251_v49 = vpop.f32.mrf.mxu0  ;;  %v3154_v15 = vpop.f32.mrf.mxu1  ;;  %6603 = vmatprep.subr.bf16.mxu0 %v8867_v14  ;;  %v3731_v10 = vmul.f32 0.01, %v10767_v1  ;;  %6510 = vmatprep.subr.bf16.mxu1 %v8825_v29  ;;  %v10814_v16 = vpack.c.bf16 %v3873_v27, %v3865_v47  ;;  %v3872_v4 = vmax.f32 %v10728_v53, %v10787_v8  ;;  %v10828_v40 = vadd.f32 %v10439_v41, %v2973_v2 }
 0x357   :  { %13231 = vst [vmem:[#allocation24_spill] sm:$0xff] %v10794_v62  ;;  %v3738_v11 = vmul.f32 0.01, %v10783_v30  ;;  %v3252_v37 = vadd.f32 %v3251_v49, %v3151_v39  ;;  %6439 = vmatprep.mubr.bf16.mxu0 %v10794_v62  ;;  %v3155_v14 = vadd.f32 %v3154_v15, %v10587_v21  ;;  %6359 = vmatmul.mubr.bf16.gmra.mxu1 %v10715_v60  ;;  %v3777_v47 = vmul.f32 0.01, %v10790_v55 }
 0x358   :  { %v3255_v7 = vpop.f32.mrf.mxu0  ;;  %13232 = vst [vmem:[#allocation27_spill] sm:$0xff] %v10814_v16  ;;  %v3156_v24 = vpop.f32.mrf.mxu1  ;;  %6440 = vmatmul.mubr.bf16.gmra.mxu0 %v10802_v17  ;;  %v10832_v3 = vadd.f32 %v10463_v45, %v2977_v35  ;;  %6368 = vmatprep.mubr.bf16.mxu1 %v10814_v16  ;;  %v3835_v29 = vmax.f32 %v10767_v1, %v3731_v10  ;;  %v8831_v45 = vld [vmem:[%s13087_s7 + $0x8d4] ss:$24 sps:$4 sm:$0xff]   ;;  %v8871_v1 = vld [vmem:[%s13087_s7 + $0x9c0] ss:$24 sps:$4 sm:$0xff]  }
 0x359   :  { %v3739_v38 = vmul.f32 0.01, %v3252_v37  ;;  %v3157_v51 = vadd.f32 %v3156_v24, %v10598_v59  ;;  %6511 = vmatpush1.bf16.msra.mxu1 %v8823_v36  ;;  %v3842_v53 = vmax.f32 %v10783_v30, %v3738_v11  ;;  %6604 = vmatpush1.bf16.msra.mxu0 %v8865_v57  ;;  %v3889_v2 = vmax.f32 %v10777_v0, %v3785_v9  ;;  %v8834_v11 = vld [vmem:[%s13087_s7 + $0x8a4] ss:$24 sps:$4 sm:$0xff]  }
 0x35a   :  { %v3257_v23 = vpop.f32.mrf.mxu0  ;;  %v3158_v6 = vpop.f32.mrf.mxu1  ;;  %6512 = vmatprep.subr.bf16.mxu1 %v8828_v44  ;;  %v3086_v19 = vadd.f32 %v10511_v63, %v2985_v32  ;;  %6605 = vmatprep.subr.bf16.mxu0 %v8873_v61  ;;  %v3834_v30 = vmax.f32 %v10781_v58, %v3730_v25  ;;  %v10852_v49 = vadd.f32 %v3255_v7, %v3155_v14  ;;  %v10859_v15 = vmul.f32 0.01, %v10832_v3  ;;  %v8829_v58 = vld [vmem:[%s13087_s7 + $0x8d0] ss:$24 sps:$4 sm:$0xff]  }
 0x35b   :  { %v3843_v27 = vmax.f32 %v3252_v37, %v3739_v38  ;;  %v10845_v48 = vadd.f32 %v3257_v23, %v3157_v51  ;;  %v3159_v42 = vadd.f32 %v3158_v6, %v10587_v21  ;;  %v3881_v63 = vmax.f32 %v10790_v55, %v3777_v47  ;;  %v8885_v47 = vld [vmem:[%s13087_s7 + $0x964] ss:$24 sps:$4 sm:$0xff]  }
 0x35c   :  { %v3259_v41 = vpop.f32.mrf.mxu0  ;;  %v3160_v39 = vpop.f32.mrf.mxu1  ;;  %v2983_v36 = vadd.f32 %v10485_v31, %v10478_v28  ;;  %v10869_v37 = vpack.c.bf16 %v3872_v4, %v3864_v34  ;;  %v3776_v55 = vmul.f32 0.01, %v10828_v40  ;;  %v10872_v7 = vpack.c.bf16 %v3842_v53, %v3834_v30  ;;  %v8877_v28 = vld [vmem:[%s13087_s7 + $0x990] ss:$24 sps:$4 sm:$0xff]   ;;  %v8879_v31 = vld [vmem:[%s13087_s7 + $0x994] ss:$24 sps:$4 sm:$0xff]  }
 0x35d   :  { %v3161_v8 = vadd.f32 %v3160_v39, %v10598_v59  ;;  %v10855_v0 = vpack.c.bf16 %v3843_v27, %v3835_v29  ;;  %v3260_v44 = vadd.f32 %v3259_v41, %v3159_v42  ;;  %6513 = vmatpush1.bf16.msra.mxu1 %v8826_v52  ;;  %v3793_v32 = vmul.f32 0.01, %v3086_v19  ;;  %6606 = vmatpush1.bf16.msra.mxu0 %v8871_v1  ;;  %v8832_v27 = vld [vmem:[%s13087_s7 + $0x8a0] ss:$24 sps:$4 sm:$0xff]  }
 0x35e   :  { %v3261_v35 = vpop.f32.mrf.mxu0  ;;  %v3164_v10 = vpop.f32.mrf.mxu1  ;;  %6514 = vmatprep.subr.bf16.mxu1 %v8831_v45  ;;  %v3747_v34 = vmul.f32 0.01, %v10845_v48  ;;  %v10882_v61 = vpack.c.bf16 %v3889_v2, %v3881_v63  ;;  %v3746_v38 = vmul.f32 0.01, %v10852_v49  ;;  %v3888_v6 = vmax.f32 %v10832_v3, %v10859_v15  ;;  %6607 = vmatprep.subr.bf16.mxu0 %v8879_v31  ;;  %v8891_v31 = vld [vmem:[%s13087_s7 + $0x934] ss:$24 sps:$4 sm:$0xff]  }
 0x35f   :  { %13233 = vst [vmem:[#allocation19_spill] sm:$0xff] %v10855_v0  ;;  %v3262_v57 = vadd.f32 %v3261_v35, %v3161_v8  ;;  %6449 = vmatprep.mubr.bf16.mxu0 %v10855_v0  ;;  %v3754_v24 = vmul.f32 0.01, %v3260_v44  ;;  %v3165_v51 = vadd.f32 %v3164_v10, %v10587_v21  ;;  %6369 = vmatmul.mubr.bf16.gmra.mxu1 %v10869_v37  ;;  %v8883_v8 = vld [vmem:[%s13087_s7 + $0x960] ss:$24 sps:$4 sm:$0xff]  }
 0x360   :  { %v3265_v9 = vpop.f32.mrf.mxu0  ;;  %v3166_v25 = vpop.f32.mrf.mxu1  ;;  %6450 = vmatmul.mubr.bf16.gmra.mxu0 %v10872_v7  ;;  %v3084_v52 = vadd.f32 %v10489_v33, %v2983_v36  ;;  %6378 = vmatprep.mubr.bf16.mxu1 %v10882_v61  ;;  %v8837_v33 = vld [vmem:[%s13087_s7 + $0x874] ss:$24 sps:$4 sm:$0xff]   ;;  %v3880_v3 = vmax.f32 %v10828_v40, %v3776_v55  ;;  %v3897_v39 = vmax.f32 %v3086_v19, %v3793_v32 }
 0x361   :  { %v3755_v14 = vmul.f32 0.01, %v3262_v57  ;;  %v3167_v23 = vadd.f32 %v3166_v25, %v10598_v59  ;;  %v3858_v29 = vmax.f32 %v3260_v44, %v3754_v24  ;;  %6515 = vmatpush2.bf16.msra.mxu1 %v8829_v58  ;;  %v3851_v1 = vmax.f32 %v10845_v48, %v3747_v34  ;;  %6608 = vmatpush1.bf16.msra.mxu0 %v8877_v28  ;;  %v8835_v58 = vld [vmem:[%s13087_s7 + $0x870] ss:$24 sps:$4 sm:$0xff]   ;;  %v8840_v28 = vld [vmem:[%s13087_s7 + $0x844] ss:$24 sps:$4 sm:$0xff]  }
 0x362   :  { %v3267_v4 = vpop.f32.mrf.mxu0  ;;  %v3168_v53 = vpop.f32.mrf.mxu1  ;;  %6516 = vmatprep.subr.bf16.mxu1 %v8834_v11  ;;  %v3850_v35 = vmax.f32 %v10852_v49, %v3746_v38  ;;  %v10911_v63 = vadd.f32 %v3265_v9, %v3165_v51  ;;  %6609 = vmatprep.subr.bf16.mxu0 %v8885_v47  ;;  %v3792_v10 = vmul.f32 0.01, %v3084_v52  ;;  %v10920_v11 = vpack.c.bf16 %v3888_v6, %v3880_v3  ;;  %v8889_v24 = vld [vmem:[%s13087_s7 + $0x930] ss:$24 sps:$4 sm:$0xff]   ;;  %v8895_v3 = vld [vmem:[%s13087_s7 + $0x900] ss:$24 sps:$4 sm:$0xff]  }
 0x363   :  { %v3859_v41 = vmax.f32 %v3262_v57, %v3755_v14  ;;  %v10899_v45 = vadd.f32 %v3267_v4, %v3167_v23  ;;  %v3169_v2 = vadd.f32 %v3168_v53, %v10587_v21  ;;  %v10930_v32 = vpack.c.bf16 %v3897_v39, %v3897_v39  ;;  %v8897_v4 = vld [vmem:[%s13087_s7 + $0x904] ss:$24 sps:$4 sm:$0xff]   ;;  %v8838_v53 = vld [vmem:[%s13087_s7 + $0x840] ss:$24 sps:$4 sm:$0xff]  }
 0x364   :  { %v3269_v42 = vpop.f32.mrf.mxu0  ;;  %v3170_v30 = vpop.f32.mrf.mxu1  ;;  %v10922_v49 = vpack.c.bf16 %v3858_v29, %v3850_v35  ;;  %v3762_v25 = vmul.f32 0.01, %v10911_v63  ;;  %v3896_v47 = vmax.f32 %v3084_v52, %v3792_v10 }
 0x365   :  { %v3270_v15 = vadd.f32 %v3269_v42, %v3169_v2  ;;  %v3171_v36 = vadd.f32 %v3170_v30, %v10598_v59  ;;  %v3763_v40 = vmul.f32 0.01, %v10899_v45  ;;  %v10915_v48 = vpack.c.bf16 %v3859_v41, %v3851_v1  ;;  %6517 = vmatpush2.bf16.msra.mxu1 %v8832_v27  ;;  %6610 = vmatpush1.bf16.msra.mxu0 %v8883_v8 }
 0x366   :  { %v3271_v44 = vpop.f32.mrf.mxu0  ;;  %v3174_v19 = vpop.f32.mrf.mxu1  ;;  %13235 = vst [vmem:[#allocation29_spill] sm:$0xff] %v10922_v49  ;;  %6518 = vmatprep.subr.bf16.mxu1 %v8837_v33  ;;  %v8843_v33 = vld [vmem:[%s13087_s7 + $0x814] ss:$24 sps:$4 sm:$0xff]   ;;  %6611 = vmatprep.subr.bf16.mxu0 %v8891_v31  ;;  %v3866_v39 = vmax.f32 %v10911_v63, %v3762_v25 }
 0x367   :  { %13234 = vst [vmem:[#allocation28_spill] sm:$0xff] %v10915_v48  ;;  %v3770_v55 = vmul.f32 0.01, %v3270_v15  ;;  %v3272_v57 = vadd.f32 %v3271_v44, %v3171_v36  ;;  %6459 = vmatprep.mubr.bf16.mxu0 %v10915_v48  ;;  %v3175_v14 = vadd.f32 %v3174_v19, %v10587_v21  ;;  %6379 = vmatmul.mubr.bf16.gmra.mxu1 %v10920_v11  ;;  %v8903_v63 = vld [vmem:[%s13087_s7 + $0xbd4] ss:$24 sps:$4 sm:$0xff]  }
 0x368   :  { %v3275_v9 = vpop.f32.mrf.mxu0  ;;  %v3176_v34 = vpop.f32.mrf.mxu1  ;;  %6460 = vmatmul.mubr.bf16.gmra.mxu0 %v10922_v49  ;;  %v3867_v6 = vmax.f32 %v10899_v45, %v3763_v40  ;;  %6388 = vmatprep.mubr.bf16.mxu1 %v10930_v32  ;;  %v8841_v40 = vld [vmem:[%s13087_s7 + $0x810] ss:$24 sps:$4 sm:$0xff]  }
 0x369   :  { %v3771_v38 = vmul.f32 0.01, %v3272_v57  ;;  %v3177_v51 = vadd.f32 %v3176_v34, %v10598_v59  ;;  %6519 = vmatpush2.bf16.msra.mxu1 %v8835_v58  ;;  %v3874_v27 = vmax.f32 %v3270_v15, %v3770_v55  ;;  %6612 = vmatpush1.bf16.msra.mxu0 %v8889_v24  ;;  %v3276_v1 = vadd.f32 %v3275_v9, %v3175_v14  ;;  %v8846_v9 = vld [vmem:[%s13087_s7 + $0x7e4] ss:$24 sps:$4 sm:$0xff]   ;;  %v8901_v34 = vld [vmem:[%s13087_s7 + $0xbd0] ss:$24 sps:$4 sm:$0xff]  }
 0x36a   :  { %v3277_v23 = vpop.f32.mrf.mxu0  ;;  %v3178_v29 = vpop.f32.mrf.mxu1  ;;  %6520 = vmatprep.subr.bf16.mxu1 %v8840_v28  ;;  %6613 = vmatprep.subr.bf16.mxu0 %v8897_v4  ;;  %v10960_v15 = vpack.c.bf16 %v3896_v47, %v3896_v47  ;;  %v8909_v14 = vld [vmem:[%s13087_s7 + $0xba4] ss:$24 sps:$4 sm:$0xff]   ;;  %v8844_v4 = vld [vmem:[%s13087_s7 + $0x7e0] ss:$24 sps:$4 sm:$0xff]  }
 0x36b   :  { %v3875_v41 = vmax.f32 %v3272_v57, %v3771_v38  ;;  %v3278_v2 = vadd.f32 %v3277_v23, %v3177_v51  ;;  %v3179_v52 = vadd.f32 %v3178_v29, %v10587_v21  ;;  %v10968_v19 = vpack.c.bf16 %v3874_v27, %v3866_v39  ;;  %v8849_v27 = vld [vmem:[%s13087_s7 + $0x7b4] ss:$24 sps:$4 sm:$0xff]   ;;  %v8847_v39 = vld [vmem:[%s13087_s7 + $0x7b0] ss:$24 sps:$4 sm:$0xff]  }
 0x36c   :  { %v3279_v42 = vpop.f32.mrf.mxu0  ;;  %v3180_v45 = vpop.f32.mrf.mxu1  ;;  %v3778_v24 = vmul.f32 0.01, %v3276_v1 }
 0x36d   :  { %v3181_v30 = vadd.f32 %v3180_v45, %v10598_v59  ;;  %v10958_v35 = vpack.c.bf16 %v3875_v41, %v3867_v6  ;;  %v3779_v36 = vmul.f32 0.01, %v3278_v2  ;;  %v3280_v44 = vadd.f32 %v3279_v42, %v3179_v52  ;;  %6521 = vmatpush2.bf16.msra.mxu1 %v8838_v53  ;;  %13237 = vst [vmem:[#allocation31_spill] sm:$0xff] %v10968_v19 }
 0x36e   :  { %v3281_v8 = vpop.f32.mrf.mxu0  ;;  %v3184_v10 = vpop.f32.mrf.mxu1  ;;  %6522 = vmatprep.subr.bf16.mxu1 %v8843_v33  ;;  %6614 = vmatpush1.bf16.msra.mxu0 %v8895_v3  ;;  %v3882_v42 = vmax.f32 %v3276_v1, %v3778_v24  ;;  %v8915_v3 = vld [vmem:[%s13087_s7 + $0xb74] ss:$24 sps:$4 sm:$0xff]   ;;  %v8852_v1 = vld [vmem:[%s13087_s7 + $0x784] ss:$24 sps:$4 sm:$0xff]  }
 0x36f   :  { %13236 = vst [vmem:[#allocation30_spill] sm:$0xff] %v10958_v35  ;;  %v3282_v58 = vadd.f32 %v3281_v8, %v3181_v30  ;;  %v3185_v55 = vadd.f32 %v3184_v10, %v10587_v21  ;;  %6469 = vmatprep.mubr.bf16.mxu0 %v10958_v35  ;;  %v3786_v28 = vmul.f32 0.01, %v3280_v44  ;;  %6389 = vmatmul.mubr.bf16.gmra.mxu1 %v10960_v15 }
 0x370   :  { %v3285_v57 = vpop.f32.mrf.mxu0  ;;  %v3186_v31 = vpop.f32.mrf.mxu1  ;;  %6470 = vmatmul.mubr.bf16.gmra.mxu0 %v10968_v19  ;;  %v3883_v51 = vmax.f32 %v3278_v2, %v3779_v36  ;;  %6615 = vmatprep.subr.bf16.mxu0 %v8903_v63  ;;  %v8907_v2 = vld [vmem:[%s13087_s7 + $0xba0] ss:$24 sps:$4 sm:$0xff]  }
 0x371   :  { %v3787_v25 = vmul.f32 0.01, %v3282_v58  ;;  %v3187_v21 = vadd.f32 %v3186_v31, %v10598_v59  ;;  %6523 = vmatpush2.bf16.msra.mxu1 %v8841_v40  ;;  %v3890_v47 = vmax.f32 %v3280_v44, %v3786_v28  ;;  %v3286_v29 = vadd.f32 %v3285_v57, %v3185_v55  ;;  %v8913_v44 = vld [vmem:[%s13087_s7 + $0xb70] ss:$24 sps:$4 sm:$0xff]   ;;  %v13241_v40 = vld [vmem:[#allocation17_spill] sm:$0xff] }
 0x372   :  { %v3287_v38 = vpop.f32.mrf.mxu0  ;;  %v3188_v23 = vpop.f32.mrf.mxu1  ;;  %6524 = vmatprep.subr.bf16.mxu1 %v8846_v9  ;;  %6616 = vmatpush2.bf16.msra.mxu0 %v8901_v34  ;;  %v13113_v63 = vsub.s32 4, %v13241_v40  ;;  %v13112_v55 = vsub.s32 5, %v13241_v40  ;;  %v8850_v57 = vld [vmem:[%s13087_s7 + $0x780] ss:$24 sps:$4 sm:$0xff]   ;;  %v8858_v28 = vld [vmem:[%s13087_s7 + $0x15c] ss:$24 sps:$4 sm:$0xff]  }
 0x373   :  { %v3891_v6 = vmax.f32 %v3282_v58, %v3787_v25  ;;  %v3288_v53 = vadd.f32 %v3287_v38, %v3187_v21  ;;  %6617 = vmatprep.subr.bf16.mxu0 %v8909_v14  ;;  %v11001_v30 = vpack.c.bf16 %v3890_v47, %v3882_v42  ;;  %v3794_v8 = vmul.f32 0.01, %v3286_v29  ;;  %v8921_v58 = vld [vmem:[%s13087_s7 + $0xb44] ss:$24 sps:$4 sm:$0xff]   ;;  %v8919_v31 = vld [vmem:[%s13087_s7 + $0xb40] ss:$24 sps:$4 sm:$0xff]  }
 0x374   :  { %v3289_v59 = vpop.f32.mrf.mxu0  ;;  %v3189_v41 = vpop.f32.mrf.mxu1  ;;  %v11028_v34 = vld [vmem:[#allocation10] sm:$0xff]  ;;  %v8931_v42 = vld [vmem:[%s13087_s7 + $0xae0] ss:$24 sps:$4 sm:$0xff]  }
 0x375   :  { %v3795_v33 = vmul.f32 0.01, %v3288_v53  ;;  %v10993_v45 = vpack.c.bf16 %v3891_v6, %v3883_v51  ;;  %6525 = vmatpush2.bf16.msra.mxu1 %v8844_v4  ;;  %13239 = vst [vmem:[#allocation33_spill] sm:$0xff] %v11001_v30  ;;  %v3898_v9 = vmax.f32 %v3286_v29, %v3794_v8  ;;  %v11033_v24 = vrot.slane %v11028_v34, %v13113_v63  ;;  %v8927_v25 = vld [vmem:[%s13087_s7 + $0xb14] ss:$24 sps:$4 sm:$0xff]  }
 0x376   :  { %v3290_v52 = vpop.f32.mrf.mxu0  ;;  %6526 = vmatprep.subr.bf16.mxu1 %v8849_v27  ;;  %6618 = vmatpush2.bf16.msra.mxu0 %v8907_v2  ;;  %v11041_v21 = vrot.slane %v11028_v34, %v13112_v55  ;;  %v8925_v23 = vld [vmem:[%s13087_s7 + $0xb10] ss:$24 sps:$4 sm:$0xff]   ;;  %v8933_v6 = vld [vmem:[%s13087_s7 + $0xae4] ss:$24 sps:$4 sm:$0xff]  }
 0x377   :  { %13238 = vst [vmem:[#allocation32_spill] sm:$0xff] %v10993_v45  ;;  %v3899_v36 = vmax.f32 %v3288_v53, %v3795_v33  ;;  %6479 = vmatprep.mubr.bf16.mxu0 %v10993_v45  ;;  %6619 = vmatprep.subr.bf16.mxu0 %v8915_v3  ;;  %v11043_v38 = vpack.c.bf16 %v3898_v9, %v3898_v9  ;;  %v8939_v3 = vld [vmem:[%s13087_s7 + $0xab4] ss:$24 sps:$4 sm:$0xff]  }
 0x378   :  { %6480 = vmatmul.mubr.bf16.gmra.mxu0 %v11001_v30 }
 0x379   :  { %v11010_v10 = vpack.c.bf16 %v3899_v36, %v3899_v36  ;;  %6527 = vmatpush2.bf16.msra.mxu1 %v8847_v39  ;;  %13242 = vst [vmem:[#allocation35_spill] sm:$0xff] %v11043_v38 }
 0x37a   :  { %6528 = vmatprep.subr.bf16.mxu1 %v8852_v1  ;;  %6620 = vmatpush2.bf16.msra.mxu0 %v8913_v44 }
 0x37b   :  { %13240 = vst [vmem:[#allocation34_spill] sm:$0xff] %v11010_v10  ;;  %6489 = vmatprep.mubr.bf16.mxu0 %v11010_v10  ;;  %6621 = vmatprep.subr.bf16.mxu0 %v8921_v58 }
 0x37d   :  { %6529 = vmatpush2.bf16.msra.mxu1 %v8850_v57 }
 0x37e   :  { %v3326_v14 = vpop.f32.mrf.mxu1  ;;  %6700 = vmatprep.subr.bf16.mxu1 %v8858_v28  ;;  %6622 = vmatpush2.bf16.msra.mxu0 %v8919_v31  ;;  %v8937_v28 = vld [vmem:[%s13087_s7 + $0xab0] ss:$24 sps:$4 sm:$0xff]  }
 0x37f   :  { %v3327_v4 = vadd.f32 %v3326_v14, %v11033_v24  ;;  %6623 = vmatprep.subr.bf16.mxu0 %v8927_v25  ;;  %v8945_v14 = vld [vmem:[%s13087_s7 + $0xa84] ss:$24 sps:$4 sm:$0xff]  }
 0x380   :  { %v3427_v51 = vpop.f32.mrf.mxu0  ;;  %v3328_v47 = vpop.f32.mrf.mxu1  ;;  %6490 = vmatmul.mubr.bf16.gmra.mxu0 %v11043_v38 }
 0x381   :  { %v3329_v29 = vadd.f32 %v3328_v47, %v11041_v21  ;;  %v3428_v33 = vadd.f32 %v3427_v51, %v3327_v4 }
 0x382   :  { %v3429_v53 = vpop.f32.mrf.mxu0  ;;  %v3330_v59 = vpop.f32.mrf.mxu1  ;;  %6624 = vmatpush2.bf16.msra.mxu0 %v8925_v23 }
 0x383   :  { %v3430_v27 = vadd.f32 %v3429_v53, %v3329_v29  ;;  %v3331_v41 = vadd.f32 %v3330_v59, %v11033_v24  ;;  %6625 = vmatprep.subr.bf16.mxu0 %v8933_v6  ;;  %v3700_v31 = vmul.f32 0.01, %v3428_v33 }
 0x384   :  { %v3431_v2 = vpop.f32.mrf.mxu0  ;;  %v3332_v52 = vpop.f32.mrf.mxu1 }
 0x385   :  { %v3432_v39 = vadd.f32 %v3431_v2, %v3331_v41  ;;  %v3333_v8 = vadd.f32 %v3332_v52, %v11041_v21  ;;  %v3701_v44 = vmul.f32 0.01, %v3430_v27  ;;  %v8943_v2 = vld [vmem:[%s13087_s7 + $0xa80] ss:$24 sps:$4 sm:$0xff]  }
 0x386   :  { %v3433_v36 = vpop.f32.mrf.mxu0  ;;  %v3336_v1 = vpop.f32.mrf.mxu1  ;;  %6626 = vmatpush2.bf16.msra.mxu0 %v8931_v42  ;;  %v3804_v42 = vmax.f32 %v3428_v33, %v3700_v31  ;;  %v8864_v31 = vld [vmem:[%s13087_s7 + $0x12c] ss:$24 sps:$4 sm:$0xff]  }
 0x387   :  { %v3708_v58 = vmul.f32 0.01, %v3432_v39  ;;  %v3434_v57 = vadd.f32 %v3433_v36, %v3333_v8  ;;  %6627 = vmatprep.subr.bf16.mxu0 %v8939_v3  ;;  %v3337_v23 = vadd.f32 %v3336_v1, %v11033_v24  ;;  %v3805_v53 = vmax.f32 %v3430_v27, %v3701_v44  ;;  %v8951_v36 = vld [vmem:[%s13087_s7 + $0x45c] ss:$24 sps:$4 sm:$0xff]  }
 0x388   :  { %v3437_v9 = vpop.f32.mrf.mxu0  ;;  %v3338_v25 = vpop.f32.mrf.mxu1 }
 0x389   :  { %v3709_v51 = vmul.f32 0.01, %v3434_v57  ;;  %v3339_v4 = vadd.f32 %v3338_v25, %v11041_v21  ;;  %v3812_v6 = vmax.f32 %v3432_v39, %v3708_v58  ;;  %v3438_v39 = vadd.f32 %v3437_v9, %v3337_v23  ;;  %v8856_v58 = vld [vmem:[%s13087_s7 + $0x158] ss:$24 sps:$4 sm:$0xff]  }
 0x38a   :  { %v3439_v47 = vpop.f32.mrf.mxu0  ;;  %v3340_v29 = vpop.f32.mrf.mxu1  ;;  %6628 = vmatpush2.bf16.msra.mxu0 %v8937_v28 }
 0x38b   :  { %v3813_v59 = vmax.f32 %v3434_v57, %v3709_v51  ;;  %v3440_v52 = vadd.f32 %v3439_v47, %v3339_v4  ;;  %v3341_v3 = vadd.f32 %v3340_v29, %v11033_v24  ;;  %6629 = vmatprep.subr.bf16.mxu0 %v8945_v14  ;;  %v11083_v33 = vpack.c.bf16 %v3812_v6, %v3804_v42 }
 0x38c   :  { %v3441_v41 = vpop.f32.mrf.mxu0  ;;  %v3342_v8 = vpop.f32.mrf.mxu1  ;;  %v3716_v4 = vmul.f32 0.01, %v3438_v39 }
 0x38d   :  { %v3343_v27 = vadd.f32 %v3342_v8, %v11041_v21  ;;  %v11078_v44 = vpack.c.bf16 %v3813_v59, %v3805_v53  ;;  %v3442_v57 = vadd.f32 %v3441_v41, %v3341_v3  ;;  %v3717_v9 = vmul.f32 0.01, %v3440_v52  ;;  %v8862_v59 = vld [vmem:[%s13087_s7 + $0x128] ss:$24 sps:$4 sm:$0xff]  }
 0x38e   :  { %v3443_v1 = vpop.f32.mrf.mxu0  ;;  %v3346_v28 = vpop.f32.mrf.mxu1  ;;  %6630 = vmatpush2.bf16.msra.mxu0 %v8943_v2  ;;  %v8870_v2 = vld [vmem:[%s13087_s7 + $0xfc] ss:$24 sps:$4 sm:$0xff]  }
 0x38f   :  { %v3444_v25 = vadd.f32 %v3443_v1, %v3343_v27  ;;  %6530 = vmatprep.mubr.bf16.mxu1 %v11078_v44  ;;  %v3724_v51 = vmul.f32 0.01, %v3442_v57  ;;  %6801 = vmatprep.subr.bf16.mxu0 %v8951_v36  ;;  %v3347_v6 = vadd.f32 %v3346_v28, %v11033_v24  ;;  %v3821_v1 = vmax.f32 %v3440_v52, %v3717_v9 }
 0x390   :  { %v3447_v14 = vpop.f32.mrf.mxu0  ;;  %v3348_v23 = vpop.f32.mrf.mxu1  ;;  %6531 = vmatmul.mubr.bf16.vlgmr.msra.gmra.mxu1 %v11083_v33 }
 0x391   :  { %v3725_v47 = vmul.f32 0.01, %v3444_v25  ;;  %v3349_v29 = vadd.f32 %v3348_v23, %v11041_v21  ;;  %6701 = vmatpush1.bf16.msra.mxu1 %v8856_v58  ;;  %v3828_v42 = vmax.f32 %v3442_v57, %v3724_v51  ;;  %v3820_v23 = vmax.f32 %v3438_v39, %v3716_v4  ;;  %v8868_v57 = vld [vmem:[%s13087_s7 + $0xf8] ss:$24 sps:$4 sm:$0xff]  }
 0x392   :  { %v3449_v53 = vpop.f32.mrf.mxu0  ;;  %v3350_v41 = vpop.f32.mrf.mxu1  ;;  %6702 = vmatprep.subr.bf16.mxu1 %v8864_v31  ;;  %v3448_v58 = vadd.f32 %v3447_v14, %v3347_v6  ;;  %v8876_v14 = vld [vmem:[%s13087_s7 + $0xcc] ss:$24 sps:$4 sm:$0xff]  }
 0x393   :  { %v3829_v3 = vmax.f32 %v3444_v25, %v3725_v47  ;;  %v3450_v8 = vadd.f32 %v3449_v53, %v3349_v29  ;;  %v3351_v36 = vadd.f32 %v3350_v41, %v11033_v24  ;;  %v11105_v25 = vpack.c.bf16 %v3828_v42, %v3820_v23 }
 0x394   :  { %v3451_v27 = vpop.f32.mrf.mxu0  ;;  %v3352_v28 = vpop.f32.mrf.mxu1  ;;  %v3732_v47 = vmul.f32 0.01, %v3448_v58 }
 0x395   :  { %v3452_v55 = vadd.f32 %v3451_v27, %v3351_v36  ;;  %v3353_v63 = vadd.f32 %v3352_v28, %v11041_v21  ;;  %6703 = vmatpush1.bf16.msra.mxu1 %v8862_v59  ;;  %v11100_v18 = vpack.c.bf16 %v3829_v3, %v3821_v1  ;;  %13244 = vst [vmem:[#allocation37_spill] sm:$0xff] %v11105_v25  ;;  %v3733_v51 = vmul.f32 0.01, %v3450_v8  ;;  %v8882_v36 = vld [vmem:[%s13087_s7 + $0x9c] ss:$24 sps:$4 sm:$0xff]  }
 0x396   :  { %v3453_v5 = vpop.f32.mrf.mxu0  ;;  %v3356_v31 = vpop.f32.mrf.mxu1  ;;  %6704 = vmatprep.subr.bf16.mxu1 %v8870_v2  ;;  %v3836_v23 = vmax.f32 %v3448_v58, %v3732_v47  ;;  %v8888_v58 = vld [vmem:[%s13087_s7 + $0x6c] ss:$24 sps:$4 sm:$0xff]  }
 0x397   :  { %13243 = vst [vmem:[#allocation36_spill] sm:$0xff] %v11100_v18  ;;  %v3740_v52 = vmul.f32 0.01, %v3452_v55  ;;  %v3454_v9 = vadd.f32 %v3453_v5, %v3353_v63  ;;  %6540 = vmatprep.mubr.bf16.mxu1 %v11100_v18  ;;  %v3357_v29 = vadd.f32 %v3356_v31, %v11033_v24  ;;  %v8874_v5 = vld [vmem:[%s13087_s7 + $0xc8] ss:$24 sps:$4 sm:$0xff]   ;;  %v3837_v63 = vmax.f32 %v3450_v8, %v3733_v51 }
 0x398   :  { %v3457_v39 = vpop.f32.mrf.mxu0  ;;  %v3358_v4 = vpop.f32.mrf.mxu1  ;;  %6541 = vmatmul.mubr.bf16.gmra.mxu1 %v11105_v25  ;;  %v8880_v51 = vld [vmem:[%s13087_s7 + $0x98] ss:$24 sps:$4 sm:$0xff]  }
 0x399   :  { %v3741_v6 = vmul.f32 0.01, %v3454_v9  ;;  %v3359_v53 = vadd.f32 %v3358_v4, %v11041_v21  ;;  %6705 = vmatpush1.bf16.msra.mxu1 %v8868_v57  ;;  %v3844_v2 = vmax.f32 %v3452_v55, %v3740_v52  ;;  %v3458_v31 = vadd.f32 %v3457_v39, %v3357_v29 }
 0x39a   :  { %v3459_v59 = vpop.f32.mrf.mxu0  ;;  %v3360_v41 = vpop.f32.mrf.mxu1  ;;  %6706 = vmatprep.subr.bf16.mxu1 %v8876_v14 }
 0x39b   :  { %v3845_v42 = vmax.f32 %v3454_v9, %v3741_v6  ;;  %v3460_v27 = vadd.f32 %v3459_v59, %v3359_v53  ;;  %v3361_v1 = vadd.f32 %v3360_v41, %v11033_v24  ;;  %v11127_v52 = vpack.c.bf16 %v3844_v2, %v3836_v23  ;;  %v8886_v2 = vld [vmem:[%s13087_s7 + $0x68] ss:$24 sps:$4 sm:$0xff]   ;;  %v8894_v23 = vld [vmem:[%s13087_s7 + $0x3c] ss:$24 sps:$4 sm:$0xff]  }
 0x39c   :  { %v3461_v3 = vpop.f32.mrf.mxu0  ;;  %v3362_v28 = vpop.f32.mrf.mxu1  ;;  %v3748_v29 = vmul.f32 0.01, %v3458_v31 }
 0x39d   :  { %v3363_v57 = vadd.f32 %v3362_v28, %v11041_v21  ;;  %v11122_v38 = vpack.c.bf16 %v3845_v42, %v3837_v63  ;;  %v3462_v8 = vadd.f32 %v3461_v3, %v3361_v1  ;;  %6707 = vmatpush1.bf16.msra.mxu1 %v8874_v5  ;;  %13246 = vst [vmem:[#allocation39_spill] sm:$0xff] %v11127_v52  ;;  %v3749_v39 = vmul.f32 0.01, %v3460_v27 }
 0x39e   :  { %v3463_v4 = vpop.f32.mrf.mxu0  ;;  %v3366_v55 = vpop.f32.mrf.mxu1  ;;  %6708 = vmatprep.subr.bf16.mxu1 %v8882_v36 }
 0x39f   :  { %13245 = vst [vmem:[#allocation38_spill] sm:$0xff] %v11122_v38  ;;  %v3464_v9 = vadd.f32 %v3463_v4, %v3363_v57  ;;  %6550 = vmatprep.mubr.bf16.mxu1 %v11122_v38  ;;  %v3756_v47 = vmul.f32 0.01, %v3462_v8  ;;  %v3367_v59 = vadd.f32 %v3366_v55, %v11033_v24  ;;  %v3853_v57 = vmax.f32 %v3460_v27, %v3749_v39 }
 0x3a0   :  { %v3467_v14 = vpop.f32.mrf.mxu0  ;;  %v3368_v6 = vpop.f32.mrf.mxu1  ;;  %6551 = vmatmul.mubr.bf16.gmra.mxu1 %v11127_v52  ;;  %v3852_v55 = vmax.f32 %v3458_v31, %v3748_v29  ;;  %v8900_v31 = vld [vmem:[%s13087_s7 + $0xc] ss:$24 sps:$4 sm:$0xff]  }
 0x3a1   :  { %v3757_v53 = vmul.f32 0.01, %v3464_v9  ;;  %v3369_v41 = vadd.f32 %v3368_v6, %v11041_v21  ;;  %6709 = vmatpush1.bf16.msra.mxu1 %v8880_v51  ;;  %v3860_v42 = vmax.f32 %v3462_v8, %v3756_v47  ;;  %v3468_v51 = vadd.f32 %v3467_v14, %v3367_v59 }
 0x3a2   :  { %v3469_v5 = vpop.f32.mrf.mxu0  ;;  %v3370_v63 = vpop.f32.mrf.mxu1  ;;  %6710 = vmatprep.subr.bf16.mxu1 %v8888_v58  ;;  %v8892_v58 = vld [vmem:[%s13087_s7 + $0x38] ss:$24 sps:$4 sm:$0xff]  }
 0x3a3   :  { %v3861_v3 = vmax.f32 %v3464_v9, %v3757_v53  ;;  %v3470_v36 = vadd.f32 %v3469_v5, %v3369_v41  ;;  %v3371_v1 = vadd.f32 %v3370_v63, %v11033_v24  ;;  %v11149_v47 = vpack.c.bf16 %v3860_v42, %v3852_v55 }
 0x3a4   :  { %v3471_v28 = vpop.f32.mrf.mxu0  ;;  %v3372_v4 = vpop.f32.mrf.mxu1  ;;  %v3764_v29 = vmul.f32 0.01, %v3468_v51 }
 0x3a5   :  { %v3472_v6 = vadd.f32 %v3471_v28, %v3371_v1  ;;  %v3373_v10 = vadd.f32 %v3372_v4, %v11041_v21  ;;  %6711 = vmatpush1.bf16.msra.mxu1 %v8886_v2  ;;  %v11144_v9 = vpack.c.bf16 %v3861_v3, %v3853_v57  ;;  %13248 = vst [vmem:[#allocation41_spill] sm:$0xff] %v11149_v47  ;;  %v3765_v53 = vmul.f32 0.01, %v3470_v36  ;;  %v8906_v57 = vld [vmem:[%s13087_s7 + $0x2dc] ss:$24 sps:$4 sm:$0xff]  }
 0x3a6   :  { %v3473_v30 = vpop.f32.mrf.mxu0  ;;  %v3376_v8 = vpop.f32.mrf.mxu1  ;;  %6712 = vmatprep.subr.bf16.mxu1 %v8894_v23 }
 0x3a7   :  { %13247 = vst [vmem:[#allocation40_spill] sm:$0xff] %v11144_v9  ;;  %v3772_v41 = vmul.f32 0.01, %v3472_v6  ;;  %v3474_v27 = vadd.f32 %v3473_v30, %v3373_v10  ;;  %6560 = vmatprep.mubr.bf16.mxu1 %v11144_v9  ;;  %v3377_v5 = vadd.f32 %v3376_v8, %v11033_v24  ;;  %v8898_v10 = vld [vmem:[%s13087_s7 + $0x8] ss:$24 sps:$4 sm:$0xff]   ;;  %v3869_v42 = vmax.f32 %v3470_v36, %v3765_v53 }
 0x3a8   :  { %v3477_v39 = vpop.f32.mrf.mxu0  ;;  %v3378_v14 = vpop.f32.mrf.mxu1  ;;  %6561 = vmatmul.mubr.bf16.gmra.mxu1 %v11149_v47  ;;  %v3868_v8 = vmax.f32 %v3468_v51, %v3764_v29 }
 0x3a9   :  { %v3773_v59 = vmul.f32 0.01, %v3474_v27  ;;  %v3379_v63 = vadd.f32 %v3378_v14, %v11041_v21  ;;  %6713 = vmatpush1.bf16.msra.mxu1 %v8892_v58  ;;  %v3876_v3 = vmax.f32 %v3472_v6, %v3772_v41  ;;  %v3478_v58 = vadd.f32 %v3477_v39, %v3377_v5  ;;  %v8904_v41 = vld [vmem:[%s13087_s7 + $0x2d8] ss:$24 sps:$4 sm:$0xff]   ;;  %v8912_v39 = vld [vmem:[%s13087_s7 + $0x2ac] ss:$24 sps:$4 sm:$0xff]  }
 0x3aa   :  { %v3479_v2 = vpop.f32.mrf.mxu0  ;;  %v3380_v30 = vpop.f32.mrf.mxu1  ;;  %6714 = vmatprep.subr.bf16.mxu1 %v8900_v31 }
 0x3ab   :  { %v3877_v1 = vmax.f32 %v3474_v27, %v3773_v59  ;;  %v3480_v28 = vadd.f32 %v3479_v2, %v3379_v63  ;;  %v3381_v4 = vadd.f32 %v3380_v30, %v11033_v24  ;;  %v11171_v27 = vpack.c.bf16 %v3876_v3, %v3868_v8 }
 0x3ac   :  { %v3481_v23 = vpop.f32.mrf.mxu0  ;;  %v3382_v55 = vpop.f32.mrf.mxu1  ;;  %v3780_v63 = vmul.f32 0.01, %v3478_v58 }
 0x3ad   :  { %v3383_v14 = vadd.f32 %v3382_v55, %v11041_v21  ;;  %v11166_v19 = vpack.c.bf16 %v3877_v1, %v3869_v42  ;;  %v3781_v36 = vmul.f32 0.01, %v3480_v28  ;;  %v3482_v6 = vadd.f32 %v3481_v23, %v3381_v4  ;;  %6715 = vmatpush1.bf16.msra.mxu1 %v8898_v10  ;;  %13250 = vst [vmem:[#allocation43_spill] sm:$0xff] %v11171_v27  ;;  %v8910_v42 = vld [vmem:[%s13087_s7 + $0x2a8] ss:$24 sps:$4 sm:$0xff]  }
 0x3ae   :  { %v3483_v45 = vpop.f32.mrf.mxu0  ;;  %v3386_v53 = vpop.f32.mrf.mxu1  ;;  %6716 = vmatprep.subr.bf16.mxu1 %v8906_v57  ;;  %v3884_v8 = vmax.f32 %v3478_v58, %v3780_v63  ;;  %v8924_v58 = vld [vmem:[%s13087_s7 + $0x24c] ss:$24 sps:$4 sm:$0xff]   ;;  %v8930_v63 = vld [vmem:[%s13087_s7 + $0x21c] ss:$24 sps:$4 sm:$0xff]  }
 0x3af   :  { %13249 = vst [vmem:[#allocation42_spill] sm:$0xff] %v11166_v19  ;;  %v3484_v31 = vadd.f32 %v3483_v45, %v3383_v14  ;;  %v3387_v59 = vadd.f32 %v3386_v53, %v11033_v24  ;;  %6570 = vmatprep.mubr.bf16.mxu1 %v11166_v19  ;;  %v3788_v29 = vmul.f32 0.01, %v3482_v6  ;;  %v3885_v45 = vmax.f32 %v3480_v28, %v3781_v36 }
 0x3b0   :  { %v3487_v51 = vpop.f32.mrf.mxu0  ;;  %v3388_v5 = vpop.f32.mrf.mxu1  ;;  %6571 = vmatmul.mubr.bf16.gmra.mxu1 %v11171_v27 }
 0x3b1   :  { %v3789_v2 = vmul.f32 0.01, %v3484_v31  ;;  %v3389_v30 = vadd.f32 %v3388_v5, %v11041_v21  ;;  %6717 = vmatpush2.bf16.msra.mxu1 %v8904_v41  ;;  %v3892_v3 = vmax.f32 %v3482_v6, %v3788_v29  ;;  %v3488_v23 = vadd.f32 %v3487_v51, %v3387_v59  ;;  %v8918_v21 = vld [vmem:[%s13087_s7 + $0x27c] ss:$24 sps:$4 sm:$0xff]   ;;  %v8916_v6 = vld [vmem:[%s13087_s7 + $0x278] ss:$24 sps:$4 sm:$0xff]  }
 0x3b2   :  { %v3489_v10 = vpop.f32.mrf.mxu0  ;;  %v3390_v24 = vpop.f32.mrf.mxu1  ;;  %6718 = vmatprep.subr.bf16.mxu1 %v8912_v39  ;;  %v1594_v51 = vsub.s32 6, %v13241_v40  ;;  %v8922_v39 = vld [vmem:[%s13087_s7 + $0x248] ss:$24 sps:$4 sm:$0xff]   ;;  %v1598_v29 = vsub.s32 7, %v13241_v40 }
 0x3b3   :  { %v3893_v1 = vmax.f32 %v3484_v31, %v3789_v2  ;;  %v3490_v57 = vadd.f32 %v3489_v10, %v3389_v30  ;;  %v11191_v53 = vpack.c.bf16 %v3892_v3, %v3884_v8  ;;  %v3796_v41 = vmul.f32 0.01, %v3488_v23  ;;  %v8928_v30 = vld [vmem:[%s13087_s7 + $0x218] ss:$24 sps:$4 sm:$0xff]  }
 0x3b4   :  { %v3491_v4 = vpop.f32.mrf.mxu0  ;;  %v3391_v55 = vpop.f32.mrf.mxu1  ;;  %v11210_v2 = vrot.slane %v11028_v34, %v1594_v51  ;;  %v11216_v10 = vrot.slane %v11028_v34, %v1598_v29  ;;  %v8934_v34 = vld [vmem:[%s13087_s7 + $0x1e8] ss:$24 sps:$4 sm:$0xff]  }
 0x3b5   :  { %v3797_v14 = vmul.f32 0.01, %v3490_v57  ;;  %v11186_v36 = vpack.c.bf16 %v3893_v1, %v3885_v45  ;;  %6719 = vmatpush2.bf16.msra.mxu1 %v8910_v42  ;;  %13252 = vst [vmem:[#allocation45_spill] sm:$0xff] %v11191_v53  ;;  %v3900_v5 = vmax.f32 %v3488_v23, %v3796_v41  ;;  %v8936_v42 = vld [vmem:[%s13087_s7 + $0x1ec] ss:$24 sps:$4 sm:$0xff]  }
 0x3b6   :  { %v3492_v28 = vpop.f32.mrf.mxu0  ;;  %6720 = vmatprep.subr.bf16.mxu1 %v8918_v21  ;;  %v8942_v55 = vld [vmem:[%s13087_s7 + $0x1bc] ss:$24 sps:$4 sm:$0xff]  }
 0x3b7   :  { %13251 = vst [vmem:[#allocation44_spill] sm:$0xff] %v11186_v36  ;;  %v3901_v31 = vmax.f32 %v3490_v57, %v3797_v14  ;;  %6580 = vmatprep.mubr.bf16.mxu1 %v11186_v36  ;;  %v11218_v45 = vpack.c.bf16 %v3900_v5, %v3900_v5  ;;  %v8948_v5 = vld [vmem:[%s13087_s7 + $0x18c] ss:$24 sps:$4 sm:$0xff]  }
 0x3b8   :  { %6581 = vmatmul.mubr.bf16.gmra.mxu1 %v11191_v53 }
 0x3b9   :  { %v11197_v59 = vpack.c.bf16 %v3901_v31, %v3901_v31  ;;  %6721 = vmatpush2.bf16.msra.mxu1 %v8916_v6  ;;  %13254 = vst [vmem:[#allocation47_spill] sm:$0xff] %v11218_v45 }
 0x3ba   :  { %6722 = vmatprep.subr.bf16.mxu1 %v8924_v58 }
 0x3bb   :  { %13253 = vst [vmem:[#allocation46_spill] sm:$0xff] %v11197_v59  ;;  %6590 = vmatprep.mubr.bf16.mxu1 %v11197_v59 }
 0x3bd   :  { %6723 = vmatpush2.bf16.msra.mxu1 %v8922_v39  ;;  %v8940_v39 = vld [vmem:[%s13087_s7 + $0x1b8] ss:$24 sps:$4 sm:$0xff]  }
 0x3be   :  { %v3528_v24 = vpop.f32.mrf.mxu1  ;;  %6724 = vmatprep.subr.bf16.mxu1 %v8930_v63 }
 0x3bf   :  { %v3529_v1 = vadd.f32 %v3528_v24, %v11210_v2 }
 0x3c0   :  { %v3629_v3 = vpop.f32.mrf.mxu0  ;;  %v3530_v23 = vpop.f32.mrf.mxu1  ;;  %6591 = vmatmul.mubr.bf16.gmra.mxu1 %v11218_v45 }
 0x3c1   :  { %v3531_v57 = vadd.f32 %v3530_v23, %v11216_v10  ;;  %6725 = vmatpush2.bf16.msra.mxu1 %v8928_v30  ;;  %6732 = vmatprep.mubr.bf16.mxu1 %v10491_v12  ;;  %v3630_v6 = vadd.f32 %v3629_v3, %v3529_v1 }
 0x3c2   :  { %v3631_v4 = vpop.f32.mrf.mxu0  ;;  %v3532_v21 = vpop.f32.mrf.mxu1  ;;  %6726 = vmatprep.subr.bf16.mxu1 %v8936_v42 }
 0x3c3   :  { %v3632_v8 = vadd.f32 %v3631_v4, %v3531_v57  ;;  %v3533_v14 = vadd.f32 %v3532_v21, %v11210_v2  ;;  %v3702_v3 = vmul.f32 0.01, %v3630_v6  ;;  %v8946_v21 = vld [vmem:[%s13087_s7 + $0x188] ss:$24 sps:$4 sm:$0xff]  }
 0x3c4   :  { %v3633_v28 = vpop.f32.mrf.mxu0  ;;  %v3534_v41 = vpop.f32.mrf.mxu1 }
 0x3c5   :  { %v3634_v31 = vadd.f32 %v3633_v28, %v3533_v14  ;;  %v3535_v58 = vadd.f32 %v3534_v41, %v11216_v10  ;;  %6727 = vmatpush2.bf16.msra.mxu1 %v8934_v34  ;;  %v3703_v63 = vmul.f32 0.01, %v3632_v8  ;;  %v8954_v28 = vld [vmem:[%s13087_s7 + $0x75c] ss:$24 sps:$4 sm:$0xff]   ;;  %v3806_v40 = vmax.f32 %v3630_v6, %v3702_v3  ;;  %v8952_v6 = vld [vmem:[%s13087_s7 + $0x758] ss:$24 sps:$4 sm:$0xff]  }
 0x3c6   :  { %v3635_v51 = vpop.f32.mrf.mxu0  ;;  %v3538_v29 = vpop.f32.mrf.mxu1  ;;  %6728 = vmatprep.subr.bf16.mxu1 %v8942_v55 }
 0x3c7   :  { %v3710_v30 = vmul.f32 0.01, %v3634_v31  ;;  %v3636_v24 = vadd.f32 %v3635_v51, %v3535_v58  ;;  %v3539_v57 = vadd.f32 %v3538_v29, %v11210_v2  ;;  %v3807_v41 = vmax.f32 %v3632_v8, %v3703_v63 }
 0x3c8   :  { %v3639_v42 = vpop.f32.mrf.mxu0  ;;  %v3540_v1 = vpop.f32.mrf.mxu1 }
 0x3c9   :  { %v3711_v23 = vmul.f32 0.01, %v3636_v24  ;;  %v3541_v4 = vadd.f32 %v3540_v1, %v11216_v10  ;;  %6729 = vmatpush2.bf16.msra.mxu1 %v8940_v39  ;;  %v3814_v55 = vmax.f32 %v3634_v31, %v3710_v30  ;;  %v3640_v39 = vadd.f32 %v3639_v42, %v3539_v57 }
 0x3ca   :  { %v3641_v34 = vpop.f32.mrf.mxu0  ;;  %v3542_v14 = vpop.f32.mrf.mxu1  ;;  %6730 = vmatprep.subr.bf16.mxu1 %v8948_v5  ;;  %v8949_v5 = vld [vmem:[%s13087_s7 + $0x458] ss:$24 sps:$4 sm:$0xff]  }
 0x3cb   :  { %v3815_v58 = vmax.f32 %v3636_v24, %v3711_v23  ;;  %v3642_v29 = vadd.f32 %v3641_v34, %v3541_v4  ;;  %v3543_v1 = vadd.f32 %v3542_v14, %v11210_v2  ;;  %v11256_v30 = vpack.c.bf16 %v3814_v55, %v3806_v40  ;;  %v8960_v40 = vld [vmem:[%s13087_s7 + $0x72c] ss:$24 sps:$4 sm:$0xff]   ;;  %v8955_v55 = vld [vmem:[%s13087_s7 + $0x428] ss:$24 sps:$4 sm:$0xff]  }
 0x3cc   :  { %v3643_v51 = vpop.f32.mrf.mxu0  ;;  %v3544_v12 = vpop.f32.mrf.mxu1  ;;  %v3718_v4 = vmul.f32 0.01, %v3640_v39 }
 0x3cd   :  { %v3545_v45 = vadd.f32 %v3544_v12, %v11216_v10  ;;  %6731 = vmatpush2.bf16.msra.mxu1 %v8946_v21  ;;  %v11251_v31 = vpack.c.bf16 %v3815_v58, %v3807_v41  ;;  %13256 = vst [vmem:[#allocation49_spill] sm:$0xff] %v11256_v30  ;;  %v3644_v8 = vadd.f32 %v3643_v51, %v3543_v1  ;;  %v8957_v12 = vld [vmem:[%s13087_s7 + $0x42c] ss:$24 sps:$4 sm:$0xff]   ;;  %v3719_v3 = vmul.f32 0.01, %v3642_v29 }
 0x3ce   :  { %v3645_v59 = vpop.f32.mrf.mxu0  ;;  %v3548_v63 = vpop.f32.mrf.mxu1  ;;  %6902 = vmatprep.subr.bf16.mxu1 %v8954_v28  ;;  %v8958_v28 = vld [vmem:[%s13087_s7 + $0x728] ss:$24 sps:$4 sm:$0xff]   ;;  %v8963_v41 = vld [vmem:[%s13087_s7 + $0x3fc] ss:$24 sps:$4 sm:$0xff]  }
 0x3cf   :  { %13255 = vst [vmem:[#allocation48_spill] sm:$0xff] %v11251_v31  ;;  %v3646_v24 = vadd.f32 %v3645_v59, %v3545_v45  ;;  %6631 = vmatprep.mubr.bf16.mxu0 %v11251_v31  ;;  %v3726_v23 = vmul.f32 0.01, %v3644_v8  ;;  %v3549_v21 = vadd.f32 %v3548_v63, %v11210_v2 }
 0x3d0   :  { %v3649_v42 = vpop.f32.mrf.mxu0  ;;  %6733 = vmatmul.mubr.bf16.vlgmr.msra.gmra.mxu1 %v10609_v13  ;;  %v3550_v57 = vpop.f32.mrf.mxu1  ;;  %6632 = vmatmul.mubr.bf16.vlgmr.msra.gmra.mxu0 %v11256_v30 }
 0x3d1   :  { %v3727_v34 = vmul.f32 0.01, %v3646_v24  ;;  %v3551_v59 = vadd.f32 %v3550_v57, %v11216_v10  ;;  %6742 = vmatprep.mubr.bf16.mxu1 %v10622_v50  ;;  %6802 = vmatpush1.bf16.msra.mxu0 %v8949_v5  ;;  %v3830_v58 = vmax.f32 %v3644_v8, %v3726_v23  ;;  %v3822_v50 = vmax.f32 %v3640_v39, %v3718_v4  ;;  %v8969_v39 = vld [vmem:[%s13087_s7 + $0x3cc] ss:$24 sps:$4 sm:$0xff]  }
 0x3d2   :  { %v3651_v45 = vpop.f32.mrf.mxu0  ;;  %6903 = vmatpush1.bf16.msra.mxu1 %v8952_v6  ;;  %v3552_v14 = vpop.f32.mrf.mxu1  ;;  %6803 = vmatprep.subr.bf16.mxu0 %v8957_v12  ;;  %v8966_v6 = vld [vmem:[%s13087_s7 + $0x6fc] ss:$24 sps:$4 sm:$0xff]   ;;  %v3823_v12 = vmax.f32 %v3642_v29, %v3719_v3  ;;  %v3650_v13 = vadd.f32 %v3649_v42, %v3549_v21  ;;  %v8964_v29 = vld [vmem:[%s13087_s7 + $0x6f8] ss:$24 sps:$4 sm:$0xff]   ;;  %v8972_v21 = vld [vmem:[%s13087_s7 + $0x6cc] ss:$24 sps:$4 sm:$0xff]  }
 0x3d3   :  { %v3831_v51 = vmax.f32 %v3646_v24, %v3727_v34  ;;  %v3652_v1 = vadd.f32 %v3651_v45, %v3551_v59  ;;  %v3553_v5 = vadd.f32 %v3552_v14, %v11210_v2  ;;  %6904 = vmatprep.subr.bf16.mxu1 %v8960_v40  ;;  %v8961_v40 = vld [vmem:[%s13087_s7 + $0x3f8] ss:$24 sps:$4 sm:$0xff]   ;;  %v11298_v42 = vpack.c.bf16 %v3830_v58, %v3822_v50 }
 0x3d4   :  { %v3653_v63 = vpop.f32.mrf.mxu0  ;;  %v3554_v57 = vpop.f32.mrf.mxu1  ;;  %v3734_v45 = vmul.f32 0.01, %v3650_v13 }
 0x3d5   :  { %v3654_v30 = vadd.f32 %v3653_v63, %v3553_v5  ;;  %v3555_v31 = vadd.f32 %v3554_v57, %v11216_v10  ;;  %6804 = vmatpush1.bf16.msra.mxu0 %v8955_v55  ;;  %v11287_v24 = vpack.c.bf16 %v3831_v51, %v3823_v12  ;;  %13258 = vst [vmem:[#allocation51_spill] sm:$0xff] %v11298_v42  ;;  %v3735_v3 = vmul.f32 0.01, %v3652_v1 }
 0x3d6   :  { %v3655_v53 = vpop.f32.mrf.mxu0  ;;  %6905 = vmatpush1.bf16.msra.mxu1 %v8958_v28  ;;  %v3558_v8 = vpop.f32.mrf.mxu1  ;;  %6805 = vmatprep.subr.bf16.mxu0 %v8963_v41  ;;  %v8970_v41 = vld [vmem:[%s13087_s7 + $0x6c8] ss:$24 sps:$4 sm:$0xff]  }
 0x3d7   :  { %13257 = vst [vmem:[#allocation50_spill] sm:$0xff] %v11287_v24  ;;  %v3742_v23 = vmul.f32 0.01, %v3654_v30  ;;  %v3656_v4 = vadd.f32 %v3655_v53, %v3555_v31  ;;  %6906 = vmatprep.subr.bf16.mxu1 %v8966_v6  ;;  %6641 = vmatprep.mubr.bf16.mxu0 %v11287_v24  ;;  %v3559_v14 = vadd.f32 %v3558_v8, %v11210_v2  ;;  %v8967_v31 = vld [vmem:[%s13087_s7 + $0x3c8] ss:$24 sps:$4 sm:$0xff]  }
 0x3d8   :  { %v3659_v34 = vpop.f32.mrf.mxu0  ;;  %6743 = vmatmul.mubr.bf16.gmra.mxu1 %v10653_v43  ;;  %v3560_v59 = vpop.f32.mrf.mxu1  ;;  %6642 = vmatmul.mubr.bf16.gmra.mxu0 %v11298_v42  ;;  %v3839_v58 = vmax.f32 %v3652_v1, %v3735_v3  ;;  %v8975_v6 = vld [vmem:[%s13087_s7 + $0x39c] ss:$24 sps:$4 sm:$0xff]  }
 0x3d9   :  { %v3743_v55 = vmul.f32 0.01, %v3656_v4  ;;  %v3561_v50 = vadd.f32 %v3560_v59, %v11216_v10  ;;  %6752 = vmatprep.mubr.bf16.mxu1 %v10676_v54  ;;  %6806 = vmatpush1.bf16.msra.mxu0 %v8961_v40  ;;  %v3846_v51 = vmax.f32 %v3654_v30, %v3742_v23  ;;  %v8978_v40 = vld [vmem:[%s13087_s7 + $0x69c] ss:$24 sps:$4 sm:$0xff]   ;;  %v3660_v59 = vadd.f32 %v3659_v34, %v3559_v14  ;;  %v8984_v14 = vld [vmem:[%s13087_s7 + $0x66c] ss:$24 sps:$4 sm:$0xff]  }
 0x3da   :  { %v3661_v28 = vpop.f32.mrf.mxu0  ;;  %6907 = vmatpush1.bf16.msra.mxu1 %v8964_v29  ;;  %v3562_v53 = vpop.f32.mrf.mxu1  ;;  %6807 = vmatprep.subr.bf16.mxu0 %v8969_v39  ;;  %v3838_v29 = vmax.f32 %v3650_v13, %v3734_v45  ;;  %v8981_v45 = vld [vmem:[%s13087_s7 + $0x36c] ss:$24 sps:$4 sm:$0xff]  }
 0x3db   :  { %v3847_v5 = vmax.f32 %v3656_v4, %v3743_v55  ;;  %6908 = vmatprep.subr.bf16.mxu1 %v8972_v21  ;;  %v3662_v12 = vadd.f32 %v3661_v28, %v3561_v50  ;;  %v3563_v57 = vadd.f32 %v3562_v53, %v11210_v2  ;;  %v8973_v4 = vld [vmem:[%s13087_s7 + $0x398] ss:$24 sps:$4 sm:$0xff]  }
 0x3dc   :  { %v3663_v63 = vpop.f32.mrf.mxu0  ;;  %v3564_v8 = vpop.f32.mrf.mxu1  ;;  %v8976_v21 = vld [vmem:[%s13087_s7 + $0x698] ss:$24 sps:$4 sm:$0xff]   ;;  %v11331_v55 = vpack.c.bf16 %v3846_v51, %v3838_v29 }
 0x3dd   :  { %v3565_v30 = vadd.f32 %v3564_v8, %v11216_v10  ;;  %v11323_v3 = vpack.c.bf16 %v3847_v5, %v3839_v58  ;;  %v3664_v39 = vadd.f32 %v3663_v63, %v3563_v57  ;;  %6808 = vmatpush1.bf16.msra.mxu0 %v8967_v31  ;;  %v3751_v50 = vmul.f32 0.01, %v3662_v12  ;;  %v8979_v57 = vld [vmem:[%s13087_s7 + $0x368] ss:$24 sps:$4 sm:$0xff]  }
 0x3de   :  { %v3665_v1 = vpop.f32.mrf.mxu0  ;;  %6909 = vmatpush1.bf16.msra.mxu1 %v8970_v41  ;;  %v3568_v23 = vpop.f32.mrf.mxu1  ;;  %13260 = vst [vmem:[#allocation53_spill] sm:$0xff] %v11331_v55  ;;  %6809 = vmatprep.subr.bf16.mxu0 %v8975_v6  ;;  %v3750_v31 = vmul.f32 0.01, %v3660_v59  ;;  %v8982_v8 = vld [vmem:[%s13087_s7 + $0x668] ss:$24 sps:$4 sm:$0xff]  }
 0x3df   :  { %13259 = vst [vmem:[#allocation52_spill] sm:$0xff] %v11323_v3  ;;  %v3666_v13 = vadd.f32 %v3665_v1, %v3565_v30  ;;  %6651 = vmatprep.mubr.bf16.mxu0 %v11323_v3  ;;  %v3758_v28 = vmul.f32 0.01, %v3664_v39  ;;  %6910 = vmatprep.subr.bf16.mxu1 %v8978_v40  ;;  %v3569_v58 = vadd.f32 %v3568_v23, %v11210_v2  ;;  %v8990_v23 = vld [vmem:[%s13087_s7 + $0x63c] ss:$24 sps:$4 sm:$0xff]  }
 0x3e0   :  { %v3669_v34 = vpop.f32.mrf.mxu0  ;;  %6753 = vmatmul.mubr.bf16.gmra.mxu1 %v10657_v20  ;;  %v3570_v53 = vpop.f32.mrf.mxu1  ;;  %6652 = vmatmul.mubr.bf16.gmra.mxu0 %v11331_v55 }
 0x3e1   :  { %v3759_v41 = vmul.f32 0.01, %v3666_v13  ;;  %v3571_v51 = vadd.f32 %v3570_v53, %v11216_v10  ;;  %6762 = vmatprep.mubr.bf16.mxu1 %v10730_v22  ;;  %v3862_v63 = vmax.f32 %v3664_v39, %v3758_v28  ;;  %6810 = vmatpush1.bf16.msra.mxu0 %v8973_v4  ;;  %v8987_v39 = vld [vmem:[%s13087_s7 + $0x33c] ss:$24 sps:$4 sm:$0xff]   ;;  %v3855_v4 = vmax.f32 %v3662_v12, %v3751_v50  ;;  %v8988_v12 = vld [vmem:[%s13087_s7 + $0x638] ss:$24 sps:$4 sm:$0xff]  }
 0x3e2   :  { %v3671_v5 = vpop.f32.mrf.mxu0  ;;  %6911 = vmatpush1.bf16.msra.mxu1 %v8976_v21  ;;  %v3572_v6 = vpop.f32.mrf.mxu1  ;;  %6811 = vmatprep.subr.bf16.mxu0 %v8981_v45  ;;  %v3854_v28 = vmax.f32 %v3660_v59, %v3750_v31  ;;  %v3670_v53 = vadd.f32 %v3669_v34, %v3569_v58  ;;  %v8993_v58 = vld [vmem:[%s13087_s7 + $0x30c] ss:$24 sps:$4 sm:$0xff]  }
 0x3e3   :  { %v3863_v40 = vmax.f32 %v3666_v13, %v3759_v41  ;;  %v3672_v29 = vadd.f32 %v3671_v5, %v3571_v51  ;;  %v3573_v30 = vadd.f32 %v3572_v6, %v11210_v2  ;;  %6912 = vmatprep.subr.bf16.mxu1 %v8984_v14  ;;  %v8985_v5 = vld [vmem:[%s13087_s7 + $0x338] ss:$24 sps:$4 sm:$0xff]   ;;  %v8996_v6 = vld [vmem:[%s13087_s7 + $0x60c] ss:$24 sps:$4 sm:$0xff]  }
 0x3e4   :  { %v3673_v1 = vpop.f32.mrf.mxu0  ;;  %v3574_v21 = vpop.f32.mrf.mxu1  ;;  %v11367_v59 = vpack.c.bf16 %v3862_v63, %v3854_v28  ;;  %v3766_v63 = vmul.f32 0.01, %v3670_v53 }
 0x3e5   :  { %v3674_v22 = vadd.f32 %v3673_v1, %v3573_v30  ;;  %v3575_v13 = vadd.f32 %v3574_v21, %v11216_v10  ;;  %v3767_v51 = vmul.f32 0.01, %v3672_v29  ;;  %6812 = vmatpush1.bf16.msra.mxu0 %v8979_v57  ;;  %v11359_v14 = vpack.c.bf16 %v3863_v40, %v3855_v4  ;;  %v8991_v4 = vld [vmem:[%s13087_s7 + $0x308] ss:$24 sps:$4 sm:$0xff]  }
 0x3e6   :  { %v3675_v41 = vpop.f32.mrf.mxu0  ;;  %6913 = vmatpush1.bf16.msra.mxu1 %v8982_v8  ;;  %v3578_v45 = vpop.f32.mrf.mxu1  ;;  %13262 = vst [vmem:[#allocation55_spill] sm:$0xff] %v11367_v59  ;;  %6813 = vmatprep.subr.bf16.mxu0 %v8987_v39  ;;  %v8994_v21 = vld [vmem:[%s13087_s7 + $0x608] ss:$24 sps:$4 sm:$0xff]  }
 0x3e7   :  { %13261 = vst [vmem:[#allocation54_spill] sm:$0xff] %v11359_v14  ;;  %v3774_v34 = vmul.f32 0.01, %v3674_v22  ;;  %v3676_v50 = vadd.f32 %v3675_v41, %v3575_v13  ;;  %6914 = vmatprep.subr.bf16.mxu1 %v8990_v23  ;;  %6661 = vmatprep.mubr.bf16.mxu0 %v11359_v14  ;;  %v3579_v40 = vadd.f32 %v3578_v45, %v11210_v2 }
 0x3e8   :  { %v3679_v31 = vpop.f32.mrf.mxu0  ;;  %6763 = vmatmul.mubr.bf16.gmra.mxu1 %v10715_v60  ;;  %v3580_v57 = vpop.f32.mrf.mxu1  ;;  %6662 = vmatmul.mubr.bf16.gmra.mxu0 %v11367_v59  ;;  %v3871_v39 = vmax.f32 %v3672_v29, %v3767_v51  ;;  %v8999_v29 = vld [vmem:[%s13087_s7 + $0x5dc] ss:$24 sps:$4 sm:$0xff]  }
 0x3e9   :  { %v3775_v8 = vmul.f32 0.01, %v3676_v50  ;;  %v3581_v30 = vadd.f32 %v3580_v57, %v11216_v10  ;;  %6772 = vmatprep.mubr.bf16.mxu1 %v10814_v16  ;;  %6814 = vmatpush1.bf16.msra.mxu0 %v8985_v5  ;;  %v3878_v28 = vmax.f32 %v3674_v22, %v3774_v34  ;;  %v3870_v57 = vmax.f32 %v3670_v53, %v3766_v63 }
 0x3ea   :  { %v3681_v1 = vpop.f32.mrf.mxu0  ;;  %6915 = vmatpush1.bf16.msra.mxu1 %v8988_v12  ;;  %v3582_v23 = vpop.f32.mrf.mxu1  ;;  %6815 = vmatprep.subr.bf16.mxu0 %v8993_v58  ;;  %v9002_v12 = vld [vmem:[%s13087_s7 + $0x8dc] ss:$24 sps:$4 sm:$0xff]   ;;  %v3680_v16 = vadd.f32 %v3679_v31, %v3579_v40 }
 0x3eb   :  { %v3879_v13 = vmax.f32 %v3676_v50, %v3775_v8  ;;  %v3682_v41 = vadd.f32 %v3681_v1, %v3581_v30  ;;  %6916 = vmatprep.subr.bf16.mxu1 %v8996_v6  ;;  %v3583_v51 = vadd.f32 %v3582_v23, %v11210_v2  ;;  %v8997_v30 = vld [vmem:[%s13087_s7 + $0x5d8] ss:$24 sps:$4 sm:$0xff]   ;;  %v11403_v53 = vpack.c.bf16 %v3878_v28, %v3870_v57  ;;  %v9008_v23 = vld [vmem:[%s13087_s7 + $0x8ac] ss:$24 sps:$4 sm:$0xff]   ;;  %v9003_v57 = vld [vmem:[%s13087_s7 + $0x5a8] ss:$24 sps:$4 sm:$0xff]  }
 0x3ec   :  { %v3683_v45 = vpop.f32.mrf.mxu0  ;;  %v3584_v5 = vpop.f32.mrf.mxu1  ;;  %v9000_v1 = vld [vmem:[%s13087_s7 + $0x8d8] ss:$24 sps:$4 sm:$0xff]   ;;  %v3782_v28 = vmul.f32 0.01, %v3680_v16 }
 0x3ed   :  { %v3585_v22 = vadd.f32 %v3584_v5, %v11216_v10  ;;  %v11395_v50 = vpack.c.bf16 %v3879_v13, %v3871_v39  ;;  %v3783_v58 = vmul.f32 0.01, %v3682_v41  ;;  %v3684_v6 = vadd.f32 %v3683_v45, %v3583_v51  ;;  %6816 = vmatpush1.bf16.msra.mxu0 %v8991_v4  ;;  %13264 = vst [vmem:[#allocation57_spill] sm:$0xff] %v11403_v53  ;;  %v9005_v39 = vld [vmem:[%s13087_s7 + $0x5ac] ss:$24 sps:$4 sm:$0xff]  }
 0x3ee   :  { %v3685_v34 = vpop.f32.mrf.mxu0  ;;  %6917 = vmatpush1.bf16.msra.mxu1 %v8994_v21  ;;  %v3588_v8 = vpop.f32.mrf.mxu1  ;;  %6817 = vmatprep.subr.bf16.mxu0 %v8999_v29 }
 0x3ef   :  { %13263 = vst [vmem:[#allocation56_spill] sm:$0xff] %v11395_v50  ;;  %v3686_v31 = vadd.f32 %v3685_v34, %v3585_v22  ;;  %v3589_v63 = vadd.f32 %v3588_v8, %v11210_v2  ;;  %6671 = vmatprep.mubr.bf16.mxu0 %v11395_v50  ;;  %v3790_v4 = vmul.f32 0.01, %v3684_v6  ;;  %6918 = vmatprep.subr.bf16.mxu1 %v9002_v12  ;;  %v9006_v12 = vld [vmem:[%s13087_s7 + $0x8a8] ss:$24 sps:$4 sm:$0xff]  }
 0x3f0   :  { %v3689_v40 = vpop.f32.mrf.mxu0  ;;  %6773 = vmatmul.mubr.bf16.gmra.mxu1 %v10869_v37  ;;  %v3590_v21 = vpop.f32.mrf.mxu1  ;;  %6672 = vmatmul.mubr.bf16.gmra.mxu0 %v11403_v53  ;;  %v3887_v29 = vmax.f32 %v3682_v41, %v3783_v58  ;;  %v9011_v41 = vld [vmem:[%s13087_s7 + $0x57c] ss:$24 sps:$4 sm:$0xff]  }
 0x3f1   :  { %v3791_v13 = vmul.f32 0.01, %v3686_v31  ;;  %v3591_v2 = vadd.f32 %v3590_v21, %v11216_v10  ;;  %6782 = vmatprep.mubr.bf16.mxu1 %v10882_v61  ;;  %v3690_v51 = vadd.f32 %v3689_v40, %v3589_v63  ;;  %6818 = vmatpush2.bf16.msra.mxu0 %v8997_v30  ;;  %v3894_v22 = vmax.f32 %v3684_v6, %v3790_v4  ;;  %v9014_v30 = vld [vmem:[%s13087_s7 + $0x87c] ss:$24 sps:$4 sm:$0xff]   ;;  %v9009_v6 = vld [vmem:[%s13087_s7 + $0x578] ss:$24 sps:$4 sm:$0xff]  }
 0x3f2   :  { %v3691_v45 = vpop.f32.mrf.mxu0  ;;  %6919 = vmatpush2.bf16.msra.mxu1 %v9000_v1  ;;  %v3592_v5 = vpop.f32.mrf.mxu1  ;;  %6819 = vmatprep.subr.bf16.mxu0 %v9005_v39  ;;  %v3886_v1 = vmax.f32 %v3680_v16, %v3782_v28  ;;  %v9017_v16 = vld [vmem:[%s13087_s7 + $0x54c] ss:$24 sps:$4 sm:$0xff]  }
 0x3f3   :  { %v3895_v10 = vmax.f32 %v3686_v31, %v3791_v13  ;;  %v3692_v34 = vadd.f32 %v3691_v45, %v3591_v2  ;;  %6920 = vmatprep.subr.bf16.mxu1 %v9008_v23  ;;  %v9012_v31 = vld [vmem:[%s13087_s7 + $0x878] ss:$24 sps:$4 sm:$0xff]   ;;  %v3798_v23 = vmul.f32 0.01, %v3690_v51  ;;  %v9020_v28 = vld [vmem:[%s13087_s7 + $0x84c] ss:$24 sps:$4 sm:$0xff]  }
 0x3f4   :  { %v3693_v8 = vpop.f32.mrf.mxu0  ;;  %v3593_v58 = vpop.f32.mrf.mxu1  ;;  %v11437_v39 = vpack.c.bf16 %v3894_v22, %v3886_v1  ;;  %v9015_v2 = vld [vmem:[%s13087_s7 + $0x548] ss:$24 sps:$4 sm:$0xff]   ;;  %v9023_v5 = vld [vmem:[%s13087_s7 + $0x51c] ss:$24 sps:$4 sm:$0xff]  }
 0x3f5   :  { %v3799_v63 = vmul.f32 0.01, %v3692_v34  ;;  %v11429_v21 = vpack.c.bf16 %v3895_v10, %v3887_v29  ;;  %6820 = vmatpush2.bf16.msra.mxu0 %v9003_v57  ;;  %v9018_v45 = vld [vmem:[%s13087_s7 + $0x848] ss:$24 sps:$4 sm:$0xff]   ;;  %v3902_v29 = vmax.f32 %v3690_v51, %v3798_v23  ;;  %v9026_v57 = vld [vmem:[%s13087_s7 + $0x81c] ss:$24 sps:$4 sm:$0xff]  }
 0x3f6   :  { %v3694_v40 = vpop.f32.mrf.mxu0  ;;  %6921 = vmatpush2.bf16.msra.mxu1 %v9006_v12  ;;  %13266 = vst [vmem:[#allocation59_spill] sm:$0xff] %v11437_v39  ;;  %6821 = vmatprep.subr.bf16.mxu0 %v9011_v41  ;;  %v9021_v12 = vld [vmem:[%s13087_s7 + $0x518] ss:$24 sps:$4 sm:$0xff]   ;;  %v9032_v8 = vld [vmem:[%s13087_s7 + $0x7ec] ss:$24 sps:$4 sm:$0xff]  }
 0x3f7   :  { %13265 = vst [vmem:[#allocation58_spill] sm:$0xff] %v11429_v21  ;;  %v3903_v4 = vmax.f32 %v3692_v34, %v3799_v63  ;;  %6681 = vmatprep.mubr.bf16.mxu0 %v11429_v21  ;;  %6922 = vmatprep.subr.bf16.mxu1 %v9014_v30  ;;  %v9024_v51 = vld [vmem:[%s13087_s7 + $0x818] ss:$24 sps:$4 sm:$0xff]   ;;  %v11470_v22 = vpack.c.bf16 %v3902_v29, %v3902_v29  ;;  %v9029_v34 = vld [vmem:[%s13087_s7 + $0x4ec] ss:$24 sps:$4 sm:$0xff]  }
 0x3f8   :  { %6783 = vmatmul.mubr.bf16.gmra.mxu1 %v10920_v11  ;;  %6682 = vmatmul.mubr.bf16.gmra.mxu0 %v11437_v39  ;;  %v9027_v58 = vld [vmem:[%s13087_s7 + $0x4e8] ss:$24 sps:$4 sm:$0xff]   ;;  %v9035_v63 = vld [vmem:[%s13087_s7 + $0x4bc] ss:$24 sps:$4 sm:$0xff]   ;;  %v9033_v23 = vld [vmem:[%s13087_s7 + $0x4b8] ss:$24 sps:$4 sm:$0xff]  }
 0x3f9   :  { %v11447_v13 = vpack.c.bf16 %v3903_v4, %v3903_v4  ;;  %6792 = vmatprep.mubr.bf16.mxu1 %v10930_v32  ;;  %6822 = vmatpush2.bf16.msra.mxu0 %v9009_v6  ;;  %13268 = vst [vmem:[#allocation61_spill] sm:$0xff] %v11470_v22  ;;  %v9030_v30 = vld [vmem:[%s13087_s7 + $0x7e8] ss:$24 sps:$4 sm:$0xff]   ;;  %v9038_v40 = vld [vmem:[%s13087_s7 + $0x7bc] ss:$24 sps:$4 sm:$0xff]  }
 0x3fa   :  { %6923 = vmatpush2.bf16.msra.mxu1 %v9012_v31  ;;  %6823 = vmatprep.subr.bf16.mxu0 %v9017_v16  ;;  %v4344_v31 = vld [vmem:[#allocation12] sm:$0x3f] }
 0x3fb   :  { %13267 = vst [vmem:[#allocation60_spill] sm:$0xff] %v11447_v13  ;;  %6691 = vmatprep.mubr.bf16.mxu0 %v11447_v13  ;;  %6924 = vmatprep.subr.bf16.mxu1 %v9020_v28  ;;  %v9036_v4 = vld [vmem:[%s13087_s7 + $0x7b8] ss:$24 sps:$4 sm:$0xff]   ;;  %v9041_v28 = vld [vmem:[%s13087_s7 + $0x48c] ss:$24 sps:$4 sm:$0xff]  }
 0x3fd   :  { %6824 = vmatpush2.bf16.msra.mxu0 %v9015_v2  ;;  %v9044_v2 = vld [vmem:[%s13087_s7 + $0x78c] ss:$24 sps:$4 sm:$0xff]  }
 0x3fe   :  { %6925 = vmatpush2.bf16.msra.mxu1 %v9018_v45  ;;  %v6330_v10 = vpop.f32.mrf.mxu1  ;;  %6825 = vmatprep.subr.bf16.mxu0 %v9023_v5  ;;  %v11509_v45 = vrot.slane %v4344_v31, %v13224_v26  ;;  %v9039_v5 = vld [vmem:[%s13087_s7 + $0x488] ss:$24 sps:$4 sm:$0xff]   ;;  %v9047_v26 = vld [vmem:[%s13087_s7 + $0xa5c] ss:$24 sps:$4 sm:$0xff]  }
 0x3ff   :  { %6926 = vmatprep.subr.bf16.mxu1 %v9026_v57  ;;  %v9042_v57 = vld [vmem:[%s13087_s7 + $0x788] ss:$24 sps:$4 sm:$0xff]  }
 0x400   :  { %6793 = vmatmul.mubr.bf16.gmra.mxu1 %v10960_v15  ;;  %v6332_v41 = vpop.f32.mrf.mxu1  ;;  %6692 = vmatmul.mubr.bf16.gmra.mxu0 %v11470_v22 }
 0x401   :  { %6934 = vmatprep.mubr.bf16.mxu1 %v11078_v44  ;;  %6826 = vmatpush2.bf16.msra.mxu0 %v9021_v12  ;;  %v13269_v12 = vld [vmem:[#allocation18_spill] sm:$0xff] }
 0x402   :  { %6927 = vmatpush2.bf16.msra.mxu1 %v9024_v51  ;;  %6833 = vmatprep.mubr.bf16.mxu0 %v10710_v56  ;;  %v6334_v1 = vpop.f32.mrf.mxu1  ;;  %v11518_v51 = vrot.slane %v4344_v31, %v13269_v12 }
 0x403   :  { %6827 = vmatprep.subr.bf16.mxu0 %v9029_v34  ;;  %6928 = vmatprep.subr.bf16.mxu1 %v9032_v8  ;;  %v9050_v8 = vld [vmem:[%s13087_s7 + $0x164] ss:$24 sps:$4 sm:$0xff]  }
 0x404   :  { %v11494_v6 = vpop.f32.mrf.mxu1 }
 0x405   :  { %6828 = vmatpush2.bf16.msra.mxu0 %v9027_v58  ;;  %v6331_v58 = vadd.f32 %v6330_v10, %v11509_v45 }
 0x406   :  { %6929 = vmatpush2.bf16.msra.mxu1 %v9030_v30  ;;  %v6340_v16 = vpop.f32.mrf.mxu1  ;;  %6829 = vmatprep.subr.bf16.mxu0 %v9035_v63 }
 0x407   :  { %6930 = vmatprep.subr.bf16.mxu1 %v9038_v40  ;;  %v6333_v40 = vadd.f32 %v6332_v41, %v11518_v51  ;;  %v9056_v41 = vld [vmem:[%s13087_s7 + $0x134] ss:$24 sps:$4 sm:$0xff]  }
 0x408   :  { %v6342_v29 = vpop.f32.mrf.mxu1 }
 0x409   :  { %6830 = vmatpush2.bf16.msra.mxu0 %v9033_v23  ;;  %v9045_v23 = vld [vmem:[%s13087_s7 + $0xa58] ss:$24 sps:$4 sm:$0xff]  }
 0x40a   :  { %6931 = vmatpush2.bf16.msra.mxu1 %v9036_v4  ;;  %v6344_v34 = vpop.f32.mrf.mxu1  ;;  %6831 = vmatprep.subr.bf16.mxu0 %v9041_v28  ;;  %v9048_v4 = vld [vmem:[%s13087_s7 + $0x160] ss:$24 sps:$4 sm:$0xff]  }
 0x40b   :  { %6932 = vmatprep.subr.bf16.mxu1 %v9044_v2  ;;  %v9053_v2 = vld [vmem:[%s13087_s7 + $0xa2c] ss:$24 sps:$4 sm:$0xff]  }
 0x40c   :  { %v11527_v30 = vpop.f32.mrf.mxu1 }
 0x40d   :  { %13270 = vst [vmem:[#allocation18_spill] sm:$0xff] %v11527_v30  ;;  %6832 = vmatpush2.bf16.msra.mxu0 %v9039_v5  ;;  %v6335_v5 = vadd.f32 %v6334_v1, %v11509_v45  ;;  %v9054_v1 = vld [vmem:[%s13087_s7 + $0x130] ss:$24 sps:$4 sm:$0xff]   ;;  %v6341_v30 = vadd.f32 %v6340_v16, %v11509_v45  ;;  %v9065_v16 = vld [vmem:[%s13087_s7 + $0x9cc] ss:$24 sps:$4 sm:$0xff]  }
 0x40e   :  { %6933 = vmatpush2.bf16.msra.mxu1 %v9042_v57  ;;  %v11530_v31 = vpop.f32.mrf.mxu1  ;;  %7003 = vmatprep.subr.bf16.mxu0 %v9047_v26 }
 0x40f   :  { %7104 = vmatprep.subr.bf16.mxu1 %v9050_v8 }
 0x410   :  { %v6431_v63 = vpop.f32.mrf.mxu0  ;;  %6834 = vmatmul.mubr.bf16.vlgmr.msra.gmra.mxu0 %v10720_v46  ;;  %v6352_v57 = vpop.f32.mrf.mxu1 }
 0x411   :  { %v11538_v10 = vadd.f32 %v6431_v63, %v6331_v58  ;;  %6935 = vmatmul.mubr.bf16.vlgmr.msra.gmra.mxu1 %v11083_v33  ;;  %6843 = vmatprep.mubr.bf16.mxu0 %v10794_v62  ;;  %v9051_v58 = vld [vmem:[%s13087_s7 + $0xa28] ss:$24 sps:$4 sm:$0xff]  }
 0x412   :  { %v6433_v28 = vpop.f32.mrf.mxu0  ;;  %6944 = vmatprep.mubr.bf16.mxu1 %v11100_v18  ;;  %7004 = vmatpush1.bf16.msra.mxu0 %v9045_v23  ;;  %v6354_v8 = vpop.f32.mrf.mxu1  ;;  %v9059_v23 = vld [vmem:[%s13087_s7 + $0x9fc] ss:$24 sps:$4 sm:$0xff]   ;;  %v6343_v18 = vadd.f32 %v6342_v29, %v11518_v51  ;;  %v6345_v29 = vadd.f32 %v6344_v34, %v11509_v45 }
 0x413   :  { %v11549_v12 = vadd.f32 %v6433_v28, %v6333_v40  ;;  %7105 = vmatpush1.bf16.msra.mxu1 %v9048_v4  ;;  %7005 = vmatprep.subr.bf16.mxu0 %v9053_v2  ;;  %v9062_v4 = vld [vmem:[%s13087_s7 + $0x104] ss:$24 sps:$4 sm:$0xff]   ;;  %v9057_v2 = vld [vmem:[%s13087_s7 + $0x9f8] ss:$24 sps:$4 sm:$0xff]  }
 0x414   :  { %v6435_v26 = vpop.f32.mrf.mxu0  ;;  %7106 = vmatprep.subr.bf16.mxu1 %v9056_v41  ;;  %v11569_v28 = vpop.f32.mrf.mxu1  ;;  %v9060_v41 = vld [vmem:[%s13087_s7 + $0x100] ss:$24 sps:$4 sm:$0xff]  }
 0x415   :  { %v11559_v63 = vadd.f32 %v6435_v26, %v6335_v5  ;;  %13271 = vst [vmem:[#allocation62_spill] sm:$0xff] %v11569_v28 }
 0x416   :  { %v11561_v40 = vpop.f32.mrf.mxu0  ;;  %7006 = vmatpush1.bf16.msra.mxu0 %v9051_v58  ;;  %v9068_v58 = vld [vmem:[%s13087_s7 + $0xd4] ss:$24 sps:$4 sm:$0xff]  }
 0x417   :  { %7107 = vmatpush1.bf16.msra.mxu1 %v9054_v1  ;;  %v11572_v5 = vpop.f32.mrf.mxu1  ;;  %7007 = vmatprep.subr.bf16.mxu0 %v9059_v23 }
 0x418   :  { %v6441_v26 = vpop.f32.mrf.mxu0  ;;  %7108 = vmatprep.subr.bf16.mxu1 %v9062_v4  ;;  %6844 = vmatmul.mubr.bf16.gmra.mxu0 %v10802_v17  ;;  %v9063_v4 = vld [vmem:[%s13087_s7 + $0x9c8] ss:$24 sps:$4 sm:$0xff]  }
 0x419   :  { %v11581_v28 = vadd.f32 %v6441_v26, %v6341_v30  ;;  %6945 = vmatmul.mubr.bf16.gmra.mxu1 %v11105_v25  ;;  %v6362_v1 = vpop.f32.mrf.mxu1  ;;  %6853 = vmatprep.mubr.bf16.mxu0 %v10855_v0  ;;  %v9066_v26 = vld [vmem:[%s13087_s7 + $0xd0] ss:$24 sps:$4 sm:$0xff]  }
 0x41a   :  { %v6443_v62 = vpop.f32.mrf.mxu0  ;;  %6954 = vmatprep.mubr.bf16.mxu1 %v11122_v38  ;;  %7008 = vmatpush1.bf16.msra.mxu0 %v9057_v2  ;;  %v6351_v38 = vadd.f32 %v11530_v31, %v11509_v45  ;;  %v9077_v31 = vld [vmem:[%s13087_s7 + $0x96c] ss:$24 sps:$4 sm:$0xff]  }
 0x41b   :  { %v11594_v30 = vadd.f32 %v6443_v62, %v6343_v18  ;;  %7109 = vmatpush1.bf16.msra.mxu1 %v9060_v41  ;;  %v6364_v23 = vpop.f32.mrf.mxu1  ;;  %7009 = vmatprep.subr.bf16.mxu0 %v9065_v16  ;;  %v9071_v18 = vld [vmem:[%s13087_s7 + $0x99c] ss:$24 sps:$4 sm:$0xff]  }
 0x41c   :  { %v6445_v25 = vpop.f32.mrf.mxu0  ;;  %7110 = vmatprep.subr.bf16.mxu1 %v9068_v58  ;;  %v9074_v62 = vld [vmem:[%s13087_s7 + $0xa4] ss:$24 sps:$4 sm:$0xff]   ;;  %v9072_v58 = vld [vmem:[%s13087_s7 + $0xa0] ss:$24 sps:$4 sm:$0xff]  }
 0x41d   :  { %v11602_v34 = vadd.f32 %v6445_v25, %v6345_v29  ;;  %v11610_v2 = vpop.f32.mrf.mxu1  ;;  %v9069_v25 = vld [vmem:[%s13087_s7 + $0x998] ss:$24 sps:$4 sm:$0xff]  }
 0x41e   :  { %13273 = vst [vmem:[#allocation64_spill] sm:$0xff] %v11610_v2  ;;  %v11612_v41 = vpop.f32.mrf.mxu0  ;;  %7010 = vmatpush1.bf16.msra.mxu0 %v9063_v4  ;;  %v6353_v2 = vadd.f32 %v6352_v57, %v11518_v51  ;;  %v9080_v4 = vld [vmem:[%s13087_s7 + $0x74] ss:$24 sps:$4 sm:$0xff]   ;;  %v6355_v57 = vadd.f32 %v6354_v8, %v11509_v45 }
 0x41f   :  { %13272 = vst [vmem:[#allocation63_spill] sm:$0xff] %v11602_v34  ;;  %7111 = vmatpush1.bf16.msra.mxu1 %v9066_v26  ;;  %v11616_v16 = vpop.f32.mrf.mxu1  ;;  %7011 = vmatprep.subr.bf16.mxu0 %v9071_v18 }
 0x420   :  { %v6451_v29 = vpop.f32.mrf.mxu0  ;;  %7112 = vmatprep.subr.bf16.mxu1 %v9074_v62  ;;  %6854 = vmatmul.mubr.bf16.gmra.mxu0 %v10872_v7  ;;  %v9075_v62 = vld [vmem:[%s13087_s7 + $0x968] ss:$24 sps:$4 sm:$0xff]  }
 0x421   :  { %v11625_v0 = vadd.f32 %v6451_v29, %v6351_v38  ;;  %6955 = vmatmul.mubr.bf16.gmra.mxu1 %v11127_v52  ;;  %v6372_v26 = vpop.f32.mrf.mxu1  ;;  %6863 = vmatprep.mubr.bf16.mxu0 %v10915_v48  ;;  %v9078_v29 = vld [vmem:[%s13087_s7 + $0x70] ss:$24 sps:$4 sm:$0xff]  }
 0x422   :  { %v6453_v34 = vpop.f32.mrf.mxu0  ;;  %6964 = vmatprep.mubr.bf16.mxu1 %v11144_v9  ;;  %7012 = vmatpush1.bf16.msra.mxu0 %v9069_v25  ;;  %v6361_v9 = vadd.f32 %v11572_v5, %v11509_v45  ;;  %v9089_v5 = vld [vmem:[%s13087_s7 + $0x90c] ss:$24 sps:$4 sm:$0xff]  }
 0x423   :  { %v11638_v38 = vadd.f32 %v6453_v34, %v6353_v2  ;;  %7113 = vmatpush1.bf16.msra.mxu1 %v9072_v58  ;;  %v6374_v18 = vpop.f32.mrf.mxu1  ;;  %7013 = vmatprep.subr.bf16.mxu0 %v9077_v31  ;;  %v9083_v34 = vld [vmem:[%s13087_s7 + $0x93c] ss:$24 sps:$4 sm:$0xff]  }
 0x424   :  { %v6455_v52 = vpop.f32.mrf.mxu0  ;;  %7114 = vmatprep.subr.bf16.mxu1 %v9080_v4  ;;  %v9086_v2 = vld [vmem:[%s13087_s7 + $0x44] ss:$24 sps:$4 sm:$0xff]   ;;  %v9084_v4 = vld [vmem:[%s13087_s7 + $0x40] ss:$24 sps:$4 sm:$0xff]  }
 0x425   :  { %v11646_v8 = vadd.f32 %v6455_v52, %v6355_v57  ;;  %v11654_v25 = vpop.f32.mrf.mxu1  ;;  %v9081_v52 = vld [vmem:[%s13087_s7 + $0x938] ss:$24 sps:$4 sm:$0xff]  }
 0x426   :  { %13275 = vst [vmem:[#allocation66_spill] sm:$0xff] %v11654_v25  ;;  %v11656_v58 = vpop.f32.mrf.mxu0  ;;  %7014 = vmatpush1.bf16.msra.mxu0 %v9075_v62  ;;  %v6363_v25 = vadd.f32 %v6362_v1, %v11518_v51  ;;  %v9092_v62 = vld [vmem:[%s13087_s7 + $0x14] ss:$24 sps:$4 sm:$0xff]   ;;  %v6365_v1 = vadd.f32 %v6364_v23, %v11509_v45 }
 0x427   :  { %13274 = vst [vmem:[#allocation65_spill] sm:$0xff] %v11646_v8  ;;  %7115 = vmatpush1.bf16.msra.mxu1 %v9078_v29  ;;  %v11660_v31 = vpop.f32.mrf.mxu1  ;;  %7015 = vmatprep.subr.bf16.mxu0 %v9083_v34 }
 0x428   :  { %v6461_v57 = vpop.f32.mrf.mxu0  ;;  %7116 = vmatprep.subr.bf16.mxu1 %v9086_v2  ;;  %6864 = vmatmul.mubr.bf16.gmra.mxu0 %v10922_v49  ;;  %v9087_v2 = vld [vmem:[%s13087_s7 + $0x908] ss:$24 sps:$4 sm:$0xff]  }
 0x429   :  { %v11669_v48 = vadd.f32 %v6461_v57, %v6361_v9  ;;  %6965 = vmatmul.mubr.bf16.gmra.mxu1 %v11149_v47  ;;  %v6382_v29 = vpop.f32.mrf.mxu1  ;;  %6873 = vmatprep.mubr.bf16.mxu0 %v10958_v35  ;;  %v9090_v57 = vld [vmem:[%s13087_s7 + $0x10] ss:$24 sps:$4 sm:$0xff]   ;;  %v6373_v35 = vadd.f32 %v6372_v26, %v11518_v51  ;;  %v6375_v26 = vadd.f32 %v6374_v18, %v11509_v45 }
 0x42a   :  { %v6463_v8 = vpop.f32.mrf.mxu0  ;;  %6974 = vmatprep.mubr.bf16.mxu1 %v11166_v19  ;;  %7016 = vmatpush1.bf16.msra.mxu0 %v9081_v52  ;;  %v6371_v19 = vadd.f32 %v11616_v16, %v11509_v45  ;;  %v9101_v16 = vld [vmem:[%s13087_s7 + $0xbac] ss:$24 sps:$4 sm:$0xff]  }
 0x42b   :  { %v11682_v9 = vadd.f32 %v6463_v8, %v6363_v25  ;;  %7117 = vmatpush1.bf16.msra.mxu1 %v9084_v4  ;;  %v6384_v34 = vpop.f32.mrf.mxu1  ;;  %7017 = vmatprep.subr.bf16.mxu0 %v9089_v5  ;;  %v9095_v8 = vld [vmem:[%s13087_s7 + $0xbdc] ss:$24 sps:$4 sm:$0xff]  }
 0x42c   :  { %v6465_v47 = vpop.f32.mrf.mxu0  ;;  %7118 = vmatprep.subr.bf16.mxu1 %v9092_v62  ;;  %v9098_v25 = vld [vmem:[%s13087_s7 + $0x2e4] ss:$24 sps:$4 sm:$0xff]   ;;  %v9096_v62 = vld [vmem:[%s13087_s7 + $0x2e0] ss:$24 sps:$4 sm:$0xff]  }
 0x42d   :  { %v11690_v23 = vadd.f32 %v6465_v47, %v6365_v1  ;;  %v11698_v52 = vpop.f32.mrf.mxu1  ;;  %v9093_v47 = vld [vmem:[%s13087_s7 + $0xbd8] ss:$24 sps:$4 sm:$0xff]  }
 0x42e   :  { %13277 = vst [vmem:[#allocation68_spill] sm:$0xff] %v11698_v52  ;;  %v11700_v4 = vpop.f32.mrf.mxu0  ;;  %7018 = vmatpush1.bf16.msra.mxu0 %v9087_v2  ;;  %v9104_v2 = vld [vmem:[%s13087_s7 + $0x2b4] ss:$24 sps:$4 sm:$0xff]  }
 0x42f   :  { %13276 = vst [vmem:[#allocation67_spill] sm:$0xff] %v11690_v23  ;;  %7119 = vmatpush1.bf16.msra.mxu1 %v9090_v57  ;;  %v6390_v5 = vpop.f32.mrf.mxu1  ;;  %7019 = vmatprep.subr.bf16.mxu0 %v9095_v8  ;;  %v13278_v57 = vld [vmem:[#allocation31_spill] sm:$0xff]  ;;  %v13279_v8 = vld [vmem:[#allocation32_spill] sm:$0xff] }
 0x430   :  { %v6471_v1 = vpop.f32.mrf.mxu0  ;;  %7120 = vmatprep.subr.bf16.mxu1 %v9098_v25  ;;  %6874 = vmatmul.mubr.bf16.gmra.mxu0 %v13278_v57 }
 0x431   :  { %v11711_v52 = vadd.f32 %v6471_v1, %v6371_v19  ;;  %6975 = vmatmul.mubr.bf16.gmra.mxu1 %v11171_v27  ;;  %v6392_v23 = vpop.f32.mrf.mxu1  ;;  %6883 = vmatprep.mubr.bf16.mxu0 %v13279_v8  ;;  %v9099_v1 = vld [vmem:[%s13087_s7 + $0xba8] ss:$24 sps:$4 sm:$0xff]  }
 0x432   :  { %v6473_v49 = vpop.f32.mrf.mxu0  ;;  %6984 = vmatprep.mubr.bf16.mxu1 %v11186_v36  ;;  %7020 = vmatpush2.bf16.msra.mxu0 %v9093_v47  ;;  %v9102_v27 = vld [vmem:[%s13087_s7 + $0x2b0] ss:$24 sps:$4 sm:$0xff]   ;;  %v13282_v36 = vld [vmem:[#allocation45_spill] sm:$0xff] }
 0x433   :  { %v11724_v19 = vadd.f32 %v6473_v49, %v6373_v35  ;;  %7121 = vmatpush2.bf16.msra.mxu1 %v9096_v62  ;;  %v6394_v25 = vpop.f32.mrf.mxu1  ;;  %7021 = vmatprep.subr.bf16.mxu0 %v9101_v16  ;;  %v9107_v49 = vld [vmem:[%s13087_s7 + $0xb7c] ss:$24 sps:$4 sm:$0xff]   ;;  %v9105_v16 = vld [vmem:[%s13087_s7 + $0xb78] ss:$24 sps:$4 sm:$0xff]  }
 0x434   :  { %v6475_v57 = vpop.f32.mrf.mxu0  ;;  %7122 = vmatprep.subr.bf16.mxu1 %v9104_v2  ;;  %v9110_v35 = vld [vmem:[%s13087_s7 + $0x284] ss:$24 sps:$4 sm:$0xff]   ;;  %v6381_v25 = vadd.f32 %v11660_v31, %v11509_v45  ;;  %v9108_v2 = vld [vmem:[%s13087_s7 + $0x280] ss:$24 sps:$4 sm:$0xff]  }
 0x435   :  { %v11732_v18 = vadd.f32 %v6475_v57, %v6375_v26  ;;  %v6395_v47 = vpop.f32.mrf.mxu1  ;;  %v6383_v26 = vadd.f32 %v6382_v29, %v11518_v51  ;;  %v9113_v31 = vld [vmem:[%s13087_s7 + $0xb4c] ss:$24 sps:$4 sm:$0xff]   ;;  %v13283_v29 = vld [vmem:[#allocation34_spill] sm:$0xff] }
 0x436   :  { %v11740_v62 = vpop.f32.mrf.mxu0  ;;  %7022 = vmatpush2.bf16.msra.mxu0 %v9099_v1  ;;  %v13281_v1 = vld [vmem:[#allocation33_spill] sm:$0xff] }
 0x437   :  { %13280 = vst [vmem:[#allocation69_spill] sm:$0xff] %v11732_v18  ;;  %7123 = vmatpush2.bf16.msra.mxu1 %v9102_v27  ;;  %7023 = vmatprep.subr.bf16.mxu0 %v9107_v49  ;;  %v9116_v27 = vld [vmem:[%s13087_s7 + $0x254] ss:$24 sps:$4 sm:$0xff]   ;;  %v6385_v18 = vadd.f32 %v6384_v34, %v11509_v45  ;;  %v13284_v49 = vld [vmem:[#allocation46_spill] sm:$0xff] }
 0x438   :  { %v6481_v57 = vpop.f32.mrf.mxu0  ;;  %7124 = vmatprep.subr.bf16.mxu1 %v9110_v35  ;;  %6884 = vmatmul.mubr.bf16.gmra.mxu0 %v13281_v1 }
 0x439   :  { %v11751_v47 = vadd.f32 %v6481_v57, %v6381_v25  ;;  %6985 = vmatmul.mubr.bf16.gmra.mxu1 %v13282_v36  ;;  %6893 = vmatprep.mubr.bf16.mxu0 %v13283_v29  ;;  %v9111_v25 = vld [vmem:[%s13087_s7 + $0xb48] ss:$24 sps:$4 sm:$0xff]  }
 0x43a   :  { %v6483_v8 = vpop.f32.mrf.mxu0  ;;  %6994 = vmatprep.mubr.bf16.mxu1 %v13284_v49  ;;  %7024 = vmatpush2.bf16.msra.mxu0 %v9105_v16  ;;  %v9114_v57 = vld [vmem:[%s13087_s7 + $0x250] ss:$24 sps:$4 sm:$0xff]   ;;  %v9122_v16 = vld [vmem:[%s13087_s7 + $0x224] ss:$24 sps:$4 sm:$0xff]  }
 0x43b   :  { %v11764_v35 = vadd.f32 %v6483_v8, %v6383_v26  ;;  %7125 = vmatpush2.bf16.msra.mxu1 %v9108_v2  ;;  %7025 = vmatprep.subr.bf16.mxu0 %v9113_v31  ;;  %v9119_v8 = vld [vmem:[%s13087_s7 + $0xb1c] ss:$24 sps:$4 sm:$0xff]   ;;  %v6391_v26 = vadd.f32 %v6390_v5, %v11509_v45  ;;  %v9117_v31 = vld [vmem:[%s13087_s7 + $0xb18] ss:$24 sps:$4 sm:$0xff]   ;;  %v9125_v45 = vld [vmem:[%s13087_s7 + $0xaec] ss:$24 sps:$4 sm:$0xff]  }
 0x43c   :  { %v6485_v36 = vpop.f32.mrf.mxu0  ;;  %7126 = vmatprep.subr.bf16.mxu1 %v9116_v27  ;;  %v6393_v27 = vadd.f32 %v6392_v23, %v11518_v51  ;;  %v9128_v5 = vld [vmem:[%s13087_s7 + $0x1f4] ss:$24 sps:$4 sm:$0xff]   ;;  %v13289_v23 = vld [vmem:[#allocation22_spill] sm:$0xff] }
 0x43d   :  { %v11772_v34 = vadd.f32 %v6485_v36, %v6385_v18  ;;  %v9120_v36 = vld [vmem:[%s13087_s7 + $0x220] ss:$24 sps:$4 sm:$0xff]  }
 0x43e   :  { %v11780_v2 = vpop.f32.mrf.mxu0  ;;  %7026 = vmatpush2.bf16.msra.mxu0 %v9111_v25  ;;  %v13286_v25 = vld [vmem:[#allocation35_spill] sm:$0xff] }
 0x43f   :  { %13285 = vst [vmem:[#allocation33_spill] sm:$0xff] %v11772_v34  ;;  %7127 = vmatpush2.bf16.msra.mxu1 %v9114_v57  ;;  %7027 = vmatprep.subr.bf16.mxu0 %v9119_v8  ;;  %v13287_v57 = vld [vmem:[#allocation47_spill] sm:$0xff]  ;;  %v13288_v34 = vld [vmem:[#allocation48_spill] sm:$0xff] }
 0x440   :  { %v6491_v18 = vpop.f32.mrf.mxu0  ;;  %7128 = vmatprep.subr.bf16.mxu1 %v9122_v16  ;;  %6894 = vmatmul.mubr.bf16.gmra.mxu0 %v13286_v25  ;;  %v9123_v16 = vld [vmem:[%s13087_s7 + $0xae8] ss:$24 sps:$4 sm:$0xff]  }
 0x441   :  { %v11790_v49 = vadd.f32 %v6491_v18, %v6391_v26  ;;  %6995 = vmatmul.mubr.bf16.gmra.mxu1 %v13287_v57  ;;  %7035 = vmatprep.mubr.bf16.mxu0 %v13288_v34  ;;  %v9126_v26 = vld [vmem:[%s13087_s7 + $0x1f0] ss:$24 sps:$4 sm:$0xff]   ;;  %v9131_v34 = vld [vmem:[%s13087_s7 + $0xabc] ss:$24 sps:$4 sm:$0xff]  }
 0x442   :  { %v6493_v29 = vpop.f32.mrf.mxu0  ;;  %7136 = vmatprep.mubr.bf16.mxu1 %v13289_v23  ;;  %7028 = vmatpush2.bf16.msra.mxu0 %v9117_v31  ;;  %v9135_v23 = vld [vmem:[%s13087_s7 + $0xa88] ss:$24 sps:$4 sm:$0xff]  }
 0x443   :  { %v11802_v8 = vadd.f32 %v6493_v29, %v6393_v27  ;;  %7129 = vmatpush2.bf16.msra.mxu1 %v9120_v36  ;;  %7029 = vmatprep.subr.bf16.mxu0 %v9125_v45  ;;  %v9134_v29 = vld [vmem:[%s13087_s7 + $0x1c4] ss:$24 sps:$4 sm:$0xff]   ;;  %v9129_v36 = vld [vmem:[%s13087_s7 + $0xab8] ss:$24 sps:$4 sm:$0xff]  }
 0x444   :  { %v6495_v18 = vpop.f32.mrf.mxu0  ;;  %7130 = vmatprep.subr.bf16.mxu1 %v9128_v5  ;;  %v9132_v27 = vld [vmem:[%s13087_s7 + $0x1c0] ss:$24 sps:$4 sm:$0xff]   ;;  %v9137_v45 = vld [vmem:[%s13087_s7 + $0xa8c] ss:$24 sps:$4 sm:$0xff]   ;;  %v9150_v57 = vld [vmem:[%s13087_s7 + $0x730] ss:$24 sps:$4 sm:$0xff]  }
 0x445   :  { %13290 = vst [vmem:[#allocation22_spill] sm:$0xff] %v11802_v8  ;;  %v9140_v5 = vld [vmem:[%s13087_s7 + $0x194] ss:$24 sps:$4 sm:$0xff]  }
 0x446   :  { %v6496_v31 = vpop.f32.mrf.mxu0  ;;  %7030 = vmatpush2.bf16.msra.mxu0 %v9123_v16  ;;  %v9138_v16 = vld [vmem:[%s13087_s7 + $0x190] ss:$24 sps:$4 sm:$0xff]  }
 0x447   :  { %7131 = vmatpush2.bf16.msra.mxu1 %v9126_v26  ;;  %7031 = vmatprep.subr.bf16.mxu0 %v9131_v34  ;;  %v9143_v34 = vld [vmem:[%s13087_s7 + $0x464] ss:$24 sps:$4 sm:$0xff]   ;;  %v9144_v31 = vld [vmem:[%s13087_s7 + $0x760] ss:$24 sps:$4 sm:$0xff]  }
 0x448   :  { %7132 = vmatprep.subr.bf16.mxu1 %v9134_v29  ;;  %v9146_v26 = vld [vmem:[%s13087_s7 + $0x764] ss:$24 sps:$4 sm:$0xff]   ;;  %v9141_v29 = vld [vmem:[%s13087_s7 + $0x460] ss:$24 sps:$4 sm:$0xff]  }
 0x44a   :  { %7032 = vmatpush2.bf16.msra.mxu0 %v9129_v36 }
 0x44b   :  { %7133 = vmatpush2.bf16.msra.mxu1 %v9132_v27  ;;  %7033 = vmatprep.subr.bf16.mxu0 %v9137_v45  ;;  %v9149_v27 = vld [vmem:[%s13087_s7 + $0x434] ss:$24 sps:$4 sm:$0xff]  }
 0x44c   :  { %7134 = vmatprep.subr.bf16.mxu1 %v9140_v5  ;;  %v9152_v45 = vld [vmem:[%s13087_s7 + $0x734] ss:$24 sps:$4 sm:$0xff]  }
 0x44d   :  { %v13291_v5 = vld [vmem:[#allocation49_spill] sm:$0xff] }
 0x44e   :  { %7034 = vmatpush2.bf16.msra.mxu0 %v9135_v23  ;;  %v13292_v23 = vld [vmem:[#allocation23_spill] sm:$0xff] }
 0x44f   :  { %7135 = vmatpush2.bf16.msra.mxu1 %v9138_v16  ;;  %7205 = vmatprep.subr.bf16.mxu0 %v9143_v34  ;;  %v13293_v16 = vld [vmem:[#allocation25_spill] sm:$0xff] }
 0x450   :  { %v11840_v18 = vpop.f32.mrf.mxu1  ;;  %7306 = vmatprep.subr.bf16.mxu1 %v9146_v26  ;;  %v9147_v26 = vld [vmem:[%s13087_s7 + $0x430] ss:$24 sps:$4 sm:$0xff]  }
 0x451   :  { %7036 = vmatmul.mubr.bf16.vlgmr.msra.gmra.mxu0 %v13291_v5 }
 0x452   :  { %v11848_v36 = vpop.f32.mrf.mxu1  ;;  %7137 = vmatmul.mubr.bf16.vlgmr.msra.gmra.mxu1 %v13292_v23  ;;  %7045 = vmatprep.mubr.bf16.mxu0 %v11287_v24  ;;  %v9155_v23 = vld [vmem:[%s13087_s7 + $0x404] ss:$24 sps:$4 sm:$0xff]  }
 0x453   :  { %7146 = vmatprep.mubr.bf16.mxu1 %v13293_v16  ;;  %7206 = vmatpush1.bf16.msra.mxu0 %v9141_v29  ;;  %v9158_v29 = vld [vmem:[%s13087_s7 + $0x704] ss:$24 sps:$4 sm:$0xff]   ;;  %v9161_v16 = vld [vmem:[%s13087_s7 + $0x3d4] ss:$24 sps:$4 sm:$0xff]  }
 0x454   :  { %v11860_v34 = vpop.f32.mrf.mxu1  ;;  %7307 = vmatpush1.bf16.msra.mxu1 %v9144_v31  ;;  %7207 = vmatprep.subr.bf16.mxu0 %v9149_v27  ;;  %v9153_v31 = vld [vmem:[%s13087_s7 + $0x400] ss:$24 sps:$4 sm:$0xff]  }
 0x455   :  { %7308 = vmatprep.subr.bf16.mxu1 %v9152_v45  ;;  %v9156_v27 = vld [vmem:[%s13087_s7 + $0x700] ss:$24 sps:$4 sm:$0xff]  }
 0x456   :  { %v11868_v5 = vpop.f32.mrf.mxu1 }
 0x457   :  { %7208 = vmatpush1.bf16.msra.mxu0 %v9147_v26 }
 0x458   :  { %7309 = vmatpush1.bf16.msra.mxu1 %v9150_v57  ;;  %v11882_v45 = vpop.f32.mrf.mxu1  ;;  %7209 = vmatprep.subr.bf16.mxu0 %v9155_v23  ;;  %v9164_v57 = vld [vmem:[%s13087_s7 + $0x6d4] ss:$24 sps:$4 sm:$0xff]   ;;  %v9159_v23 = vld [vmem:[%s13087_s7 + $0x3d0] ss:$24 sps:$4 sm:$0xff]  }
 0x459   :  { %7310 = vmatprep.subr.bf16.mxu1 %v9158_v29  ;;  %7046 = vmatmul.mubr.bf16.gmra.mxu0 %v11298_v42  ;;  %v9162_v29 = vld [vmem:[%s13087_s7 + $0x6d0] ss:$24 sps:$4 sm:$0xff]   ;;  %v13294_v42 = vld [vmem:[#allocation26_spill] sm:$0xff] }
 0x45a   :  { %7147 = vmatmul.mubr.bf16.gmra.mxu1 %v10653_v43  ;;  %v11892_v26 = vpop.f32.mrf.mxu1  ;;  %7055 = vmatprep.mubr.bf16.mxu0 %v11323_v3  ;;  %v9167_v43 = vld [vmem:[%s13087_s7 + $0x3a4] ss:$24 sps:$4 sm:$0xff]   ;;  %v9173_v3 = vld [vmem:[%s13087_s7 + $0x374] ss:$24 sps:$4 sm:$0xff]  }
 0x45b   :  { %7156 = vmatprep.mubr.bf16.mxu1 %v10676_v54  ;;  %7210 = vmatpush1.bf16.msra.mxu0 %v9153_v31  ;;  %v9170_v54 = vld [vmem:[%s13087_s7 + $0x6a4] ss:$24 sps:$4 sm:$0xff]  }
 0x45c   :  { %7311 = vmatpush1.bf16.msra.mxu1 %v9156_v27  ;;  %v11902_v24 = vpop.f32.mrf.mxu1  ;;  %7211 = vmatprep.subr.bf16.mxu0 %v9161_v16  ;;  %v9165_v27 = vld [vmem:[%s13087_s7 + $0x3a0] ss:$24 sps:$4 sm:$0xff]  }
 0x45d   :  { %7312 = vmatprep.subr.bf16.mxu1 %v9164_v57  ;;  %v9168_v16 = vld [vmem:[%s13087_s7 + $0x6a0] ss:$24 sps:$4 sm:$0xff]  }
 0x45e   :  { %v11910_v31 = vpop.f32.mrf.mxu1 }
 0x45f   :  { %7212 = vmatpush1.bf16.msra.mxu0 %v9159_v23  ;;  %v9176_v23 = vld [vmem:[%s13087_s7 + $0x674] ss:$24 sps:$4 sm:$0xff]  }
 0x460   :  { %7313 = vmatpush1.bf16.msra.mxu1 %v9162_v29  ;;  %v11918_v57 = vpop.f32.mrf.mxu1  ;;  %7213 = vmatprep.subr.bf16.mxu0 %v9167_v43  ;;  %v9171_v43 = vld [vmem:[%s13087_s7 + $0x370] ss:$24 sps:$4 sm:$0xff]  }
 0x461   :  { %7314 = vmatprep.subr.bf16.mxu1 %v9170_v54  ;;  %7056 = vmatmul.mubr.bf16.gmra.mxu0 %v11331_v55  ;;  %v9174_v54 = vld [vmem:[%s13087_s7 + $0x670] ss:$24 sps:$4 sm:$0xff]  }
 0x462   :  { %7157 = vmatmul.mubr.bf16.gmra.mxu1 %v10657_v20  ;;  %v11928_v29 = vpop.f32.mrf.mxu1  ;;  %7065 = vmatprep.mubr.bf16.mxu0 %v11359_v14  ;;  %v9179_v20 = vld [vmem:[%s13087_s7 + $0x344] ss:$24 sps:$4 sm:$0xff]   ;;  %v9185_v14 = vld [vmem:[%s13087_s7 + $0x314] ss:$24 sps:$4 sm:$0xff]  }
 0x463   :  { %7166 = vmatprep.mubr.bf16.mxu1 %v13294_v42  ;;  %7214 = vmatpush1.bf16.msra.mxu0 %v9165_v27  ;;  %v9182_v42 = vld [vmem:[%s13087_s7 + $0x644] ss:$24 sps:$4 sm:$0xff]  }
 0x464   :  { %7315 = vmatpush1.bf16.msra.mxu1 %v9168_v16  ;;  %v11938_v25 = vpop.f32.mrf.mxu1  ;;  %7215 = vmatprep.subr.bf16.mxu0 %v9173_v3  ;;  %v9177_v16 = vld [vmem:[%s13087_s7 + $0x340] ss:$24 sps:$4 sm:$0xff]   ;;  %v13295_v55 = vld [vmem:[#allocation27_spill] sm:$0xff] }
 0x465   :  { %7316 = vmatprep.subr.bf16.mxu1 %v9176_v23  ;;  %v9180_v3 = vld [vmem:[%s13087_s7 + $0x640] ss:$24 sps:$4 sm:$0xff]  }
 0x466   :  { %v11946_v27 = vpop.f32.mrf.mxu1 }
 0x467   :  { %7216 = vmatpush1.bf16.msra.mxu0 %v9171_v43  ;;  %v9188_v43 = vld [vmem:[%s13087_s7 + $0x614] ss:$24 sps:$4 sm:$0xff]  }
 0x468   :  { %7317 = vmatpush1.bf16.msra.mxu1 %v9174_v54  ;;  %v11954_v23 = vpop.f32.mrf.mxu1  ;;  %7217 = vmatprep.subr.bf16.mxu0 %v9179_v20  ;;  %v9183_v20 = vld [vmem:[%s13087_s7 + $0x310] ss:$24 sps:$4 sm:$0xff]  }
 0x469   :  { %7318 = vmatprep.subr.bf16.mxu1 %v9182_v42  ;;  %7066 = vmatmul.mubr.bf16.gmra.mxu0 %v11367_v59  ;;  %v9186_v42 = vld [vmem:[%s13087_s7 + $0x610] ss:$24 sps:$4 sm:$0xff]   ;;  %v9197_v59 = vld [vmem:[%s13087_s7 + $0x5b4] ss:$24 sps:$4 sm:$0xff]  }
 0x46a   :  { %7167 = vmatmul.mubr.bf16.gmra.mxu1 %v10715_v60  ;;  %v11964_v54 = vpop.f32.mrf.mxu1  ;;  %7075 = vmatprep.mubr.bf16.mxu0 %v11395_v50  ;;  %v9191_v60 = vld [vmem:[%s13087_s7 + $0x5e4] ss:$24 sps:$4 sm:$0xff]  }
 0x46b   :  { %7176 = vmatprep.mubr.bf16.mxu1 %v13295_v55  ;;  %7218 = vmatpush1.bf16.msra.mxu0 %v9177_v16  ;;  %v9194_v55 = vld [vmem:[%s13087_s7 + $0x8e4] ss:$24 sps:$4 sm:$0xff]  }
 0x46c   :  { %7319 = vmatpush1.bf16.msra.mxu1 %v9180_v3  ;;  %v11974_v8 = vpop.f32.mrf.mxu1  ;;  %7219 = vmatprep.subr.bf16.mxu0 %v9185_v14  ;;  %v9189_v3 = vld [vmem:[%s13087_s7 + $0x5e0] ss:$24 sps:$4 sm:$0xff]  }
 0x46d   :  { %7320 = vmatprep.subr.bf16.mxu1 %v9188_v43  ;;  %v9192_v14 = vld [vmem:[%s13087_s7 + $0x8e0] ss:$24 sps:$4 sm:$0xff]  }
 0x46e   :  { %v11982_v16 = vpop.f32.mrf.mxu1 }
 0x46f   :  { %7220 = vmatpush1.bf16.msra.mxu0 %v9183_v20  ;;  %v9200_v20 = vld [vmem:[%s13087_s7 + $0x8b4] ss:$24 sps:$4 sm:$0xff]  }
 0x470   :  { %7321 = vmatpush1.bf16.msra.mxu1 %v9186_v42  ;;  %v11990_v43 = vpop.f32.mrf.mxu1  ;;  %7221 = vmatprep.subr.bf16.mxu0 %v9191_v60  ;;  %v9195_v60 = vld [vmem:[%s13087_s7 + $0x5b0] ss:$24 sps:$4 sm:$0xff]  }
 0x471   :  { %7322 = vmatprep.subr.bf16.mxu1 %v9194_v55  ;;  %7076 = vmatmul.mubr.bf16.gmra.mxu0 %v11403_v53  ;;  %v9198_v55 = vld [vmem:[%s13087_s7 + $0x8b0] ss:$24 sps:$4 sm:$0xff]  }
 0x472   :  { %7177 = vmatmul.mubr.bf16.gmra.mxu1 %v10869_v37  ;;  %v12000_v42 = vpop.f32.mrf.mxu1  ;;  %7085 = vmatprep.mubr.bf16.mxu0 %v11429_v21  ;;  %v9203_v37 = vld [vmem:[%s13087_s7 + $0x584] ss:$24 sps:$4 sm:$0xff]   ;;  %v9209_v21 = vld [vmem:[%s13087_s7 + $0x554] ss:$24 sps:$4 sm:$0xff]  }
 0x473   :  { %7186 = vmatprep.mubr.bf16.mxu1 %v10882_v61  ;;  %7222 = vmatpush2.bf16.msra.mxu0 %v9189_v3  ;;  %v9206_v61 = vld [vmem:[%s13087_s7 + $0x884] ss:$24 sps:$4 sm:$0xff]  }
 0x474   :  { %7323 = vmatpush2.bf16.msra.mxu1 %v9192_v14  ;;  %v12010_v50 = vpop.f32.mrf.mxu1  ;;  %7223 = vmatprep.subr.bf16.mxu0 %v9197_v59  ;;  %v9201_v14 = vld [vmem:[%s13087_s7 + $0x580] ss:$24 sps:$4 sm:$0xff]  }
 0x475   :  { %7324 = vmatprep.subr.bf16.mxu1 %v9200_v20  ;;  %v9204_v59 = vld [vmem:[%s13087_s7 + $0x880] ss:$24 sps:$4 sm:$0xff]  }
 0x476   :  { %v12018_v3 = vpop.f32.mrf.mxu1 }
 0x477   :  { %7224 = vmatpush2.bf16.msra.mxu0 %v9195_v60  ;;  %v9212_v60 = vld [vmem:[%s13087_s7 + $0x854] ss:$24 sps:$4 sm:$0xff]  }
 0x478   :  { %7325 = vmatpush2.bf16.msra.mxu1 %v9198_v55  ;;  %v12026_v20 = vpop.f32.mrf.mxu1  ;;  %7225 = vmatprep.subr.bf16.mxu0 %v9203_v37  ;;  %v9207_v37 = vld [vmem:[%s13087_s7 + $0x550] ss:$24 sps:$4 sm:$0xff]  }
 0x479   :  { %7326 = vmatprep.subr.bf16.mxu1 %v9206_v61  ;;  %7086 = vmatmul.mubr.bf16.gmra.mxu0 %v11437_v39  ;;  %v9210_v61 = vld [vmem:[%s13087_s7 + $0x850] ss:$24 sps:$4 sm:$0xff]  }
 0x47a   :  { %7187 = vmatmul.mubr.bf16.gmra.mxu1 %v10920_v11  ;;  %v12036_v55 = vpop.f32.mrf.mxu1  ;;  %7095 = vmatprep.mubr.bf16.mxu0 %v11447_v13  ;;  %v9215_v11 = vld [vmem:[%s13087_s7 + $0x524] ss:$24 sps:$4 sm:$0xff]   ;;  %v9221_v13 = vld [vmem:[%s13087_s7 + $0x4f4] ss:$24 sps:$4 sm:$0xff]  }
 0x47b   :  { %7196 = vmatprep.mubr.bf16.mxu1 %v10930_v32  ;;  %7226 = vmatpush2.bf16.msra.mxu0 %v9201_v14  ;;  %v9218_v32 = vld [vmem:[%s13087_s7 + $0x824] ss:$24 sps:$4 sm:$0xff]  }
 0x47c   :  { %7327 = vmatpush2.bf16.msra.mxu1 %v9204_v59  ;;  %v12046_v53 = vpop.f32.mrf.mxu1  ;;  %7227 = vmatprep.subr.bf16.mxu0 %v9209_v21  ;;  %v9213_v59 = vld [vmem:[%s13087_s7 + $0x520] ss:$24 sps:$4 sm:$0xff]  }
 0x47d   :  { %7328 = vmatprep.subr.bf16.mxu1 %v9212_v60  ;;  %v9216_v21 = vld [vmem:[%s13087_s7 + $0x820] ss:$24 sps:$4 sm:$0xff]  }
 0x47e   :  { %v12054_v14 = vpop.f32.mrf.mxu1 }
 0x47f   :  { %7228 = vmatpush2.bf16.msra.mxu0 %v9207_v37  ;;  %v9224_v37 = vld [vmem:[%s13087_s7 + $0x7f4] ss:$24 sps:$4 sm:$0xff]  }
 0x480   :  { %7329 = vmatpush2.bf16.msra.mxu1 %v9210_v61  ;;  %v12062_v60 = vpop.f32.mrf.mxu1  ;;  %7229 = vmatprep.subr.bf16.mxu0 %v9215_v11  ;;  %v9219_v11 = vld [vmem:[%s13087_s7 + $0x4f0] ss:$24 sps:$4 sm:$0xff]  }
 0x481   :  { %7330 = vmatprep.subr.bf16.mxu1 %v9218_v32  ;;  %7096 = vmatmul.mubr.bf16.gmra.mxu0 %v11470_v22  ;;  %v9222_v32 = vld [vmem:[%s13087_s7 + $0x7f0] ss:$24 sps:$4 sm:$0xff]  }
 0x482   :  { %7197 = vmatmul.mubr.bf16.gmra.mxu1 %v10960_v15  ;;  %v12072_v61 = vpop.f32.mrf.mxu1  ;;  %7237 = vmatprep.mubr.bf16.mxu0 %v10710_v56  ;;  %v9227_v15 = vld [vmem:[%s13087_s7 + $0x4c4] ss:$24 sps:$4 sm:$0xff]  }
 0x483   :  { %7338 = vmatprep.mubr.bf16.mxu1 %v11078_v44  ;;  %7230 = vmatpush2.bf16.msra.mxu0 %v9213_v59  ;;  %v9230_v56 = vld [vmem:[%s13087_s7 + $0x7c4] ss:$24 sps:$4 sm:$0xff]   ;;  %v9225_v59 = vld [vmem:[%s13087_s7 + $0x4c0] ss:$24 sps:$4 sm:$0xff]  }
 0x484   :  { %7331 = vmatpush2.bf16.msra.mxu1 %v9216_v21  ;;  %v6596_v39 = vpop.f32.mrf.mxu1  ;;  %7231 = vmatprep.subr.bf16.mxu0 %v9221_v13  ;;  %v9233_v13 = vld [vmem:[%s13087_s7 + $0x494] ss:$24 sps:$4 sm:$0xff]  }
 0x485   :  { %7332 = vmatprep.subr.bf16.mxu1 %v9224_v37  ;;  %v9228_v39 = vld [vmem:[%s13087_s7 + $0x7c0] ss:$24 sps:$4 sm:$0xff]   ;;  %v9236_v21 = vld [vmem:[%s13087_s7 + $0x794] ss:$24 sps:$4 sm:$0xff]   ;;  %v9231_v37 = vld [vmem:[%s13087_s7 + $0x490] ss:$24 sps:$4 sm:$0xff]  }
 0x486   :  { %v6597_v44 = vpop.f32.mrf.mxu1 }
 0x487   :  { %7232 = vmatpush2.bf16.msra.mxu0 %v9219_v11  ;;  %v9234_v11 = vld [vmem:[%s13087_s7 + $0x790] ss:$24 sps:$4 sm:$0xff]  }
 0x488   :  { %7333 = vmatpush2.bf16.msra.mxu1 %v9222_v32  ;;  %7233 = vmatprep.subr.bf16.mxu0 %v9227_v15  ;;  %v9239_v32 = vld [vmem:[%s13087_s7 + $0xa64] ss:$24 sps:$4 sm:$0xff]   ;;  %v6533_v15 = vadd.f32 %v11840_v18, %v11538_v10  ;;  %v9242_v18 = vld [vmem:[%s13087_s7 + $0xa34] ss:$24 sps:$4 sm:$0xff]  }
 0x489   :  { %7334 = vmatprep.subr.bf16.mxu1 %v9230_v56 }
 0x48b   :  { %7234 = vmatpush2.bf16.msra.mxu0 %v9225_v59  ;;  %v6337_v59 = vadd.f32 %v11494_v6, %v11518_v51  ;;  %v6537_v6 = vadd.f32 %v11860_v34, %v11559_v63 }
 0x48c   :  { %7335 = vmatpush2.bf16.msra.mxu1 %v9228_v39  ;;  %7235 = vmatprep.subr.bf16.mxu0 %v9233_v13  ;;  %v6535_v39 = vadd.f32 %v11848_v36, %v11549_v12  ;;  %v9237_v13 = vld [vmem:[%s13087_s7 + $0xa60] ss:$24 sps:$4 sm:$0xff]  }
 0x48d   :  { %7336 = vmatprep.subr.bf16.mxu1 %v9236_v21 }
 0x48f   :  { %7236 = vmatpush2.bf16.msra.mxu0 %v9231_v37  ;;  %v6438_v37 = vadd.f32 %v11561_v40, %v6337_v59  ;;  %v9245_v59 = vld [vmem:[%s13087_s7 + $0xa04] ss:$24 sps:$4 sm:$0xff]  }
 0x490   :  { %7337 = vmatpush2.bf16.msra.mxu1 %v9234_v11  ;;  %v12111_v56 = vpop.f32.mrf.mxu1  ;;  %v6633_v44 = vpop.f32.mrf.mxu0  ;;  %7407 = vmatprep.subr.bf16.mxu0 %v9239_v32  ;;  %v13298_v11 = vld [vmem:[#allocation24_spill] sm:$0xff] }
 0x491   :  { %13296 = vst [vmem:[#allocation23_spill] sm:$0xff] %v12111_v56  ;;  %8500 = vmatprep.subr.bf16.mxu1 %v9239_v32  ;;  %v6634_v21 = vadd.f32 %v6633_v44, %v6533_v15  ;;  %v13299_v32 = vld [vmem:[#allocation36_spill] sm:$0xff] }
 0x492   :  { %v12120_v22 = vpop.f32.mrf.mxu1  ;;  %v6635_v10 = vpop.f32.mrf.mxu0  ;;  %7238 = vmatmul.mubr.bf16.vlgmr.msra.gmra.mxu0 %v10720_v46  ;;  %v9240_v46 = vld [vmem:[%s13087_s7 + $0xa30] ss:$24 sps:$4 sm:$0xff]  }
 0x493   :  { %13297 = vst [vmem:[#allocation25_spill] sm:$0xff] %v12120_v22  ;;  %7339 = vmatmul.mubr.bf16.vlgmr.msra.gmra.mxu1 %v11083_v33  ;;  %v7508_v12 = vmul.f32 0.01, %v6634_v21  ;;  %v6636_v36 = vadd.f32 %v6635_v10, %v6535_v39  ;;  %7247 = vmatprep.mubr.bf16.mxu0 %v13298_v11  ;;  %v6539_v22 = vadd.f32 %v11868_v5, %v6438_v37  ;;  %v9248_v11 = vld [vmem:[%s13087_s7 + $0x9d4] ss:$24 sps:$4 sm:$0xff]  }
 0x494   :  { %7348 = vmatprep.mubr.bf16.mxu1 %v13299_v32  ;;  %v12132_v15 = vpop.f32.mrf.mxu1  ;;  %v6637_v44 = vpop.f32.mrf.mxu0  ;;  %7408 = vmatpush1.bf16.msra.mxu0 %v9237_v13 }
 0x495   :  { %v7586_v56 = vmax.f32 %v6634_v21, %v7508_v12  ;;  %8516 = vmatpush1.bf16.msra.mxu1 %v9237_v13  ;;  %v7509_v40 = vmul.f32 0.01, %v6636_v36  ;;  %v6638_v33 = vadd.f32 %v6637_v44, %v6537_v6  ;;  %7409 = vmatprep.subr.bf16.mxu0 %v9242_v18  ;;  %v6543_v21 = vadd.f32 %v11882_v45, %v11581_v28  ;;  %v13301_v44 = vld [vmem:[#allocation37_spill] sm:$0xff] }
 0x496   :  { %8501 = vmatprep.subr.bf16.mxu1 %v9242_v18  ;;  %v12138_v63 = vpop.f32.mrf.mxu1  ;;  %v6639_v34 = vpop.f32.mrf.mxu0  ;;  %v6545_v28 = vadd.f32 %v11892_v26, %v11594_v30  ;;  %v13302_v26 = vld [vmem:[#allocation63_spill] sm:$0xff] }
 0x497   :  { %7664 = vst [vmem:[%s13089_s9] sm:$0xff] %v7586_v56  ;;  %v7587_v5 = vmax.f32 %v6636_v36, %v7509_v40  ;;  %v7514_v39 = vmul.f32 0.01, %v6638_v33  ;;  %v6640_v13 = vadd.f32 %v6639_v34, %v6539_v22  ;;  %v9243_v56 = vld [vmem:[%s13087_s7 + $0xa00] ss:$24 sps:$4 sm:$0xff]   ;;  %v13303_v34 = vld [vmem:[#allocation19_spill] sm:$0xff] }
 0x498   :  { %v12148_v10 = vpop.f32.mrf.mxu1  ;;  %7410 = vmatpush1.bf16.msra.mxu0 %v9240_v46  ;;  %v6643_v6 = vpop.f32.mrf.mxu0  ;;  %v13300_v22 = vld [vmem:[#allocation18_spill] sm:$0xff] }
 0x499   :  { %7665 = vst [vmem:[%s13089_s9 + $0x8] sm:$0xff] %v7587_v5  ;;  %v7592_v18 = vmax.f32 %v6638_v33, %v7514_v39  ;;  %8517 = vmatpush1.bf16.msra.mxu1 %v9240_v46  ;;  %v7515_v37 = vmul.f32 0.01, %v6640_v13  ;;  %v6347_v12 = vadd.f32 %v13300_v22, %v11518_v51  ;;  %7411 = vmatprep.subr.bf16.mxu0 %v9245_v59 }
 0x49a   :  { %8502 = vmatprep.subr.bf16.mxu1 %v9245_v59  ;;  %v6644_v45 = vadd.f32 %v6643_v6, %v6543_v21  ;;  %v12160_v36 = vpop.f32.mrf.mxu1  ;;  %7248 = vmatmul.mubr.bf16.gmra.mxu0 %v10802_v17  ;;  %v6645_v40 = vpop.f32.mrf.mxu0  ;;  %v6547_v46 = vadd.f32 %v11902_v24, %v13302_v26  ;;  %v13304_v59 = vld [vmem:[#allocation38_spill] sm:$0xff]  ;;  %v9246_v17 = vld [vmem:[%s13087_s7 + $0x9d0] ss:$24 sps:$4 sm:$0xff]  }
 0x49b   :  { %7670 = vst [vmem:[%s13089_s9 + $0x30] sm:$0xff] %v7592_v18  ;;  %v7593_v32 = vmax.f32 %v6640_v13, %v7515_v37  ;;  %7349 = vmatmul.mubr.bf16.gmra.mxu1 %v13301_v44  ;;  %v6448_v30 = vadd.f32 %v11612_v41, %v6347_v12  ;;  %7257 = vmatprep.mubr.bf16.mxu0 %v13303_v34  ;;  %v9251_v6 = vld [vmem:[%s13087_s7 + $0x9a4] ss:$24 sps:$4 sm:$0xff]   ;;  %v9249_v44 = vld [vmem:[%s13087_s7 + $0x9a0] ss:$24 sps:$4 sm:$0xff]  }
 0x49c   :  { %v7520_v33 = vmul.f32 0.01, %v6644_v45  ;;  %7358 = vmatprep.mubr.bf16.mxu1 %v13304_v59  ;;  %v6646_v5 = vadd.f32 %v6645_v40, %v6545_v28  ;;  %v12175_v39 = vpop.f32.mrf.mxu1  ;;  %7412 = vmatpush1.bf16.msra.mxu0 %v9243_v56  ;;  %v6647_v41 = vpop.f32.mrf.mxu0  ;;  %v13307_v59 = vld [vmem:[#allocation65_spill] sm:$0xff] }
 0x49d   :  { %7671 = vst [vmem:[%s13089_s9 + $0x38] sm:$0xff] %v7593_v32  ;;  %8518 = vmatpush1.bf16.msra.mxu1 %v9243_v56  ;;  %v6549_v24 = vadd.f32 %v11910_v31, %v6448_v30  ;;  %7413 = vmatprep.subr.bf16.mxu0 %v9248_v11  ;;  %v6648_v18 = vadd.f32 %v6647_v41, %v6547_v46 }
 0x49e   :  { %v7598_v13 = vmax.f32 %v6644_v45, %v7520_v33  ;;  %v7521_v21 = vmul.f32 0.01, %v6646_v5  ;;  %8503 = vmatprep.subr.bf16.mxu1 %v9248_v11  ;;  %v12184_v37 = vpop.f32.mrf.mxu1  ;;  %v6649_v22 = vpop.f32.mrf.mxu0  ;;  %v6553_v56 = vadd.f32 %v11918_v57, %v11625_v0  ;;  %v13305_v11 = vld [vmem:[#allocation62_spill] sm:$0xff]  ;;  %v6555_v0 = vadd.f32 %v11928_v29, %v11638_v38  ;;  %v9254_v33 = vld [vmem:[%s13087_s7 + $0x974] ss:$24 sps:$4 sm:$0xff]   ;;  %v13306_v38 = vld [vmem:[#allocation39_spill] sm:$0xff] }
 0x49f   :  { %v7526_v12 = vmul.f32 0.01, %v6648_v18  ;;  %v6650_v28 = vadd.f32 %v6649_v22, %v6549_v24  ;;  %v6357_v32 = vadd.f32 %v13305_v11, %v11518_v51  ;;  %v13308_v24 = vld [vmem:[#allocation28_spill] sm:$0xff]  ;;  %v6563_v11 = vadd.f32 %v11954_v23, %v11669_v48 }
 0x4a0   :  { %7676 = vst [vmem:[%s13089_s9 + $0x60] sm:$0xff] %v7598_v13  ;;  %v7599_v31 = vmax.f32 %v6646_v5, %v7521_v21  ;;  %v12194_v45 = vpop.f32.mrf.mxu1  ;;  %7414 = vmatpush1.bf16.msra.mxu0 %v9246_v17  ;;  %v6653_v40 = vpop.f32.mrf.mxu0  ;;  %v6557_v5 = vadd.f32 %v11938_v25, %v13307_v59  ;;  %v13309_v13 = vld [vmem:[#allocation40_spill] sm:$0xff]  ;;  %v6565_v48 = vadd.f32 %v11964_v54, %v11682_v9  ;;  %v13312_v9 = vld [vmem:[#allocation41_spill] sm:$0xff] }
 0x4a1   :  { %8519 = vmatpush1.bf16.msra.mxu1 %v9246_v17  ;;  %v7604_v57 = vmax.f32 %v6648_v18, %v7526_v12  ;;  %v7527_v30 = vmul.f32 0.01, %v6650_v28  ;;  %7415 = vmatprep.subr.bf16.mxu0 %v9251_v6  ;;  %v6654_v26 = vadd.f32 %v6653_v40, %v6553_v56  ;;  %v6458_v34 = vadd.f32 %v11656_v58, %v6357_v32  ;;  %v9257_v12 = vld [vmem:[%s13087_s7 + $0x944] ss:$24 sps:$4 sm:$0xff]  }
 0x4a2   :  { %7677 = vst [vmem:[%s13089_s9 + $0x68] sm:$0xff] %v7599_v31  ;;  %8504 = vmatprep.subr.bf16.mxu1 %v9251_v6  ;;  %v12206_v46 = vpop.f32.mrf.mxu1  ;;  %7258 = vmatmul.mubr.bf16.gmra.mxu0 %v10872_v7  ;;  %v6655_v29 = vpop.f32.mrf.mxu0  ;;  %v9252_v7 = vld [vmem:[%s13087_s7 + $0x970] ss:$24 sps:$4 sm:$0xff]  }
 0x4a3   :  { %7359 = vmatmul.mubr.bf16.gmra.mxu1 %v13306_v38  ;;  %7682 = vst [vmem:[%s13089_s9 + $0x90] sm:$0xff] %v7604_v57  ;;  %v7605_v17 = vmax.f32 %v6650_v28, %v7527_v30  ;;  %v7532_v41 = vmul.f32 0.01, %v6654_v26  ;;  %7267 = vmatprep.mubr.bf16.mxu0 %v13308_v24  ;;  %v6656_v21 = vadd.f32 %v6655_v29, %v6555_v0  ;;  %v13310_v0 = vld [vmem:[#allocation64_spill] sm:$0xff]  ;;  %v9255_v30 = vld [vmem:[%s13087_s7 + $0x940] ss:$24 sps:$4 sm:$0xff]  }
 0x4a4   :  { %7368 = vmatprep.mubr.bf16.mxu1 %v13309_v13  ;;  %v12221_v58 = vpop.f32.mrf.mxu1  ;;  %7416 = vmatpush1.bf16.msra.mxu0 %v9249_v44  ;;  %v6657_v25 = vpop.f32.mrf.mxu0  ;;  %v6559_v18 = vadd.f32 %v11946_v27, %v6458_v34  ;;  %v6367_v57 = vadd.f32 %v13310_v0, %v11518_v51  ;;  %v9260_v29 = vld [vmem:[%s13087_s7 + $0x914] ss:$24 sps:$4 sm:$0xff]  }
 0x4a5   :  { %8520 = vmatpush1.bf16.msra.mxu1 %v9249_v44  ;;  %7683 = vst [vmem:[%s13089_s9 + $0x98] sm:$0xff] %v7605_v17  ;;  %v7610_v6 = vmax.f32 %v6654_v26, %v7532_v41  ;;  %v7533_v22 = vmul.f32 0.01, %v6656_v21  ;;  %7417 = vmatprep.subr.bf16.mxu0 %v9254_v33  ;;  %v6658_v56 = vadd.f32 %v6657_v25, %v6557_v5  ;;  %v13311_v5 = vld [vmem:[#allocation29_spill] sm:$0xff]  ;;  %v13313_v17 = vld [vmem:[#allocation67_spill] sm:$0xff] }
 0x4a6   :  { %8505 = vmatprep.subr.bf16.mxu1 %v9254_v33  ;;  %v12230_v31 = vpop.f32.mrf.mxu1  ;;  %v6659_v28 = vpop.f32.mrf.mxu0  ;;  %v6468_v59 = vadd.f32 %v11700_v4, %v6367_v57  ;;  %v6567_v41 = vadd.f32 %v11974_v8, %v13313_v17 }
 0x4a7   :  { %7688 = vst [vmem:[%s13089_s9 + $0xc0] sm:$0xff] %v7610_v6  ;;  %v7611_v27 = vmax.f32 %v6656_v21, %v7533_v22  ;;  %v7538_v32 = vmul.f32 0.01, %v6658_v56  ;;  %v6660_v44 = vadd.f32 %v6659_v28, %v6559_v18  ;;  %v13314_v21 = vld [vmem:[#allocation30_spill] sm:$0xff]  ;;  %v9258_v18 = vld [vmem:[%s13087_s7 + $0x910] ss:$24 sps:$4 sm:$0xff]  }
 0x4a8   :  { %v12240_v40 = vpop.f32.mrf.mxu1  ;;  %7418 = vmatpush1.bf16.msra.mxu0 %v9252_v7  ;;  %v6663_v26 = vpop.f32.mrf.mxu0  ;;  %v6569_v6 = vadd.f32 %v11982_v16, %v6468_v59  ;;  %v9266_v59 = vld [vmem:[%s13087_s7 + $0xbb4] ss:$24 sps:$4 sm:$0xff]  }
 0x4a9   :  { %8521 = vmatpush1.bf16.msra.mxu1 %v9252_v7  ;;  %7689 = vst [vmem:[%s13089_s9 + $0xc8] sm:$0xff] %v7611_v27  ;;  %v7616_v23 = vmax.f32 %v6658_v56, %v7538_v32  ;;  %v7539_v33 = vmul.f32 0.01, %v6660_v44  ;;  %7419 = vmatprep.subr.bf16.mxu0 %v9257_v12  ;;  %v6664_v34 = vadd.f32 %v6663_v26, %v6563_v11  ;;  %v13315_v7 = vld [vmem:[#allocation42_spill] sm:$0xff] }
 0x4aa   :  { %8506 = vmatprep.subr.bf16.mxu1 %v9257_v12  ;;  %v12252_v38 = vpop.f32.mrf.mxu1  ;;  %7268 = vmatmul.mubr.bf16.gmra.mxu0 %v13311_v5  ;;  %v6665_v54 = vpop.f32.mrf.mxu0  ;;  %v9263_v11 = vld [vmem:[%s13087_s7 + $0xbe4] ss:$24 sps:$4 sm:$0xff]   ;;  %v6573_v32 = vadd.f32 %v11990_v43, %v11711_v52  ;;  %v6575_v52 = vadd.f32 %v12000_v42, %v11724_v19 }
 0x4ab   :  { %7369 = vmatmul.mubr.bf16.gmra.mxu1 %v13312_v9  ;;  %7694 = vst [vmem:[%s13089_s9 + $0xf0] sm:$0xff] %v7616_v23  ;;  %v7617_v24 = vmax.f32 %v6660_v44, %v7539_v33  ;;  %v7544_v13 = vmul.f32 0.01, %v6664_v34  ;;  %7277 = vmatprep.mubr.bf16.mxu0 %v13314_v21  ;;  %v6666_v25 = vadd.f32 %v6665_v54, %v6565_v48  ;;  %v9261_v48 = vld [vmem:[%s13087_s7 + $0xbe0] ss:$24 sps:$4 sm:$0xff]   ;;  %v13317_v9 = vld [vmem:[#allocation31_spill] sm:$0xff] }
 0x4ac   :  { %7378 = vmatprep.mubr.bf16.mxu1 %v13315_v7  ;;  %v12267_v4 = vpop.f32.mrf.mxu1  ;;  %7420 = vmatpush1.bf16.msra.mxu0 %v9255_v30  ;;  %v6667_v8 = vpop.f32.mrf.mxu0  ;;  %v13318_v19 = vld [vmem:[#allocation43_spill] sm:$0xff]  ;;  %v13319_v54 = vld [vmem:[#allocation69_spill] sm:$0xff]  ;;  %v13321_v21 = vld [vmem:[#allocation44_spill] sm:$0xff] }
 0x4ad   :  { %8522 = vmatpush1.bf16.msra.mxu1 %v9255_v30  ;;  %7695 = vst [vmem:[%s13089_s9 + $0xf8] sm:$0xff] %v7617_v24  ;;  %v7622_v22 = vmax.f32 %v6664_v34, %v7544_v13  ;;  %v7545_v56 = vmul.f32 0.01, %v6666_v25  ;;  %7421 = vmatprep.subr.bf16.mxu0 %v9260_v29  ;;  %v6668_v12 = vadd.f32 %v6667_v8, %v6567_v41  ;;  %v13316_v30 = vld [vmem:[#allocation66_spill] sm:$0xff]  ;;  %v13320_v13 = vld [vmem:[#allocation32_spill] sm:$0xff] }
 0x4ae   :  { %8507 = vmatprep.subr.bf16.mxu1 %v9260_v29  ;;  %v12276_v28 = vpop.f32.mrf.mxu1  ;;  %v6669_v27 = vpop.f32.mrf.mxu0  ;;  %v6377_v26 = vadd.f32 %v13316_v30, %v11518_v51  ;;  %v6577_v17 = vadd.f32 %v12010_v50, %v13319_v54 }
 0x4af   :  { %7700 = vst [vmem:[%s13089_s9 + $0x120] sm:$0xff] %v7622_v22  ;;  %v7623_v16 = vmax.f32 %v6666_v25, %v7545_v56  ;;  %v7550_v44 = vmul.f32 0.01, %v6668_v12  ;;  %v6670_v0 = vadd.f32 %v6669_v27, %v6569_v6  ;;  %v9264_v25 = vld [vmem:[%s13087_s7 + $0xbb0] ss:$24 sps:$4 sm:$0xff]   ;;  %v6583_v27 = vadd.f32 %v12026_v20, %v11751_v47 }
 0x4b0   :  { %v12286_v57 = vpop.f32.mrf.mxu1  ;;  %7422 = vmatpush1.bf16.msra.mxu0 %v9258_v18  ;;  %v6673_v23 = vpop.f32.mrf.mxu0  ;;  %v6478_v5 = vadd.f32 %v11740_v62, %v6377_v26  ;;  %v9267_v26 = vld [vmem:[%s13087_s7 + $0xb80] ss:$24 sps:$4 sm:$0xff]   ;;  %v6585_v47 = vadd.f32 %v12036_v55, %v11764_v35 }
 0x4b1   :  { %8523 = vmatpush1.bf16.msra.mxu1 %v9258_v18  ;;  %7701 = vst [vmem:[%s13089_s9 + $0x128] sm:$0xff] %v7623_v16  ;;  %v7628_v43 = vmax.f32 %v6668_v12, %v7550_v44  ;;  %v7551_v33 = vmul.f32 0.01, %v6670_v0  ;;  %7423 = vmatprep.subr.bf16.mxu0 %v9263_v11  ;;  %v6674_v34 = vadd.f32 %v6673_v23, %v6573_v32  ;;  %v9269_v12 = vld [vmem:[%s13087_s7 + $0xb84] ss:$24 sps:$4 sm:$0xff]   ;;  %v13326_v35 = vld [vmem:[#allocation45_spill] sm:$0xff] }
 0x4b2   :  { %8508 = vmatprep.subr.bf16.mxu1 %v9263_v11  ;;  %v12298_v29 = vpop.f32.mrf.mxu1  ;;  %7278 = vmatmul.mubr.bf16.gmra.mxu0 %v13317_v9  ;;  %v6675_v42 = vpop.f32.mrf.mxu0  ;;  %v6579_v18 = vadd.f32 %v12018_v3, %v6478_v5 }
 0x4b3   :  { %7379 = vmatmul.mubr.bf16.gmra.mxu1 %v13318_v19  ;;  %7706 = vst [vmem:[%s13089_s9 + $0x150] sm:$0xff] %v7628_v43  ;;  %v7629_v41 = vmax.f32 %v6670_v0, %v7551_v33  ;;  %v7556_v24 = vmul.f32 0.01, %v6674_v34  ;;  %7287 = vmatprep.mubr.bf16.mxu0 %v13320_v13  ;;  %v6676_v7 = vadd.f32 %v6675_v42, %v6575_v52  ;;  %v13324_v0 = vld [vmem:[#allocation68_spill] sm:$0xff]  ;;  %v13328_v19 = vld [vmem:[#allocation34_spill] sm:$0xff] }
 0x4b4   :  { %7388 = vmatprep.mubr.bf16.mxu1 %v13321_v21  ;;  %v12313_v62 = vpop.f32.mrf.mxu1  ;;  %7424 = vmatpush2.bf16.msra.mxu0 %v9261_v48  ;;  %v6677_v50 = vpop.f32.mrf.mxu0  ;;  %v6387_v30 = vadd.f32 %v13324_v0, %v11518_v51  ;;  %v9272_v43 = vld [vmem:[%s13087_s7 + $0xb54] ss:$24 sps:$4 sm:$0xff]   ;;  %v13329_v42 = vld [vmem:[#allocation46_spill] sm:$0xff]  ;;  %v13335_v0 = vld [vmem:[#allocation35_spill] sm:$0xff] }
 0x4b5   :  { %8524 = vmatpush2.bf16.msra.mxu1 %v9261_v48  ;;  %7707 = vst [vmem:[%s13089_s9 + $0x158] sm:$0xff] %v7629_v41  ;;  %v7634_v8 = vmax.f32 %v6674_v34, %v7556_v24  ;;  %v7557_v6 = vmul.f32 0.01, %v6676_v7  ;;  %7425 = vmatprep.subr.bf16.mxu0 %v9266_v59  ;;  %v6678_v22 = vadd.f32 %v6677_v50, %v6577_v17  ;;  %v13327_v34 = vld [vmem:[#allocation33_spill] sm:$0xff] }
 0x4b6   :  { %8509 = vmatprep.subr.bf16.mxu1 %v9266_v59  ;;  %v12322_v56 = vpop.f32.mrf.mxu1  ;;  %v6679_v11 = vpop.f32.mrf.mxu0  ;;  %v6488_v33 = vadd.f32 %v11780_v2, %v6387_v30  ;;  %v6587_v59 = vadd.f32 %v12046_v53, %v13327_v34  ;;  %v6593_v50 = vadd.f32 %v12062_v60, %v11790_v49  ;;  %v13336_v30 = vld [vmem:[#allocation47_spill] sm:$0xff] }
 0x4b7   :  { %13322 = vst [vmem:[#allocation26_spill] sm:$0xff] %v12322_v56  ;;  %7712 = vst [vmem:[%s13089_s9 + $0x180] sm:$0xff] %v7634_v8  ;;  %v7635_v3 = vmax.f32 %v6676_v7, %v7557_v6  ;;  %v7562_v32 = vmul.f32 0.01, %v6678_v22  ;;  %v6680_v16 = vadd.f32 %v6679_v11, %v6579_v18  ;;  %v9275_v7 = vld [vmem:[%s13087_s7 + $0xb24] ss:$24 sps:$4 sm:$0xff]  }
 0x4b8   :  { %v12332_v44 = vpop.f32.mrf.mxu1  ;;  %7426 = vmatpush2.bf16.msra.mxu0 %v9264_v25  ;;  %v6683_v48 = vpop.f32.mrf.mxu0  ;;  %v6589_v17 = vadd.f32 %v12054_v14, %v6488_v33  ;;  %v13333_v11 = vld [vmem:[#allocation22_spill] sm:$0xff]  ;;  %v13372_v56 = vld [vmem:[#allocation21_spill] sm:$0xff] }
 0x4b9   :  { %13323 = vst [vmem:[#allocation27_spill] sm:$0xff] %v12332_v44  ;;  %8525 = vmatpush2.bf16.msra.mxu1 %v9264_v25  ;;  %7713 = vst [vmem:[%s13089_s9 + $0x188] sm:$0xff] %v7635_v3  ;;  %v7640_v20 = vmax.f32 %v6678_v22, %v7562_v32  ;;  %v7563_v23 = vmul.f32 0.01, %v6680_v16  ;;  %7427 = vmatprep.subr.bf16.mxu0 %v9269_v12  ;;  %v6684_v52 = vadd.f32 %v6683_v48, %v6583_v27  ;;  %v9273_v22 = vld [vmem:[%s13087_s7 + $0xb20] ss:$24 sps:$4 sm:$0xff]  }
 0x4ba   :  { %8510 = vmatprep.subr.bf16.mxu1 %v9269_v12  ;;  %v12344_v51 = vpop.f32.mrf.mxu1  ;;  %7288 = vmatmul.mubr.bf16.gmra.mxu0 %v13281_v1  ;;  %v6685_v55 = vpop.f32.mrf.mxu0  ;;  %v9270_v1 = vld [vmem:[%s13087_s7 + $0xb50] ss:$24 sps:$4 sm:$0xff]   ;;  %v6595_v27 = vadd.f32 %v12072_v61, %v13333_v11 }
 0x4bb   :  { %13325 = vst [vmem:[#allocation24_spill] sm:$0xff] %v12344_v51  ;;  %7389 = vmatmul.mubr.bf16.gmra.mxu1 %v13326_v35  ;;  %7718 = vst [vmem:[%s13089_s9 + $0x1b0] sm:$0xff] %v7640_v20  ;;  %v7641_v5 = vmax.f32 %v6680_v16, %v7563_v23  ;;  %v7568_v9 = vmul.f32 0.01, %v6684_v52  ;;  %7297 = vmatprep.mubr.bf16.mxu0 %v13328_v19  ;;  %v6686_v54 = vadd.f32 %v6685_v55, %v6585_v47  ;;  %v9278_v16 = vld [vmem:[%s13087_s7 + $0xaf4] ss:$24 sps:$4 sm:$0xff]  }
 0x4bc   :  { %7398 = vmatprep.mubr.bf16.mxu1 %v13329_v42  ;;  %v12359_v2 = vpop.f32.mrf.mxu1  ;;  %7428 = vmatpush2.bf16.msra.mxu0 %v9267_v26  ;;  %v6687_v53 = vpop.f32.mrf.mxu0  ;;  %v13337_v47 = vld [vmem:[#allocation48_spill] sm:$0xff]  ;;  %v9279_v19 = vld [vmem:[%s13087_s7 + $0xac0] ss:$24 sps:$4 sm:$0xff]  }
 0x4bd   :  { %13330 = vst [vmem:[#allocation36_spill] sm:$0xff] %v12359_v2  ;;  %8526 = vmatpush2.bf16.msra.mxu1 %v9267_v26  ;;  %7719 = vst [vmem:[%s13089_s9 + $0x1b8] sm:$0xff] %v7641_v5  ;;  %v7646_v41 = vmax.f32 %v6684_v52, %v7568_v9  ;;  %v7569_v24 = vmul.f32 0.01, %v6686_v54  ;;  %7429 = vmatprep.subr.bf16.mxu0 %v9272_v43  ;;  %v6688_v13 = vadd.f32 %v6687_v53, %v6587_v59  ;;  %v13338_v20 = vld [vmem:[#allocation56_spill] sm:$0xff] }
 0x4be   :  { %8511 = vmatprep.subr.bf16.mxu1 %v9272_v43  ;;  %v12368_v21 = vpop.f32.mrf.mxu1  ;;  %v6689_v25 = vpop.f32.mrf.mxu0  ;;  %v9276_v43 = vld [vmem:[%s13087_s7 + $0xaf0] ss:$24 sps:$4 sm:$0xff]   ;;  %v9281_v59 = vld [vmem:[%s13087_s7 + $0xac4] ss:$24 sps:$4 sm:$0xff]   ;;  %v9284_v42 = vld [vmem:[%s13087_s7 + $0xa94] ss:$24 sps:$4 sm:$0xff]  }
 0x4bf   :  { %13331 = vst [vmem:[#allocation18_spill] sm:$0xff] %v12368_v21  ;;  %7724 = vst [vmem:[%s13089_s9 + $0x1e0] sm:$0xff] %v7646_v41  ;;  %v7647_v14 = vmax.f32 %v6686_v54, %v7569_v24  ;;  %v7574_v18 = vmul.f32 0.01, %v6688_v13  ;;  %v6690_v8 = vadd.f32 %v6689_v25, %v6589_v17  ;;  %v9282_v54 = vld [vmem:[%s13087_s7 + $0xa90] ss:$24 sps:$4 sm:$0xff]  }
 0x4c0   :  { %v12378_v6 = vpop.f32.mrf.mxu1  ;;  %7430 = vmatpush2.bf16.msra.mxu0 %v9270_v1  ;;  %v6693_v12 = vpop.f32.mrf.mxu0  ;;  %v13339_v24 = vld [vmem:[#allocation49_spill] sm:$0xff]  ;;  %v13342_v25 = vld [vmem:[#allocation58_spill] sm:$0xff] }
 0x4c1   :  { %13332 = vst [vmem:[#allocation37_spill] sm:$0xff] %v12378_v6  ;;  %8527 = vmatpush2.bf16.msra.mxu1 %v9270_v1  ;;  %7725 = vst [vmem:[%s13089_s9 + $0x1e8] sm:$0xff] %v7647_v14  ;;  %v7652_v49 = vmax.f32 %v6688_v13, %v7574_v18  ;;  %v7575_v60 = vmul.f32 0.01, %v6690_v8  ;;  %7431 = vmatprep.subr.bf16.mxu0 %v9275_v7  ;;  %v6694_v3 = vadd.f32 %v6693_v12, %v6593_v50  ;;  %v13340_v13 = vld [vmem:[#allocation57_spill] sm:$0xff] }
 0x4c2   :  { %8512 = vmatprep.subr.bf16.mxu1 %v9275_v7  ;;  %v12388_v32 = vpop.f32.mrf.mxu1  ;;  %7298 = vmatmul.mubr.bf16.gmra.mxu0 %v13335_v0  ;;  %v6695_v61 = vpop.f32.mrf.mxu0  ;;  %v13341_v7 = vld [vmem:[#allocation50_spill] sm:$0xff] }
 0x4c3   :  { %13334 = vst [vmem:[#allocation63_spill] sm:$0xff] %v12388_v32  ;;  %7399 = vmatmul.mubr.bf16.gmra.mxu1 %v13336_v30  ;;  %7730 = vst [vmem:[%s13089_s9 + $0x210] sm:$0xff] %v7652_v49  ;;  %v7653_v26 = vmax.f32 %v6690_v8, %v7575_v60  ;;  %v7580_v48 = vmul.f32 0.01, %v6694_v3  ;;  %7439 = vmatprep.mubr.bf16.mxu0 %v13337_v47  ;;  %v6696_v23 = vadd.f32 %v6695_v61, %v6595_v27  ;;  %v13343_v49 = vld [vmem:[#allocation51_spill] sm:$0xff] }
 0x4c4   :  { %7479 = vmatprep.mubr.bf16.mxu1 %v13338_v20  ;;  %v6798_v52 = vpop.f32.mrf.mxu1  ;;  %7432 = vmatpush2.bf16.msra.mxu0 %v9273_v22  ;;  %v6697_v33 = vpop.f32.mrf.mxu0  ;;  %v13344_v60 = vld [vmem:[#allocation59_spill] sm:$0xff] }
 0x4c5   :  { %8528 = vmatpush2.bf16.msra.mxu1 %v9273_v22  ;;  %7731 = vst [vmem:[%s13089_s9 + $0x218] sm:$0xff] %v7653_v26  ;;  %v7658_v35 = vmax.f32 %v6694_v3, %v7580_v48  ;;  %v7581_v55 = vmul.f32 0.01, %v6696_v23  ;;  %7433 = vmatprep.subr.bf16.mxu0 %v9278_v16  ;;  %v13345_v3 = vld [vmem:[#allocation52_spill] sm:$0xff]  ;;  %v13347_v52 = vld [vmem:[#allocation53_spill] sm:$0xff]  ;;  %v13349_v33 = vld [vmem:[#allocation54_spill] sm:$0xff] }
 0x4c6   :  { %8513 = vmatprep.subr.bf16.mxu1 %v9278_v16  ;;  %v6799_v34 = vpop.f32.mrf.mxu1  ;;  %v6698_v5 = vpop.f32.mrf.mxu0  ;;  %v13346_v16 = vld [vmem:[#allocation60_spill] sm:$0xff] }
 0x4c7   :  { %7736 = vst [vmem:[%s13089_s9 + $0x240] sm:$0x3] %v7658_v35  ;;  %v7659_v9 = vmax.f32 %v6696_v23, %v7581_v55 }
 0x4c8   :  { %7434 = vmatpush2.bf16.msra.mxu0 %v9276_v43 }
 0x4c9   :  { %8529 = vmatpush2.bf16.msra.mxu1 %v9276_v43  ;;  %7737 = vst [vmem:[%s13089_s9 + $0x248] sm:$0x3] %v7659_v9  ;;  %7435 = vmatprep.subr.bf16.mxu0 %v9281_v59  ;;  %v13348_v43 = vld [vmem:[#allocation61_spill] sm:$0xff] }
 0x4ca   :  { %8514 = vmatprep.subr.bf16.mxu1 %v9281_v59 }
 0x4cc   :  { %7436 = vmatpush2.bf16.msra.mxu0 %v9279_v19 }
 0x4cd   :  { %8530 = vmatpush2.bf16.msra.mxu1 %v9279_v19  ;;  %7437 = vmatprep.subr.bf16.mxu0 %v9284_v42 }
 0x4ce   :  { %8515 = vmatprep.subr.bf16.mxu1 %v9284_v42 }
 0x4d0   :  { %7438 = vmatpush2.bf16.msra.mxu0 %v9282_v54  ;;  %v12424_v1 = vpop.f32.mrf.mxu0 }
 0x4d1   :  { %8531 = vmatpush2.bf16.msra.mxu1 %v9282_v54  ;;  %v12426_v53 = vpop.f32.mrf.mxu1  ;;  %v13350_v54 = vld [vmem:[#allocation55_spill] sm:$0xff] }
 0x4d2   :  { %v12428_v17 = vpop.f32.mrf.mxu0 }
 0x4d3   :  { %v12430_v41 = vpop.f32.mrf.mxu1  ;;  %7440 = vmatmul.mubr.bf16.vlgmr.msra.gmra.mxu0 %v13339_v24 }
 0x4d4   :  { %7480 = vmatmul.mubr.bf16.vlgmr.msra.gmra.mxu1 %v13340_v13  ;;  %7449 = vmatprep.mubr.bf16.mxu0 %v13341_v7  ;;  %v12436_v50 = vpop.f32.mrf.mxu0 }
 0x4d5   :  { %7489 = vmatprep.mubr.bf16.mxu1 %v13342_v25  ;;  %v12438_v14 = vpop.f32.mrf.mxu1 }
 0x4d6   :  { %v12440_v18 = vpop.f32.mrf.mxu0 }
 0x4d7   :  { %v12442_v8 = vpop.f32.mrf.mxu1 }
 0x4d8   :  { %v12444_v22 = vpop.f32.mrf.mxu0 }
 0x4d9   :  { %v12446_v12 = vpop.f32.mrf.mxu1 }
 0x4da   :  { %v12448_v11 = vpop.f32.mrf.mxu0 }
 0x4db   :  { %v12450_v27 = vpop.f32.mrf.mxu1  ;;  %7450 = vmatmul.mubr.bf16.gmra.mxu0 %v13343_v49 }
 0x4dc   :  { %7490 = vmatmul.mubr.bf16.gmra.mxu1 %v13344_v60  ;;  %7459 = vmatprep.mubr.bf16.mxu0 %v13345_v3  ;;  %v12456_v0 = vpop.f32.mrf.mxu0 }
 0x4dd   :  { %7499 = vmatprep.mubr.bf16.mxu1 %v13346_v16  ;;  %v12458_v30 = vpop.f32.mrf.mxu1 }
 0x4de   :  { %v12460_v61 = vpop.f32.mrf.mxu0 }
 0x4df   :  { %v12462_v26 = vpop.f32.mrf.mxu1 }
 0x4e0   :  { %v12464_v48 = vpop.f32.mrf.mxu0 }
 0x4e1   :  { %v12466_v47 = vpop.f32.mrf.mxu1 }
 0x4e2   :  { %v12468_v20 = vpop.f32.mrf.mxu0 }
 0x4e3   :  { %v12470_v23 = vpop.f32.mrf.mxu1  ;;  %7460 = vmatmul.mubr.bf16.gmra.mxu0 %v13347_v52 }
 0x4e4   :  { %7500 = vmatmul.mubr.bf16.gmra.mxu1 %v13348_v43  ;;  %7469 = vmatprep.mubr.bf16.mxu0 %v13349_v33  ;;  %v12475_v35 = vpop.f32.mrf.mxu0 }
 0x4e5   :  { %v12477_v55 = vpop.f32.mrf.mxu1 }
 0x4e6   :  { %v12479_v34 = vpop.f32.mrf.mxu0 }
 0x4e7   :  { %v12481_v59 = vpop.f32.mrf.mxu1 }
 0x4e8   :  { %v12483_v5 = vpop.f32.mrf.mxu0 }
 0x4e9   :  { %v12485_v9 = vpop.f32.mrf.mxu1 }
 0x4ea   :  { %v12487_v19 = vpop.f32.mrf.mxu0 }
 0x4eb   :  { %v12489_v42 = vpop.f32.mrf.mxu1  ;;  %7470 = vmatmul.mubr.bf16.gmra.mxu0 %v13350_v54 }
 0x4ec   :  { %v12492_v24 = vpop.f32.mrf.mxu0 }
 0x4ed   :  { %v12494_v13 = vpop.f32.mrf.mxu1 }
 0x4ee   :  { %v12496_v7 = vpop.f32.mrf.mxu0 }
 0x4ef   :  { %v12498_v25 = vpop.f32.mrf.mxu1 }
 0x4f0   :  { %v12500_v49 = vpop.f32.mrf.mxu0 }
 0x4f1   :  { %v12502_v60 = vpop.f32.mrf.mxu1 }
 0x4f2   :  { %13351 = vst [vmem:[#allocation19_spill] sm:$0xff] %v12502_v60  ;;  %v12504_v3 = vpop.f32.mrf.mxu0 }
 0x4f3   :  { %13352 = vst [vmem:[#allocation38_spill] sm:$0xff] %v12504_v3  ;;  %v12506_v16 = vpop.f32.mrf.mxu1 }
 0x4f4   :  { %13353 = vst [vmem:[#allocation62_spill] sm:$0xff] %v12506_v16  ;;  %v12508_v52 = vpop.f32.mrf.mxu0 }
 0x4f5   :  { %13354 = vst [vmem:[#allocation39_spill] sm:$0xff] %v12508_v52  ;;  %v12510_v43 = vpop.f32.mrf.mxu1  ;;  %v12540_v52 = vld [vmem:[#allocation12] sm:$0x3f] }
 0x4f6   :  { %13355 = vst [vmem:[#allocation65_spill] sm:$0xff] %v12510_v43  ;;  %v12512_v33 = vpop.f32.mrf.mxu0  ;;  %13370 = vst [vmem:[#allocation68_spill] sm:$0xff] %v12540_v52 }
 0x4f7   :  { %13356 = vst [vmem:[#allocation28_spill] sm:$0xff] %v12512_v33  ;;  %v12514_v54 = vpop.f32.mrf.mxu1 }
 0x4f8   :  { %13357 = vst [vmem:[#allocation40_spill] sm:$0xff] %v12514_v54  ;;  %v12516_v32 = vpop.f32.mrf.mxu0 }
 0x4f9   :  { %13358 = vst [vmem:[#allocation64_spill] sm:$0xff] %v12516_v32  ;;  %v12518_v6 = vpop.f32.mrf.mxu1 }
 0x4fa   :  { %13359 = vst [vmem:[#allocation29_spill] sm:$0xff] %v12518_v6  ;;  %v12520_v21 = vpop.f32.mrf.mxu0 }
 0x4fb   :  { %13360 = vst [vmem:[#allocation41_spill] sm:$0xff] %v12520_v21  ;;  %v12522_v2 = vpop.f32.mrf.mxu1 }
 0x4fc   :  { %13361 = vst [vmem:[#allocation67_spill] sm:$0xff] %v12522_v2  ;;  %v12524_v51 = vpop.f32.mrf.mxu0  ;;  %v13371_v2 = vld [vmem:[#allocation20_spill] sm:$0xff] }
 0x4fd   :  { %13362 = vst [vmem:[#allocation30_spill] sm:$0xff] %v12524_v51  ;;  %v12526_v44 = vpop.f32.mrf.mxu1  ;;  %v12544_v51 = vrot.slane %v12540_v52, %v13371_v2 }
 0x4fe   :  { %13363 = vst [vmem:[#allocation42_spill] sm:$0xff] %v12526_v44  ;;  %v12528_v16 = vpop.f32.mrf.mxu0 }
 0x4ff   :  { %13364 = vst [vmem:[#allocation66_spill] sm:$0xff] %v12528_v16  ;;  %v12530_v60 = vpop.f32.mrf.mxu1 }
 0x500   :  { %13365 = vst [vmem:[#allocation31_spill] sm:$0xff] %v12530_v60  ;;  %v12532_v43 = vpop.f32.mrf.mxu0  ;;  %v12548_v60 = vrot.slane %v12540_v52, %v13372_v56 }
 0x501   :  { %13366 = vst [vmem:[#allocation43_spill] sm:$0xff] %v12532_v43  ;;  %v12534_v33 = vpop.f32.mrf.mxu1 }
 0x502   :  { %13367 = vst [vmem:[#allocation69_spill] sm:$0xff] %v12534_v33  ;;  %v12536_v54 = vpop.f32.mrf.mxu0  ;;  %v13373_v33 = vld [vmem:[#allocation23_spill] sm:$0xff] }
 0x503   :  { %13368 = vst [vmem:[#allocation32_spill] sm:$0xff] %v12536_v54  ;;  %v12538_v32 = vpop.f32.mrf.mxu1  ;;  %v6735_v43 = vadd.f32 %v13373_v33, %v12544_v51  ;;  %v13374_v54 = vld [vmem:[#allocation25_spill] sm:$0xff] }
 0x504   :  { %13369 = vst [vmem:[#allocation44_spill] sm:$0xff] %v12538_v32  ;;  %v6899_v6 = vpop.f32.mrf.mxu0  ;;  %v6737_v32 = vadd.f32 %v13374_v54, %v12548_v60 }
 0x505   :  { %v7000_v21 = vpop.f32.mrf.mxu1  ;;  %v6739_v6 = vadd.f32 %v12132_v15, %v12544_v51 }
 0x506   :  { %v6900_v44 = vpop.f32.mrf.mxu0  ;;  %v6836_v21 = vadd.f32 %v12424_v1, %v6735_v43  ;;  %v6838_v2 = vadd.f32 %v12428_v17, %v6737_v32  ;;  %v6745_v1 = vadd.f32 %v12148_v10, %v12544_v51  ;;  %v6747_v32 = vadd.f32 %v12160_v36, %v12548_v60 }
 0x507   :  { %v7001_v16 = vpop.f32.mrf.mxu1  ;;  %v6741_v44 = vadd.f32 %v12138_v63, %v12548_v60  ;;  %v6840_v56 = vadd.f32 %v12436_v50, %v6739_v6 }
 0x508   :  { %v6937_v16 = vadd.f32 %v12426_v53, %v6836_v21  ;;  %v6939_v43 = vadd.f32 %v12430_v41, %v6838_v2  ;;  %v6846_v50 = vadd.f32 %v12444_v22, %v6745_v1  ;;  %v6749_v21 = vadd.f32 %v12175_v39, %v12544_v51 }
 0x509   :  { %v6842_v52 = vadd.f32 %v12440_v18, %v6741_v44  ;;  %v6941_v53 = vadd.f32 %v12438_v14, %v6840_v56  ;;  %v6848_v2 = vadd.f32 %v12448_v11, %v6747_v32  ;;  %v6751_v14 = vadd.f32 %v12184_v37, %v12548_v60 }
 0x50a   :  { %v6850_v22 = vadd.f32 %v12456_v0, %v6749_v21  ;;  %v6947_v39 = vadd.f32 %v12446_v12, %v6846_v50  ;;  %v6755_v1 = vadd.f32 %v12194_v45, %v12544_v51 }
 0x50b   :  { %v6943_v10 = vadd.f32 %v12442_v8, %v6842_v52  ;;  %v6949_v0 = vadd.f32 %v12450_v27, %v6848_v2 }
 0x50c   :  { %v6951_v50 = vadd.f32 %v12458_v30, %v6850_v22 }
 0x511   :  { %v7037_v33 = vpop.f32.mrf.mxu0 }
 0x512   :  { %v12563_v3 = vpop.f32.mrf.mxu1  ;;  %v7038_v15 = vadd.f32 %v7037_v33, %v6937_v16 }
 0x513   :  { %v7039_v17 = vpop.f32.mrf.mxu0 }
 0x514   :  { %v12570_v63 = vpop.f32.mrf.mxu1  ;;  %v7510_v18 = vmul.f32 0.01, %v7038_v15  ;;  %v7040_v54 = vadd.f32 %v7039_v17, %v6939_v43  ;;  %v6852_v43 = vadd.f32 %v12460_v61, %v6751_v14  ;;  %v6856_v61 = vadd.f32 %v12464_v48, %v6755_v1 }
 0x515   :  { %v7041_v6 = vpop.f32.mrf.mxu0 }
 0x516   :  { %v12577_v41 = vpop.f32.mrf.mxu1  ;;  %v7588_v36 = vmax.f32 %v7038_v15, %v7510_v18  ;;  %v7511_v44 = vmul.f32 0.01, %v7040_v54  ;;  %v7042_v16 = vadd.f32 %v7041_v6, %v6941_v53  ;;  %v6757_v53 = vadd.f32 %v12206_v46, %v12548_v60 }
 0x517   :  { %v7043_v56 = vpop.f32.mrf.mxu0  ;;  %v6953_v6 = vadd.f32 %v12462_v26, %v6852_v43  ;;  %v6957_v26 = vadd.f32 %v12466_v47, %v6856_v61 }
 0x518   :  { %v12583_v33 = vpop.f32.mrf.mxu1  ;;  %7666 = vst [vmem:[%s13089_s9 + $0x10] sm:$0xff] %v7588_v36  ;;  %v7589_v8 = vmax.f32 %v7040_v54, %v7511_v44  ;;  %v7516_v52 = vmul.f32 0.01, %v7042_v16  ;;  %v7044_v11 = vadd.f32 %v7043_v56, %v6943_v10  ;;  %v6759_v10 = vadd.f32 %v12221_v58, %v12544_v51 }
 0x519   :  { %v7047_v37 = vpop.f32.mrf.mxu0  ;;  %v6858_v30 = vadd.f32 %v12468_v20, %v6757_v53  ;;  %v6769_v53 = vadd.f32 %v12267_v4, %v12544_v51 }
 0x51a   :  { %v12592_v15 = vpop.f32.mrf.mxu1  ;;  %7667 = vst [vmem:[%s13089_s9 + $0x18] sm:$0xff] %v7589_v8  ;;  %v7594_v12 = vmax.f32 %v7042_v16, %v7516_v52  ;;  %v7517_v32 = vmul.f32 0.01, %v7044_v11  ;;  %v7048_v17 = vadd.f32 %v7047_v37, %v6947_v39  ;;  %v6761_v16 = vadd.f32 %v12230_v31, %v12548_v60 }
 0x51b   :  { %v7049_v45 = vpop.f32.mrf.mxu0  ;;  %v6860_v14 = vadd.f32 %v12475_v35, %v6759_v10  ;;  %v6765_v8 = vadd.f32 %v12240_v40, %v12544_v51  ;;  %v6959_v35 = vadd.f32 %v12470_v23, %v6858_v30  ;;  %v6767_v37 = vadd.f32 %v12252_v38, %v12548_v60 }
 0x51c   :  { %v12601_v18 = vpop.f32.mrf.mxu1  ;;  %7672 = vst [vmem:[%s13089_s9 + $0x40] sm:$0xff] %v7594_v12  ;;  %v7595_v27 = vmax.f32 %v7044_v11, %v7517_v32  ;;  %v7522_v54 = vmul.f32 0.01, %v7048_v17  ;;  %v7050_v21 = vadd.f32 %v7049_v45, %v6949_v0  ;;  %v6862_v52 = vadd.f32 %v12479_v34, %v6761_v16 }
 0x51d   :  { %v7051_v46 = vpop.f32.mrf.mxu0  ;;  %v6961_v0 = vadd.f32 %v12477_v55, %v6860_v14  ;;  %v6866_v34 = vadd.f32 %v12483_v5, %v6765_v8  ;;  %v6868_v55 = vadd.f32 %v12487_v19, %v6767_v37  ;;  %v6775_v30 = vadd.f32 %v12286_v57, %v12544_v51  ;;  %v13377_v37 = vld [vmem:[#allocation39_spill] sm:$0xff] }
 0x51e   :  { %v12610_v2 = vpop.f32.mrf.mxu1  ;;  %7673 = vst [vmem:[%s13089_s9 + $0x48] sm:$0xff] %v7595_v27  ;;  %v7600_v48 = vmax.f32 %v7048_v17, %v7522_v54  ;;  %v7523_v36 = vmul.f32 0.01, %v7050_v21  ;;  %v7052_v44 = vadd.f32 %v7051_v46, %v6951_v50  ;;  %v6963_v50 = vadd.f32 %v12481_v59, %v6862_v52 }
 0x51f   :  { %v7053_v58 = vpop.f32.mrf.mxu0  ;;  %v6771_v54 = vadd.f32 %v12276_v28, %v12548_v60  ;;  %v6967_v59 = vadd.f32 %v12485_v9, %v6866_v34  ;;  %v6777_v14 = vadd.f32 %v12298_v29, %v12548_v60 }
 0x520   :  { %v12619_v22 = vpop.f32.mrf.mxu1  ;;  %7678 = vst [vmem:[%s13089_s9 + $0x70] sm:$0xff] %v7600_v48  ;;  %v7601_v20 = vmax.f32 %v7050_v21, %v7523_v36  ;;  %v7528_v56 = vmul.f32 0.01, %v7052_v44  ;;  %v7054_v39 = vadd.f32 %v7053_v58, %v6953_v6  ;;  %v6870_v21 = vadd.f32 %v12492_v24, %v6769_v53  ;;  %v13380_v53 = vld [vmem:[#allocation27_spill] sm:$0xff] }
 0x521   :  { %v7057_v31 = vpop.f32.mrf.mxu0  ;;  %v6872_v48 = vadd.f32 %v12496_v7, %v6771_v54  ;;  %v6969_v24 = vadd.f32 %v12489_v42, %v6868_v55  ;;  %v6876_v7 = vadd.f32 %v12500_v49, %v6775_v30 }
 0x522   :  { %v12628_v11 = vpop.f32.mrf.mxu1  ;;  %7679 = vst [vmem:[%s13089_s9 + $0x78] sm:$0xff] %v7601_v20  ;;  %v7606_v47 = vmax.f32 %v7052_v44, %v7528_v56  ;;  %v7529_v1 = vmul.f32 0.01, %v7054_v39  ;;  %v7058_v43 = vadd.f32 %v7057_v31, %v6957_v26  ;;  %v6971_v58 = vadd.f32 %v12494_v13, %v6870_v21  ;;  %v13375_v13 = vld [vmem:[#allocation38_spill] sm:$0xff] }
 0x523   :  { %v7059_v40 = vpop.f32.mrf.mxu0  ;;  %v6973_v8 = vadd.f32 %v12498_v25, %v6872_v48  ;;  %v6878_v31 = vadd.f32 %v13375_v13, %v6777_v14  ;;  %v13379_v25 = vld [vmem:[#allocation19_spill] sm:$0xff] }
 0x524   :  { %v12637_v12 = vpop.f32.mrf.mxu1  ;;  %7684 = vst [vmem:[%s13089_s9 + $0xa0] sm:$0xff] %v7606_v47  ;;  %v7607_v23 = vmax.f32 %v7054_v39, %v7529_v1  ;;  %v7534_v32 = vmul.f32 0.01, %v7058_v43  ;;  %v7060_v17 = vadd.f32 %v7059_v40, %v6959_v35  ;;  %v6779_v39 = vadd.f32 %v12313_v62, %v12544_v51  ;;  %v13376_v1 = vld [vmem:[#allocation26_spill] sm:$0xff] }
 0x525   :  { %v7061_v38 = vpop.f32.mrf.mxu0  ;;  %v6977_v34 = vadd.f32 %v13379_v25, %v6876_v7  ;;  %v13387_v7 = vld [vmem:[#allocation40_spill] sm:$0xff] }
 0x526   :  { %v12646_v45 = vpop.f32.mrf.mxu1  ;;  %7685 = vst [vmem:[%s13089_s9 + $0xa8] sm:$0xff] %v7607_v23  ;;  %v7612_v5 = vmax.f32 %v7058_v43, %v7534_v32  ;;  %v7535_v61 = vmul.f32 0.01, %v7060_v17  ;;  %v7062_v27 = vadd.f32 %v7061_v38, %v6961_v0  ;;  %v6781_v43 = vadd.f32 %v13376_v1, %v12548_v60  ;;  %v13381_v38 = vld [vmem:[#allocation28_spill] sm:$0xff] }
 0x527   :  { %v7063_v4 = vpop.f32.mrf.mxu0  ;;  %v6880_v0 = vadd.f32 %v13377_v37, %v6779_v39  ;;  %v13388_v39 = vld [vmem:[#allocation41_spill] sm:$0xff] }
 0x528   :  { %v12655_v10 = vpop.f32.mrf.mxu1  ;;  %7690 = vst [vmem:[%s13089_s9 + $0xd0] sm:$0xff] %v7612_v5  ;;  %v7613_v19 = vmax.f32 %v7060_v17, %v7535_v61  ;;  %v7540_v6 = vmul.f32 0.01, %v7062_v27  ;;  %v7064_v46 = vadd.f32 %v7063_v4, %v6963_v50  ;;  %v6785_v50 = vadd.f32 %v13380_v53, %v12544_v51  ;;  %v13393_v53 = vld [vmem:[#allocation66_spill] sm:$0xff] }
 0x529   :  { %v7067_v28 = vpop.f32.mrf.mxu0  ;;  %v6882_v55 = vadd.f32 %v13381_v38, %v6781_v43 }
 0x52a   :  { %v12664_v36 = vpop.f32.mrf.mxu1  ;;  %7691 = vst [vmem:[%s13089_s9 + $0xd8] sm:$0xff] %v7613_v19  ;;  %v7618_v9 = vmax.f32 %v7062_v27, %v7540_v6  ;;  %v7541_v44 = vmul.f32 0.01, %v7064_v46  ;;  %v7068_v16 = vadd.f32 %v7067_v28, %v6967_v59  ;;  %v13382_v27 = vld [vmem:[#allocation62_spill] sm:$0xff]  ;;  %v13383_v19 = vld [vmem:[#allocation24_spill] sm:$0xff] }
 0x52b   :  { %v7069_v57 = vpop.f32.mrf.mxu0  ;;  %v6979_v54 = vadd.f32 %v13382_v27, %v6878_v31  ;;  %v6787_v6 = vadd.f32 %v13383_v19, %v12548_v60 }
 0x52c   :  { %v12673_v26 = vpop.f32.mrf.mxu1  ;;  %7696 = vst [vmem:[%s13089_s9 + $0x100] sm:$0xff] %v7618_v9  ;;  %v7619_v42 = vmax.f32 %v7064_v46, %v7541_v44  ;;  %v7546_v20 = vmul.f32 0.01, %v7068_v16  ;;  %v7070_v56 = vadd.f32 %v7069_v57, %v6969_v24  ;;  %v13384_v46 = vld [vmem:[#allocation65_spill] sm:$0xff]  ;;  %v13385_v24 = vld [vmem:[#allocation64_spill] sm:$0xff] }
 0x52d   :  { %v7071_v29 = vpop.f32.mrf.mxu0  ;;  %v6981_v30 = vadd.f32 %v13384_v46, %v6880_v0  ;;  %v6886_v9 = vadd.f32 %v13385_v24, %v6785_v50  ;;  %v13391_v0 = vld [vmem:[#allocation29_spill] sm:$0xff] }
 0x52e   :  { %v12682_v52 = vpop.f32.mrf.mxu1  ;;  %7697 = vst [vmem:[%s13089_s9 + $0x108] sm:$0xff] %v7619_v42  ;;  %v7624_v49 = vmax.f32 %v7068_v16, %v7546_v20  ;;  %v7547_v35 = vmul.f32 0.01, %v7070_v56  ;;  %v7072_v47 = vadd.f32 %v7071_v29, %v6971_v58  ;;  %v13386_v58 = vld [vmem:[#allocation36_spill] sm:$0xff]  ;;  %v6983_v42 = vadd.f32 %v13387_v7, %v6882_v55 }
 0x52f   :  { %v7073_v62 = vpop.f32.mrf.mxu0  ;;  %v6789_v57 = vadd.f32 %v13386_v58, %v12544_v51 }
 0x530   :  { %v12691_v40 = vpop.f32.mrf.mxu1  ;;  %7702 = vst [vmem:[%s13089_s9 + $0x130] sm:$0xff] %v7624_v49  ;;  %v7625_v23 = vmax.f32 %v7070_v56, %v7547_v35  ;;  %v7552_v32 = vmul.f32 0.01, %v7072_v47  ;;  %v7074_v17 = vadd.f32 %v7073_v62, %v6973_v8  ;;  %v6888_v8 = vadd.f32 %v13388_v39, %v6787_v6  ;;  %v13389_v49 = vld [vmem:[#allocation18_spill] sm:$0xff] }
 0x531   :  { %13378 = vst [vmem:[#allocation45_spill] sm:$0xff] %v12691_v40  ;;  %v7077_v5 = vpop.f32.mrf.mxu0  ;;  %v6791_v35 = vadd.f32 %v13389_v49, %v12548_v60  ;;  %v6987_v62 = vadd.f32 %v13391_v0, %v6886_v9  ;;  %v13396_v6 = vld [vmem:[#allocation42_spill] sm:$0xff] }
 0x532   :  { %v12700_v61 = vpop.f32.mrf.mxu1  ;;  %7703 = vst [vmem:[%s13089_s9 + $0x138] sm:$0xff] %v7625_v23  ;;  %v7630_v21 = vmax.f32 %v7072_v47, %v7552_v32  ;;  %v7553_v4 = vmul.f32 0.01, %v7074_v17  ;;  %v7078_v59 = vadd.f32 %v7077_v5, %v6977_v34  ;;  %v13390_v47 = vld [vmem:[#allocation30_spill] sm:$0xff]  ;;  %v13392_v32 = vld [vmem:[#allocation37_spill] sm:$0xff]  ;;  %v13394_v5 = vld [vmem:[#allocation67_spill] sm:$0xff] }
 0x533   :  { %v7079_v48 = vpop.f32.mrf.mxu0  ;;  %v6890_v1 = vadd.f32 %v13390_v47, %v6789_v57  ;;  %v6892_v50 = vadd.f32 %v13393_v53, %v6791_v35  ;;  %v6989_v27 = vadd.f32 %v13394_v5, %v6888_v8 }
 0x534   :  { %v12709_v28 = vpop.f32.mrf.mxu1  ;;  %7708 = vst [vmem:[%s13089_s9 + $0x160] sm:$0xff] %v7630_v21  ;;  %v7631_v44 = vmax.f32 %v7074_v17, %v7553_v4  ;;  %v7558_v16 = vmul.f32 0.01, %v7078_v59  ;;  %v7080_v14 = vadd.f32 %v7079_v48, %v6979_v54  ;;  %v6795_v17 = vadd.f32 %v13392_v32, %v12544_v51  ;;  %v13397_v48 = vld [vmem:[#allocation43_spill] sm:$0xff] }
 0x535   :  { %v7081_v20 = vpop.f32.mrf.mxu0  ;;  %v6991_v46 = vadd.f32 %v13396_v6, %v6890_v1 }
 0x536   :  { %v12718_v56 = vpop.f32.mrf.mxu1  ;;  %7709 = vst [vmem:[%s13089_s9 + $0x168] sm:$0xff] %v7631_v44  ;;  %v7636_v29 = vmax.f32 %v7078_v59, %v7558_v16  ;;  %v7559_v13 = vmul.f32 0.01, %v7080_v14  ;;  %v7082_v31 = vadd.f32 %v7081_v20, %v6981_v30  ;;  %v13395_v59 = vld [vmem:[#allocation63_spill] sm:$0xff]  ;;  %v6896_v24 = vadd.f32 %v13397_v48, %v6795_v17  ;;  %v13402_v48 = vld [vmem:[#allocation17_spill] sm:$0xff] }
 0x537   :  { %v7083_v43 = vpop.f32.mrf.mxu0  ;;  %v6797_v19 = vadd.f32 %v13395_v59, %v12548_v60  ;;  %v13399_v60 = vld [vmem:[#allocation32_spill] sm:$0xff] }
 0x538   :  { %v12727_v37 = vpop.f32.mrf.mxu1  ;;  %7714 = vst [vmem:[%s13089_s9 + $0x190] sm:$0xff] %v7636_v29  ;;  %v7637_v25 = vmax.f32 %v7080_v14, %v7559_v13  ;;  %v7564_v34 = vmul.f32 0.01, %v7082_v31  ;;  %v7084_v23 = vadd.f32 %v7083_v43, %v6983_v42  ;;  %v13398_v14 = vld [vmem:[#allocation31_spill] sm:$0xff] }
 0x539   :  { %v7087_v38 = vpop.f32.mrf.mxu0  ;;  %v6993_v58 = vadd.f32 %v13398_v14, %v6892_v50  ;;  %v6898_v42 = vadd.f32 %v13399_v60, %v6797_v19 }
 0x53a   :  { %v12736_v55 = vpop.f32.mrf.mxu1  ;;  %7715 = vst [vmem:[%s13089_s9 + $0x198] sm:$0xff] %v7637_v25  ;;  %v7642_v54 = vmax.f32 %v7082_v31, %v7564_v34  ;;  %v7565_v21 = vmul.f32 0.01, %v7084_v23  ;;  %v7088_v4 = vadd.f32 %v7087_v38, %v6987_v62  ;;  %v13400_v31 = vld [vmem:[#allocation69_spill] sm:$0xff]  ;;  %v13401_v62 = vld [vmem:[#allocation44_spill] sm:$0xff] }
 0x53b   :  { %v7089_v51 = vpop.f32.mrf.mxu0  ;;  %v6997_v49 = vadd.f32 %v13400_v31, %v6896_v24  ;;  %v6999_v25 = vadd.f32 %v13401_v62, %v6898_v42  ;;  %v13403_v24 = vsub.s32 4, %v13402_v48 }
 0x53c   :  { %v12745_v30 = vpop.f32.mrf.mxu1  ;;  %7720 = vst [vmem:[%s13089_s9 + $0x1c0] sm:$0xff] %v7642_v54  ;;  %v7643_v9 = vmax.f32 %v7084_v23, %v7565_v21  ;;  %v7570_v44 = vmul.f32 0.01, %v7088_v4  ;;  %v7090_v16 = vadd.f32 %v7089_v51, %v6989_v27 }
 0x53d   :  { %v7091_v57 = vpop.f32.mrf.mxu0 }
 0x53e   :  { %v12752_v7 = vpop.f32.mrf.mxu1  ;;  %7721 = vst [vmem:[%s13089_s9 + $0x1c8] sm:$0xff] %v7643_v9  ;;  %v7648_v20 = vmax.f32 %v7088_v4, %v7570_v44  ;;  %v7571_v39 = vmul.f32 0.01, %v7090_v16  ;;  %v7092_v8 = vadd.f32 %v7091_v57, %v6991_v46  ;;  %v13404_v9 = vld [vmem:[#allocation68_spill] sm:$0xff] }
 0x53f   :  { %v7093_v29 = vpop.f32.mrf.mxu0  ;;  %v12791_v44 = vrot.slane %v13404_v9, %v13403_v24 }
 0x540   :  { %v12758_v13 = vpop.f32.mrf.mxu1  ;;  %7726 = vst [vmem:[%s13089_s9 + $0x1f0] sm:$0xff] %v7648_v20  ;;  %v7649_v35 = vmax.f32 %v7090_v16, %v7571_v39  ;;  %v7576_v47 = vmul.f32 0.01, %v7092_v8  ;;  %v7094_v1 = vadd.f32 %v7093_v29, %v6993_v58 }
 0x541   :  { %v7097_v43 = vpop.f32.mrf.mxu0  ;;  %v7143_v58 = vadd.f32 %v12577_v41, %v12791_v44 }
 0x542   :  { %v12764_v0 = vpop.f32.mrf.mxu1  ;;  %7727 = vst [vmem:[%s13089_s9 + $0x1f8] sm:$0xff] %v7649_v35  ;;  %v7654_v34 = vmax.f32 %v7092_v8, %v7576_v47  ;;  %v7577_v23 = vmul.f32 0.01, %v7094_v1  ;;  %v7098_v32 = vadd.f32 %v7097_v43, %v6997_v49  ;;  %v13405_v8 = vsub.s32 5, %v13402_v48 }
 0x543   :  { %v7099_v17 = vpop.f32.mrf.mxu0 }
 0x544   :  { %v12770_v53 = vpop.f32.mrf.mxu1  ;;  %7732 = vst [vmem:[%s13089_s9 + $0x220] sm:$0xff] %v7654_v34  ;;  %v7655_v50 = vmax.f32 %v7094_v1, %v7577_v23  ;;  %v7582_v38 = vmul.f32 0.01, %v7098_v32  ;;  %v7100_v5 = vadd.f32 %v7099_v17, %v6999_v25  ;;  %v12806_v29 = vrot.slane %v13404_v9, %v13405_v8 }
 0x545   :  { %v7101_v27 = vpop.f32.mrf.mxu0  ;;  %v7159_v17 = vadd.f32 %v12628_v11, %v12791_v44 }
 0x546   :  { %v7202_v54 = vpop.f32.mrf.mxu1  ;;  %7733 = vst [vmem:[%s13089_s9 + $0x228] sm:$0xff] %v7655_v50  ;;  %v7660_v21 = vmax.f32 %v7098_v32, %v7582_v38  ;;  %v7583_v4 = vmul.f32 0.01, %v7100_v5  ;;  %v7151_v41 = vadd.f32 %v12601_v18, %v12806_v29 }
 0x547   :  { %v7102_v59 = vpop.f32.mrf.mxu0 }
 0x548   :  { %v7203_v19 = vpop.f32.mrf.mxu1  ;;  %7738 = vst [vmem:[%s13089_s9 + $0x250] sm:$0x3] %v7660_v21  ;;  %v7661_v6 = vmax.f32 %v7100_v5, %v7583_v4 }
 0x54a   :  { %7739 = vst [vmem:[%s13089_s9 + $0x258] sm:$0x3] %v7661_v6 }
 0x552   :  { %v12784_v46 = vpop.f32.mrf.mxu0 }
 0x553   :  { %v12786_v51 = vpop.f32.mrf.mxu1 }
 0x554   :  { %v12793_v16 = vpop.f32.mrf.mxu0 }
 0x555   :  { %v12795_v14 = vpop.f32.mrf.mxu1 }
 0x556   :  { %v7243_v57 = vpop.f32.mrf.mxu0 }
 0x557   :  { %v7344_v60 = vpop.f32.mrf.mxu1  ;;  %v7244_v42 = vadd.f32 %v7243_v57, %v7143_v58 }
 0x558   :  { %v12799_v20 = vpop.f32.mrf.mxu0 }
 0x559   :  { %v12801_v39 = vpop.f32.mrf.mxu1  ;;  %v12808_v31 = vadd.f32 %v7344_v60, %v7244_v42 }
 0x55a   :  { %v12810_v49 = vpop.f32.mrf.mxu0 }
 0x55b   :  { %v12812_v35 = vpop.f32.mrf.mxu1 }
 0x55c   :  { %v7251_v47 = vpop.f32.mrf.mxu0 }
 0x55d   :  { %v7352_v1 = vpop.f32.mrf.mxu1  ;;  %v7252_v43 = vadd.f32 %v7251_v47, %v7151_v41 }
 0x55e   :  { %v12816_v62 = vpop.f32.mrf.mxu0 }
 0x55f   :  { %v12818_v25 = vpop.f32.mrf.mxu1  ;;  %v12820_v34 = vadd.f32 %v7352_v1, %v7252_v43 }
 0x560   :  { %v12822_v23 = vpop.f32.mrf.mxu0 }
 0x561   :  { %13406 = vst [vmem:[#allocation33_spill] sm:$0xff] %v12820_v34  ;;  %v12824_v32 = vpop.f32.mrf.mxu1  ;;  %v7139_v34 = vadd.f32 %v12563_v3, %v12791_v44  ;;  %v7179_v3 = vadd.f32 %v12700_v61, %v12791_v44 }
 0x562   :  { %v7259_v50 = vpop.f32.mrf.mxu0 }
 0x563   :  { %v7360_v38 = vpop.f32.mrf.mxu1  ;;  %v7260_v5 = vadd.f32 %v7259_v50, %v7159_v17 }
 0x564   :  { %v12828_v18 = vpop.f32.mrf.mxu0 }
 0x565   :  { %v12830_v27 = vpop.f32.mrf.mxu1  ;;  %v12832_v54 = vadd.f32 %v7360_v38, %v7260_v5 }
 0x566   :  { %v12834_v21 = vpop.f32.mrf.mxu0 }
 0x567   :  { %13407 = vst [vmem:[#allocation34_spill] sm:$0xff] %v12832_v54  ;;  %13408 = vst [vmem:[#allocation46_spill] sm:$0xff] %v12834_v21  ;;  %v12836_v4 = vpop.f32.mrf.mxu1 }
 0x568   :  { %13409 = vst [vmem:[#allocation22_spill] sm:$0xff] %v12836_v4  ;;  %v12838_v59 = vpop.f32.mrf.mxu0 }
 0x569   :  { %13410 = vst [vmem:[#allocation35_spill] sm:$0xff] %v12838_v59  ;;  %v12840_v19 = vpop.f32.mrf.mxu1 }
 0x56a   :  { %13411 = vst [vmem:[#allocation47_spill] sm:$0xff] %v12840_v19  ;;  %v12842_v6 = vpop.f32.mrf.mxu0 }
 0x56b   :  { %13412 = vst [vmem:[#allocation48_spill] sm:$0xff] %v12842_v6  ;;  %v12844_v11 = vpop.f32.mrf.mxu1 }
 0x56c   :  { %13413 = vst [vmem:[#allocation56_spill] sm:$0xff] %v12844_v11  ;;  %v12846_v48 = vpop.f32.mrf.mxu0 }
 0x56d   :  { %13414 = vst [vmem:[#allocation49_spill] sm:$0xff] %v12846_v48  ;;  %v12848_v24 = vpop.f32.mrf.mxu1 }
 0x56e   :  { %13415 = vst [vmem:[#allocation57_spill] sm:$0xff] %v12848_v24  ;;  %v12850_v9 = vpop.f32.mrf.mxu0 }
 0x56f   :  { %13416 = vst [vmem:[#allocation50_spill] sm:$0xff] %v12850_v9  ;;  %v12852_v58 = vpop.f32.mrf.mxu1 }
 0x570   :  { %13417 = vst [vmem:[#allocation58_spill] sm:$0xff] %v12852_v58  ;;  %v12854_v57 = vpop.f32.mrf.mxu0 }
 0x571   :  { %13418 = vst [vmem:[#allocation51_spill] sm:$0xff] %v12854_v57  ;;  %v12856_v60 = vpop.f32.mrf.mxu1 }
 0x572   :  { %13419 = vst [vmem:[#allocation59_spill] sm:$0xff] %v12856_v60  ;;  %v7279_v42 = vpop.f32.mrf.mxu0 }
 0x573   :  { %v7380_v8 = vpop.f32.mrf.mxu1  ;;  %v7280_v61 = vadd.f32 %v7279_v42, %v7179_v3 }
 0x574   :  { %v7281_v41 = vpop.f32.mrf.mxu0 }
 0x575   :  { %v7382_v47 = vpop.f32.mrf.mxu1 }
 0x576   :  { %v7283_v1 = vpop.f32.mrf.mxu0 }
 0x577   :  { %v12858_v43 = vpop.f32.mrf.mxu1 }
 0x578   :  { %v7285_v17 = vpop.f32.mrf.mxu0 }
 0x579   :  { %v12860_v50 = vpop.f32.mrf.mxu1 }
 0x57a   :  { %v7289_v38 = vpop.f32.mrf.mxu0 }
 0x57b   :  { %v12862_v5 = vpop.f32.mrf.mxu1 }
 0x57c   :  { %v12864_v24 = vpop.f32.mrf.mxu0 }
 0x57d   :  { %v12866_v58 = vpop.f32.mrf.mxu1 }
 0x57e   :  { %v12868_v57 = vpop.f32.mrf.mxu0 }
 0x57f   :  { %v12870_v60 = vpop.f32.mrf.mxu1 }
 0x580   :  { %13420 = vst [vmem:[#allocation52_spill] sm:$0xff] %v12870_v60  ;;  %v12872_v9 = vpop.f32.mrf.mxu0  ;;  %v7141_v60 = vadd.f32 %v12570_v63, %v12806_v29  ;;  %v12902_v63 = vadd.f32 %v12646_v45, %v12791_v44  ;;  %v7240_v45 = vadd.f32 %v12784_v46, %v7139_v34 }
 0x581   :  { %v12874_v11 = vpop.f32.mrf.mxu1 }
 0x582   :  { %13421 = vst [vmem:[#allocation60_spill] sm:$0xff] %v12874_v11  ;;  %v12876_v19 = vpop.f32.mrf.mxu0  ;;  %v7145_v11 = vadd.f32 %v12583_v33, %v12806_v29  ;;  %v12906_v33 = vadd.f32 %v12655_v10, %v12806_v29  ;;  %v7183_v10 = vadd.f32 %v12718_v56, %v12791_v44  ;;  %v7195_v56 = vadd.f32 %v12758_v13, %v12806_v29 }
 0x583   :  { %v12878_v48 = vpop.f32.mrf.mxu1 }
 0x584   :  { %13422 = vst [vmem:[#allocation53_spill] sm:$0xff] %v12878_v48  ;;  %v12880_v40 = vpop.f32.mrf.mxu0  ;;  %v7149_v48 = vadd.f32 %v12592_v15, %v12791_v44  ;;  %v12910_v15 = vadd.f32 %v12664_v36, %v12791_v44  ;;  %v7185_v36 = vadd.f32 %v12727_v37, %v12806_v29  ;;  %v7246_v46 = vadd.f32 %v12799_v20, %v7145_v11 }
 0x585   :  { %13423 = vst [vmem:[#allocation61_spill] sm:$0xff] %v12880_v40  ;;  %v12882_v54 = vpop.f32.mrf.mxu1  ;;  %v7153_v40 = vadd.f32 %v12610_v2, %v12791_v44  ;;  %v12914_v2 = vadd.f32 %v12673_v26, %v12806_v29  ;;  %v7189_v26 = vadd.f32 %v12736_v55, %v12791_v44  ;;  %v7381_v20 = vadd.f32 %v7380_v8, %v7280_v61 }
 0x586   :  { %v7303_v6 = vpop.f32.mrf.mxu0  ;;  %v7284_v13 = vadd.f32 %v7283_v1, %v7183_v10  ;;  %v7296_v10 = vadd.f32 %v12872_v9, %v7195_v56 }
 0x587   :  { %v7404_v4 = vpop.f32.mrf.mxu1  ;;  %v7250_v6 = vadd.f32 %v12810_v49, %v7149_v48  ;;  %v7254_v37 = vadd.f32 %v12816_v62, %v7153_v40  ;;  %v7290_v49 = vadd.f32 %v7289_v38, %v7189_v26  ;;  %v7347_v62 = vadd.f32 %v12801_v39, %v7246_v46 }
 0x588   :  { %v7304_v59 = vpop.f32.mrf.mxu0  ;;  %v7155_v4 = vadd.f32 %v12619_v22, %v12806_v29  ;;  %v12918_v22 = vadd.f32 %v12682_v52, %v12791_v44  ;;  %v7191_v52 = vadd.f32 %v12745_v30, %v12806_v29  ;;  %v12946_v30 = vadd.f32 %v12770_v53, %v12806_v29 }
 0x589   :  { %v7405_v21 = vpop.f32.mrf.mxu1  ;;  %v7242_v59 = vadd.f32 %v12793_v16, %v7141_v60  ;;  %v12942_v16 = vadd.f32 %v12764_v0, %v12791_v44  ;;  %v7286_v60 = vadd.f32 %v7285_v17, %v7185_v36  ;;  %v12953_v53 = vadd.f32 %v12818_v25, %v7254_v37 }
 0x58a   :  { %v7161_v21 = vadd.f32 %v12637_v12, %v12806_v29  ;;  %v7181_v12 = vadd.f32 %v12709_v28, %v12806_v29  ;;  %v7193_v28 = vadd.f32 %v12752_v7, %v12791_v44  ;;  %v7256_v55 = vadd.f32 %v12822_v23, %v7155_v4 }
 0x58b   :  { %v7341_v7 = vadd.f32 %v12786_v51, %v7240_v45  ;;  %v7343_v11 = vadd.f32 %v12795_v14, %v7242_v59  ;;  %v7351_v44 = vadd.f32 %v12812_v35, %v7250_v6  ;;  %v7385_v39 = vadd.f32 %v12858_v43, %v7284_v13 }
 0x58c   :  { %v7282_v34 = vadd.f32 %v7281_v41, %v7181_v12  ;;  %v12956_v51 = vadd.f32 %v12824_v32, %v7256_v55  ;;  %v7262_v14 = vadd.f32 %v12828_v18, %v7161_v21  ;;  %v7391_v35 = vadd.f32 %v12862_v5, %v7290_v49 }
 0x58d   :  { %v7292_v25 = vadd.f32 %v12864_v24, %v7191_v52  ;;  %v7294_v21 = vadd.f32 %v12868_v57, %v7193_v28 }
 0x58e   :  { %v7383_v23 = vadd.f32 %v7382_v47, %v7282_v34  ;;  %v7387_v47 = vadd.f32 %v12860_v50, %v7286_v60  ;;  %v12973_v57 = vadd.f32 %v12830_v27, %v7262_v14  ;;  %v13424_v27 = vld [vmem:[#allocation52_spill] sm:$0xff] }
 0x593   :  { %v7441_v48 = vpop.f32.mrf.mxu0 }
 0x594   :  { %v7481_v40 = vpop.f32.mrf.mxu1  ;;  %v7442_v42 = vadd.f32 %v7441_v48, %v7341_v7  ;;  %v7395_v7 = vadd.f32 %v13424_v27, %v7294_v21  ;;  %v13434_v27 = vld [vmem:[#allocation45_spill] sm:$0xff] }
 0x595   :  { %v7482_v0 = vadd.f32 %v7481_v40, %v7381_v20  ;;  %v7443_v8 = vpop.f32.mrf.mxu0  ;;  %v13425_v20 = vld [vmem:[#allocation60_spill] sm:$0xff] }
 0x596   :  { %v7483_v41 = vpop.f32.mrf.mxu1  ;;  %v7512_v1 = vmul.f32 0.01, %v7442_v42  ;;  %v7444_v38 = vadd.f32 %v7443_v8, %v7343_v11 }
 0x597   :  { %v7560_v17 = vmul.f32 0.01, %v7482_v0  ;;  %v7484_v4 = vadd.f32 %v7483_v41, %v7383_v23  ;;  %v7445_v3 = vpop.f32.mrf.mxu0 }
 0x598   :  { %v7485_v12 = vpop.f32.mrf.mxu1  ;;  %v7590_v32 = vmax.f32 %v7442_v42, %v7512_v1  ;;  %v7513_v61 = vmul.f32 0.01, %v7444_v38  ;;  %v7446_v36 = vadd.f32 %v7445_v3, %v12808_v31  ;;  %v7393_v31 = vadd.f32 %v12866_v58, %v7292_v25 }
 0x599   :  { %v7638_v45 = vmax.f32 %v7482_v0, %v7560_v17  ;;  %v7561_v18 = vmul.f32 0.01, %v7484_v4  ;;  %v7486_v26 = vadd.f32 %v7485_v12, %v7385_v39  ;;  %v7447_v43 = vpop.f32.mrf.mxu0  ;;  %v7397_v58 = vadd.f32 %v13425_v20, %v7296_v10  ;;  %v13426_v0 = vld [vmem:[#allocation61_spill] sm:$0xff] }
 0x59a   :  { %v7487_v59 = vpop.f32.mrf.mxu1  ;;  %7668 = vst [vmem:[%s13089_s9 + $0x20] sm:$0xff] %v7590_v32  ;;  %v7591_v24 = vmax.f32 %v7444_v38, %v7513_v61  ;;  %v7448_v5 = vadd.f32 %v7447_v43, %v7347_v62  ;;  %v7518_v9 = vmul.f32 0.01, %v7446_v36  ;;  %v7300_v42 = vadd.f32 %v12876_v19, %v12942_v16  ;;  %v13435_v20 = vld [vmem:[#allocation49_spill] sm:$0xff] }
 0x59b   :  { %7716 = vst [vmem:[%s13089_s9 + $0x1a0] sm:$0xff] %v7638_v45  ;;  %v7639_v50 = vmax.f32 %v7484_v4, %v7561_v18  ;;  %v7488_v52 = vadd.f32 %v7487_v59, %v7387_v47  ;;  %v7566_v28 = vmul.f32 0.01, %v7486_v26  ;;  %v7451_v46 = vpop.f32.mrf.mxu0  ;;  %v7302_v14 = vadd.f32 %v13426_v0, %v12946_v30  ;;  %v13428_v4 = vld [vmem:[#allocation46_spill] sm:$0xff]  ;;  %v13429_v47 = vld [vmem:[#allocation35_spill] sm:$0xff]  ;;  %v13430_v18 = vld [vmem:[#allocation53_spill] sm:$0xff] }
 0x59c   :  { %v7491_v34 = vpop.f32.mrf.mxu1  ;;  %7669 = vst [vmem:[%s13089_s9 + $0x28] sm:$0xff] %v7591_v24  ;;  %v7519_v56 = vmul.f32 0.01, %v7448_v5  ;;  %v7452_v37 = vadd.f32 %v7451_v46, %v7351_v44  ;;  %v7596_v11 = vmax.f32 %v7446_v36, %v7518_v9  ;;  %v13427_v44 = vld [vmem:[#allocation33_spill] sm:$0xff]  ;;  %v7264_v39 = vadd.f32 %v13428_v4, %v12902_v63  ;;  %v13432_v9 = vld [vmem:[#allocation48_spill] sm:$0xff] }
 0x59d   :  { %7717 = vst [vmem:[%s13089_s9 + $0x1a8] sm:$0xff] %v7639_v50  ;;  %v7567_v6 = vmul.f32 0.01, %v7488_v52  ;;  %v7492_v55 = vadd.f32 %v7491_v34, %v7391_v35  ;;  %v7644_v13 = vmax.f32 %v7486_v26, %v7566_v28  ;;  %v7453_v60 = vpop.f32.mrf.mxu0  ;;  %v7266_v35 = vadd.f32 %v13429_v47, %v12906_v33 }
 0x59e   :  { %v7493_v49 = vpop.f32.mrf.mxu1  ;;  %v7597_v48 = vmax.f32 %v7448_v5, %v7519_v56  ;;  %v7524_v62 = vmul.f32 0.01, %v7452_v37  ;;  %7674 = vst [vmem:[%s13089_s9 + $0x50] sm:$0xff] %v7596_v11  ;;  %v7454_v8 = vadd.f32 %v7453_v60, %v13427_v44  ;;  %v7401_v21 = vadd.f32 %v13430_v18, %v7300_v42  ;;  %v13442_v18 = vld [vmem:[#allocation59_spill] sm:$0xff] }
 0x59f   :  { %v7645_v40 = vmax.f32 %v7488_v52, %v7567_v6  ;;  %v7572_v23 = vmul.f32 0.01, %v7492_v55  ;;  %7722 = vst [vmem:[%s13089_s9 + $0x1d0] sm:$0xff] %v7644_v13  ;;  %v7494_v41 = vadd.f32 %v7493_v49, %v7393_v31  ;;  %v7455_v1 = vpop.f32.mrf.mxu0  ;;  %v7403_v33 = vadd.f32 %v12882_v54, %v7302_v14  ;;  %v13431_v52 = vld [vmem:[#allocation22_spill] sm:$0xff] }
 0x5a0   :  { %v7495_v17 = vpop.f32.mrf.mxu1  ;;  %7675 = vst [vmem:[%s13089_s9 + $0x58] sm:$0xff] %v7597_v48  ;;  %v7602_v19 = vmax.f32 %v7452_v37, %v7524_v62  ;;  %v7456_v30 = vadd.f32 %v7455_v1, %v12953_v53  ;;  %v7525_v25 = vmul.f32 0.01, %v7454_v8  ;;  %v7365_v31 = vadd.f32 %v13431_v52, %v7264_v39  ;;  %v13433_v54 = vld [vmem:[#allocation34_spill] sm:$0xff]  ;;  %v13436_v48 = vld [vmem:[#allocation47_spill] sm:$0xff] }
 0x5a1   :  { %7723 = vst [vmem:[%s13089_s9 + $0x1d8] sm:$0xff] %v7645_v40  ;;  %v7650_v16 = vmax.f32 %v7492_v55, %v7572_v23  ;;  %v7496_v38 = vadd.f32 %v7495_v17, %v7395_v7  ;;  %v7573_v3 = vmul.f32 0.01, %v7494_v41  ;;  %v7457_v12 = vpop.f32.mrf.mxu0  ;;  %v7270_v28 = vadd.f32 %v13432_v9, %v12910_v15  ;;  %v13437_v23 = vld [vmem:[#allocation56_spill] sm:$0xff] }
 0x5a2   :  { %v7497_v32 = vpop.f32.mrf.mxu1  ;;  %7680 = vst [vmem:[%s13089_s9 + $0x80] sm:$0xff] %v7602_v19  ;;  %v7530_v53 = vmul.f32 0.01, %v7456_v30  ;;  %v7458_v61 = vadd.f32 %v7457_v12, %v12956_v51  ;;  %v7603_v10 = vmax.f32 %v7454_v8, %v7525_v25  ;;  %v7175_v7 = vadd.f32 %v13434_v27, %v12806_v29  ;;  %v13441_v12 = vld [vmem:[#allocation58_spill] sm:$0xff] }
 0x5a3   :  { %7728 = vst [vmem:[%s13089_s9 + $0x200] sm:$0xff] %v7650_v16  ;;  %v7578_v45 = vmul.f32 0.01, %v7496_v38  ;;  %v7498_v63 = vadd.f32 %v7497_v32, %v7397_v58  ;;  %v7651_v36 = vmax.f32 %v7494_v41, %v7573_v3  ;;  %v7461_v26 = vpop.f32.mrf.mxu0  ;;  %v7272_v58 = vadd.f32 %v13435_v20, %v12914_v2  ;;  %v13438_v2 = vld [vmem:[#allocation50_spill] sm:$0xff] }
 0x5a4   :  { %v7501_v43 = vpop.f32.mrf.mxu1  ;;  %v7608_v59 = vmax.f32 %v7456_v30, %v7530_v53  ;;  %v7531_v50 = vmul.f32 0.01, %v7458_v61  ;;  %7681 = vst [vmem:[%s13089_s9 + $0x88] sm:$0xff] %v7603_v10  ;;  %v7462_v51 = vadd.f32 %v7461_v26, %v13433_v54  ;;  %v7367_v40 = vadd.f32 %v13436_v48, %v7266_v35  ;;  %v13439_v30 = vld [vmem:[#allocation57_spill] sm:$0xff] }
 0x5a5   :  { %v7656_v24 = vmax.f32 %v7496_v38, %v7578_v45  ;;  %v7579_v5 = vmul.f32 0.01, %v7498_v63  ;;  %7729 = vst [vmem:[%s13089_s9 + $0x208] sm:$0xff] %v7651_v36  ;;  %v7502_v46 = vadd.f32 %v7501_v43, %v7401_v21  ;;  %v7463_v34 = vpop.f32.mrf.mxu0  ;;  %v7371_v42 = vadd.f32 %v13437_v23, %v7270_v28 }
 0x5a6   :  { %v7503_v56 = vpop.f32.mrf.mxu1  ;;  %7686 = vst [vmem:[%s13089_s9 + $0xb0] sm:$0xff] %v7608_v59  ;;  %v7609_v15 = vmax.f32 %v7458_v61, %v7531_v50  ;;  %v7464_v37 = vadd.f32 %v7463_v34, %v12973_v57  ;;  %v7536_v11 = vmul.f32 0.01, %v7462_v51  ;;  %v7274_v0 = vadd.f32 %v13438_v2, %v12918_v22  ;;  %v13440_v22 = vld [vmem:[#allocation51_spill] sm:$0xff] }
 0x5a7   :  { %7734 = vst [vmem:[%s13089_s9 + $0x230] sm:$0xff] %v7656_v24  ;;  %v7657_v6 = vmax.f32 %v7498_v63, %v7579_v5  ;;  %v7504_v55 = vadd.f32 %v7503_v56, %v7403_v33  ;;  %v7584_v13 = vmul.f32 0.01, %v7502_v46  ;;  %v7465_v60 = vpop.f32.mrf.mxu0  ;;  %v7373_v38 = vadd.f32 %v13439_v30, %v7272_v58 }
 0x5a8   :  { %v7505_v49 = vpop.f32.mrf.mxu1  ;;  %7687 = vst [vmem:[%s13089_s9 + $0xb8] sm:$0xff] %v7609_v15  ;;  %v7537_v57 = vmul.f32 0.01, %v7464_v37  ;;  %v7466_v29 = vadd.f32 %v7465_v60, %v7365_v31  ;;  %v7614_v14 = vmax.f32 %v7462_v51, %v7536_v11  ;;  %v7276_v39 = vadd.f32 %v13440_v22, %v7175_v7 }
 0x5a9   :  { %7735 = vst [vmem:[%s13089_s9 + $0x238] sm:$0xff] %v7657_v6  ;;  %v7585_v62 = vmul.f32 0.01, %v7504_v55  ;;  %v7662_v44 = vmax.f32 %v7502_v46, %v7584_v13  ;;  %v7467_v8 = vpop.f32.mrf.mxu0  ;;  %v7375_v32 = vadd.f32 %v13441_v12, %v7274_v0 }
 0x5aa   :  { %v7506_v41 = vpop.f32.mrf.mxu1  ;;  %v7615_v1 = vmax.f32 %v7464_v37, %v7537_v57  ;;  %v7542_v19 = vmul.f32 0.01, %v7466_v29  ;;  %v7468_v16 = vadd.f32 %v7467_v8, %v7367_v40  ;;  %7692 = vst [vmem:[%s13089_s9 + $0xe0] sm:$0xff] %v7614_v14  ;;  %v7377_v21 = vadd.f32 %v13442_v18, %v7276_v39 }
 0x5ab   :  { %v7663_v17 = vmax.f32 %v7504_v55, %v7585_v62  ;;  %7740 = vst [vmem:[%s13089_s9 + $0x260] sm:$0x3] %v7662_v44  ;;  %v7471_v4 = vpop.f32.mrf.mxu0 }
 0x5ac   :  { %7693 = vst [vmem:[%s13089_s9 + $0xe8] sm:$0xff] %v7615_v1  ;;  %v7620_v47 = vmax.f32 %v7466_v29, %v7542_v19  ;;  %v7543_v35 = vmul.f32 0.01, %v7468_v16  ;;  %v7472_v25 = vadd.f32 %v7471_v4, %v7371_v42 }
 0x5ad   :  { %7741 = vst [vmem:[%s13089_s9 + $0x268] sm:$0x3] %v7663_v17  ;;  %v7473_v3 = vpop.f32.mrf.mxu0 }
 0x5ae   :  { %7698 = vst [vmem:[%s13089_s9 + $0x110] sm:$0xff] %v7620_v47  ;;  %v7621_v53 = vmax.f32 %v7468_v16, %v7543_v35  ;;  %v7548_v45 = vmul.f32 0.01, %v7472_v25  ;;  %v7474_v61 = vadd.f32 %v7473_v3, %v7373_v38 }
 0x5af   :  { %v7475_v63 = vpop.f32.mrf.mxu0 }
 0x5b0   :  { %7699 = vst [vmem:[%s13089_s9 + $0x118] sm:$0xff] %v7621_v53  ;;  %v7626_v33 = vmax.f32 %v7472_v25, %v7548_v45  ;;  %v7549_v10 = vmul.f32 0.01, %v7474_v61  ;;  %v7476_v36 = vadd.f32 %v7475_v63, %v7375_v32 }
 0x5b1   :  { %v7477_v26 = vpop.f32.mrf.mxu0 }
 0x5b2   :  { %7704 = vst [vmem:[%s13089_s9 + $0x140] sm:$0xff] %v7626_v33  ;;  %v7627_v43 = vmax.f32 %v7474_v61, %v7549_v10  ;;  %v7554_v59 = vmul.f32 0.01, %v7476_v36  ;;  %v7478_v24 = vadd.f32 %v7477_v26, %v7377_v21 }
 0x5b4   :  { %7705 = vst [vmem:[%s13089_s9 + $0x148] sm:$0xff] %v7627_v43  ;;  %v7632_v50 = vmax.f32 %v7476_v36, %v7554_v59  ;;  %v7555_v5 = vmul.f32 0.01, %v7478_v24 }
 0x5b6   :  { %7710 = vst [vmem:[%s13089_s9 + $0x170] sm:$0xff] %v7632_v50  ;;  %v7633_v52 = vmax.f32 %v7478_v24, %v7555_v5 }
 0x5b8   :  { %7711 = vst [vmem:[%s13089_s9 + $0x178] sm:$0xff] %v7633_v52 }
 0x5b9   :  { %7746 = vsyncpa [#allocation3], 1 }
 0x5ba   :  { %7747 = vsyncpa [#allocation5], 1 }
 0x5bb   :  { %7748 = vsyncpa [#allocation8], 1 }
 0x5bc   :  { %7749 = vsyncpa [#allocation11], 1 }

</bundles_post_ra>
